<compile_context>
chip_gen: v5e
topology: v5e:2x2
jax: 0.10.0
libtpu: 0.0.40
codegen_flags: <defaults>
</compile_context>

<pallas_src>
import jax
import jax.numpy as jnp
from jax.experimental import pallas as pl
from jax.experimental.pallas import tpu as pltpu


# ----------------------------- model dims -----------------------------------
C, H, W = 4, 16, 16          # small spatial (real model: 4 x 160 x 144)
DATADIM = C * H * W          # 1024
INTERDIM1 = 2500
INTERDIM2 = 150
OUTDIM = 7
BATCH = 2

# Padded / tiled layout (lane-friendly, MXU-friendly).
TK = 512                                   # K tile for fc1 streaming


def _round_up(x, m):
    return (x + m - 1) // m * m


DATADIM_PAD = _round_up(DATADIM, TK)       # 1024 (real model: 92160, already /512)
N1_PAD = _round_up(INTERDIM1, 128)         # 2560
N2_PAD = _round_up(INTERDIM2, 128)         # 256
OUT_PAD = _round_up(OUTDIM, 128)           # 128


def _pad_to(a, shape):
    pads = [(0, s - d) for d, s in zip(a.shape, shape)]
    return jnp.pad(a, pads)


# ------------------------------ kernel --------------------------------------
def mlp_kernel(x_ref, w1_ref, b1_ref, w2_ref, b2_ref, w3_ref, b3_ref,
               o_ref, acc_ref):
    # Grid axis 0 = K-tiles of fc1 (reduction).  All other operands have constant
    # block indices, so Pallas keeps them VMEM-resident across the whole grid.
    #
    # x_ref : (Bp, TK)        bf16      w1_ref: (TK, N1_PAD)     bf16
    # b1_ref: (1, N1_PAD)     f32       w2_ref: (N1_PAD, N2_PAD) bf16
    # b2_ref: (1, N2_PAD)     f32       w3_ref: (N2_PAD, OUT_PAD) bf16
    # b3_ref: (1, OUT_PAD)    f32       o_ref : (Bp, OUT_PAD)    f32
    # acc_ref: (Bp, N1_PAD)   f32 VMEM scratch (fc1 accumulator)
    k = pl.program_id(0)

    @pl.when(k == 0)
    def _init():
        acc_ref[...] = jnp.zeros_like(acc_ref)

    acc_ref[...] += jnp.dot(x_ref[...], w1_ref[...],
                            preferred_element_type=jnp.float32)

    @pl.when(k == pl.num_programs(0) - 1)
    def _finalize():
        # fc1 epilogue + fc2 + fc3 (tiny relative to the fc1 weight stream).
        h1 = jnp.tanh(acc_ref[...] + b1_ref[...])            # f32 tanh (v5e-safe)
        h2 = jnp.dot(h1.astype(jnp.bfloat16), w2_ref[...],
                     preferred_element_type=jnp.float32) + b2_ref[...]
        h2 = jnp.tanh(h2)
        out = jnp.dot(h2.astype(jnp.bfloat16), w3_ref[...],
                      preferred_element_type=jnp.float32) + b3_ref[...]
        o_ref[...] = out.astype(o_ref.dtype)


# --------------------------- one-time param prep ------------------------------
def prepare_params(params):
    """Transpose to (in, out), zero-pad to lane multiples, cast weights to bf16.

    Done ONCE (not per forward call) so the per-call path pays no extra HBM pass
    for transposes/casts.
    """
    (w1, b1), (w2, b2), (w3, b3) = params
    w1t = _pad_to(w1.T, (DATADIM_PAD, N1_PAD)).astype(jnp.bfloat16)
    w2t = _pad_to(w2.T, (INTERDIM1, N2_PAD))
    w2t = _pad_to(w2t, (N1_PAD, N2_PAD)).astype(jnp.bfloat16)
    w3t = _pad_to(w3.T, (INTERDIM2, OUT_PAD))
    w3t = _pad_to(w3t, (N2_PAD, OUT_PAD)).astype(jnp.bfloat16)
    b1r = _pad_to(b1.reshape(1, -1), (1, N1_PAD)).astype(jnp.float32)
    b2r = _pad_to(b2.reshape(1, -1), (1, N2_PAD)).astype(jnp.float32)
    b3r = _pad_to(b3.reshape(1, -1), (1, OUT_PAD)).astype(jnp.float32)
    return (w1t, b1r, w2t, b2r, w3t, b3r)


# ------------------------------ wrapper --------------------------------------
def mlp_forward(x_nchw, prepared):
    """x_nchw: (B, C, H, W) float32. Returns (B, OUTDIM) float32."""
    w1t, b1r, w2t, b2r, w3t, b3r = prepared
    B = x_nchw.shape[0]
    Bp = max(8, _round_up(B, 8))             # fill a full sublane tile

    # torch: x = x.view(x.size(0), -1)   (row-major flatten, NCHW)
    x2 = x_nchw.reshape(B, -1)
    x2 = _pad_to(x2, (Bp, DATADIM_PAD)).astype(jnp.bfloat16)

    n_k = DATADIM_PAD // TK

    out_padded = pl.pallas_call(
        mlp_kernel,
        out_shape=jax.ShapeDtypeStruct((Bp, OUT_PAD), jnp.float32),
        grid=(n_k,),
        in_specs=[
            pl.BlockSpec((Bp, TK), lambda k: (0, k)),          # x: stream K tiles
            pl.BlockSpec((TK, N1_PAD), lambda k: (k, 0)),      # w1: stream K tiles
            pl.BlockSpec((1, N1_PAD), lambda k: (0, 0)),       # b1: resident
            pl.BlockSpec((N1_PAD, N2_PAD), lambda k: (0, 0)),  # w2: resident
            pl.BlockSpec((1, N2_PAD), lambda k: (0, 0)),       # b2: resident
            pl.BlockSpec((N2_PAD, OUT_PAD), lambda k: (0, 0)),  # w3: resident
            pl.BlockSpec((1, OUT_PAD), lambda k: (0, 0)),      # b3: resident
        ],
        out_specs=pl.BlockSpec((Bp, OUT_PAD), lambda k: (0, 0)),
        scratch_shapes=[pltpu.VMEM((Bp, N1_PAD), jnp.float32)],
        compiler_params=pltpu.CompilerParams(
            dimension_semantics=("arbitrary",),       # K is a reduction axis
            vmem_limit_bytes=32 * 1024 * 1024,        # ~9 MiB actually needed; <64 MiB (v7x)
        ),
    )(x2, w1t, b1r, w2t, b2r, w3t, b3r)

    return out_padded[:B, :OUTDIM]


# --------------------------- deterministic init -------------------------------
def init_linear(key, out_features, in_features):
    # Mimic torch.nn.Linear default init: U(-1/sqrt(fan_in), 1/sqrt(fan_in))
    kw, kb = jax.random.split(key)
    bound = 1.0 / (in_features ** 0.5)
    w = jax.random.uniform(kw, (out_features, in_features), jnp.float32,
                           minval=-bound, maxval=bound)
    b = jax.random.uniform(kb, (out_features,), jnp.float32,
                           minval=-bound, maxval=bound)
    return w, b


def init_params(key):
    k1, k2, k3 = jax.random.split(key, 3)
    return (
        init_linear(k1, INTERDIM1, DATADIM),
        init_linear(k2, INTERDIM2, INTERDIM1),
        init_linear(k3, OUTDIM, INTERDIM2),
    )


def reference_forward_f32(x_nchw, params):
    (w1, b1), (w2, b2), (w3, b3) = params
    x = x_nchw.reshape(x_nchw.shape[0], -1)
    x = jnp.tanh(x @ w1.T + b1)
    x = jnp.tanh(x @ w2.T + b2)
    return x @ w3.T + b3


def reference_forward_bf16(x_nchw, params):
    # Same numerics as the kernel: bf16 MXU inputs, f32 accumulation, f32 tanh.
    (w1, b1), (w2, b2), (w3, b3) = params
    bf = jnp.bfloat16
    x = x_nchw.reshape(x_nchw.shape[0], -1).astype(bf)
    h1 = jnp.tanh(jnp.dot(x, w1.T.astype(bf), preferred_element_type=jnp.float32) + b1)
    h2 = jnp.tanh(jnp.dot(h1.astype(bf), w2.T.astype(bf),
                          preferred_element_type=jnp.float32) + b2)
    return jnp.dot(h2.astype(bf), w3.T.astype(bf),
                   preferred_element_type=jnp.float32) + b3


# -------------------------------- main ----------------------------------------
if __name__ == "__main__":
    key = jax.random.PRNGKey(0)
    kx, kp = jax.random.split(key)

    x = jax.random.normal(kx, (BATCH, C, H, W), jnp.float32)
    params = init_params(kp)
    prepared = prepare_params(params)        # one-time: transpose + pad + bf16 cast

    out = mlp_forward(x, prepared)
    out = jax.block_until_ready(out)
    assert out.shape == (BATCH, OUTDIM)

    ref_bf16 = reference_forward_bf16(x, params)
    ref_f32 = reference_forward_f32(x, params)
    assert jnp.allclose(out, ref_bf16, atol=2e-3, rtol=2e-3), "mismatch vs bf16 reference"
    assert jnp.allclose(out, ref_f32, atol=5e-2, rtol=5e-2), "mismatch vs f32 reference"

    print("KERNEL_OK")
</pallas_src>

<mosaic_0001>
module attributes {stable_mosaic.version = 11 : i64} {
  func.func @mlp_kernel(%arg0: i32, %arg1: memref<8x512xbf16, #tpu.memory_space<vmem>>, %arg2: memref<512x2560xbf16, #tpu.memory_space<vmem>>, %arg3: memref<1x2560xf32, #tpu.memory_space<vmem>>, %arg4: memref<2560x256xbf16, #tpu.memory_space<vmem>>, %arg5: memref<1x256xf32, #tpu.memory_space<vmem>>, %arg6: memref<256x128xbf16, #tpu.memory_space<vmem>>, %arg7: memref<1x128xf32, #tpu.memory_space<vmem>>, %arg8: memref<8x128xf32, #tpu.memory_space<vmem>>, %arg9: memref<8x2560xf32, #tpu.memory_space<vmem>>) attributes {dimension_semantics = [#tpu.dimension_semantics<arbitrary>], iteration_bounds = array<i64: 2>, scalar_prefetch = 0 : i64, scratch_operands = 1 : i64, tpu.core_type = #tpu.core_type<tc>, window_params = [{transform_indices = @transform_0, window_bounds = array<i64: 8, 512>}, {transform_indices = @transform_1, window_bounds = array<i64: 512, 2560>}, {pipeline_mode = #tpu.pipeline_mode<synchronous>, transform_indices = @transform_2, window_bounds = array<i64: 1, 2560>}, {pipeline_mode = #tpu.pipeline_mode<synchronous>, transform_indices = @transform_3, window_bounds = array<i64: 2560, 256>}, {pipeline_mode = #tpu.pipeline_mode<synchronous>, transform_indices = @transform_4, window_bounds = array<i64: 1, 256>}, {pipeline_mode = #tpu.pipeline_mode<synchronous>, transform_indices = @transform_5, window_bounds = array<i64: 256, 128>}, {pipeline_mode = #tpu.pipeline_mode<synchronous>, transform_indices = @transform_6, window_bounds = array<i64: 1, 128>}, {pipeline_mode = #tpu.pipeline_mode<synchronous>, transform_indices = @transform_7, window_bounds = array<i64: 8, 128>}]} {
    %c0_i32 = arith.constant 0 : i32
    %0 = arith.cmpi eq, %arg0, %c0_i32 : i32
    %1 = arith.extui %0 : i1 to i32
    %c0_i32_0 = arith.constant 0 : i32
    %2 = arith.cmpi ne, %1, %c0_i32_0 : i32
    scf.if %2 {
      %cst_9 = arith.constant 0.000000e+00 : f32
      %12 = vector.broadcast %cst_9 : f32 to vector<8x2560xf32>
      %c0_10 = arith.constant 0 : index
      %c0_11 = arith.constant 0 : index
      %13 = vector.load %arg9[%c0_10, %c0_11] : memref<8x2560xf32, #tpu.memory_space<vmem>>, vector<8x2560xf32>
      tpu.vector_store %arg9[%c0_10, %c0_11], %12 {strides = array<i32>} : memref<8x2560xf32, #tpu.memory_space<vmem>>, vector<8x2560xf32>,
    } else {
    }
    %c0 = arith.constant 0 : index
    %c0_1 = arith.constant 0 : index
    %3 = vector.load %arg9[%c0, %c0_1] : memref<8x2560xf32, #tpu.memory_space<vmem>>, vector<8x2560xf32>
    %c0_2 = arith.constant 0 : index
    %c0_3 = arith.constant 0 : index
    %4 = vector.load %arg1[%c0_2, %c0_3] : memref<8x512xbf16, #tpu.memory_space<vmem>>, vector<8x512xbf16>
    %c0_4 = arith.constant 0 : index
    %c0_5 = arith.constant 0 : index
    %5 = vector.load %arg2[%c0_4, %c0_5] : memref<512x2560xbf16, #tpu.memory_space<vmem>>, vector<512x2560xbf16>
    %cst = arith.constant dense<0.000000e+00> : vector<8x2560xf32>
    %6 = tpu.matmul %4, %5, %cst {dimension_numbers = #tpu.dot_dimension_numbers<[1], [0], [0], [1], [0, 0, 1, 1], [], []>} : vector<8x512xbf16>, vector<512x2560xbf16>, vector<8x2560xf32> -> vector<8x2560xf32>
    %7 = arith.addf %3, %6 : vector<8x2560xf32>
    %c0_6 = arith.constant 0 : index
    %c0_7 = arith.constant 0 : index
    %8 = vector.load %arg9[%c0_6, %c0_7] : memref<8x2560xf32, #tpu.memory_space<vmem>>, vector<8x2560xf32>
    tpu.vector_store %arg9[%c0_6, %c0_7], %7 {strides = array<i32>} : memref<8x2560xf32, #tpu.memory_space<vmem>>, vector<8x2560xf32>,
    %c1_i32 = arith.constant 1 : i32
    %9 = arith.cmpi eq, %arg0, %c1_i32 : i32
    %10 = arith.extui %9 : i1 to i32
    %c0_i32_8 = arith.constant 0 : i32
    %11 = arith.cmpi ne, %10, %c0_i32_8 : i32
    scf.if %11 {
      %c0_9 = arith.constant 0 : index
      %c0_10 = arith.constant 0 : index
      %12 = vector.load %arg9[%c0_9, %c0_10] : memref<8x2560xf32, #tpu.memory_space<vmem>>, vector<8x2560xf32>
      %c0_11 = arith.constant 0 : index
      %c0_12 = arith.constant 0 : index
      %13 = vector.load %arg3[%c0_11, %c0_12] : memref<1x2560xf32, #tpu.memory_space<vmem>>, vector<1x2560xf32>
      %14 = vector.broadcast %13 : vector<1x2560xf32> to vector<8x2560xf32>
      %15 = arith.addf %12, %14 : vector<8x2560xf32>
      %16 = math.tanh %15 : vector<8x2560xf32>
      %17 = arith.truncf %16 : vector<8x2560xf32> to vector<8x2560xbf16>
      %c0_13 = arith.constant 0 : index
      %c0_14 = arith.constant 0 : index
      %18 = vector.load %arg4[%c0_13, %c0_14] : memref<2560x256xbf16, #tpu.memory_space<vmem>>, vector<2560x256xbf16>
      %cst_15 = arith.constant dense<0.000000e+00> : vector<8x256xf32>
      %19 = tpu.matmul %17, %18, %cst_15 {dimension_numbers = #tpu.dot_dimension_numbers<[1], [0], [0], [1], [0, 0, 1, 1], [], []>} : vector<8x2560xbf16>, vector<2560x256xbf16>, vector<8x256xf32> -> vector<8x256xf32>
      %c0_16 = arith.constant 0 : index
      %c0_17 = arith.constant 0 : index
      %20 = vector.load %arg5[%c0_16, %c0_17] : memref<1x256xf32, #tpu.memory_space<vmem>>, vector<1x256xf32>
      %21 = vector.broadcast %20 : vector<1x256xf32> to vector<8x256xf32>
      %22 = arith.addf %19, %21 : vector<8x256xf32>
      %23 = math.tanh %22 : vector<8x256xf32>
      %24 = arith.truncf %23 : vector<8x256xf32> to vector<8x256xbf16>
      %c0_18 = arith.constant 0 : index
      %c0_19 = arith.constant 0 : index
      %25 = vector.load %arg6[%c0_18, %c0_19] : memref<256x128xbf16, #tpu.memory_space<vmem>>, vector<256x128xbf16>
      %cst_20 = arith.constant dense<0.000000e+00> : vector<8x128xf32>
      %26 = tpu.matmul %24, %25, %cst_20 {dimension_numbers = #tpu.dot_dimension_numbers<[1], [0], [0], [1], [0, 0, 1, 1], [], []>} : vector<8x256xbf16>, vector<256x128xbf16>, vector<8x128xf32> -> vector<8x128xf32>
      %c0_21 = arith.constant 0 : index
      %c0_22 = arith.constant 0 : index
      %27 = vector.load %arg7[%c0_21, %c0_22] : memref<1x128xf32, #tpu.memory_space<vmem>>, vector<1x128xf32>
      %28 = vector.broadcast %27 : vector<1x128xf32> to vector<8x128xf32>
      %29 = arith.addf %26, %28 : vector<8x128xf32>
      %c0_23 = arith.constant 0 : index
      %c0_24 = arith.constant 0 : index
      %30 = vector.load %arg8[%c0_23, %c0_24] : memref<8x128xf32, #tpu.memory_space<vmem>>, vector<8x128xf32>
      tpu.vector_store %arg8[%c0_23, %c0_24], %29 {strides = array<i32>} : memref<8x128xf32, #tpu.memory_space<vmem>>, vector<8x128xf32>,
    } else {
    }
    return
  }
  func.func @transform_0(%arg0: i32) -> (i32, i32) {
    %c0_i32 = arith.constant 0 : i32
    %c0_i32_0 = arith.constant 0 : i32
    return %c0_i32, %arg0 : i32, i32
  }
  func.func @transform_1(%arg0: i32) -> (i32, i32) {
    %c0_i32 = arith.constant 0 : i32
    %c0_i32_0 = arith.constant 0 : i32
    return %arg0, %c0_i32 : i32, i32
  }
  func.func @transform_2(%arg0: i32) -> (i32, i32) {
    %c0_i32 = arith.constant 0 : i32
    %c0_i32_0 = arith.constant 0 : i32
    %c0_i32_1 = arith.constant 0 : i32
    return %c0_i32, %c0_i32_0 : i32, i32
  }
  func.func @transform_3(%arg0: i32) -> (i32, i32) {
    %c0_i32 = arith.constant 0 : i32
    %c0_i32_0 = arith.constant 0 : i32
    %c0_i32_1 = arith.constant 0 : i32
    return %c0_i32, %c0_i32_0 : i32, i32
  }
  func.func @transform_4(%arg0: i32) -> (i32, i32) {
    %c0_i32 = arith.constant 0 : i32
    %c0_i32_0 = arith.constant 0 : i32
    %c0_i32_1 = arith.constant 0 : i32
    return %c0_i32, %c0_i32_0 : i32, i32
  }
  func.func @transform_5(%arg0: i32) -> (i32, i32) {
    %c0_i32 = arith.constant 0 : i32
    %c0_i32_0 = arith.constant 0 : i32
    %c0_i32_1 = arith.constant 0 : i32
    return %c0_i32, %c0_i32_0 : i32, i32
  }
  func.func @transform_6(%arg0: i32) -> (i32, i32) {
    %c0_i32 = arith.constant 0 : i32
    %c0_i32_0 = arith.constant 0 : i32
    %c0_i32_1 = arith.constant 0 : i32
    return %c0_i32, %c0_i32_0 : i32, i32
  }
  func.func @transform_7(%arg0: i32) -> (i32, i32) {
    %c0_i32 = arith.constant 0 : i32
    %c0_i32_0 = arith.constant 0 : i32
    %c0_i32_1 = arith.constant 0 : i32
    return %c0_i32, %c0_i32_0 : i32, i32
  }
}

</mosaic_0001>

<bundles_post_ra>
// kernel: tpu_custom_call.1
= control target key start
LH: loop header
LB: loop body
LE: loop exit
PB: predicated region body
PF: predicated region fallthrough
CT: control target
= control target key end

     0   :  { %s15338_s0 = inlined_call_operand.hbm [shape: bf16[8,1024], index: 0, kind: input, shape index: {}]   ;;  %s15339_s1 = inlined_call_operand.hbm [shape: bf16[1024,2560], index: 1, kind: input, shape index: {}]   ;;  %s15340_s2 = inlined_call_operand.hbm [shape: f32[1,2560], index: 2, kind: input, shape index: {}]   ;;  %s15341_s3 = inlined_call_operand.hbm [shape: bf16[2560,256], index: 3, kind: input, shape index: {}]   ;;  %s15342_s4 = inlined_call_operand.hbm [shape: f32[1,256], index: 4, kind: input, shape index: {}]   ;;  %s15343_s5 = inlined_call_operand.hbm [shape: bf16[256,128], index: 5, kind: input, shape index: {}]   ;;  %s15344_s6 = inlined_call_operand.hbm [shape: f32[1,128], index: 6, kind: input, shape index: {}]   ;;  %s15345_s7 = inlined_call_operand.hbm [shape: f32[8,128], index: 7, kind: output, shape index: {}]  }
   0x1   :  { %15346 = sst [smem:[#allocation22_spill]] %s15340_s2 }
   0x2   :  { %15347 = sst [smem:[#allocation23_spill]] %s15341_s3 }
   0x3   :  { %15348 = sst [smem:[#allocation24_spill]] %s15342_s4 }
   0x4   :  { %12 = vsyncpa [#allocation4], 0 }
   0x5   :  { %14 = vsyncpa [#allocation4 + $0x1], 0 }
   0x6   :  { %15 = vsyncpa [#allocation7], 0 }
   0x7   :  { %17 = vsyncpa [#allocation7 + $0x1], 0 }
   0x8   :  { %18 = vsyncpa [#allocation10], 0 }
   0x9   :  { %19 = vsyncpa [#allocation13], 0 }
   0xa   :  { %20 = vsyncpa [#allocation5], 0  ;;  %s13667_s24 = smov 0   ;;  %s13669_s25 = smov 0  }
   0xb   :  { %s13671_s26 = smov 0   ;;  %s13673_s27 = smov 0  }
   0xc LB: > { %s15349_s2 = sld [smem:[#allocation22_spill]]  ;;  %s13691_s8 = sadd.s32 4294967295, %s13612_s27   ;;  %s13612_s27 = sphi %s13673_s27, %s15359_s27   ;;  %s13608_s26 = sphi %s13671_s26, %s15358_s26   ;;  %s13604_s25 = sphi %s13669_s25, %s15357_s25   ;;  %s13600_s24 = sphi %s13667_s24, %s15356_s24  }
   0xd   : > { %p8255_p0 = scmp.ge.s32.totalorder %s13612_s27, 1  ;;  %p47_p1 = scmp.eq.s32.totalorder %s13691_s8, 0 }
   0xe   : > { %p209_p2 = scmp.lt.s32.totalorder %s13612_s27, 3  ;;  %p8256_p3 = scmp.ne.s32.totalorder %s13691_s8, 0 }
   0xf   : > { %s13614_s10 = smov [#allocation8]   ;;  %s15351_s3 = sld [smem:[#allocation23_spill]] }
  0x10   : > { %p13697_p4 = pnand %p8255_p0, %p209_p2  ;;  %s223_s11 = sshll.u32 %s13614_s10, 4  ;;  %s224_s11 = int_to_ptr.vmem [resolvable:$true] %s223_s11 }
  0x11   : > { %s13615_s16 = smov [#allocation9]   ;;  %s13616_s18 = smov 128  }
  0x12   : > { %s221_s30 = sshll.u32 %s15349_s2, 4  ;;  %p13193_p5 = pneg %p13697_p4  ;;  %s222_s30 = int_to_ptr.hbm [resolvable:$true] %s221_s30 }
  0x13   : > { %s234_s17 = sshll.u32 %s13615_s16, 4  ;;  %s13617_s19 = smov 8   ;;  %s235_s17 = int_to_ptr.vmem [resolvable:$true] %s234_s17 }
  0x14   : > { %p13708_p6 = pnand %p13193_p5, %p47_p1  ;;  %s258_s22 = sshll.u32 %s15343_s5, 4  ;;  %s259_s22 = int_to_ptr.hbm [resolvable:$true] %s258_s22 }
  0x15   : > { %s232_s14 = sshll.u32 %s15351_s3, 4  ;;  %s13618_s23 = smov [#allocation12]   ;;  %s233_s14 = int_to_ptr.hbm [resolvable:$true] %s232_s14 }
  0x16   : > { %13196 = dma.hbm_to_vmem [thread:$0]  (!%p13708_p6), %s222_s30, 320, %s224_s11, [#allocation7]  }
  0x17   : > { %13199 = dma.hbm_to_vmem [thread:$0]  (!%p13708_p6), %s233_s14, 40960, %s235_s17, [#allocation10], %s13616_s18, %s13616_s18, %s13617_s19  }
  0x18   : > { %s260_s28 = sshll.u32 %s13618_s23, 4  ;;  %s15353_s4 = sld [smem:[#allocation24_spill]]  ;;  %s261_s28 = int_to_ptr.vmem [resolvable:$true] %s260_s28 }
  0x19   : > { %s13619_s30 = smov 64   ;;  %s13620_s11 = smov 4  }
  0x1a   : > { %13205 = dma.hbm_to_vmem [thread:$0]  (!%p13708_p6), %s259_s22, 2048, %s261_s28, [#allocation13], %s13619_s30, %s13619_s30, %s13620_s11  }
  0x1b   : > { %s13621_s13 = smov [#allocation11]   ;;  %s273_s18 = sshll.u32 %s15344_s6, 4  ;;  %s274_s18 = int_to_ptr.hbm [resolvable:$true] %s273_s18 }
  0x1c   : > { %s249_s14 = sshll.u32 %s13621_s13, 4  ;;  %s13622_s19 = smov [#allocation14]   ;;  %s250_s14 = int_to_ptr.vmem [resolvable:$true] %s249_s14 }
  0x1d   : > { %s275_s20 = sshll.u32 %s13622_s19, 4  ;;  %s13732_s21 = sadd.s32 1, %s13612_s27   ;;  %s276_s20 = int_to_ptr.vmem [resolvable:$true] %s275_s20 }
  0x1e   : > { %s247_s12 = sshll.u32 %s15353_s4, 4  ;;  %s30_s22 = ssub.s32 %s13612_s27, %s13732_s21  ;;  %s248_s12 = int_to_ptr.hbm [resolvable:$true] %s247_s12 }
  0x1f   : > { %13202 = dma.hbm_to_vmem [thread:$0]  (!%p13708_p6), %s248_s12, 32, %s250_s14, [#allocation10]  }
  0x20   : > { %13208 = dma.hbm_to_vmem [thread:$0]  (!%p13708_p6), %s274_s18, 16, %s276_s20, [#allocation13]  }
  0x21   : > { %s33_s23 = sadd.s32 1, %s13608_s26  ;;  %p31_p7 = scmp.eq.s32.totalorder %s30_s22, 0 }
  0x22   : > { %p40_p8 = scmp.ne.s32.totalorder %s13608_s26, %s13604_s25  ;;  %p41_p9 = scmp.eq.s32.totalorder %s13612_s27, 0 }
  0x23   : > { %p46_p10 = scmp.ne.s32.totalorder %s13604_s25, %s13600_s24  ;;  %p13221_p13 = scmp.lt.s32.totalorder %s13612_s27, 2 }
  0x24   : > { %s13743_s28 = scalar_select %p31_p7, %s13608_s26, %s33_s23  }
  0x25   : > { %p42_p11 = por %p41_p9, %p40_p8  ;;  %p13747_p12 = por %p47_p1, %p46_p10 }
  0x26   : > { %s286_s15 = sand.u32 1, %s13608_s26   ;;  %s12185_s12 = sshll.u32 %s13612_s27, 4 }
  0x27   : > { %s8262_s10 = sshll.u32 %s286_s15, 4  ;;  %s295_s13 = scalar_lea.hbm %s15338_s0, %s12185_s12 }
  0x28   : > { %s290_s14 = scalar_lea.vmem [#allocation3], %s8262_s10  ;;  %s297_s24 = sshll.u32 %s295_s13, 4  ;;  %s298_s24 = int_to_ptr.hbm [resolvable:$true] %s297_s24 }
  0x29   : > { %s299_s16 = sshll.u32 %s290_s14, 4  ;;  %p13757_p0 = pnand %p13221_p13, %p42_p11  ;;  %s300_s16 = int_to_ptr.vmem [resolvable:$true] %s299_s16 }
  0x2a   : > { %s13162_s18 = smul.u32 5120, %s286_s15  ;;  %s306_s19 = sand.u32 1, %s13612_s27  }
  0x2b   : > { %s287_s20 = scalar_lea.sflag [#allocation4], %s286_s15  ;;  %s13470_s22 = sshra.s32 %s298_s24, 4  ;;  %s13471_s22 = int_to_ptr.hbm [resolvable:$true] %s13470_s22 }
  0x2c   : > { %s13472_s23 = scalar_lea.hbm %s13471_s22, 16  ;;  %p13474_p5 = pneg %p13757_p0 }
  0x2d   : > { %p13473_p2 = scmp.ne.s32.totalorder %s13471_s22, %s13472_s23  ;;  %s13477_s30 = scalar_lea.hbm %s15338_s0, 32 }
  0x2e   : > { %p13478_p8 = scmp.lt.s32.totalorder %s13471_s22, %s15338_s0  ;;  %p13479_p9 = scmp.lt.s32.totalorder %s13477_s30, %s13472_s23 }
  0x2f   : > { %p13475_p6 = pnand %p13474_p5, %p13473_p2 }
  0x30   : > { %p13480_p10 = por %p13479_p9, %p13478_p8 }
  0x31   : > { %p13476_p7 = pneg %p13475_p6 }
  0x33   : > { %p13481_p11 = pnand %p13480_p10, %p13476_p7 }
  0x35   : > { %13484 = shalt.err (!%p13481_p11)
}
  0x36   : > { %13212 = dma.hbm_to_vmem [thread:$0]  (!%p13757_p0), %s298_s24, 256, %s300_s16, %s287_s20  }
  0x37   : > { %s13163_s15 = smul.u32 5120, %s13612_s27  ;;  %s310_s14 = scalar_lea.vmem [#allocation6], %s13162_s18 }
  0x38   : > { %s319_s2 = sshll.u32 %s310_s14, 4  ;;  %s307_s22 = scalar_lea.sflag [#allocation7], %s306_s19  ;;  %s320_s2 = int_to_ptr.vmem [resolvable:$true] %s319_s2 }
  0x39   : > { %s316_s12 = scalar_lea.hbm %s15339_s1, %s13163_s15  ;;  %s13507_s24 = scalar_lea.hbm %s15339_s1, 10240 }
  0x3a   : > { %s317_s4 = sshll.u32 %s316_s12, 4  ;;  %s318_s4 = int_to_ptr.hbm [resolvable:$true] %s317_s4 }
  0x3b   : > { %s13500_s23 = sshra.s32 %s318_s4, 4  ;;  %s13501_s23 = int_to_ptr.hbm [resolvable:$true] %s13500_s23 }
  0x3c   : > { %s13502_s30 = scalar_lea.hbm %s13501_s23, 5120  ;;  %p13508_p7 = scmp.lt.s32.totalorder %s13501_s23, %s15339_s1 }
  0x3d   : > { %p13503_p13 = scmp.ne.s32.totalorder %s13501_s23, %s13502_s30  ;;  %p13509_p8 = scmp.lt.s32.totalorder %s13507_s24, %s13502_s30 }
  0x3f   : > { %p13505_p2 = pnand %p13503_p13, %p13474_p5  ;;  %p13510_p9 = por %p13509_p8, %p13508_p7 }
  0x41   : > { %p13506_p6 = pneg %p13505_p2 }
  0x43   : > { %p13511_p10 = pnand %p13510_p9, %p13506_p6 }
  0x45   : > { %13514 = shalt.err (!%p13511_p10)
}
  0x46   : > { %s13623_s3 = smov 1280   ;;  %s13624_s19 = smov 80  }
  0x47   : > { %13215 = dma.hbm_to_vmem [thread:$0]  (!%p13757_p0), %s318_s4, 81920, %s320_s2, %s307_s22, %s13623_s3, %s13623_s3, %s13624_s19  }
  0x48   : > { %331 = sbr.rel (%p13697_p4) target bundleno = 1507 (0x5e3), region = 48  ;;  %s333_s11 = sand.u32 (!%p13697_p4), 1, %s13604_s25  }
  0x49   : > { %s8269_s13 = sshll.u32 (!%p13697_p4), %s333_s11, 4  ;;  %s334_s15 = scalar_lea.sflag (!%p13697_p4), [#allocation4], %s333_s11 }
  0x4a   : > { %s13793_s14 = scalar_lea.vmem (!%p13697_p4), [#allocation3], %s8269_s13 }
  0x4d   : > { %13575 = dma.done.wait (%p13747_p12), %s334_s15, 256  }
  0x4e   : > { %13577 = vsyncadd (%p13747_p12), %s334_s15, 4294967040  ;;  %s343_s10 = sand.u32 1, %s13691_s8   ;;  %s13164_s17 = smul.u32 5120, %s333_s11 }
  0x4f   : > { %s344_s2 = scalar_lea.sflag [#allocation7], %s343_s10 }
  0x50   : > { %s13800_s4 = scalar_lea.vmem [#allocation6], %s13164_s17 }
  0x51   : > { %13579 = dma.done.wait (%p13747_p12), %s344_s2, 81920  }
  0x52   : > { %13581 = vsyncadd (%p13747_p12), %s344_s2, 4294885376 }
  0x53   : > { %13583 = dma.done.wait (%p47_p1), [#allocation7], 320  }
  0x54   : > { %13585 = vsyncadd (%p47_p1), [#allocation7], 4294966976 }
  0x55   : > { %13587 = dma.done.wait (%p47_p1), [#allocation10], 40992  }
  0x56   : > { %13589 = vsyncadd (%p47_p1), [#allocation10], 4294926304 }
  0x57   : > { %13591 = dma.done.wait (%p47_p1), [#allocation13], 2064  }
  0x58   : > { %13593 = vsyncadd (%p47_p1), [#allocation13], 4294965232  ;;  %409 = sbr.rel (%p8256_p3) target bundleno = 114 (0x72), region = 80 }
  0x5d   : > { %v13625_v0 = vmov 0.0  }
  0x5e   : > { %410 = vst [vmem:[#allocation2] sm:$0xff] %v13625_v0 }
  0x5f   : > { %411 = vst [vmem:[#allocation2 + $0x38] sm:$0xff] %v13625_v0 }
  0x60   : > { %412 = vst [vmem:[#allocation2 + $0x50] sm:$0xff] %v13625_v0 }
  0x61   : > { %413 = vst [vmem:[#allocation2 + $0x18] sm:$0xff] %v13625_v0 }
  0x62   : > { %414 = vst [vmem:[#allocation2 + $0x30] sm:$0xff] %v13625_v0 }
  0x63   : > { %415 = vst [vmem:[#allocation2 + $0x68] sm:$0xff] %v13625_v0 }
  0x64   : > { %416 = vst [vmem:[#allocation2 + $0x78] sm:$0xff] %v13625_v0 }
  0x65   : > { %417 = vst [vmem:[#allocation2 + $0x80] sm:$0xff] %v13625_v0 }
  0x66   : > { %418 = vst [vmem:[#allocation2 + $0x8] sm:$0xff] %v13625_v0 }
  0x67   : > { %419 = vst [vmem:[#allocation2 + $0x88] sm:$0xff] %v13625_v0 }
  0x68   : > { %420 = vst [vmem:[#allocation2 + $0x28] sm:$0xff] %v13625_v0 }
  0x69   : > { %421 = vst [vmem:[#allocation2 + $0x40] sm:$0xff] %v13625_v0 }
  0x6a   : > { %422 = vst [vmem:[#allocation2 + $0x58] sm:$0xff] %v13625_v0 }
  0x6b   : > { %423 = vst [vmem:[#allocation2 + $0x10] sm:$0xff] %v13625_v0 }
  0x6c   : > { %424 = vst [vmem:[#allocation2 + $0x98] sm:$0xff] %v13625_v0 }
  0x6d   : > { %425 = vst [vmem:[#allocation2 + $0x60] sm:$0xff] %v13625_v0 }
  0x6e   : > { %426 = vst [vmem:[#allocation2 + $0x20] sm:$0xff] %v13625_v0 }
  0x6f   : > { %427 = vst [vmem:[#allocation2 + $0x48] sm:$0xff] %v13625_v0 }
  0x70   : > { %428 = vst [vmem:[#allocation2 + $0x70] sm:$0xff] %v13625_v0 }
  0x71   : > { %429 = vst [vmem:[#allocation2 + $0x90] sm:$0xff] %v13625_v0 }
  0x72 PF: > { %v8838_v1 = vld [vmem:[%s13800_s4 + $0x460] sm:$0xf]  ;;  %v12336_v2 = vld [vmem:[%s13800_s4 + $0x4ac] sm:$0xf0]  ;;  %p10836_p1 = scmp.ne.s32.totalorder %s13691_s8, 1 }
  0x73   : > { %v9478_v3 = vld [vmem:[%s13800_s4 + $0x960] sm:$0xf]  ;;  %v8839_v4 = vor.u32 %v12336_v2, %v8838_v1  ;;  %v12496_v5 = vld [vmem:[%s13800_s4 + $0x9ac] sm:$0xf0] }
  0x74   : > { %v10118_v6 = vld [vmem:[%s13800_s4 + $0xe60] sm:$0xf]  ;;  %v12656_v7 = vld [vmem:[%s13800_s4 + $0xeac] sm:$0xf0]  ;;  %v9479_v8 = vor.u32 %v12496_v5, %v9478_v3 }
  0x75   : > { %v10119_v9 = vor.u32 %v12656_v7, %v10118_v6  ;;  %v10758_v10 = vld [vmem:[%s13800_s4 + $0x1360] sm:$0xf]  ;;  %v12816_v11 = vld [vmem:[%s13800_s4 + $0x13ac] sm:$0xf0]  ;;  %4306 = vmatpush.bf16.msra.mxu0 %v8839_v4 }
  0x76   : > { %v8758_v12 = vld [vmem:[%s13800_s4 + $0x3c0] sm:$0xf]  ;;  %v10759_v13 = vor.u32 %v12816_v11, %v10758_v10  ;;  %v12316_v14 = vld [vmem:[%s13800_s4 + $0x40c] sm:$0xf0]  ;;  %4319 = vmatpush.bf16.msra.mxu1 %v9479_v8 }
  0x77   : > { %v9398_v15 = vld [vmem:[%s13800_s4 + $0x8c0] sm:$0xf]  ;;  %v12476_v16 = vld [vmem:[%s13800_s4 + $0x90c] sm:$0xf0]  ;;  %4332 = vmatpush.bf16.msra.mxu2 %v10119_v9  ;;  %v8759_v17 = vor.u32 %v12316_v14, %v8758_v12 }
  0x78   : > { %v9399_v18 = vor.u32 %v12476_v16, %v9398_v15  ;;  %v10038_v19 = vld [vmem:[%s13800_s4 + $0xdc0] sm:$0xf]  ;;  %v12636_v20 = vld [vmem:[%s13800_s4 + $0xe0c] sm:$0xf0]  ;;  %4345 = vmatpush.bf16.msra.mxu3 %v10759_v13 }
  0x79   : > { %v10678_v21 = vld [vmem:[%s13800_s4 + $0x12c0] sm:$0xf]  ;;  %v10039_v22 = vor.u32 %v12636_v20, %v10038_v19  ;;  %v12796_v23 = vld [vmem:[%s13800_s4 + $0x130c] sm:$0xf0]  ;;  %4307 = vmatpush.bf16.msra.mxu0 %v8759_v17 }
  0x7a   : > { %v8678_v24 = vld [vmem:[%s13800_s4 + $0x320] sm:$0xf]  ;;  %v12296_v25 = vld [vmem:[%s13800_s4 + $0x36c] sm:$0xf0]  ;;  %v10679_v26 = vor.u32 %v12796_v23, %v10678_v21  ;;  %4320 = vmatpush.bf16.msra.mxu1 %v9399_v18 }
  0x7b   : > { %v9318_v27 = vld [vmem:[%s13800_s4 + $0x820] sm:$0xf]  ;;  %v12456_v28 = vld [vmem:[%s13800_s4 + $0x86c] sm:$0xf0]  ;;  %v8679_v30 = vor.u32 %v12296_v25, %v8678_v24  ;;  %4333 = vmatpush.bf16.msra.mxu2 %v10039_v22 }
  0x7c   : > { %v9958_v29 = vld [vmem:[%s13800_s4 + $0xd20] sm:$0xf]  ;;  %v12616_v31 = vld [vmem:[%s13800_s4 + $0xd6c] sm:$0xf0]  ;;  %v9319_v34 = vor.u32 %v12456_v28, %v9318_v27  ;;  %4346 = vmatpush.bf16.msra.mxu3 %v10679_v26 }
  0x7d   : > { %v10598_v32 = vld [vmem:[%s13800_s4 + $0x1220] sm:$0xf]  ;;  %v12776_v33 = vld [vmem:[%s13800_s4 + $0x126c] sm:$0xf0]  ;;  %v9959_v35 = vor.u32 %v12616_v31, %v9958_v29  ;;  %4308 = vmatpush.bf16.msra.mxu0 %v8679_v30  ;;  %v12326_v29 = vld [vmem:[%s13800_s4 + $0x464] sm:$0xf] }
  0x7e   : > { %v8598_v36 = vld [vmem:[%s13800_s4 + $0x280] sm:$0xf]  ;;  %v12276_v37 = vld [vmem:[%s13800_s4 + $0x2cc] sm:$0xf0]  ;;  %v10599_v39 = vor.u32 %v12776_v33, %v10598_v32  ;;  %4321 = vmatpush.bf16.msra.mxu1 %v9319_v34  ;;  %v8840_v30 = vld [vmem:[%s13800_s4 + $0x4b0] sm:$0xf0] }
  0x7f   : > { %v9238_v38 = vld [vmem:[%s13800_s4 + $0x780] sm:$0xf]  ;;  %v12436_v40 = vld [vmem:[%s13800_s4 + $0x7cc] sm:$0xf0]  ;;  %v8599_v45 = vor.u32 %v12276_v37, %v8598_v36  ;;  %4334 = vmatpush.bf16.msra.mxu2 %v9959_v35  ;;  %v12486_v31 = vld [vmem:[%s13800_s4 + $0x964] sm:$0xf] }
  0x80   : > { %v9878_v41 = vld [vmem:[%s13800_s4 + $0xc80] sm:$0xf]  ;;  %v12596_v42 = vld [vmem:[%s13800_s4 + $0xccc] sm:$0xf0]  ;;  %v9239_v46 = vor.u32 %v12436_v40, %v9238_v38  ;;  %4347 = vmatpush.bf16.msra.mxu3 %v10599_v39  ;;  %v9480_v33 = vld [vmem:[%s13800_s4 + $0x9b0] sm:$0xf0] }
  0x81   : > { %v10518_v43 = vld [vmem:[%s13800_s4 + $0x1180] sm:$0xf]  ;;  %v12756_v44 = vld [vmem:[%s13800_s4 + $0x11cc] sm:$0xf0]  ;;  %v9879_v47 = vor.u32 %v12596_v42, %v9878_v41  ;;  %4309 = vmatpush.bf16.msra.mxu0 %v8599_v45  ;;  %v12646_v34 = vld [vmem:[%s13800_s4 + $0xe64] sm:$0xf]  ;;  %v8843_v41 = vor.u32 %v12326_v29, %v8840_v30  ;;  %v9483_v42 = vor.u32 %v12486_v31, %v9480_v33 }
  0x82   : > { %v8518_v48 = vld [vmem:[%s13800_s4 + $0x1e0] sm:$0xf]  ;;  %v12256_v49 = vld [vmem:[%s13800_s4 + $0x22c] sm:$0xf0]  ;;  %v10519_v51 = vor.u32 %v12756_v44, %v10518_v43  ;;  %4322 = vmatpush.bf16.msra.mxu1 %v9239_v46  ;;  %v10120_v35 = vld [vmem:[%s13800_s4 + $0xeb0] sm:$0xf0] }
  0x83   : > { %v9158_v50 = vld [vmem:[%s13800_s4 + $0x6e0] sm:$0xf]  ;;  %v12416_v52 = vld [vmem:[%s13800_s4 + $0x72c] sm:$0xf0]  ;;  %v8519_v57 = vor.u32 %v12256_v49, %v8518_v48  ;;  %4335 = vmatpush.bf16.msra.mxu2 %v9879_v47  ;;  %v12806_v38 = vld [vmem:[%s13800_s4 + $0x1364] sm:$0xf]  ;;  %v10123_v43 = vor.u32 %v12646_v34, %v10120_v35 }
  0x84   : > { %v9798_v53 = vld [vmem:[%s13800_s4 + $0xbe0] sm:$0xf]  ;;  %v12576_v54 = vld [vmem:[%s13800_s4 + $0xc2c] sm:$0xf0]  ;;  %v9159_v58 = vor.u32 %v12416_v52, %v9158_v50  ;;  %4348 = vmatpush.bf16.msra.mxu3 %v10519_v51  ;;  %v10760_v39 = vld [vmem:[%s13800_s4 + $0x13b0] sm:$0xf0] }
  0x85   : > { %v10438_v55 = vld [vmem:[%s13800_s4 + $0x10e0] sm:$0xf]  ;;  %v12736_v56 = vld [vmem:[%s13800_s4 + $0x112c] sm:$0xf0]  ;;  %v9799_v59 = vor.u32 %v12576_v54, %v9798_v53  ;;  %4310 = vmatpush.bf16.msra.mxu0 %v8519_v57  ;;  %v12306_v44 = vld [vmem:[%s13800_s4 + $0x3c4] sm:$0xf]  ;;  %v10763_v47 = vor.u32 %v12806_v38, %v10760_v39 }
  0x86   : > { %v8438_v60 = vld [vmem:[%s13800_s4 + $0x140] sm:$0xf]  ;;  %v12236_v61 = vld [vmem:[%s13800_s4 + $0x18c] sm:$0xf0]  ;;  %v10439_v63 = vor.u32 %v12736_v56, %v10438_v55  ;;  %4323 = vmatpush.bf16.msra.mxu1 %v9159_v58  ;;  %v8760_v45 = vld [vmem:[%s13800_s4 + $0x410] sm:$0xf0] }
  0x87   : > { %v9078_v62 = vld [vmem:[%s13800_s4 + $0x640] sm:$0xf]  ;;  %v12396_v0 = vld [vmem:[%s13800_s4 + $0x68c] sm:$0xf0]  ;;  %v8439_v5 = vor.u32 %v12236_v61, %v8438_v60  ;;  %4336 = vmatpush.bf16.msra.mxu2 %v9799_v59  ;;  %v12466_v46 = vld [vmem:[%s13800_s4 + $0x8c4] sm:$0xf]  ;;  %v8763_v53 = vor.u32 %v12306_v44, %v8760_v45 }
  0x88   : > { %v9718_v1 = vld [vmem:[%s13800_s4 + $0xb40] sm:$0xf]  ;;  %v12556_v2 = vld [vmem:[%s13800_s4 + $0xb8c] sm:$0xf0]  ;;  %v9079_v6 = vor.u32 %v12396_v0, %v9078_v62  ;;  %4349 = vmatpush.bf16.msra.mxu3 %v10439_v63  ;;  %v9400_v48 = vld [vmem:[%s13800_s4 + $0x910] sm:$0xf0] }
  0x89   : > { %v10358_v3 = vld [vmem:[%s13800_s4 + $0x1040] sm:$0xf]  ;;  %v12716_v4 = vld [vmem:[%s13800_s4 + $0x108c] sm:$0xf0]  ;;  %v9719_v7 = vor.u32 %v12556_v2, %v9718_v1  ;;  %4311 = vmatpush.bf16.msra.mxu0 %v8439_v5  ;;  %v12626_v49 = vld [vmem:[%s13800_s4 + $0xdc4] sm:$0xf]  ;;  %v9403_v54 = vor.u32 %v12466_v46, %v9400_v48 }
  0x8a   : > { %v8358_v8 = vld [vmem:[%s13800_s4 + $0xa0] sm:$0xf]  ;;  %v12216_v9 = vld [vmem:[%s13800_s4 + $0xec] sm:$0xf0]  ;;  %v10359_v11 = vor.u32 %v12716_v4, %v10358_v3  ;;  %4324 = vmatpush.bf16.msra.mxu1 %v9079_v6  ;;  %v10040_v50 = vld [vmem:[%s13800_s4 + $0xe10] sm:$0xf0] }
  0x8b   : > { %v8998_v10 = vld [vmem:[%s13800_s4 + $0x5a0] sm:$0xf]  ;;  %v12376_v12 = vld [vmem:[%s13800_s4 + $0x5ec] sm:$0xf0]  ;;  %v8359_v17 = vor.u32 %v12216_v9, %v8358_v8  ;;  %4337 = vmatpush.bf16.msra.mxu2 %v9719_v7  ;;  %v12786_v51 = vld [vmem:[%s13800_s4 + $0x12c4] sm:$0xf]  ;;  %v10043_v55 = vor.u32 %v12626_v49, %v10040_v50 }
  0x8c   : > { %v9638_v13 = vld [vmem:[%s13800_s4 + $0xaa0] sm:$0xf]  ;;  %v12536_v14 = vld [vmem:[%s13800_s4 + $0xaec] sm:$0xf0]  ;;  %v8999_v20 = vor.u32 %v12376_v12, %v8998_v10  ;;  %4350 = vmatpush.bf16.msra.mxu3 %v10359_v11  ;;  %v10680_v52 = vld [vmem:[%s13800_s4 + $0x1310] sm:$0xf0] }
  0x8d   : > { %v10278_v15 = vld [vmem:[%s13800_s4 + $0xfa0] sm:$0xf]  ;;  %v12696_v16 = vld [vmem:[%s13800_s4 + $0xfec] sm:$0xf0]  ;;  %v9639_v21 = vor.u32 %v12536_v14, %v9638_v13  ;;  %4312 = vmatpush.bf16.msra.mxu0 %v8359_v17  ;;  %v12286_v56 = vld [vmem:[%s13800_s4 + $0x324] sm:$0xf]  ;;  %v10683_v59 = vor.u32 %v12786_v51, %v10680_v52 }
  0x8e   : > { %v8278_v18 = vld [vmem:[%s13800_s4] sm:$0xf]  ;;  %v12196_v19 = vld [vmem:[%s13800_s4 + $0x4c] sm:$0xf0]  ;;  %v10279_v25 = vor.u32 %v12696_v16, %v10278_v15  ;;  %4325 = vmatpush.bf16.msra.mxu1 %v8999_v20  ;;  %v8680_v57 = vld [vmem:[%s13800_s4 + $0x370] sm:$0xf0] }
  0x8f   : > { %v8918_v22 = vld [vmem:[%s13800_s4 + $0x500] sm:$0xf]  ;;  %v12356_v23 = vld [vmem:[%s13800_s4 + $0x54c] sm:$0xf0]  ;;  %v8279_v32 = vor.u32 %v12196_v19, %v8278_v18  ;;  %4338 = vmatpush.bf16.msra.mxu2 %v9639_v21  ;;  %v12446_v58 = vld [vmem:[%s13800_s4 + $0x824] sm:$0xf]  ;;  %v8683_v1 = vor.u32 %v12286_v56, %v8680_v57 }
  0x90   : > { %v9558_v24 = vld [vmem:[%s13800_s4 + $0xa00] sm:$0xf]  ;;  %v12516_v26 = vld [vmem:[%s13800_s4 + $0xa4c] sm:$0xf0]  ;;  %v8919_v36 = vor.u32 %v12356_v23, %v8918_v22  ;;  %4351 = vmatpush.bf16.msra.mxu3 %v10279_v25  ;;  %v9320_v60 = vld [vmem:[%s13800_s4 + $0x870] sm:$0xf0] }
  0x91   : > { %v10198_v27 = vld [vmem:[%s13800_s4 + $0xf00] sm:$0xf]  ;;  %v12676_v28 = vld [vmem:[%s13800_s4 + $0xf4c] sm:$0xf0]  ;;  %v9559_v37 = vor.u32 %v12516_v26, %v9558_v24  ;;  %4313 = vmatpush.bf16.msra.mxu0 %v8279_v32  ;;  %v12606_v61 = vld [vmem:[%s13800_s4 + $0xd24] sm:$0xf]  ;;  %v9323_v3 = vor.u32 %v12446_v58, %v9320_v60 }
  0x92   : > { %v10199_v40 = vor.u32 %v12676_v28, %v10198_v27  ;;  %4326 = vmatpush.bf16.msra.mxu1 %v8919_v36  ;;  %v9960_v62 = vld [vmem:[%s13800_s4 + $0xd70] sm:$0xf0]  ;;  %v12766_v63 = vld [vmem:[%s13800_s4 + $0x1224] sm:$0xf]  ;;  %v451_v2 = vld [vmem:[%s13793_s14 + $0x8] sm:$0xff] }
  0x93   : > { %4339 = vmatpush.bf16.msra.mxu2 %v9559_v37  ;;  %v10600_v0 = vld [vmem:[%s13800_s4 + $0x1270] sm:$0xf0]  ;;  %v9963_v4 = vor.u32 %v12606_v61, %v9960_v62  ;;  %v12266_v5 = vld [vmem:[%s13800_s4 + $0x284] sm:$0xf]  ;;  %v1096_v8 = vunpack.c.l.b16 %v451_v2  ;;  %v1097_v9 = vunpack.c.h.b16 %v451_v2 }
  0x94   : > { %4352 = vmatpush.bf16.msra.mxu3 %v10199_v40  ;;  %v8600_v6 = vld [vmem:[%s13800_s4 + $0x2d0] sm:$0xf0]  ;;  %v12426_v7 = vld [vmem:[%s13800_s4 + $0x784] sm:$0xf]  ;;  %v10603_v10 = vor.u32 %v12766_v63, %v10600_v0 }
  0x95   : > { %4358 = vmatpush.bf16.msrb.mxu0 %v8843_v41  ;;  %v9240_v11 = vld [vmem:[%s13800_s4 + $0x7d0] sm:$0xf0]  ;;  %v12586_v12 = vld [vmem:[%s13800_s4 + $0xc84] sm:$0xf]  ;;  %v13917_v16 = vpack.c.b16 %v1096_v8, %v1096_v8  ;;  %v13919_v17 = vpack.c.b16 %v1097_v9, %v1097_v9  ;;  %v8603_v19 = vor.u32 %v12266_v5, %v8600_v6  ;;  %v12337_v8 = vld [vmem:[%s13800_s4 + $0x4b4] sm:$0xf0] }
  0x96   : > { %4371 = vmatpush.bf16.msrb.mxu1 %v9483_v42  ;;  %v9880_v13 = vld [vmem:[%s13800_s4 + $0xcd0] sm:$0xf0]  ;;  %v12746_v14 = vld [vmem:[%s13800_s4 + $0x1184] sm:$0xf]  ;;  %v9243_v22 = vor.u32 %v12426_v7, %v9240_v11  ;;  %v8846_v7 = vld [vmem:[%s13800_s4 + $0x468] sm:$0xf] }
  0x97   : > { %4384 = vmatpush.bf16.msrb.mxu2 %v10123_v43  ;;  %v10520_v15 = vld [vmem:[%s13800_s4 + $0x11d0] sm:$0xf0]  ;;  %v9883_v23 = vor.u32 %v12586_v12, %v9880_v13  ;;  %v12246_v24 = vld [vmem:[%s13800_s4 + $0x1e4] sm:$0xf]  ;;  %4353 = vmatmul.bf16.vlgmr.msra.gmra.mxu3 %v13919_v17  ;;  %v9486_v9 = vld [vmem:[%s13800_s4 + $0x968] sm:$0xf] }
  0x98   : > { %4397 = vmatpush.bf16.msrb.mxu3 %v10763_v47  ;;  %v450_v18 = vld [vmem:[%s13793_s14] sm:$0xff]  ;;  %v10523_v27 = vor.u32 %v12746_v14, %v10520_v15  ;;  %4340 = vmatmul.bf16.vlgmr.msra.gmra.mxu2 %v13917_v16  ;;  %v12497_v11 = vld [vmem:[%s13800_s4 + $0x9b4] sm:$0xf0]  ;;  %v10126_v12 = vld [vmem:[%s13800_s4 + $0xe68] sm:$0xf] }
  0x99   : > { %4359 = vmatpush.bf16.msrb.mxu0 %v8763_v53  ;;  %v1094_v20 = vunpack.c.l.b16 %v450_v18  ;;  %v1095_v21 = vunpack.c.h.b16 %v450_v18  ;;  %v8520_v25 = vld [vmem:[%s13800_s4 + $0x230] sm:$0xf0]  ;;  %v12406_v26 = vld [vmem:[%s13800_s4 + $0x6e4] sm:$0xf]  ;;  %v12657_v13 = vld [vmem:[%s13800_s4 + $0xeb4] sm:$0xf0] }
  0x9a   : > { %4372 = vmatpush.bf16.msrb.mxu1 %v9403_v54  ;;  %v9160_v28 = vld [vmem:[%s13800_s4 + $0x730] sm:$0xf0]  ;;  %v12566_v29 = vld [vmem:[%s13800_s4 + $0xbe4] sm:$0xf]  ;;  %v8523_v35 = vor.u32 %v12246_v24, %v8520_v25  ;;  %v10766_v18 = vld [vmem:[%s13800_s4 + $0x1368] sm:$0xf] }
  0x9b   : > { %4385 = vmatpush.bf16.msrb.mxu2 %v10043_v55  ;;  %v9800_v30 = vld [vmem:[%s13800_s4 + $0xc30] sm:$0xf0]  ;;  %v13929_v31 = vpack.c.b16 %v1094_v20, %v1094_v20  ;;  %v13931_v32 = vpack.c.b16 %v1095_v21, %v1095_v21  ;;  %v12726_v33 = vld [vmem:[%s13800_s4 + $0x10e4] sm:$0xf]  ;;  %v9163_v36 = vor.u32 %v12406_v26, %v9160_v28  ;;  %v8847_v21 = vor.u32 %v12337_v8, %v8846_v7  ;;  %v8766_v24 = vld [vmem:[%s13800_s4 + $0x3c8] sm:$0xf] }
  0x9c   : > { %4398 = vmatpush.bf16.msrb.mxu3 %v10683_v59  ;;  %v10440_v34 = vld [vmem:[%s13800_s4 + $0x1130] sm:$0xf0]  ;;  %v9803_v37 = vor.u32 %v12566_v29, %v9800_v30  ;;  %v12226_v38 = vld [vmem:[%s13800_s4 + $0x144] sm:$0xf]  ;;  %v12317_v25 = vld [vmem:[%s13800_s4 + $0x414] sm:$0xf0] }
  0x9d   : > { %4360 = vmatpush.bf16.msrb.mxu0 %v8683_v1  ;;  %4327 = vmatmul.bf16.vlgmr.msra.gmra.mxu1 %v13931_v32  ;;  %v8440_v39 = vld [vmem:[%s13800_s4 + $0x190] sm:$0xf0]  ;;  %v12386_v40 = vld [vmem:[%s13800_s4 + $0x644] sm:$0xf]  ;;  %v10443_v41 = vor.u32 %v12726_v33, %v10440_v34  ;;  %v9406_v26 = vld [vmem:[%s13800_s4 + $0x8c8] sm:$0xf] }
  0x9e   : > { %4373 = vmatpush.bf16.msrb.mxu1 %v9323_v3  ;;  %v9080_v42 = vld [vmem:[%s13800_s4 + $0x690] sm:$0xf0]  ;;  %v12546_v43 = vld [vmem:[%s13800_s4 + $0xb44] sm:$0xf]  ;;  %4314 = vmatmul.bf16.vlgmr.msra.gmra.mxu0 %v13929_v31  ;;  %v8443_v47 = vor.u32 %v12226_v38, %v8440_v39  ;;  %v12477_v28 = vld [vmem:[%s13800_s4 + $0x914] sm:$0xf0] }
  0x9f   : > { %4386 = vmatpush.bf16.msrb.mxu2 %v9963_v4  ;;  %v9720_v44 = vld [vmem:[%s13800_s4 + $0xb90] sm:$0xf0]  ;;  %v12706_v45 = vld [vmem:[%s13800_s4 + $0x1044] sm:$0xf]  ;;  %v9083_v48 = vor.u32 %v12386_v40, %v9080_v42  ;;  %v10046_v29 = vld [vmem:[%s13800_s4 + $0xdc8] sm:$0xf] }
  0xa0   : > { %4399 = vmatpush.bf16.msrb.mxu3 %v10603_v10  ;;  %v10360_v46 = vld [vmem:[%s13800_s4 + $0x1090] sm:$0xf0]  ;;  %v9723_v49 = vor.u32 %v12546_v43, %v9720_v44  ;;  %v12206_v50 = vld [vmem:[%s13800_s4 + $0xa4] sm:$0xf]  ;;  %v12637_v30 = vld [vmem:[%s13800_s4 + $0xe14] sm:$0xf0] }
  0xa1   : > { %4361 = vmatpush.bf16.msrb.mxu0 %v8603_v19  ;;  %v8360_v51 = vld [vmem:[%s13800_s4 + $0xf0] sm:$0xf0]  ;;  %v12366_v52 = vld [vmem:[%s13800_s4 + $0x5a4] sm:$0xf]  ;;  %v10363_v53 = vor.u32 %v12706_v45, %v10360_v46  ;;  %v12817_v19 = vld [vmem:[%s13800_s4 + $0x13b4] sm:$0xf0] }
  0xa2   : > { %4374 = vmatpush.bf16.msrb.mxu1 %v9243_v22  ;;  %v9000_v54 = vld [vmem:[%s13800_s4 + $0x5f0] sm:$0xf0]  ;;  %v12526_v55 = vld [vmem:[%s13800_s4 + $0xaa4] sm:$0xf]  ;;  %v8363_v59 = vor.u32 %v12206_v50, %v8360_v51  ;;  %v9487_v22 = vor.u32 %v12497_v11, %v9486_v9  ;;  %v10686_v33 = vld [vmem:[%s13800_s4 + $0x12c8] sm:$0xf] }
  0xa3   : > { %4387 = vmatpush.bf16.msrb.mxu2 %v9883_v23  ;;  %v9640_v56 = vld [vmem:[%s13800_s4 + $0xaf0] sm:$0xf0]  ;;  %v12686_v57 = vld [vmem:[%s13800_s4 + $0xfa4] sm:$0xf]  ;;  %v9003_v62 = vor.u32 %v12366_v52, %v9000_v54  ;;  %v10127_v23 = vor.u32 %v12657_v13, %v10126_v12  ;;  %v12797_v34 = vld [vmem:[%s13800_s4 + $0x1314] sm:$0xf0] }
  0xa4   : > { %4400 = vmatpush.bf16.msrb.mxu3 %v10523_v27  ;;  %v10280_v58 = vld [vmem:[%s13800_s4 + $0xff0] sm:$0xf0]  ;;  %v12186_v60 = vld [vmem:[%s13800_s4 + $0x4] sm:$0xf]  ;;  %v9643_v63 = vor.u32 %v12526_v55, %v9640_v56  ;;  %v10767_v27 = vor.u32 %v12817_v19, %v10766_v18  ;;  %v8686_v38 = vld [vmem:[%s13800_s4 + $0x328] sm:$0xf] }
  0xa5   : > { %4362 = vmatpush.bf16.msrb.mxu0 %v8523_v35  ;;  %v8280_v61 = vld [vmem:[%s13800_s4 + $0x50] sm:$0xf0]  ;;  %v12346_v0 = vld [vmem:[%s13800_s4 + $0x504] sm:$0xf]  ;;  %v10283_v3 = vor.u32 %v12686_v57, %v10280_v58  ;;  %v8767_v35 = vor.u32 %v12317_v25, %v8766_v24  ;;  %v12297_v39 = vld [vmem:[%s13800_s4 + $0x374] sm:$0xf0] }
  0xa6   : > { %4375 = vmatpush.bf16.msrb.mxu1 %v9163_v36  ;;  %v8920_v1 = vld [vmem:[%s13800_s4 + $0x550] sm:$0xf0]  ;;  %v12506_v2 = vld [vmem:[%s13800_s4 + $0xa04] sm:$0xf]  ;;  %v8283_v10 = vor.u32 %v12186_v60, %v8280_v61  ;;  %v9407_v36 = vor.u32 %v12477_v28, %v9406_v26  ;;  %v9326_v40 = vld [vmem:[%s13800_s4 + $0x828] sm:$0xf] }
  0xa7   : > { %4388 = vmatpush.bf16.msrb.mxu2 %v9803_v37  ;;  %v9560_v4 = vld [vmem:[%s13800_s4 + $0xa50] sm:$0xf0]  ;;  %v12666_v5 = vld [vmem:[%s13800_s4 + $0xf04] sm:$0xf]  ;;  %v8923_v14 = vor.u32 %v12346_v0, %v8920_v1  ;;  %v10047_v37 = vor.u32 %v12637_v30, %v10046_v29  ;;  %v12457_v42 = vld [vmem:[%s13800_s4 + $0x874] sm:$0xf0] }
  0xa8   : > { %4401 = vmatpush.bf16.msrb.mxu3 %v10443_v41  ;;  %v10200_v6 = vld [vmem:[%s13800_s4 + $0xf50] sm:$0xf0]  ;;  %v9563_v15 = vor.u32 %v12506_v2, %v9560_v4  ;;  %v10687_v41 = vor.u32 %v12797_v34, %v10686_v33  ;;  %v9966_v43 = vld [vmem:[%s13800_s4 + $0xd28] sm:$0xf]  ;;  %v12617_v44 = vld [vmem:[%s13800_s4 + $0xd74] sm:$0xf0] }
  0xa9   : > { %4363 = vmatpush.bf16.msrb.mxu0 %v8443_v47  ;;  %v10203_v20 = vor.u32 %v12666_v5, %v10200_v6  ;;  %v10606_v45 = vld [vmem:[%s13800_s4 + $0x1228] sm:$0xf]  ;;  %v12777_v46 = vld [vmem:[%s13800_s4 + $0x1274] sm:$0xf0]  ;;  %v8687_v47 = vor.u32 %v12297_v39, %v8686_v38 }
  0xaa   : > { %4376 = vmatpush.bf16.msrb.mxu1 %v9083_v48  ;;  %v9327_v48 = vor.u32 %v12457_v42, %v9326_v40  ;;  %v8606_v50 = vld [vmem:[%s13800_s4 + $0x288] sm:$0xf]  ;;  %v12277_v51 = vld [vmem:[%s13800_s4 + $0x2d4] sm:$0xf0] }
  0xab   : > { %4389 = vmatpush.bf16.msrb.mxu2 %v9723_v49  ;;  %v9967_v49 = vor.u32 %v12617_v44, %v9966_v43  ;;  %v9246_v52 = vld [vmem:[%s13800_s4 + $0x788] sm:$0xf]  ;;  %v12437_v54 = vld [vmem:[%s13800_s4 + $0x7d4] sm:$0xf0] }
  0xac   : > { %4402 = vmatpush.bf16.msrb.mxu3 %v10363_v53  ;;  %v10607_v53 = vor.u32 %v12777_v46, %v10606_v45  ;;  %v9886_v55 = vld [vmem:[%s13800_s4 + $0xc88] sm:$0xf]  ;;  %v12597_v56 = vld [vmem:[%s13800_s4 + $0xcd4] sm:$0xf0]  ;;  %v9247_v60 = vor.u32 %v12437_v54, %v9246_v52  ;;  %v12647_v52 = vld [vmem:[%s13800_s4 + $0xe6c] sm:$0xf] }
  0xad   : > { %4364 = vmatpush.bf16.msrb.mxu0 %v8363_v59  ;;  %v10526_v57 = vld [vmem:[%s13800_s4 + $0x1188] sm:$0xf]  ;;  %v12757_v58 = vld [vmem:[%s13800_s4 + $0x11d4] sm:$0xf0]  ;;  %v8607_v59 = vor.u32 %v12277_v51, %v8606_v50  ;;  %v9887_v61 = vor.u32 %v12597_v56, %v9886_v55  ;;  %v9488_v51 = vld [vmem:[%s13800_s4 + $0x9b8] sm:$0xf0] }
  0xae   : > { %4377 = vmatpush.bf16.msrb.mxu1 %v9003_v62  ;;  %v8526_v62 = vld [vmem:[%s13800_s4 + $0x1e8] sm:$0xf]  ;;  %v10527_v1 = vor.u32 %v12757_v58, %v10526_v57  ;;  %v12417_v2 = vld [vmem:[%s13800_s4 + $0x734] sm:$0xf0]  ;;  %v12807_v56 = vld [vmem:[%s13800_s4 + $0x136c] sm:$0xf] }
  0xaf   : > { %4390 = vmatpush.bf16.msrb.mxu2 %v9643_v63  ;;  %v12257_v63 = vld [vmem:[%s13800_s4 + $0x234] sm:$0xf0]  ;;  %v9166_v0 = vld [vmem:[%s13800_s4 + $0x6e8] sm:$0xf]  ;;  %v10768_v57 = vld [vmem:[%s13800_s4 + $0x13b8] sm:$0xf0] }
  0xb0   : > { %4403 = vmatpush.bf16.msrb.mxu3 %v10283_v3  ;;  %v9806_v3 = vld [vmem:[%s13800_s4 + $0xbe8] sm:$0xf]  ;;  %v12577_v4 = vld [vmem:[%s13800_s4 + $0xc34] sm:$0xf0]  ;;  %v8527_v7 = vor.u32 %v12257_v63, %v8526_v62  ;;  %v9167_v8 = vor.u32 %v12417_v2, %v9166_v0  ;;  %v12307_v62 = vld [vmem:[%s13800_s4 + $0x3cc] sm:$0xf] }
  0xb1   : > { %4365 = vmatpush.bf16.msrb.mxu0 %v8283_v10  ;;  %v10446_v5 = vld [vmem:[%s13800_s4 + $0x10e8] sm:$0xf]  ;;  %v12737_v6 = vld [vmem:[%s13800_s4 + $0x1134] sm:$0xf0]  ;;  %v9807_v9 = vor.u32 %v12577_v4, %v9806_v3  ;;  %v8768_v63 = vld [vmem:[%s13800_s4 + $0x418] sm:$0xf0] }
  0xb2   : > { %4378 = vmatpush.bf16.msrb.mxu1 %v8923_v14  ;;  %v8446_v10 = vld [vmem:[%s13800_s4 + $0x148] sm:$0xf]  ;;  %v12237_v11 = vld [vmem:[%s13800_s4 + $0x194] sm:$0xf0]  ;;  %v10447_v13 = vor.u32 %v12737_v6, %v10446_v5  ;;  %v12467_v0 = vld [vmem:[%s13800_s4 + $0x8cc] sm:$0xf] }
  0xb3   : > { %4391 = vmatpush.bf16.msrb.mxu2 %v9563_v15  ;;  %v9086_v12 = vld [vmem:[%s13800_s4 + $0x648] sm:$0xf]  ;;  %v12397_v14 = vld [vmem:[%s13800_s4 + $0x694] sm:$0xf0]  ;;  %v9408_v2 = vld [vmem:[%s13800_s4 + $0x918] sm:$0xf0] }
  0xb4   : > { %4404 = vmatpush.bf16.msrb.mxu3 %v10203_v20  ;;  %4366 = vmatmul.bf16.vlgmr.msrb.gmra.mxu0 %v13929_v31  ;;  %v9726_v15 = vld [vmem:[%s13800_s4 + $0xb48] sm:$0xf]  ;;  %v12557_v18 = vld [vmem:[%s13800_s4 + $0xb94] sm:$0xf0]  ;;  %v12627_v3 = vld [vmem:[%s13800_s4 + $0xdcc] sm:$0xf] }
  0xb5   : > { %4410 = vmatpush.bf16.msra.mxu0 %v8847_v21  ;;  %4379 = vmatmul.bf16.vlgmr.msrb.gmra.mxu1 %v13931_v32  ;;  %v10366_v19 = vld [vmem:[%s13800_s4 + $0x1048] sm:$0xf]  ;;  %v12717_v20 = vld [vmem:[%s13800_s4 + $0x1094] sm:$0xf0]  ;;  %v8447_v21 = vor.u32 %v12237_v11, %v8446_v10  ;;  %v10048_v4 = vld [vmem:[%s13800_s4 + $0xe18] sm:$0xf0] }
  0xb6   : > { %4423 = vmatpush.bf16.msra.mxu1 %v9487_v22  ;;  %4392 = vmatmul.bf16.vlgmr.msrb.gmra.mxu2 %v13917_v16  ;;  %v9087_v22 = vor.u32 %v12397_v14, %v9086_v12  ;;  %v8366_v24 = vld [vmem:[%s13800_s4 + $0xa8] sm:$0xf]  ;;  %v12217_v25 = vld [vmem:[%s13800_s4 + $0xf4] sm:$0xf0]  ;;  %v12787_v5 = vld [vmem:[%s13800_s4 + $0x12cc] sm:$0xf] }
  0xb7   : > { %4436 = vmatpush.bf16.msra.mxu2 %v10127_v23  ;;  %4405 = vmatmul.bf16.vlgmr.msrb.gmra.mxu3 %v13919_v17  ;;  %v9727_v23 = vor.u32 %v12557_v18, %v9726_v15  ;;  %v9006_v26 = vld [vmem:[%s13800_s4 + $0x5a8] sm:$0xf]  ;;  %v12377_v28 = vld [vmem:[%s13800_s4 + $0x5f4] sm:$0xf0]  ;;  %v10688_v6 = vld [vmem:[%s13800_s4 + $0x1318] sm:$0xf0] }
  0xb8   : > { %4449 = vmatpush.bf16.msra.mxu3 %v10767_v27  ;;  %v10367_v27 = vor.u32 %v12717_v20, %v10366_v19  ;;  %v9646_v29 = vld [vmem:[%s13800_s4 + $0xaa8] sm:$0xf]  ;;  %v12537_v30 = vld [vmem:[%s13800_s4 + $0xaf4] sm:$0xf0]  ;;  %v9007_v38 = vor.u32 %v12377_v28, %v9006_v26  ;;  %v12287_v10 = vld [vmem:[%s13800_s4 + $0x32c] sm:$0xf] }
  0xb9   : > { %4411 = vmatpush.bf16.msra.mxu0 %v8767_v35  ;;  %v10286_v33 = vld [vmem:[%s13800_s4 + $0xfa8] sm:$0xf]  ;;  %v12697_v34 = vld [vmem:[%s13800_s4 + $0xff4] sm:$0xf0]  ;;  %v8367_v35 = vor.u32 %v12217_v25, %v8366_v24  ;;  %v9647_v39 = vor.u32 %v12537_v30, %v9646_v29  ;;  %v8688_v11 = vld [vmem:[%s13800_s4 + $0x378] sm:$0xf0] }
  0xba   : > { %4424 = vmatpush.bf16.msra.mxu1 %v9407_v36  ;;  %v8286_v36 = vld [vmem:[%s13800_s4 + $0x8] sm:$0xf]  ;;  %v10287_v43 = vor.u32 %v12697_v34, %v10286_v33  ;;  %v12517_v44 = vld [vmem:[%s13800_s4 + $0xa54] sm:$0xf0]  ;;  %v12447_v12 = vld [vmem:[%s13800_s4 + $0x82c] sm:$0xf] }
  0xbb   : > { %4437 = vmatpush.bf16.msra.mxu2 %v10047_v37  ;;  %v12197_v37 = vld [vmem:[%s13800_s4 + $0x54] sm:$0xf0]  ;;  %v8926_v40 = vld [vmem:[%s13800_s4 + $0x508] sm:$0xf]  ;;  %v9328_v14 = vld [vmem:[%s13800_s4 + $0x878] sm:$0xf0] }
  0xbc   : > { %4450 = vmatpush.bf16.msra.mxu3 %v10687_v41  ;;  %v12357_v41 = vld [vmem:[%s13800_s4 + $0x554] sm:$0xf0]  ;;  %v9566_v42 = vld [vmem:[%s13800_s4 + $0xa08] sm:$0xf]  ;;  %v8287_v50 = vor.u32 %v12197_v37, %v8286_v36  ;;  %v12607_v15 = vld [vmem:[%s13800_s4 + $0xd2c] sm:$0xf] }
  0xbd   : > { %4412 = vmatpush.bf16.msra.mxu0 %v8687_v47  ;;  %v10206_v45 = vld [vmem:[%s13800_s4 + $0xf08] sm:$0xf]  ;;  %v12677_v46 = vld [vmem:[%s13800_s4 + $0xf54] sm:$0xf0]  ;;  %v12327_v47 = vld [vmem:[%s13800_s4 + $0x46c] sm:$0xf]  ;;  %v8927_v54 = vor.u32 %v12357_v41, %v8926_v40  ;;  %v9567_v55 = vor.u32 %v12517_v44, %v9566_v42 }
  0xbe   : > { %4425 = vmatpush.bf16.msra.mxu1 %v9327_v48  ;;  %v8848_v48 = vld [vmem:[%s13800_s4 + $0x4b8] sm:$0xf0]  ;;  %v10207_v58 = vor.u32 %v12677_v46, %v10206_v45  ;;  %v12767_v19 = vld [vmem:[%s13800_s4 + $0x122c] sm:$0xf] }
  0xbf   : > { %4438 = vmatpush.bf16.msra.mxu2 %v9967_v49  ;;  %v12487_v49 = vld [vmem:[%s13800_s4 + $0x96c] sm:$0xf]  ;;  %v9968_v18 = vld [vmem:[%s13800_s4 + $0xd78] sm:$0xf0] }
  0xc0   : > { %4451 = vmatpush.bf16.msra.mxu3 %v10607_v53  ;;  %v10128_v53 = vld [vmem:[%s13800_s4 + $0xeb8] sm:$0xf0]  ;;  %v12267_v24 = vld [vmem:[%s13800_s4 + $0x28c] sm:$0xf] }
  0xc1   : > { %4413 = vmatpush.bf16.msra.mxu0 %v8607_v59  ;;  %v8851_v59 = vor.u32 %v12327_v47, %v8848_v48  ;;  %v10608_v20 = vld [vmem:[%s13800_s4 + $0x1278] sm:$0xf0]  ;;  %v12427_v26 = vld [vmem:[%s13800_s4 + $0x78c] sm:$0xf] }
  0xc2   : > { %4426 = vmatpush.bf16.msra.mxu1 %v9247_v60  ;;  %v9491_v60 = vor.u32 %v12487_v49, %v9488_v51  ;;  %v8608_v25 = vld [vmem:[%s13800_s4 + $0x2d8] sm:$0xf0]  ;;  %v12587_v29 = vld [vmem:[%s13800_s4 + $0xc8c] sm:$0xf] }
  0xc3   : > { %4439 = vmatpush.bf16.msra.mxu2 %v9887_v61  ;;  %v10131_v61 = vor.u32 %v12647_v52, %v10128_v53  ;;  %v9248_v28 = vld [vmem:[%s13800_s4 + $0x7d8] sm:$0xf0]  ;;  %v12747_v33 = vld [vmem:[%s13800_s4 + $0x118c] sm:$0xf] }
  0xc4   : > { %4452 = vmatpush.bf16.msra.mxu3 %v10527_v1  ;;  %v10771_v1 = vor.u32 %v12807_v56, %v10768_v57  ;;  %v9888_v30 = vld [vmem:[%s13800_s4 + $0xcd8] sm:$0xf0]  ;;  %v9251_v36 = vor.u32 %v12427_v26, %v9248_v28  ;;  %v12407_v40 = vld [vmem:[%s13800_s4 + $0x6ec] sm:$0xf]  ;;  %v10134_v26 = vld [vmem:[%s13800_s4 + $0xe70] sm:$0xf] }
  0xc5   : > { %4414 = vmatpush.bf16.msra.mxu0 %v8527_v7  ;;  %v8771_v7 = vor.u32 %v12307_v62, %v8768_v63  ;;  %v10528_v34 = vld [vmem:[%s13800_s4 + $0x11d8] sm:$0xf0]  ;;  %v9891_v37 = vor.u32 %v12587_v29, %v9888_v30  ;;  %v12727_v45 = vld [vmem:[%s13800_s4 + $0x10ec] sm:$0xf]  ;;  %v10774_v30 = vld [vmem:[%s13800_s4 + $0x1370] sm:$0xf] }
  0xc6   : > { %4427 = vmatpush.bf16.msra.mxu1 %v9167_v8  ;;  %v9411_v8 = vor.u32 %v12467_v0, %v9408_v2  ;;  %v10531_v41 = vor.u32 %v12747_v33, %v10528_v34  ;;  %v9168_v42 = vld [vmem:[%s13800_s4 + $0x738] sm:$0xf0]  ;;  %v12387_v52 = vld [vmem:[%s13800_s4 + $0x64c] sm:$0xf]  ;;  %v12818_v33 = vld [vmem:[%s13800_s4 + $0x13bc] sm:$0xf0] }
  0xc7   : > { %4440 = vmatpush.bf16.msra.mxu2 %v9807_v9  ;;  %v10051_v9 = vor.u32 %v12627_v3, %v10048_v4  ;;  %v9808_v44 = vld [vmem:[%s13800_s4 + $0xc38] sm:$0xf0]  ;;  %v9171_v48 = vor.u32 %v12407_v40, %v9168_v42  ;;  %v12707_v57 = vld [vmem:[%s13800_s4 + $0x104c] sm:$0xf]  ;;  %v9414_v40 = vld [vmem:[%s13800_s4 + $0x8d0] sm:$0xf] }
  0xc8   : > { %4453 = vmatpush.bf16.msra.mxu3 %v10447_v13  ;;  %v10691_v13 = vor.u32 %v12787_v5, %v10688_v6  ;;  %v10448_v46 = vld [vmem:[%s13800_s4 + $0x1138] sm:$0xf0]  ;;  %v12207_v62 = vld [vmem:[%s13800_s4 + $0xac] sm:$0xf]  ;;  %v12478_v42 = vld [vmem:[%s13800_s4 + $0x91c] sm:$0xf0] }
  0xc9   : > { %4415 = vmatpush.bf16.msra.mxu0 %v8447_v21  ;;  %v8691_v21 = vor.u32 %v12287_v10, %v8688_v11  ;;  %v8448_v51 = vld [vmem:[%s13800_s4 + $0x198] sm:$0xf0]  ;;  %v10451_v53 = vor.u32 %v12727_v45, %v10448_v46  ;;  %v12367_v0 = vld [vmem:[%s13800_s4 + $0x5ac] sm:$0xf]  ;;  %v10694_v45 = vld [vmem:[%s13800_s4 + $0x12d0] sm:$0xf] }
  0xca   : > { %4428 = vmatpush.bf16.msra.mxu1 %v9087_v22  ;;  %v9331_v22 = vor.u32 %v12447_v12, %v9328_v14  ;;  %v9728_v56 = vld [vmem:[%s13800_s4 + $0xb98] sm:$0xf0]  ;;  %v12527_v3 = vld [vmem:[%s13800_s4 + $0xaac] sm:$0xf]  ;;  %v12798_v46 = vld [vmem:[%s13800_s4 + $0x131c] sm:$0xf0] }
  0xcb   : > { %4441 = vmatpush.bf16.msra.mxu2 %v9727_v23  ;;  %v9971_v23 = vor.u32 %v12607_v15, %v9968_v18  ;;  %v8368_v63 = vld [vmem:[%s13800_s4 + $0xf8] sm:$0xf0]  ;;  %v12687_v5 = vld [vmem:[%s13800_s4 + $0xfac] sm:$0xf] }
  0xcc   : > { %4454 = vmatpush.bf16.msra.mxu3 %v10367_v27  ;;  %v10611_v27 = vor.u32 %v12767_v19, %v10608_v20  ;;  %v9008_v2 = vld [vmem:[%s13800_s4 + $0x5f8] sm:$0xf0]  ;;  %v12347_v12 = vld [vmem:[%s13800_s4 + $0x50c] sm:$0xf] }
  0xcd   : > { %4416 = vmatpush.bf16.msra.mxu0 %v8367_v35  ;;  %v8611_v35 = vor.u32 %v12267_v24, %v8608_v25  ;;  %v9648_v4 = vld [vmem:[%s13800_s4 + $0xaf8] sm:$0xf0]  ;;  %v9011_v10 = vor.u32 %v12367_v0, %v9008_v2  ;;  %v12507_v14 = vld [vmem:[%s13800_s4 + $0xa0c] sm:$0xf]  ;;  %v12498_v25 = vld [vmem:[%s13800_s4 + $0x9bc] sm:$0xf0] }
  0xce   : > { %4429 = vmatpush.bf16.msra.mxu1 %v9007_v38  ;;  %v12247_v38 = vld [vmem:[%s13800_s4 + $0x1ec] sm:$0xf]  ;;  %v10288_v6 = vld [vmem:[%s13800_s4 + $0xff8] sm:$0xf0]  ;;  %v9651_v11 = vor.u32 %v12527_v3, %v9648_v4  ;;  %v9254_v0 = vld [vmem:[%s13800_s4 + $0x790] sm:$0xf] }
  0xcf   : > { %4442 = vmatpush.bf16.msra.mxu2 %v9647_v39  ;;  %v8528_v39 = vld [vmem:[%s13800_s4 + $0x238] sm:$0xf0]  ;;  %v10291_v15 = vor.u32 %v12687_v5, %v10288_v6  ;;  %v12667_v19 = vld [vmem:[%s13800_s4 + $0xf0c] sm:$0xf]  ;;  %v12438_v2 = vld [vmem:[%s13800_s4 + $0x7dc] sm:$0xf0] }
  0xd0   : > { %4455 = vmatpush.bf16.msra.mxu3 %v10287_v43  ;;  %v12567_v43 = vld [vmem:[%s13800_s4 + $0xbec] sm:$0xf]  ;;  %v8531_v47 = vor.u32 %v12247_v38, %v8528_v39  ;;  %v9568_v18 = vld [vmem:[%s13800_s4 + $0xa58] sm:$0xf0]  ;;  %v8774_v38 = vld [vmem:[%s13800_s4 + $0x3d0] sm:$0xf] }
  0xd1   : > { %4417 = vmatpush.bf16.msra.mxu0 %v8287_v50  ;;  %v9811_v49 = vor.u32 %v12567_v43, %v9808_v44  ;;  %v12227_v50 = vld [vmem:[%s13800_s4 + $0x14c] sm:$0xf]  ;;  %v10208_v20 = vld [vmem:[%s13800_s4 + $0xf58] sm:$0xf0]  ;;  %v9571_v29 = vor.u32 %v12507_v14, %v9568_v18  ;;  %v12318_v39 = vld [vmem:[%s13800_s4 + $0x41c] sm:$0xf0] }
  0xd2   : > { %4430 = vmatpush.bf16.msra.mxu1 %v8927_v54  ;;  %v9088_v54 = vld [vmem:[%s13800_s4 + $0x698] sm:$0xf0]  ;;  %v10211_v34 = vor.u32 %v12667_v19, %v10208_v20  ;;  %v10054_v43 = vld [vmem:[%s13800_s4 + $0xdd0] sm:$0xf]  ;;  %v12638_v44 = vld [vmem:[%s13800_s4 + $0xe1c] sm:$0xf0] }
  0xd3   : > { %4443 = vmatpush.bf16.msra.mxu2 %v9567_v55  ;;  %v12547_v55 = vld [vmem:[%s13800_s4 + $0xb4c] sm:$0xf]  ;;  %v9894_v3 = vld [vmem:[%s13800_s4 + $0xc90] sm:$0xf]  ;;  %v12598_v4 = vld [vmem:[%s13800_s4 + $0xcdc] sm:$0xf0] }
  0xd4   : > { %4456 = vmatpush.bf16.msra.mxu3 %v10207_v58  ;;  %4418 = vmatmul.bf16.vlgmr.msra.gmra.mxu0 %v13929_v31  ;;  %v10368_v58 = vld [vmem:[%s13800_s4 + $0x1098] sm:$0xf0]  ;;  %v10534_v5 = vld [vmem:[%s13800_s4 + $0x1190] sm:$0xf]  ;;  %v12758_v6 = vld [vmem:[%s13800_s4 + $0x11dc] sm:$0xf0] }
  0xd5   : > { %4462 = vmatpush.bf16.msrb.mxu0 %v8851_v59  ;;  %4431 = vmatmul.bf16.vlgmr.msra.gmra.mxu1 %v13931_v32  ;;  %v8451_v59 = vor.u32 %v12227_v50, %v8448_v51  ;;  %v8694_v50 = vld [vmem:[%s13800_s4 + $0x330] sm:$0xf]  ;;  %v12298_v51 = vld [vmem:[%s13800_s4 + $0x37c] sm:$0xf0] }
  0xd6   : > { %4475 = vmatpush.bf16.msrb.mxu1 %v9491_v60  ;;  %4444 = vmatmul.bf16.vlgmr.msra.gmra.mxu2 %v13917_v16  ;;  %v9091_v60 = vor.u32 %v12387_v52, %v9088_v54  ;;  %v9334_v52 = vld [vmem:[%s13800_s4 + $0x830] sm:$0xf]  ;;  %v12458_v54 = vld [vmem:[%s13800_s4 + $0x87c] sm:$0xf0] }
  0xd7   : > { %4488 = vmatpush.bf16.msrb.mxu2 %v10131_v61  ;;  %4457 = vmatmul.bf16.vlgmr.msra.gmra.mxu3 %v13919_v17  ;;  %v9731_v61 = vor.u32 %v12547_v55, %v9728_v56  ;;  %v9974_v55 = vld [vmem:[%s13800_s4 + $0xd30] sm:$0xf]  ;;  %v12618_v56 = vld [vmem:[%s13800_s4 + $0xd7c] sm:$0xf0] }
  0xd8   : > { %4501 = vmatpush.bf16.msrb.mxu3 %v10771_v1  ;;  %v10371_v1 = vor.u32 %v12707_v57, %v10368_v58  ;;  %v10614_v57 = vld [vmem:[%s13800_s4 + $0x1230] sm:$0xf]  ;;  %v12778_v58 = vld [vmem:[%s13800_s4 + $0x127c] sm:$0xf0] }
  0xd9   : > { %4463 = vmatpush.bf16.msrb.mxu0 %v8771_v7  ;;  %v8371_v7 = vor.u32 %v12207_v62, %v8368_v63  ;;  %v8614_v62 = vld [vmem:[%s13800_s4 + $0x290] sm:$0xf]  ;;  %v12278_v63 = vld [vmem:[%s13800_s4 + $0x2dc] sm:$0xf0] }
  0xda   : > { %4476 = vmatpush.bf16.msrb.mxu1 %v9411_v8  ;;  %v12187_v8 = vld [vmem:[%s13800_s4 + $0xc] sm:$0xf]  ;;  %v12418_v14 = vld [vmem:[%s13800_s4 + $0x73c] sm:$0xf0]  ;;  %v10454_v19 = vld [vmem:[%s13800_s4 + $0x10f0] sm:$0xf] }
  0xdb   : > { %4489 = vmatpush.bf16.msrb.mxu2 %v10051_v9  ;;  %v8288_v9 = vld [vmem:[%s13800_s4 + $0x58] sm:$0xf0]  ;;  %v12578_v18 = vld [vmem:[%s13800_s4 + $0xc3c] sm:$0xf0] }
  0xdc   : > { %4502 = vmatpush.bf16.msrb.mxu3 %v10691_v13  ;;  %v8928_v13 = vld [vmem:[%s13800_s4 + $0x558] sm:$0xf0]  ;;  %v8291_v24 = vor.u32 %v12187_v8, %v8288_v9  ;;  %v9255_v8 = vor.u32 %v12438_v2, %v9254_v0  ;;  %v9895_v9 = vor.u32 %v12598_v4, %v9894_v3  ;;  %v12738_v20 = vld [vmem:[%s13800_s4 + $0x113c] sm:$0xf0]  ;;  %v12648_v0 = vld [vmem:[%s13800_s4 + $0xe74] sm:$0xf] }
  0xdd   : > { %4464 = vmatpush.bf16.msrb.mxu0 %v8691_v21  ;;  %v8854_v21 = vld [vmem:[%s13800_s4 + $0x470] sm:$0xf]  ;;  %v8931_v28 = vor.u32 %v12347_v12, %v8928_v13  ;;  %v10535_v13 = vor.u32 %v12758_v6, %v10534_v5  ;;  %v12808_v4 = vld [vmem:[%s13800_s4 + $0x1374] sm:$0xf]  ;;  %v10776_v5 = vld [vmem:[%s13800_s4 + $0x13c0] sm:$0xf0] }
  0xde   : > { %4477 = vmatpush.bf16.msrb.mxu1 %v9331_v22  ;;  %v12338_v22 = vld [vmem:[%s13800_s4 + $0x4bc] sm:$0xf0]  ;;  %v9174_v12 = vld [vmem:[%s13800_s4 + $0x6f0] sm:$0xf] }
  0xdf   : > { %4490 = vmatpush.bf16.msrb.mxu2 %v9971_v23  ;;  %v9494_v23 = vld [vmem:[%s13800_s4 + $0x970] sm:$0xf] }
  0xe0   : > { %4503 = vmatpush.bf16.msrb.mxu3 %v10611_v27  ;;  %v12658_v27 = vld [vmem:[%s13800_s4 + $0xebc] sm:$0xf0] }
  0xe1   : > { %4465 = vmatpush.bf16.msrb.mxu0 %v8611_v35  ;;  %v8855_v35 = vor.u32 %v12338_v22, %v8854_v21  ;;  %v9175_v22 = vor.u32 %v12418_v14, %v9174_v12  ;;  %v12468_v12 = vld [vmem:[%s13800_s4 + $0x8d4] sm:$0xf]  ;;  %v9416_v14 = vld [vmem:[%s13800_s4 + $0x920] sm:$0xf0] }
  0xe2   : > { %4478 = vmatpush.bf16.msrb.mxu1 %v9251_v36  ;;  %v9495_v36 = vor.u32 %v12498_v25, %v9494_v23  ;;  %v12238_v25 = vld [vmem:[%s13800_s4 + $0x19c] sm:$0xf0] }
  0xe3   : > { %4491 = vmatpush.bf16.msrb.mxu2 %v9891_v37  ;;  %v10135_v37 = vor.u32 %v12658_v27, %v10134_v26  ;;  %v9094_v26 = vld [vmem:[%s13800_s4 + $0x650] sm:$0xf]  ;;  %v10455_v27 = vor.u32 %v12738_v20, %v10454_v19  ;;  %v12788_v19 = vld [vmem:[%s13800_s4 + $0x12d4] sm:$0xf]  ;;  %v10696_v20 = vld [vmem:[%s13800_s4 + $0x1320] sm:$0xf0] }
  0xe4   : > { %4504 = vmatpush.bf16.msrb.mxu3 %v10531_v41  ;;  %v10775_v41 = vor.u32 %v12818_v33, %v10774_v30  ;;  %v12558_v30 = vld [vmem:[%s13800_s4 + $0xb9c] sm:$0xf0]  ;;  %v10374_v33 = vld [vmem:[%s13800_s4 + $0x1050] sm:$0xf] }
  0xe5   : > { %4466 = vmatpush.bf16.msrb.mxu0 %v8531_v47  ;;  %v8775_v47 = vor.u32 %v12318_v39, %v8774_v38  ;;  %v8374_v38 = vld [vmem:[%s13800_s4 + $0xb0] sm:$0xf]  ;;  %v12218_v39 = vld [vmem:[%s13800_s4 + $0xfc] sm:$0xf0] }
  0xe6   : > { %4479 = vmatpush.bf16.msrb.mxu1 %v9171_v48  ;;  %v9415_v48 = vor.u32 %v12478_v42, %v9414_v40  ;;  %v9014_v40 = vld [vmem:[%s13800_s4 + $0x5b0] sm:$0xf]  ;;  %v12378_v42 = vld [vmem:[%s13800_s4 + $0x5fc] sm:$0xf0] }
  0xe7   : > { %4492 = vmatpush.bf16.msrb.mxu2 %v9811_v49  ;;  %v10055_v49 = vor.u32 %v12638_v44, %v10054_v43  ;;  %v9654_v43 = vld [vmem:[%s13800_s4 + $0xab0] sm:$0xf]  ;;  %v12538_v44 = vld [vmem:[%s13800_s4 + $0xafc] sm:$0xf0] }
  0xe8   : > { %4505 = vmatpush.bf16.msrb.mxu3 %v10451_v53  ;;  %v10695_v53 = vor.u32 %v12798_v46, %v10694_v45  ;;  %v10294_v45 = vld [vmem:[%s13800_s4 + $0xfb0] sm:$0xf]  ;;  %v12698_v46 = vld [vmem:[%s13800_s4 + $0xffc] sm:$0xf0] }
  0xe9   : > { %4467 = vmatpush.bf16.msrb.mxu0 %v8451_v59  ;;  %v8695_v59 = vor.u32 %v12298_v51, %v8694_v50  ;;  %v9015_v50 = vor.u32 %v12378_v42, %v9014_v40  ;;  %v9655_v51 = vor.u32 %v12538_v44, %v9654_v43  ;;  %v12428_v40 = vld [vmem:[%s13800_s4 + $0x794] sm:$0xf]  ;;  %v9256_v42 = vld [vmem:[%s13800_s4 + $0x7e0] sm:$0xf0] }
  0xea   : > { %4480 = vmatpush.bf16.msrb.mxu1 %v9091_v60  ;;  %v9335_v60 = vor.u32 %v12458_v54, %v9334_v52  ;;  %v8934_v52 = vld [vmem:[%s13800_s4 + $0x510] sm:$0xf]  ;;  %v12588_v43 = vld [vmem:[%s13800_s4 + $0xc94] sm:$0xf]  ;;  %v9896_v44 = vld [vmem:[%s13800_s4 + $0xce0] sm:$0xf0] }
  0xeb   : > { %4493 = vmatpush.bf16.msrb.mxu2 %v9731_v61  ;;  %v9975_v61 = vor.u32 %v12618_v56, %v9974_v55  ;;  %v9574_v54 = vld [vmem:[%s13800_s4 + $0xa10] sm:$0xf]  ;;  %v10295_v55 = vor.u32 %v12698_v46, %v10294_v45  ;;  %v12518_v56 = vld [vmem:[%s13800_s4 + $0xa5c] sm:$0xf0]  ;;  %v12748_v45 = vld [vmem:[%s13800_s4 + $0x1194] sm:$0xf] }
  0xec   : > { %4506 = vmatpush.bf16.msrb.mxu3 %v10371_v1  ;;  %v10615_v1 = vor.u32 %v12778_v58, %v10614_v57  ;;  %v10214_v57 = vld [vmem:[%s13800_s4 + $0xf10] sm:$0xf]  ;;  %v12678_v58 = vld [vmem:[%s13800_s4 + $0xf5c] sm:$0xf0]  ;;  %v9575_v3 = vor.u32 %v12518_v56, %v9574_v54  ;;  %v10536_v46 = vld [vmem:[%s13800_s4 + $0x11e0] sm:$0xf0] }
  0xed   : > { %4468 = vmatpush.bf16.msrb.mxu0 %v8371_v7  ;;  %v8615_v7 = vor.u32 %v12278_v63, %v8614_v62  ;;  %v9496_v63 = vld [vmem:[%s13800_s4 + $0x9c0] sm:$0xf0]  ;;  %v10215_v6 = vor.u32 %v12678_v58, %v10214_v57  ;;  %v12728_v57 = vld [vmem:[%s13800_s4 + $0x10f4] sm:$0xf] }
  0xee   : > { %4481 = vmatpush.bf16.msrb.mxu1 %v9011_v10  ;;  %v8534_v10 = vld [vmem:[%s13800_s4 + $0x1f0] sm:$0xf]  ;;  %v9176_v54 = vld [vmem:[%s13800_s4 + $0x740] sm:$0xf0] }
  0xef   : > { %4494 = vmatpush.bf16.msrb.mxu2 %v9651_v11  ;;  %v12258_v11 = vld [vmem:[%s13800_s4 + $0x23c] sm:$0xf0]  ;;  %v9816_v56 = vld [vmem:[%s13800_s4 + $0xc40] sm:$0xf0] }
  0xf0   : > { %4507 = vmatpush.bf16.msrb.mxu3 %v10291_v15  ;;  %v9814_v15 = vld [vmem:[%s13800_s4 + $0xbf0] sm:$0xf]  ;;  %v8535_v21 = vor.u32 %v12258_v11, %v8534_v10  ;;  %v12308_v10 = vld [vmem:[%s13800_s4 + $0x3d4] sm:$0xf]  ;;  %v8776_v11 = vld [vmem:[%s13800_s4 + $0x420] sm:$0xf0] }
  0xf1   : > { %4469 = vmatpush.bf16.msrb.mxu0 %v8291_v24  ;;  %v9815_v23 = vor.u32 %v12578_v18, %v9814_v15  ;;  %v8454_v24 = vld [vmem:[%s13800_s4 + $0x150] sm:$0xf]  ;;  %v12628_v15 = vld [vmem:[%s13800_s4 + $0xdd4] sm:$0xf]  ;;  %v10056_v18 = vld [vmem:[%s13800_s4 + $0xe20] sm:$0xf0] }
  0xf2   : > { %4482 = vmatpush.bf16.msrb.mxu1 %v8931_v28  ;;  %v12398_v28 = vld [vmem:[%s13800_s4 + $0x69c] sm:$0xf0]  ;;  %v10456_v58 = vld [vmem:[%s13800_s4 + $0x1140] sm:$0xf0] }
  0xf3   : > { %4495 = vmatpush.bf16.msrb.mxu2 %v9571_v29  ;;  %v9734_v29 = vld [vmem:[%s13800_s4 + $0xb50] sm:$0xf] }
  0xf4   : > { %4508 = vmatpush.bf16.msrb.mxu3 %v10211_v34  ;;  %4470 = vmatmul.bf16.vlgmr.msrb.gmra.mxu0 %v13929_v31  ;;  %v12718_v34 = vld [vmem:[%s13800_s4 + $0x109c] sm:$0xf0] }
  0xf5   : > { %4514 = vmatpush.bf16.msra.mxu0 %v8855_v35  ;;  %4483 = vmatmul.bf16.vlgmr.msrb.gmra.mxu1 %v13931_v32  ;;  %v8455_v35 = vor.u32 %v12238_v25, %v8454_v24  ;;  %v12288_v24 = vld [vmem:[%s13800_s4 + $0x334] sm:$0xf]  ;;  %v8696_v25 = vld [vmem:[%s13800_s4 + $0x380] sm:$0xf0] }
  0xf6   : > { %4527 = vmatpush.bf16.msra.mxu1 %v9495_v36  ;;  %4496 = vmatmul.bf16.vlgmr.msrb.gmra.mxu2 %v13917_v16  ;;  %v9095_v36 = vor.u32 %v12398_v28, %v9094_v26  ;;  %v12448_v26 = vld [vmem:[%s13800_s4 + $0x834] sm:$0xf]  ;;  %v9336_v28 = vld [vmem:[%s13800_s4 + $0x880] sm:$0xf0] }
  0xf7   : > { %4540 = vmatpush.bf16.msra.mxu2 %v10135_v37  ;;  %4509 = vmatmul.bf16.vlgmr.msrb.gmra.mxu3 %v13919_v17  ;;  %v9735_v37 = vor.u32 %v12558_v30, %v9734_v29  ;;  %v12608_v29 = vld [vmem:[%s13800_s4 + $0xd34] sm:$0xf]  ;;  %v9976_v30 = vld [vmem:[%s13800_s4 + $0xd80] sm:$0xf0] }
  0xf8   : > { %4553 = vmatpush.bf16.msra.mxu3 %v10775_v41  ;;  %v10375_v41 = vor.u32 %v12718_v34, %v10374_v33  ;;  %v12768_v33 = vld [vmem:[%s13800_s4 + $0x1234] sm:$0xf]  ;;  %v10616_v34 = vld [vmem:[%s13800_s4 + $0x1280] sm:$0xf0] }
  0xf9   : > { %4515 = vmatpush.bf16.msra.mxu0 %v8775_v47  ;;  %v8375_v47 = vor.u32 %v12218_v39, %v8374_v38  ;;  %v12268_v38 = vld [vmem:[%s13800_s4 + $0x294] sm:$0xf]  ;;  %v8616_v39 = vld [vmem:[%s13800_s4 + $0x2e0] sm:$0xf0] }
  0xfa   : > { %4528 = vmatpush.bf16.msra.mxu1 %v9415_v48  ;;  %v8294_v48 = vld [vmem:[%s13800_s4 + $0x10] sm:$0xf] }
  0xfb   : > { %4541 = vmatpush.bf16.msra.mxu2 %v10055_v49  ;;  %v12198_v49 = vld [vmem:[%s13800_s4 + $0x5c] sm:$0xf0] }
  0xfc   : > { %4554 = vmatpush.bf16.msra.mxu3 %v10695_v53  ;;  %v12358_v53 = vld [vmem:[%s13800_s4 + $0x55c] sm:$0xf0]  ;;  %v8295_v62 = vor.u32 %v12198_v49, %v8294_v48  ;;  %v9259_v48 = vor.u32 %v12428_v40, %v9256_v42  ;;  %v9899_v49 = vor.u32 %v12588_v43, %v9896_v44  ;;  %v12339_v42 = vld [vmem:[%s13800_s4 + $0x4c4] sm:$0xf0]  ;;  %v9502_v43 = vld [vmem:[%s13800_s4 + $0x978] sm:$0xf] }
  0xfd   : > { %4516 = vmatpush.bf16.msra.mxu0 %v8695_v59  ;;  %v12328_v59 = vld [vmem:[%s13800_s4 + $0x474] sm:$0xf]  ;;  %v8935_v2 = vor.u32 %v12358_v53, %v8934_v52  ;;  %v10539_v53 = vor.u32 %v12748_v45, %v10536_v46  ;;  %v430_v44 = vld [vmem:[#allocation2] sm:$0xff]  ;;  %v12499_v46 = vld [vmem:[%s13800_s4 + $0x9c4] sm:$0xf0] }
  0xfe   : > { %4529 = vmatpush.bf16.msra.mxu1 %v9335_v60  ;;  %v8856_v60 = vld [vmem:[%s13800_s4 + $0x4c0] sm:$0xf0]  ;;  %v12408_v52 = vld [vmem:[%s13800_s4 + $0x6f4] sm:$0xf] }
  0xff   : > { %4542 = vmatpush.bf16.msra.mxu2 %v9975_v61  ;;  %v12488_v61 = vld [vmem:[%s13800_s4 + $0x974] sm:$0xf] }
 0x100   : > { %4555 = vmatpush.bf16.msra.mxu3 %v10615_v1  ;;  %v10136_v1 = vld [vmem:[%s13800_s4 + $0xec0] sm:$0xf0] }
 0x101   : > { %4517 = vmatpush.bf16.msra.mxu0 %v8615_v7  ;;  %v8859_v7 = vor.u32 %v12328_v59, %v8856_v60  ;;  %v9179_v60 = vor.u32 %v12408_v52, %v9176_v54  ;;  %v10782_v52 = vld [vmem:[%s13800_s4 + $0x1378] sm:$0xf] }
 0x102   : > { %4530 = vmatpush.bf16.msra.mxu1 %v9255_v8  ;;  %v9499_v8 = vor.u32 %v12488_v61, %v9496_v63  ;;  %v8456_v63 = vld [vmem:[%s13800_s4 + $0x1a0] sm:$0xf0] }
 0x103   : > { %4543 = vmatpush.bf16.msra.mxu2 %v9895_v9  ;;  %v10139_v9 = vor.u32 %v12648_v0, %v10136_v1  ;;  %v12388_v0 = vld [vmem:[%s13800_s4 + $0x654] sm:$0xf]  ;;  %v10459_v1 = vor.u32 %v12728_v57, %v10456_v58  ;;  %v8782_v57 = vld [vmem:[%s13800_s4 + $0x3d8] sm:$0xf] }
 0x104   : > { %4556 = vmatpush.bf16.msra.mxu3 %v10535_v13  ;;  %v10779_v13 = vor.u32 %v12808_v4, %v10776_v5  ;;  %v9736_v4 = vld [vmem:[%s13800_s4 + $0xba0] sm:$0xf0]  ;;  %v12708_v5 = vld [vmem:[%s13800_s4 + $0x1054] sm:$0xf] }
 0x105   : > { %4518 = vmatpush.bf16.msra.mxu0 %v8535_v21  ;;  %v8779_v21 = vor.u32 %v12308_v10, %v8776_v11  ;;  %v12208_v10 = vld [vmem:[%s13800_s4 + $0xb4] sm:$0xf]  ;;  %v8376_v11 = vld [vmem:[%s13800_s4 + $0x100] sm:$0xf0] }
 0x106   : > { %4531 = vmatpush.bf16.msra.mxu1 %v9175_v22  ;;  %v9419_v22 = vor.u32 %v12468_v12, %v9416_v14  ;;  %v12368_v12 = vld [vmem:[%s13800_s4 + $0x5b4] sm:$0xf] }
 0x107   : > { %4544 = vmatpush.bf16.msra.mxu2 %v9815_v23  ;;  %v10059_v23 = vor.u32 %v12628_v15, %v10056_v18  ;;  %v9016_v15 = vld [vmem:[%s13800_s4 + $0x600] sm:$0xf0]  ;;  %v12528_v18 = vld [vmem:[%s13800_s4 + $0xab4] sm:$0xf] }
 0x108   : > { %4557 = vmatpush.bf16.msra.mxu3 %v10455_v27  ;;  %v10699_v27 = vor.u32 %v12788_v19, %v10696_v20  ;;  %v9656_v19 = vld [vmem:[%s13800_s4 + $0xb00] sm:$0xf0]  ;;  %v12688_v20 = vld [vmem:[%s13800_s4 + $0xfb4] sm:$0xf] }
 0x109   : > { %4519 = vmatpush.bf16.msra.mxu0 %v8455_v35  ;;  %v8699_v35 = vor.u32 %v12288_v24, %v8696_v25  ;;  %v12188_v24 = vld [vmem:[%s13800_s4 + $0x14] sm:$0xf]  ;;  %v8296_v25 = vld [vmem:[%s13800_s4 + $0x60] sm:$0xf0] }
 0x10a   : > { %4532 = vmatpush.bf16.msra.mxu1 %v9095_v36  ;;  %v9339_v36 = vor.u32 %v12448_v26, %v9336_v28  ;;  %v12348_v26 = vld [vmem:[%s13800_s4 + $0x514] sm:$0xf]  ;;  %v9019_v28 = vor.u32 %v12368_v12, %v9016_v15  ;;  %v8299_v45 = vor.u32 %v12188_v24, %v8296_v25  ;;  %v12299_v12 = vld [vmem:[%s13800_s4 + $0x384] sm:$0xf0]  ;;  %v8622_v25 = vld [vmem:[%s13800_s4 + $0x298] sm:$0xf] }
 0x10b   : > { %4545 = vmatpush.bf16.msra.mxu2 %v9735_v37  ;;  %v9979_v37 = vor.u32 %v12608_v29, %v9976_v30  ;;  %v9659_v29 = vor.u32 %v12528_v18, %v9656_v19  ;;  %v8936_v30 = vld [vmem:[%s13800_s4 + $0x560] sm:$0xf0]  ;;  %v12459_v15 = vld [vmem:[%s13800_s4 + $0x884] sm:$0xf0]  ;;  %v9982_v18 = vld [vmem:[%s13800_s4 + $0xd38] sm:$0xf] }
 0x10c   : > { %4558 = vmatpush.bf16.msra.mxu3 %v10375_v41  ;;  %v10619_v41 = vor.u32 %v12768_v33, %v10616_v34  ;;  %v12508_v33 = vld [vmem:[%s13800_s4 + $0xa14] sm:$0xf]  ;;  %v9576_v34 = vld [vmem:[%s13800_s4 + $0xa60] sm:$0xf0]  ;;  %v12619_v19 = vld [vmem:[%s13800_s4 + $0xd84] sm:$0xf0] }
 0x10d   : > { %4520 = vmatpush.bf16.msra.mxu0 %v8375_v47  ;;  %v8619_v47 = vor.u32 %v12268_v38, %v8616_v39  ;;  %v10216_v38 = vld [vmem:[%s13800_s4 + $0xf60] sm:$0xf0]  ;;  %v8862_v39 = vld [vmem:[%s13800_s4 + $0x478] sm:$0xf]  ;;  %v9983_v24 = vor.u32 %v12619_v19, %v9982_v18 }
 0x10e   : > { %4533 = vmatpush.bf16.msra.mxu1 %v9015_v50  ;;  %v12248_v50 = vld [vmem:[%s13800_s4 + $0x1f4] sm:$0xf]  ;;  %v10302_v19 = vld [vmem:[%s13800_s4 + $0xfb8] sm:$0xf] }
 0x10f   : > { %4546 = vmatpush.bf16.msra.mxu2 %v9655_v51  ;;  %v8536_v51 = vld [vmem:[%s13800_s4 + $0x240] sm:$0xf0] }
 0x110   : > { %4559 = vmatpush.bf16.msra.mxu3 %v10295_v55  ;;  %v12568_v55 = vld [vmem:[%s13800_s4 + $0xbf4] sm:$0xf]  ;;  %v8539_v59 = vor.u32 %v12248_v50, %v8536_v51  ;;  %v8939_v50 = vor.u32 %v12348_v26, %v8936_v30  ;;  %v9579_v51 = vor.u32 %v12508_v33, %v9576_v34  ;;  %v12279_v26 = vld [vmem:[%s13800_s4 + $0x2e4] sm:$0xf0]  ;;  %v9902_v30 = vld [vmem:[%s13800_s4 + $0xc98] sm:$0xf] }
 0x111   : > { %4521 = vmatpush.bf16.msra.mxu0 %v8295_v62  ;;  %v9819_v61 = vor.u32 %v12568_v55, %v9816_v56  ;;  %v12228_v62 = vld [vmem:[%s13800_s4 + $0x154] sm:$0xf]  ;;  %v8863_v56 = vor.u32 %v12339_v42, %v8862_v39  ;;  %v12599_v33 = vld [vmem:[%s13800_s4 + $0xce4] sm:$0xf0]  ;;  %v10542_v34 = vld [vmem:[%s13800_s4 + $0x1198] sm:$0xf] }
 0x112   : > { %4534 = vmatpush.bf16.msra.mxu1 %v8935_v2  ;;  %v9096_v2 = vld [vmem:[%s13800_s4 + $0x6a0] sm:$0xf0]  ;;  %v9903_v39 = vor.u32 %v12599_v33, %v9902_v30  ;;  %v9182_v42 = vld [vmem:[%s13800_s4 + $0x6f8] sm:$0xf]  ;;  %v12519_v33 = vld [vmem:[%s13800_s4 + $0xa64] sm:$0xf0] }
 0x113   : > { %4547 = vmatpush.bf16.msra.mxu2 %v9575_v3  ;;  %v12548_v3 = vld [vmem:[%s13800_s4 + $0xb54] sm:$0xf] }
 0x114   : > { %4560 = vmatpush.bf16.msra.mxu3 %v10215_v6  ;;  %4522 = vmatmul.bf16.vlgmr.msra.gmra.mxu0 %v13929_v31  ;;  %v10376_v6 = vld [vmem:[%s13800_s4 + $0x10a0] sm:$0xf0] }
 0x115   : > { %4566 = vmatpush.bf16.msrb.mxu0 %v8859_v7  ;;  %4535 = vmatmul.bf16.vlgmr.msra.gmra.mxu1 %v13931_v32  ;;  %v8459_v7 = vor.u32 %v12228_v62, %v8456_v63  ;;  %v10379_v14 = vor.u32 %v12708_v5, %v10376_v6  ;;  %v9422_v62 = vld [vmem:[%s13800_s4 + $0x8d8] sm:$0xf]  ;;  %v12479_v63 = vld [vmem:[%s13800_s4 + $0x924] sm:$0xf0] }
 0x116   : > { %4579 = vmatpush.bf16.msrb.mxu1 %v9499_v8  ;;  %4548 = vmatmul.bf16.vlgmr.msra.gmra.mxu2 %v13917_v16  ;;  %v9099_v8 = vor.u32 %v12388_v0, %v9096_v2  ;;  %v10062_v2 = vld [vmem:[%s13800_s4 + $0xdd8] sm:$0xf]  ;;  %v12799_v5 = vld [vmem:[%s13800_s4 + $0x1324] sm:$0xf0] }
 0x117   : > { %4592 = vmatpush.bf16.msrb.mxu2 %v10139_v9  ;;  %4561 = vmatmul.bf16.vlgmr.msra.gmra.mxu3 %v13919_v17  ;;  %v9739_v9 = vor.u32 %v12548_v3, %v9736_v4  ;;  %v12639_v3 = vld [vmem:[%s13800_s4 + $0xe24] sm:$0xf0]  ;;  %v10702_v4 = vld [vmem:[%s13800_s4 + $0x12d8] sm:$0xf] }
 0x118   : > { %4605 = vmatpush.bf16.msrb.mxu3 %v10779_v13 }
 0x119   : > { %4567 = vmatpush.bf16.msrb.mxu0 %v8779_v21  ;;  %v10296_v21 = vld [vmem:[%s13800_s4 + $0x1000] sm:$0xf0] }
 0x11a   : > { %4580 = vmatpush.bf16.msrb.mxu1 %v9419_v22  ;;  %v4328_v13 = vpop.f32.mrf.mxu1 }
 0x11b   : > { %4593 = vmatpush.bf16.msrb.mxu2 %v10059_v23  ;;  %v4315_v22 = vpop.f32.mrf.mxu0  ;;  %v8379_v23 = vor.u32 %v12208_v10, %v8376_v11  ;;  %v10063_v10 = vor.u32 %v12639_v3, %v10062_v2  ;;  %v8702_v11 = vld [vmem:[%s13800_s4 + $0x338] sm:$0xf] }
 0x11c   : > { %4606 = vmatpush.bf16.msrb.mxu3 %v10699_v27  ;;  %v4329_v27 = vadd.f32 %v4328_v13, %v4315_v22  ;;  %v9342_v13 = vld [vmem:[%s13800_s4 + $0x838] sm:$0xf]  ;;  %v8703_v22 = vor.u32 %v12299_v12, %v8702_v11 }
 0x11d   : > { %4568 = vmatpush.bf16.msrb.mxu0 %v8699_v35  ;;  %v4341_v35 = vpop.f32.mrf.mxu2  ;;  %v431_v2 = vld [vmem:[#allocation2 + $0x38] sm:$0xff] }
 0x11e   : > { %4581 = vmatpush.bf16.msrb.mxu1 %v9339_v36  ;;  %v10299_v36 = vor.u32 %v12688_v20, %v10296_v21  ;;  %v4342_v40 = vadd.f32 %v4341_v35, %v4329_v27  ;;  %v10622_v20 = vld [vmem:[%s13800_s4 + $0x1238] sm:$0xf]  ;;  %v12779_v21 = vld [vmem:[%s13800_s4 + $0x1284] sm:$0xf0] }
 0x11f   : > { %4594 = vmatpush.bf16.msrb.mxu2 %v9979_v37  ;;  %v12668_v37 = vld [vmem:[%s13800_s4 + $0xf14] sm:$0xf]  ;;  %v9262_v27 = vld [vmem:[%s13800_s4 + $0x798] sm:$0xf]  ;;  %v12759_v35 = vld [vmem:[%s13800_s4 + $0x11e4] sm:$0xf0] }
 0x120   : > { %4607 = vmatpush.bf16.msrb.mxu3 %v10619_v41  ;;  %v4354_v41 = vpop.f32.mrf.mxu3  ;;  %v10219_v55 = vor.u32 %v12668_v37, %v10216_v38 }
 0x121   : > { %4569 = vmatpush.bf16.msrb.mxu0 %v8619_v47  ;;  %v10142_v47 = vld [vmem:[%s13800_s4 + $0xe78] sm:$0xf] }
 0x122   : > { %4582 = vmatpush.bf16.msrb.mxu1 %v9259_v48  ;;  %v12659_v48 = vld [vmem:[%s13800_s4 + $0xec4] sm:$0xf0]  ;;  %v4330_v54 = vpop.f32.mrf.mxu1 }
 0x123   : > { %4595 = vmatpush.bf16.msrb.mxu2 %v9899_v49  ;;  %v4355_v49 = vadd.f32 %v4354_v41, %v4342_v40  ;;  %v4317_v0 = vpop.f32.mrf.mxu0  ;;  %v8542_v40 = vld [vmem:[%s13800_s4 + $0x1f8] sm:$0xf]  ;;  %v12259_v41 = vld [vmem:[%s13800_s4 + $0x244] sm:$0xf0] }
 0x124   : > { %4608 = vmatpush.bf16.msrb.mxu3 %v10539_v53  ;;  %v12819_v53 = vld [vmem:[%s13800_s4 + $0x13c4] sm:$0xf0]  ;;  %v8462_v54 = vld [vmem:[%s13800_s4 + $0x158] sm:$0xf] }
 0x125   : > { %4570 = vmatpush.bf16.msrb.mxu0 %v8539_v59  ;;  %v5346_v58 = vadd.f32 %v4355_v49, %v430_v44  ;;  %v9503_v59 = vor.u32 %v12499_v46, %v9502_v43  ;;  %v4343_v6 = vpop.f32.mrf.mxu2  ;;  %v10543_v44 = vor.u32 %v12759_v35, %v10542_v34  ;;  %v9822_v46 = vld [vmem:[%s13800_s4 + $0xbf8] sm:$0xf]  ;;  %v12679_v35 = vld [vmem:[%s13800_s4 + $0xf64] sm:$0xf0] }
 0x126   : > { %4583 = vmatpush.bf16.msrb.mxu1 %v9179_v60  ;;  %v10143_v60 = vor.u32 %v12659_v48, %v10142_v47  ;;  %v12579_v47 = vld [vmem:[%s13800_s4 + $0xc44] sm:$0xf0]  ;;  %v10462_v49 = vld [vmem:[%s13800_s4 + $0x10f8] sm:$0xf] }
 0x127   : > { %4596 = vmatpush.bf16.msrb.mxu2 %v9819_v61  ;;  %v12319_v61 = vld [vmem:[%s13800_s4 + $0x424] sm:$0xf0]  ;;  %5366 = vst [vmem:[#allocation2] sm:$0xff] %v5346_v58  ;;  %v10382_v0 = vld [vmem:[%s13800_s4 + $0x1058] sm:$0xf] }
 0x128   : > { %4609 = vmatpush.bf16.msrb.mxu3 %v10459_v1  ;;  %v10783_v1 = vor.u32 %v12819_v53, %v10782_v52  ;;  %v9823_v53 = vor.u32 %v12579_v47, %v9822_v46  ;;  %v10222_v34 = vld [vmem:[%s13800_s4 + $0xf18] sm:$0xf]  ;;  %v12809_v46 = vld [vmem:[%s13800_s4 + $0x137c] sm:$0xf]  ;;  %v10784_v47 = vld [vmem:[%s13800_s4 + $0x13c8] sm:$0xf0] }
 0x129   : > { %4571 = vmatpush.bf16.msrb.mxu0 %v8459_v7  ;;  %v8783_v7 = vor.u32 %v12319_v61, %v8782_v57  ;;  %v12559_v61 = vld [vmem:[%s13800_s4 + $0xba4] sm:$0xf0] }
 0x12a   : > { %4584 = vmatpush.bf16.msrb.mxu1 %v9099_v8  ;;  %v4356_v8 = vpop.f32.mrf.mxu3 }
 0x12b   : > { %4597 = vmatpush.bf16.msrb.mxu2 %v9739_v9  ;;  %v9423_v9 = vor.u32 %v12479_v63, %v9422_v62  ;;  %v8382_v8 = vld [vmem:[%s13800_s4 + $0xb8] sm:$0xf] }
 0x12c   : > { %4610 = vmatpush.bf16.msrb.mxu3 %v10379_v14  ;;  %v10703_v14 = vor.u32 %v12799_v5, %v10702_v4 }
 0x12d   : > { %4572 = vmatpush.bf16.msrb.mxu0 %v8379_v23  ;;  %v9343_v23 = vor.u32 %v12459_v15, %v9342_v13  ;;  %v12379_v13 = vld [vmem:[%s13800_s4 + $0x604] sm:$0xf0] }
 0x12e   : > { %4585 = vmatpush.bf16.msrb.mxu1 %v9019_v28  ;;  %v10623_v28 = vor.u32 %v12779_v21, %v10622_v20  ;;  %v12539_v15 = vld [vmem:[%s13800_s4 + $0xb04] sm:$0xf0] }
 0x12f   : > { %4598 = vmatpush.bf16.msrb.mxu2 %v9659_v29  ;;  %v12439_v29 = vld [vmem:[%s13800_s4 + $0x7e4] sm:$0xf0] }
 0x130   : > { %4611 = vmatpush.bf16.msrb.mxu3 %v10299_v36  ;;  %v8623_v36 = vor.u32 %v12279_v26, %v8622_v25  ;;  %v9263_v38 = vor.u32 %v12439_v29, %v9262_v27  ;;  %v12699_v20 = vld [vmem:[%s13800_s4 + $0x1004] sm:$0xf0]  ;;  %v8942_v26 = vld [vmem:[%s13800_s4 + $0x518] sm:$0xf] }
 0x131   : > { %4573 = vmatpush.bf16.msrb.mxu0 %v8299_v45  ;;  %v4367_v37 = vpop.f32.mrf.mxu0  ;;  %v12419_v45 = vld [vmem:[%s13800_s4 + $0x744] sm:$0xf0]  ;;  %v10303_v30 = vor.u32 %v12699_v20, %v10302_v19  ;;  %v12589_v19 = vld [vmem:[%s13800_s4 + $0xc9c] sm:$0xf]  ;;  %v9904_v20 = vld [vmem:[%s13800_s4 + $0xce8] sm:$0xf0] }
 0x132   : > { %4586 = vmatpush.bf16.msrb.mxu1 %v8939_v50  ;;  %v4380_v43 = vpop.f32.mrf.mxu1  ;;  %v12739_v50 = vld [vmem:[%s13800_s4 + $0x1144] sm:$0xf0]  ;;  %v9183_v52 = vor.u32 %v12419_v45, %v9182_v42  ;;  %v12649_v42 = vld [vmem:[%s13800_s4 + $0xe7c] sm:$0xf] }
 0x133   : > { %4599 = vmatpush.bf16.msrb.mxu2 %v9579_v51  ;;  %v4381_v48 = vadd.f32 %v4380_v43, %v4367_v37  ;;  %v8543_v51 = vor.u32 %v12259_v41, %v8542_v40  ;;  %v10463_v58 = vor.u32 %v12739_v50, %v10462_v49  ;;  %v12359_v27 = vld [vmem:[%s13800_s4 + $0x564] sm:$0xf0]  ;;  %v12329_v37 = vld [vmem:[%s13800_s4 + $0x47c] sm:$0xf]  ;;  %v9504_v41 = vld [vmem:[%s13800_s4 + $0x9c8] sm:$0xf0] }
 0x134   : > { %4612 = vmatpush.bf16.msrb.mxu3 %v10219_v55  ;;  %4574 = vmatmul.bf16.vlgmr.msrb.gmra.mxu0 %v13929_v31  ;;  %v12239_v55 = vld [vmem:[%s13800_s4 + $0x1a4] sm:$0xf0]  ;;  %v10144_v43 = vld [vmem:[%s13800_s4 + $0xec8] sm:$0xf0] }
 0x135   : > { %4618 = vmatpush.bf16.msra.mxu0 %v8863_v56  ;;  %4587 = vmatmul.bf16.vlgmr.msrb.gmra.mxu1 %v13931_v32  ;;  %v9102_v56 = vld [vmem:[%s13800_s4 + $0x658] sm:$0xf]  ;;  %v8463_v3 = vor.u32 %v12239_v55, %v8462_v54  ;;  %v12469_v54 = vld [vmem:[%s13800_s4 + $0x8dc] sm:$0xf]  ;;  %v10787_v55 = vor.u32 %v12809_v46, %v10784_v47 }
 0x136   : > { %4631 = vmatpush.bf16.msra.mxu1 %v9503_v59  ;;  %4600 = vmatmul.bf16.vlgmr.msrb.gmra.mxu2 %v13917_v16  ;;  %v12399_v59 = vld [vmem:[%s13800_s4 + $0x6a4] sm:$0xf0] }
 0x137   : > { %4644 = vmatpush.bf16.msra.mxu2 %v10143_v60  ;;  %4613 = vmatmul.bf16.vlgmr.msrb.gmra.mxu3 %v13919_v17  ;;  %v9742_v60 = vld [vmem:[%s13800_s4 + $0xb58] sm:$0xf]  ;;  %v9103_v6 = vor.u32 %v12399_v59, %v9102_v56  ;;  %v9424_v56 = vld [vmem:[%s13800_s4 + $0x928] sm:$0xf0]  ;;  %v12789_v59 = vld [vmem:[%s13800_s4 + $0x12dc] sm:$0xf] }
 0x138   : > { %4657 = vmatpush.bf16.msra.mxu3 %v10783_v1  ;;  %v12719_v1 = vld [vmem:[%s13800_s4 + $0x10a4] sm:$0xf0] }
 0x139   : > { %4619 = vmatpush.bf16.msra.mxu0 %v8783_v7  ;;  %v4393_v57 = vpop.f32.mrf.mxu2  ;;  %v4369_v5 = vpop.f32.mrf.mxu0  ;;  %v9743_v7 = vor.u32 %v12559_v61, %v9742_v60  ;;  %v10383_v12 = vor.u32 %v12719_v1, %v10382_v0  ;;  %v10704_v60 = vld [vmem:[%s13800_s4 + $0x1328] sm:$0xf0]  ;;  %v12289_v0 = vld [vmem:[%s13800_s4 + $0x33c] sm:$0xf] }
 0x13a   : > { %4632 = vmatpush.bf16.msra.mxu1 %v9423_v9  ;;  %v4394_v62 = vadd.f32 %v4393_v57, %v4381_v48  ;;  %v4406_v63 = vpop.f32.mrf.mxu3  ;;  %v12219_v9 = vld [vmem:[%s13800_s4 + $0x104] sm:$0xf0]  ;;  %v4382_v11 = vpop.f32.mrf.mxu1  ;;  %v10223_v48 = vor.u32 %v12679_v35, %v10222_v34  ;;  %v12629_v57 = vld [vmem:[%s13800_s4 + $0xddc] sm:$0xf]  ;;  %v8704_v1 = vld [vmem:[%s13800_s4 + $0x388] sm:$0xf0] }
 0x13b   : > { %4645 = vmatpush.bf16.msra.mxu2 %v10063_v10  ;;  %v9022_v10 = vld [vmem:[%s13800_s4 + $0x5b8] sm:$0xf]  ;;  %v8383_v21 = vor.u32 %v12219_v9, %v8382_v8  ;;  %v12609_v5 = vld [vmem:[%s13800_s4 + $0xd3c] sm:$0xf]  ;;  %v10624_v8 = vld [vmem:[%s13800_s4 + $0x1288] sm:$0xf0]  ;;  %v8707_v9 = vor.u32 %v12289_v0, %v8704_v1 }
 0x13c   : > { %4658 = vmatpush.bf16.msra.mxu3 %v10703_v14  ;;  %v4407_v4 = vadd.f32 %v4406_v63, %v4394_v62  ;;  %v9662_v14 = vld [vmem:[%s13800_s4 + $0xab8] sm:$0xf]  ;;  %v9427_v62 = vor.u32 %v12469_v54, %v9424_v56  ;;  %v9184_v34 = vld [vmem:[%s13800_s4 + $0x748] sm:$0xf0]  ;;  %v12569_v35 = vld [vmem:[%s13800_s4 + $0xbfc] sm:$0xf] }
 0x13d   : > { %4620 = vmatpush.bf16.msra.mxu0 %v8703_v22  ;;  %v8302_v22 = vld [vmem:[%s13800_s4 + $0x18] sm:$0xf]  ;;  %v9663_v25 = vor.u32 %v12539_v15, %v9662_v14  ;;  %v12429_v14 = vld [vmem:[%s13800_s4 + $0x79c] sm:$0xf]  ;;  %v10384_v54 = vld [vmem:[%s13800_s4 + $0x10a8] sm:$0xf0] }
 0x13e   : > { %4633 = vmatpush.bf16.msra.mxu1 %v9343_v23  ;;  %v5347_v18 = vadd.f32 %v4407_v4, %v431_v2  ;;  %v12199_v23 = vld [vmem:[%s13800_s4 + $0x64] sm:$0xf0]  ;;  %v12449_v2 = vld [vmem:[%s13800_s4 + $0x83c] sm:$0xf]  ;;  %v9344_v4 = vld [vmem:[%s13800_s4 + $0x888] sm:$0xf0] }
 0x13f   : > { %4646 = vmatpush.bf16.msra.mxu2 %v9983_v24  ;;  %v9023_v24 = vor.u32 %v12379_v13, %v9022_v10  ;;  %v8303_v40 = vor.u32 %v12199_v23, %v8302_v22  ;;  %v9347_v10 = vor.u32 %v12449_v2, %v9344_v4  ;;  %v8624_v13 = vld [vmem:[%s13800_s4 + $0x2e8] sm:$0xf0] }
 0x140   : > { %4659 = vmatpush.bf16.msra.mxu3 %v10623_v28  ;;  %5367 = vst [vmem:[#allocation2 + $0x38] sm:$0xff] %v5347_v18  ;;  %v9582_v28 = vld [vmem:[%s13800_s4 + $0xa18] sm:$0xf]  ;;  %v9264_v18 = vld [vmem:[%s13800_s4 + $0x7e8] sm:$0xf0] }
 0x141   : > { %4621 = vmatpush.bf16.msra.mxu0 %v8623_v36  ;;  %v4395_v29 = vpop.f32.mrf.mxu2  ;;  %v9583_v45 = vor.u32 %v12519_v33, %v9582_v28  ;;  %v10544_v22 = vld [vmem:[%s13800_s4 + $0x11e8] sm:$0xf0] }
 0x142   : > { %4634 = vmatpush.bf16.msra.mxu1 %v9263_v38  ;;  %v4408_v36 = vpop.f32.mrf.mxu3  ;;  %v8864_v38 = vld [vmem:[%s13800_s4 + $0x4c8] sm:$0xf0]  ;;  %v12409_v29 = vld [vmem:[%s13800_s4 + $0x6fc] sm:$0xf] }
 0x143   : > { %4647 = vmatpush.bf16.msra.mxu2 %v9903_v39  ;;  %v12489_v39 = vld [vmem:[%s13800_s4 + $0x97c] sm:$0xf]  ;;  %v8867_v49 = vor.u32 %v12329_v37, %v8864_v38  ;;  %v8544_v28 = vld [vmem:[%s13800_s4 + $0x248] sm:$0xf0] }
 0x144   : > { %4660 = vmatpush.bf16.msra.mxu3 %v10543_v44  ;;  %v8943_v44 = vor.u32 %v12359_v27, %v8942_v26  ;;  %v9507_v50 = vor.u32 %v12489_v39, %v9504_v41  ;;  %v9907_v26 = vor.u32 %v12589_v19, %v9904_v20  ;;  %v12249_v27 = vld [vmem:[%s13800_s4 + $0x1fc] sm:$0xf]  ;;  %v9824_v36 = vld [vmem:[%s13800_s4 + $0xc48] sm:$0xf0]  ;;  %v9187_v41 = vor.u32 %v12409_v29, %v9184_v34  ;;  %v10150_v29 = vld [vmem:[%s13800_s4 + $0xe80] sm:$0xf] }
 0x145   : > { %4622 = vmatpush.bf16.msra.mxu0 %v8543_v51  ;;  %v10147_v51 = vor.u32 %v12649_v42, %v10144_v43  ;;  %v12729_v38 = vld [vmem:[%s13800_s4 + $0x10fc] sm:$0xf]  ;;  %v10464_v39 = vld [vmem:[%s13800_s4 + $0x1148] sm:$0xf0]  ;;  %v9827_v42 = vor.u32 %v12569_v35, %v9824_v36  ;;  %v10790_v35 = vld [vmem:[%s13800_s4 + $0x1380] sm:$0xf] }
 0x146   : > { %4635 = vmatpush.bf16.msra.mxu1 %v9183_v52  ;;  %v12309_v52 = vld [vmem:[%s13800_s4 + $0x3dc] sm:$0xf]  ;;  %v10467_v47 = vor.u32 %v12729_v38, %v10464_v39  ;;  %v9024_v2 = vld [vmem:[%s13800_s4 + $0x608] sm:$0xf0]  ;;  %v12820_v36 = vld [vmem:[%s13800_s4 + $0x13cc] sm:$0xf0] }
 0x147   : > { %4648 = vmatpush.bf16.msra.mxu2 %v9823_v53  ;;  %v8784_v53 = vld [vmem:[%s13800_s4 + $0x428] sm:$0xf0]  ;;  %v12229_v43 = vld [vmem:[%s13800_s4 + $0x15c] sm:$0xf] }
 0x148   : > { %4661 = vmatpush.bf16.msra.mxu3 %v10463_v58  ;;  %v10064_v58 = vld [vmem:[%s13800_s4 + $0xe28] sm:$0xf0]  ;;  %v8787_v61 = vor.u32 %v12309_v52, %v8784_v53  ;;  %v12709_v53 = vld [vmem:[%s13800_s4 + $0x105c] sm:$0xf] }
 0x149   : > { %4623 = vmatpush.bf16.msra.mxu0 %v8463_v3  ;;  %v10067_v63 = vor.u32 %v12629_v57, %v10064_v58  ;;  %v10707_v3 = vor.u32 %v12789_v59, %v10704_v60  ;;  %v10387_v1 = vor.u32 %v12709_v53, %v10384_v54  ;;  %v9664_v4 = vld [vmem:[%s13800_s4 + $0xb08] sm:$0xf0]  ;;  %v8710_v53 = vld [vmem:[%s13800_s4 + $0x340] sm:$0xf]  ;;  %v12300_v54 = vld [vmem:[%s13800_s4 + $0x38c] sm:$0xf0] }
 0x14a   : > { %4636 = vmatpush.bf16.msra.mxu1 %v9103_v6  ;;  %v9984_v6 = vld [vmem:[%s13800_s4 + $0xd88] sm:$0xf0] }
 0x14b   : > { %4649 = vmatpush.bf16.msra.mxu2 %v9743_v7  ;;  %v12769_v7 = vld [vmem:[%s13800_s4 + $0x123c] sm:$0xf]  ;;  %v9987_v11 = vor.u32 %v12609_v5, %v9984_v6  ;;  %v9584_v20 = vld [vmem:[%s13800_s4 + $0xa68] sm:$0xf0] }
 0x14c   : > { %4662 = vmatpush.bf16.msra.mxu3 %v10383_v12  ;;  %v12269_v12 = vld [vmem:[%s13800_s4 + $0x29c] sm:$0xf]  ;;  %v10627_v15 = vor.u32 %v12769_v7, %v10624_v8  ;;  %v10304_v7 = vld [vmem:[%s13800_s4 + $0x1008] sm:$0xf0] }
 0x14d   : > { %4624 = vmatpush.bf16.msra.mxu0 %v8383_v21  ;;  %v12749_v21 = vld [vmem:[%s13800_s4 + $0x119c] sm:$0xf]  ;;  %v8627_v23 = vor.u32 %v12269_v12, %v8624_v13 }
 0x14e   : > { %4637 = vmatpush.bf16.msra.mxu1 %v9023_v24  ;;  %v10547_v33 = vor.u32 %v12749_v21, %v10544_v22  ;;  %v12689_v6 = vld [vmem:[%s13800_s4 + $0xfbc] sm:$0xf]  ;;  %v10224_v22 = vld [vmem:[%s13800_s4 + $0xf68] sm:$0xf0] }
 0x14f   : > { %4650 = vmatpush.bf16.msra.mxu2 %v9663_v25  ;;  %v9267_v25 = vor.u32 %v12429_v14, %v9264_v18  ;;  %v12349_v13 = vld [vmem:[%s13800_s4 + $0x51c] sm:$0xf]  ;;  %v8944_v14 = vld [vmem:[%s13800_s4 + $0x568] sm:$0xf0]  ;;  %v10307_v19 = vor.u32 %v12689_v6, %v10304_v7  ;;  %v9910_v6 = vld [vmem:[%s13800_s4 + $0xca0] sm:$0xf] }
 0x150   : > { %4663 = vmatpush.bf16.msra.mxu3 %v10303_v30  ;;  %v12669_v21 = vld [vmem:[%s13800_s4 + $0xf1c] sm:$0xf]  ;;  %v12600_v7 = vld [vmem:[%s13800_s4 + $0xcec] sm:$0xf0] }
 0x151   : > { %4625 = vmatpush.bf16.msra.mxu0 %v8303_v40  ;;  %v4419_v24 = vpop.f32.mrf.mxu0  ;;  %v8547_v40 = vor.u32 %v12249_v27, %v8544_v28  ;;  %v12500_v28 = vld [vmem:[%s13800_s4 + $0x9cc] sm:$0xf0] }
 0x152   : > { %4638 = vmatpush.bf16.msra.mxu1 %v8943_v44  ;;  %v4432_v30 = vpop.f32.mrf.mxu1  ;;  %v8464_v44 = vld [vmem:[%s13800_s4 + $0x1a8] sm:$0xf0] }
 0x153   : > { %4651 = vmatpush.bf16.msra.mxu2 %v9583_v45  ;;  %v4433_v37 = vadd.f32 %v4432_v30, %v4419_v24  ;;  %v12389_v45 = vld [vmem:[%s13800_s4 + $0x65c] sm:$0xf]  ;;  %v8467_v56 = vor.u32 %v12229_v43, %v8464_v44  ;;  %v8870_v24 = vld [vmem:[%s13800_s4 + $0x480] sm:$0xf]  ;;  %v12660_v30 = vld [vmem:[%s13800_s4 + $0xecc] sm:$0xf0]  ;;  %v10791_v44 = vor.u32 %v12820_v36, %v10790_v35 }
 0x154   : > { %4664 = vmatpush.bf16.msra.mxu3 %v10223_v48  ;;  %4626 = vmatmul.bf16.vlgmr.msra.gmra.mxu0 %v13929_v31  ;;  %v9104_v48 = vld [vmem:[%s13800_s4 + $0x6a8] sm:$0xf0]  ;;  %v9430_v43 = vld [vmem:[%s13800_s4 + $0x8e0] sm:$0xf] }
 0x155   : > { %4670 = vmatpush.bf16.msrb.mxu0 %v8867_v49  ;;  %4639 = vmatmul.bf16.vlgmr.msra.gmra.mxu1 %v13931_v32  ;;  %v12549_v49 = vld [vmem:[%s13800_s4 + $0xb5c] sm:$0xf]  ;;  %v9107_v59 = vor.u32 %v12389_v45, %v9104_v48  ;;  %v12480_v45 = vld [vmem:[%s13800_s4 + $0x92c] sm:$0xf0]  ;;  %v10710_v48 = vld [vmem:[%s13800_s4 + $0x12e0] sm:$0xf] }
 0x156   : > { %4683 = vmatpush.bf16.msrb.mxu1 %v9507_v50  ;;  %4652 = vmatmul.bf16.vlgmr.msra.gmra.mxu2 %v13917_v16  ;;  %v9744_v50 = vld [vmem:[%s13800_s4 + $0xba8] sm:$0xf0] }
 0x157   : > { %4696 = vmatpush.bf16.msrb.mxu2 %v10147_v51  ;;  %4665 = vmatmul.bf16.vlgmr.msra.gmra.mxu3 %v13919_v17  ;;  %v9747_v60 = vor.u32 %v12549_v49, %v9744_v50  ;;  %v12800_v49 = vld [vmem:[%s13800_s4 + $0x132c] sm:$0xf0] }
 0x158   : > { %4709 = vmatpush.bf16.msrb.mxu3 %v10787_v55  ;;  %v432_v55 = vld [vmem:[#allocation2 + $0x50] sm:$0xff] }
 0x159   : > { %4671 = vmatpush.bf16.msrb.mxu0 %v8787_v61  ;;  %v4445_v46 = vpop.f32.mrf.mxu2  ;;  %v4421_v58 = vpop.f32.mrf.mxu0  ;;  %v12209_v61 = vld [vmem:[%s13800_s4 + $0xbc] sm:$0xf] }
 0x15a   : > { %4684 = vmatpush.bf16.msrb.mxu1 %v9427_v62  ;;  %v4446_v51 = vadd.f32 %v4445_v46, %v4433_v37  ;;  %v4458_v52 = vpop.f32.mrf.mxu3  ;;  %v8384_v62 = vld [vmem:[%s13800_s4 + $0x108] sm:$0xf0]  ;;  %v4434_v0 = vpop.f32.mrf.mxu1  ;;  %v10227_v37 = vor.u32 %v12669_v21, %v10224_v22  ;;  %v10070_v46 = vld [vmem:[%s13800_s4 + $0xde0] sm:$0xf]  ;;  %v12420_v21 = vld [vmem:[%s13800_s4 + $0x74c] sm:$0xf0] }
 0x15b   : > { %4697 = vmatpush.bf16.msrb.mxu2 %v10067_v63  ;;  %v12369_v63 = vld [vmem:[%s13800_s4 + $0x5bc] sm:$0xf]  ;;  %v8387_v8 = vor.u32 %v12209_v61, %v8384_v62  ;;  %v9990_v58 = vld [vmem:[%s13800_s4 + $0xd40] sm:$0xf]  ;;  %v12780_v61 = vld [vmem:[%s13800_s4 + $0x128c] sm:$0xf0]  ;;  %v8711_v62 = vor.u32 %v12300_v54, %v8710_v53 }
 0x15c   : > { %4710 = vmatpush.bf16.msrb.mxu3 %v10707_v3  ;;  %v4459_v57 = vadd.f32 %v4458_v52, %v4446_v51  ;;  %v12529_v3 = vld [vmem:[%s13800_s4 + $0xabc] sm:$0xf]  ;;  %v9431_v51 = vor.u32 %v12480_v45, %v9430_v43  ;;  %v9830_v22 = vld [vmem:[%s13800_s4 + $0xc00] sm:$0xf]  ;;  %v12720_v43 = vld [vmem:[%s13800_s4 + $0x10ac] sm:$0xf0] }
 0x15d   : > { %4672 = vmatpush.bf16.msrb.mxu0 %v8707_v9  ;;  %v12189_v9 = vld [vmem:[%s13800_s4 + $0x1c] sm:$0xf]  ;;  %v9667_v12 = vor.u32 %v12529_v3, %v9664_v4  ;;  %v9270_v3 = vld [vmem:[%s13800_s4 + $0x7a0] sm:$0xf] }
 0x15e   : > { %4685 = vmatpush.bf16.msrb.mxu1 %v9347_v10  ;;  %v5348_v5 = vadd.f32 %v4459_v57, %v432_v55  ;;  %v8304_v10 = vld [vmem:[%s13800_s4 + $0x68] sm:$0xf0]  ;;  %v9350_v55 = vld [vmem:[%s13800_s4 + $0x840] sm:$0xf]  ;;  %v12460_v57 = vld [vmem:[%s13800_s4 + $0x88c] sm:$0xf0] }
 0x15f   : > { %4698 = vmatpush.bf16.msrb.mxu2 %v9987_v11  ;;  %v9027_v11 = vor.u32 %v12369_v63, %v9024_v2  ;;  %v8307_v27 = vor.u32 %v12189_v9, %v8304_v10  ;;  %v9351_v63 = vor.u32 %v12460_v57, %v9350_v55  ;;  %v12280_v2 = vld [vmem:[%s13800_s4 + $0x2ec] sm:$0xf0] }
 0x160   : > { %4711 = vmatpush.bf16.msrb.mxu3 %v10627_v15  ;;  %5368 = vst [vmem:[#allocation2 + $0x50] sm:$0xff] %v5348_v5  ;;  %v12509_v15 = vld [vmem:[%s13800_s4 + $0xa1c] sm:$0xf]  ;;  %v12440_v5 = vld [vmem:[%s13800_s4 + $0x7ec] sm:$0xf0] }
 0x161   : > { %4673 = vmatpush.bf16.msrb.mxu0 %v8627_v23  ;;  %v4447_v18 = vpop.f32.mrf.mxu2  ;;  %v9587_v34 = vor.u32 %v12509_v15, %v9584_v20  ;;  %v12760_v9 = vld [vmem:[%s13800_s4 + $0x11ec] sm:$0xf0] }
 0x162   : > { %4686 = vmatpush.bf16.msrb.mxu1 %v9267_v25  ;;  %v4460_v23 = vpop.f32.mrf.mxu3  ;;  %v12340_v25 = vld [vmem:[%s13800_s4 + $0x4cc] sm:$0xf0]  ;;  %v9190_v18 = vld [vmem:[%s13800_s4 + $0x700] sm:$0xf] }
 0x163   : > { %4699 = vmatpush.bf16.msrb.mxu2 %v9907_v26  ;;  %v9510_v26 = vld [vmem:[%s13800_s4 + $0x980] sm:$0xf]  ;;  %v8871_v38 = vor.u32 %v12340_v25, %v8870_v24  ;;  %v12260_v15 = vld [vmem:[%s13800_s4 + $0x24c] sm:$0xf0] }
 0x164   : > { %4712 = vmatpush.bf16.msrb.mxu3 %v10547_v33  ;;  %v8947_v33 = vor.u32 %v12349_v13, %v8944_v14  ;;  %v9511_v39 = vor.u32 %v12500_v28, %v9510_v26  ;;  %v9911_v13 = vor.u32 %v12600_v7, %v9910_v6  ;;  %v8550_v14 = vld [vmem:[%s13800_s4 + $0x200] sm:$0xf]  ;;  %v12580_v23 = vld [vmem:[%s13800_s4 + $0xc4c] sm:$0xf0]  ;;  %v9191_v28 = vor.u32 %v12420_v21, %v9190_v18  ;;  %v12650_v18 = vld [vmem:[%s13800_s4 + $0xe84] sm:$0xf] }
 0x165   : > { %4674 = vmatpush.bf16.msrb.mxu0 %v8547_v40  ;;  %v10151_v40 = vor.u32 %v12660_v30, %v10150_v29  ;;  %v10470_v25 = vld [vmem:[%s13800_s4 + $0x1100] sm:$0xf]  ;;  %v12740_v26 = vld [vmem:[%s13800_s4 + $0x114c] sm:$0xf0]  ;;  %v9831_v29 = vor.u32 %v12580_v23, %v9830_v22  ;;  %v12810_v22 = vld [vmem:[%s13800_s4 + $0x1384] sm:$0xf] }
 0x166   : > { %4687 = vmatpush.bf16.msrb.mxu1 %v9187_v41  ;;  %v8790_v41 = vld [vmem:[%s13800_s4 + $0x3e0] sm:$0xf]  ;;  %v10471_v36 = vor.u32 %v12740_v26, %v10470_v25  ;;  %v12380_v55 = vld [vmem:[%s13800_s4 + $0x60c] sm:$0xf0]  ;;  %v10792_v23 = vld [vmem:[%s13800_s4 + $0x13d0] sm:$0xf0] }
 0x167   : > { %4700 = vmatpush.bf16.msrb.mxu2 %v9827_v42  ;;  %v12320_v42 = vld [vmem:[%s13800_s4 + $0x42c] sm:$0xf0]  ;;  %v8470_v30 = vld [vmem:[%s13800_s4 + $0x160] sm:$0xf] }
 0x168   : > { %4713 = vmatpush.bf16.msrb.mxu3 %v10467_v47  ;;  %v12640_v47 = vld [vmem:[%s13800_s4 + $0xe2c] sm:$0xf0]  ;;  %v8791_v50 = vor.u32 %v12320_v42, %v8790_v41  ;;  %v10390_v42 = vld [vmem:[%s13800_s4 + $0x1060] sm:$0xf] }
 0x169   : > { %4675 = vmatpush.bf16.msrb.mxu0 %v8467_v56  ;;  %v10071_v52 = vor.u32 %v12640_v47, %v10070_v46  ;;  %v10711_v56 = vor.u32 %v12800_v49, %v10710_v48  ;;  %v10391_v54 = vor.u32 %v12720_v43, %v10390_v42  ;;  %v12540_v57 = vld [vmem:[%s13800_s4 + $0xb0c] sm:$0xf0]  ;;  %v12290_v42 = vld [vmem:[%s13800_s4 + $0x344] sm:$0xf]  ;;  %v8712_v43 = vld [vmem:[%s13800_s4 + $0x390] sm:$0xf0] }
 0x16a   : > { %4688 = vmatpush.bf16.msrb.mxu1 %v9107_v59  ;;  %v12620_v59 = vld [vmem:[%s13800_s4 + $0xd8c] sm:$0xf0] }
 0x16b   : > { %4701 = vmatpush.bf16.msrb.mxu2 %v9747_v60  ;;  %v10630_v60 = vld [vmem:[%s13800_s4 + $0x1240] sm:$0xf]  ;;  %v9991_v0 = vor.u32 %v12620_v59, %v9990_v58  ;;  %v12520_v7 = vld [vmem:[%s13800_s4 + $0xa6c] sm:$0xf0] }
 0x16c   : > { %4714 = vmatpush.bf16.msrb.mxu3 %v10387_v1  ;;  %v8630_v1 = vld [vmem:[%s13800_s4 + $0x2a0] sm:$0xf]  ;;  %v10631_v4 = vor.u32 %v12780_v61, %v10630_v60  ;;  %v12700_v60 = vld [vmem:[%s13800_s4 + $0x100c] sm:$0xf0] }
 0x16d   : > { %4676 = vmatpush.bf16.msrb.mxu0 %v8387_v8  ;;  %v10550_v8 = vld [vmem:[%s13800_s4 + $0x11a0] sm:$0xf]  ;;  %v8631_v10 = vor.u32 %v12280_v2, %v8630_v1 }
 0x16e   : > { %4689 = vmatpush.bf16.msrb.mxu1 %v9027_v11  ;;  %v10551_v20 = vor.u32 %v12760_v9, %v10550_v8  ;;  %v10310_v59 = vld [vmem:[%s13800_s4 + $0xfc0] sm:$0xf]  ;;  %v12680_v9 = vld [vmem:[%s13800_s4 + $0xf6c] sm:$0xf0] }
 0x16f   : > { %4702 = vmatpush.bf16.msrb.mxu2 %v9667_v12  ;;  %v9271_v12 = vor.u32 %v12440_v5, %v9270_v3  ;;  %v8950_v2 = vld [vmem:[%s13800_s4 + $0x520] sm:$0xf]  ;;  %v12360_v3 = vld [vmem:[%s13800_s4 + $0x56c] sm:$0xf0]  ;;  %v10311_v6 = vor.u32 %v12700_v60, %v10310_v59  ;;  %v12590_v59 = vld [vmem:[%s13800_s4 + $0xca4] sm:$0xf] }
 0x170   : > { %4715 = vmatpush.bf16.msrb.mxu3 %v10307_v19  ;;  %v10230_v8 = vld [vmem:[%s13800_s4 + $0xf20] sm:$0xf]  ;;  %v9912_v60 = vld [vmem:[%s13800_s4 + $0xcf0] sm:$0xf0] }
 0x171   : > { %4677 = vmatpush.bf16.msrb.mxu0 %v8307_v27  ;;  %v4471_v11 = vpop.f32.mrf.mxu0  ;;  %v8551_v27 = vor.u32 %v12260_v15, %v8550_v14  ;;  %v9512_v15 = vld [vmem:[%s13800_s4 + $0x9d0] sm:$0xf0] }
 0x172   : > { %4690 = vmatpush.bf16.msrb.mxu1 %v8947_v33  ;;  %v4484_v19 = vpop.f32.mrf.mxu1  ;;  %v12240_v33 = vld [vmem:[%s13800_s4 + $0x1ac] sm:$0xf0] }
 0x173   : > { %4703 = vmatpush.bf16.msrb.mxu2 %v9587_v34  ;;  %v4485_v24 = vadd.f32 %v4484_v19, %v4471_v11  ;;  %v9110_v34 = vld [vmem:[%s13800_s4 + $0x660] sm:$0xf]  ;;  %v8471_v45 = vor.u32 %v12240_v33, %v8470_v30  ;;  %v12330_v11 = vld [vmem:[%s13800_s4 + $0x484] sm:$0xf]  ;;  %v10152_v19 = vld [vmem:[%s13800_s4 + $0xed0] sm:$0xf0]  ;;  %v10795_v33 = vor.u32 %v12810_v22, %v10792_v23 }
 0x174   : > { %4716 = vmatpush.bf16.msrb.mxu3 %v10227_v37  ;;  %4678 = vmatmul.bf16.vlgmr.msrb.gmra.mxu0 %v13929_v31  ;;  %v12400_v37 = vld [vmem:[%s13800_s4 + $0x6ac] sm:$0xf0]  ;;  %v12470_v30 = vld [vmem:[%s13800_s4 + $0x8e4] sm:$0xf] }
 0x175   : > { %4722 = vmatpush.bf16.msra.mxu0 %v8871_v38  ;;  %4691 = vmatmul.bf16.vlgmr.msrb.gmra.mxu1 %v13931_v32  ;;  %v9750_v38 = vld [vmem:[%s13800_s4 + $0xb60] sm:$0xf]  ;;  %v9111_v48 = vor.u32 %v12400_v37, %v9110_v34  ;;  %v9432_v34 = vld [vmem:[%s13800_s4 + $0x930] sm:$0xf0]  ;;  %v12790_v37 = vld [vmem:[%s13800_s4 + $0x12e4] sm:$0xf] }
 0x176   : > { %4735 = vmatpush.bf16.msra.mxu1 %v9511_v39  ;;  %4704 = vmatmul.bf16.vlgmr.msrb.gmra.mxu2 %v13917_v16  ;;  %v12560_v39 = vld [vmem:[%s13800_s4 + $0xbac] sm:$0xf0] }
 0x177   : > { %4748 = vmatpush.bf16.msra.mxu2 %v10151_v40  ;;  %4717 = vmatmul.bf16.vlgmr.msrb.gmra.mxu3 %v13919_v17  ;;  %v9751_v49 = vor.u32 %v12560_v39, %v9750_v38  ;;  %v10712_v38 = vld [vmem:[%s13800_s4 + $0x1330] sm:$0xf0] }
 0x178   : > { %4761 = vmatpush.bf16.msra.mxu3 %v10791_v44  ;;  %v433_v44 = vld [vmem:[#allocation2 + $0x18] sm:$0xff] }
 0x179   : > { %4723 = vmatpush.bf16.msra.mxu0 %v8791_v50  ;;  %v4497_v35 = vpop.f32.mrf.mxu2  ;;  %v4473_v47 = vpop.f32.mrf.mxu0  ;;  %v8390_v50 = vld [vmem:[%s13800_s4 + $0xc0] sm:$0xf] }
 0x17a   : > { %4736 = vmatpush.bf16.msra.mxu1 %v9431_v51  ;;  %v4498_v40 = vadd.f32 %v4497_v35, %v4485_v24  ;;  %v4510_v41 = vpop.f32.mrf.mxu3  ;;  %v12220_v51 = vld [vmem:[%s13800_s4 + $0x10c] sm:$0xf0]  ;;  %v4486_v53 = vpop.f32.mrf.mxu1  ;;  %v10231_v24 = vor.u32 %v12680_v9, %v10230_v8  ;;  %v12630_v35 = vld [vmem:[%s13800_s4 + $0xde4] sm:$0xf]  ;;  %v9192_v8 = vld [vmem:[%s13800_s4 + $0x750] sm:$0xf0] }
 0x17b   : > { %4749 = vmatpush.bf16.msra.mxu2 %v10071_v52  ;;  %v9030_v52 = vld [vmem:[%s13800_s4 + $0x5c0] sm:$0xf]  ;;  %v8391_v61 = vor.u32 %v12220_v51, %v8390_v50  ;;  %v12610_v47 = vld [vmem:[%s13800_s4 + $0xd44] sm:$0xf]  ;;  %v10632_v50 = vld [vmem:[%s13800_s4 + $0x1290] sm:$0xf0]  ;;  %v8715_v51 = vor.u32 %v12290_v42, %v8712_v43 }
 0x17c   : > { %4762 = vmatpush.bf16.msra.mxu3 %v10711_v56  ;;  %v4511_v46 = vadd.f32 %v4510_v41, %v4498_v40  ;;  %v9670_v56 = vld [vmem:[%s13800_s4 + $0xac0] sm:$0xf]  ;;  %v9435_v40 = vor.u32 %v12470_v30, %v9432_v34  ;;  %v12570_v9 = vld [vmem:[%s13800_s4 + $0xc04] sm:$0xf]  ;;  %v10392_v30 = vld [vmem:[%s13800_s4 + $0x10b0] sm:$0xf0] }
 0x17d   : > { %4724 = vmatpush.bf16.msra.mxu0 %v8711_v62  ;;  %v8310_v62 = vld [vmem:[%s13800_s4 + $0x20] sm:$0xf]  ;;  %v9671_v1 = vor.u32 %v12540_v57, %v9670_v56  ;;  %v12430_v56 = vld [vmem:[%s13800_s4 + $0x7a4] sm:$0xf] }
 0x17e   : > { %4737 = vmatpush.bf16.msra.mxu1 %v9351_v63  ;;  %v5349_v58 = vadd.f32 %v4511_v46, %v433_v44  ;;  %v12200_v63 = vld [vmem:[%s13800_s4 + $0x6c] sm:$0xf0]  ;;  %v12450_v44 = vld [vmem:[%s13800_s4 + $0x844] sm:$0xf]  ;;  %v9352_v46 = vld [vmem:[%s13800_s4 + $0x890] sm:$0xf0] }
 0x17f   : > { %4750 = vmatpush.bf16.msra.mxu2 %v9991_v0  ;;  %v9031_v0 = vor.u32 %v12380_v55, %v9030_v52  ;;  %v8311_v14 = vor.u32 %v12200_v63, %v8310_v62  ;;  %v9355_v52 = vor.u32 %v12450_v44, %v9352_v46  ;;  %v8632_v55 = vld [vmem:[%s13800_s4 + $0x2f0] sm:$0xf0] }
 0x180   : > { %4763 = vmatpush.bf16.msra.mxu3 %v10631_v4  ;;  %5369 = vst [vmem:[#allocation2 + $0x18] sm:$0xff] %v5349_v58  ;;  %v9590_v4 = vld [vmem:[%s13800_s4 + $0xa20] sm:$0xf]  ;;  %v9272_v58 = vld [vmem:[%s13800_s4 + $0x7f0] sm:$0xf0] }
 0x181   : > { %4725 = vmatpush.bf16.msra.mxu0 %v8631_v10  ;;  %v4499_v5 = vpop.f32.mrf.mxu2  ;;  %v9591_v21 = vor.u32 %v12520_v7, %v9590_v4  ;;  %v10552_v62 = vld [vmem:[%s13800_s4 + $0x11f0] sm:$0xf0] }
 0x182   : > { %4738 = vmatpush.bf16.msra.mxu1 %v9271_v12  ;;  %v4512_v10 = vpop.f32.mrf.mxu3  ;;  %v8872_v12 = vld [vmem:[%s13800_s4 + $0x4d0] sm:$0xf0]  ;;  %v12410_v5 = vld [vmem:[%s13800_s4 + $0x704] sm:$0xf] }
 0x183   : > { %4751 = vmatpush.bf16.msra.mxu2 %v9911_v13  ;;  %v12490_v13 = vld [vmem:[%s13800_s4 + $0x984] sm:$0xf]  ;;  %v8875_v25 = vor.u32 %v12330_v11, %v8872_v12  ;;  %v8552_v4 = vld [vmem:[%s13800_s4 + $0x250] sm:$0xf0] }
 0x184   : > { %4764 = vmatpush.bf16.msra.mxu3 %v10551_v20  ;;  %v8951_v20 = vor.u32 %v12360_v3, %v8950_v2  ;;  %v9515_v26 = vor.u32 %v12490_v13, %v9512_v15  ;;  %v9915_v2 = vor.u32 %v12590_v59, %v9912_v60  ;;  %v12250_v3 = vld [vmem:[%s13800_s4 + $0x204] sm:$0xf]  ;;  %v9832_v10 = vld [vmem:[%s13800_s4 + $0xc50] sm:$0xf0]  ;;  %v9195_v15 = vor.u32 %v12410_v5, %v9192_v8  ;;  %v10158_v5 = vld [vmem:[%s13800_s4 + $0xe88] sm:$0xf] }
 0x185   : > { %4726 = vmatpush.bf16.msra.mxu0 %v8551_v27  ;;  %v10155_v27 = vor.u32 %v12650_v18, %v10152_v19  ;;  %v12730_v12 = vld [vmem:[%s13800_s4 + $0x1104] sm:$0xf]  ;;  %v10472_v13 = vld [vmem:[%s13800_s4 + $0x1150] sm:$0xf0]  ;;  %v9835_v18 = vor.u32 %v12570_v9, %v9832_v10  ;;  %v10798_v9 = vld [vmem:[%s13800_s4 + $0x1388] sm:$0xf] }
 0x186   : > { %4739 = vmatpush.bf16.msra.mxu1 %v9191_v28  ;;  %v12310_v28 = vld [vmem:[%s13800_s4 + $0x3e4] sm:$0xf]  ;;  %v10475_v23 = vor.u32 %v12730_v12, %v10472_v13  ;;  %v9032_v44 = vld [vmem:[%s13800_s4 + $0x610] sm:$0xf0]  ;;  %v12821_v10 = vld [vmem:[%s13800_s4 + $0x13d4] sm:$0xf0] }
 0x187   : > { %4752 = vmatpush.bf16.msra.mxu2 %v9831_v29  ;;  %v8792_v29 = vld [vmem:[%s13800_s4 + $0x430] sm:$0xf0]  ;;  %v12230_v19 = vld [vmem:[%s13800_s4 + $0x164] sm:$0xf] }
 0x188   : > { %4765 = vmatpush.bf16.msra.mxu3 %v10471_v36  ;;  %v10072_v36 = vld [vmem:[%s13800_s4 + $0xe30] sm:$0xf0]  ;;  %v8795_v39 = vor.u32 %v12310_v28, %v8792_v29  ;;  %v12710_v29 = vld [vmem:[%s13800_s4 + $0x1064] sm:$0xf] }
 0x189   : > { %4727 = vmatpush.bf16.msra.mxu0 %v8471_v45  ;;  %v10075_v41 = vor.u32 %v12630_v35, %v10072_v36  ;;  %v10715_v45 = vor.u32 %v12790_v37, %v10712_v38  ;;  %v10395_v43 = vor.u32 %v12710_v29, %v10392_v30  ;;  %v9672_v46 = vld [vmem:[%s13800_s4 + $0xb10] sm:$0xf0]  ;;  %v8718_v29 = vld [vmem:[%s13800_s4 + $0x348] sm:$0xf]  ;;  %v12301_v30 = vld [vmem:[%s13800_s4 + $0x394] sm:$0xf0] }
 0x18a   : > { %4740 = vmatpush.bf16.msra.mxu1 %v9111_v48  ;;  %v9992_v48 = vld [vmem:[%s13800_s4 + $0xd90] sm:$0xf0] }
 0x18b   : > { %4753 = vmatpush.bf16.msra.mxu2 %v9751_v49  ;;  %v12770_v49 = vld [vmem:[%s13800_s4 + $0x1244] sm:$0xf]  ;;  %v9995_v53 = vor.u32 %v12610_v47, %v9992_v48  ;;  %v9592_v60 = vld [vmem:[%s13800_s4 + $0xa70] sm:$0xf0] }
 0x18c   : > { %4766 = vmatpush.bf16.msra.mxu3 %v10391_v54  ;;  %v12270_v54 = vld [vmem:[%s13800_s4 + $0x2a4] sm:$0xf]  ;;  %v10635_v57 = vor.u32 %v12770_v49, %v10632_v50  ;;  %v10312_v49 = vld [vmem:[%s13800_s4 + $0x1010] sm:$0xf0] }
 0x18d   : > { %4728 = vmatpush.bf16.msra.mxu0 %v8391_v61  ;;  %v12750_v61 = vld [vmem:[%s13800_s4 + $0x11a4] sm:$0xf]  ;;  %v8635_v63 = vor.u32 %v12270_v54, %v8632_v55 }
 0x18e   : > { %4741 = vmatpush.bf16.msra.mxu1 %v9031_v0  ;;  %v10555_v7 = vor.u32 %v12750_v61, %v10552_v62  ;;  %v12690_v48 = vld [vmem:[%s13800_s4 + $0xfc4] sm:$0xf]  ;;  %v10232_v62 = vld [vmem:[%s13800_s4 + $0xf70] sm:$0xf0] }
 0x18f   : > { %4754 = vmatpush.bf16.msra.mxu2 %v9671_v1  ;;  %v9275_v1 = vor.u32 %v12430_v56, %v9272_v58  ;;  %v12350_v55 = vld [vmem:[%s13800_s4 + $0x524] sm:$0xf]  ;;  %v8952_v56 = vld [vmem:[%s13800_s4 + $0x570] sm:$0xf0]  ;;  %v10315_v59 = vor.u32 %v12690_v48, %v10312_v49  ;;  %v9918_v48 = vld [vmem:[%s13800_s4 + $0xca8] sm:$0xf] }
 0x190   : > { %4767 = vmatpush.bf16.msra.mxu3 %v10311_v6  ;;  %v12670_v61 = vld [vmem:[%s13800_s4 + $0xf24] sm:$0xf]  ;;  %v12601_v49 = vld [vmem:[%s13800_s4 + $0xcf4] sm:$0xf0] }
 0x191   : > { %4729 = vmatpush.bf16.msra.mxu0 %v8311_v14  ;;  %v4523_v0 = vpop.f32.mrf.mxu0  ;;  %v8555_v14 = vor.u32 %v12250_v3, %v8552_v4  ;;  %v12501_v4 = vld [vmem:[%s13800_s4 + $0x9d4] sm:$0xf0] }
 0x192   : > { %4742 = vmatpush.bf16.msra.mxu1 %v8951_v20  ;;  %v4536_v6 = vpop.f32.mrf.mxu1  ;;  %v8472_v20 = vld [vmem:[%s13800_s4 + $0x1b0] sm:$0xf0] }
 0x193   : > { %4755 = vmatpush.bf16.msra.mxu2 %v9591_v21  ;;  %v4537_v11 = vadd.f32 %v4536_v6, %v4523_v0  ;;  %v12390_v21 = vld [vmem:[%s13800_s4 + $0x664] sm:$0xf]  ;;  %v8475_v34 = vor.u32 %v12230_v19, %v8472_v20  ;;  %v8878_v0 = vld [vmem:[%s13800_s4 + $0x488] sm:$0xf]  ;;  %v12661_v6 = vld [vmem:[%s13800_s4 + $0xed4] sm:$0xf0]  ;;  %v10799_v20 = vor.u32 %v12821_v10, %v10798_v9 }
 0x194   : > { %4768 = vmatpush.bf16.msra.mxu3 %v10231_v24  ;;  %4730 = vmatmul.bf16.vlgmr.msra.gmra.mxu0 %v13929_v31  ;;  %v9112_v24 = vld [vmem:[%s13800_s4 + $0x6b0] sm:$0xf0]  ;;  %v9438_v19 = vld [vmem:[%s13800_s4 + $0x8e8] sm:$0xf] }
 0x195   : > { %4774 = vmatpush.bf16.msrb.mxu0 %v8875_v25  ;;  %4743 = vmatmul.bf16.vlgmr.msra.gmra.mxu1 %v13931_v32  ;;  %v12550_v25 = vld [vmem:[%s13800_s4 + $0xb64] sm:$0xf]  ;;  %v9115_v37 = vor.u32 %v12390_v21, %v9112_v24  ;;  %v12481_v21 = vld [vmem:[%s13800_s4 + $0x934] sm:$0xf0]  ;;  %v10718_v24 = vld [vmem:[%s13800_s4 + $0x12e8] sm:$0xf] }
 0x196   : > { %4787 = vmatpush.bf16.msrb.mxu1 %v9515_v26  ;;  %4756 = vmatmul.bf16.vlgmr.msra.gmra.mxu2 %v13917_v16  ;;  %v9752_v26 = vld [vmem:[%s13800_s4 + $0xbb0] sm:$0xf0] }
 0x197   : > { %4800 = vmatpush.bf16.msrb.mxu2 %v10155_v27  ;;  %4769 = vmatmul.bf16.vlgmr.msra.gmra.mxu3 %v13919_v17  ;;  %v9755_v38 = vor.u32 %v12550_v25, %v9752_v26  ;;  %v12801_v25 = vld [vmem:[%s13800_s4 + $0x1334] sm:$0xf0] }
 0x198   : > { %4813 = vmatpush.bf16.msrb.mxu3 %v10795_v33  ;;  %v434_v33 = vld [vmem:[#allocation2 + $0x30] sm:$0xff] }
 0x199   : > { %4775 = vmatpush.bf16.msrb.mxu0 %v8795_v39  ;;  %v4549_v22 = vpop.f32.mrf.mxu2  ;;  %v4525_v36 = vpop.f32.mrf.mxu0  ;;  %v12210_v39 = vld [vmem:[%s13800_s4 + $0xc4] sm:$0xf] }
 0x19a   : > { %4788 = vmatpush.bf16.msrb.mxu1 %v9435_v40  ;;  %v4550_v27 = vadd.f32 %v4549_v22, %v4537_v11  ;;  %v4562_v28 = vpop.f32.mrf.mxu3  ;;  %v8392_v40 = vld [vmem:[%s13800_s4 + $0x110] sm:$0xf0]  ;;  %v4538_v42 = vpop.f32.mrf.mxu1  ;;  %v10235_v11 = vor.u32 %v12670_v61, %v10232_v62  ;;  %v10078_v22 = vld [vmem:[%s13800_s4 + $0xde8] sm:$0xf]  ;;  %v12421_v61 = vld [vmem:[%s13800_s4 + $0x754] sm:$0xf0] }
 0x19b   : > { %4801 = vmatpush.bf16.msrb.mxu2 %v10075_v41  ;;  %v12370_v41 = vld [vmem:[%s13800_s4 + $0x5c4] sm:$0xf]  ;;  %v8395_v50 = vor.u32 %v12210_v39, %v8392_v40  ;;  %v9998_v36 = vld [vmem:[%s13800_s4 + $0xd48] sm:$0xf]  ;;  %v12781_v39 = vld [vmem:[%s13800_s4 + $0x1294] sm:$0xf0]  ;;  %v8719_v40 = vor.u32 %v12301_v30, %v8718_v29 }
 0x19c   : > { %4814 = vmatpush.bf16.msrb.mxu3 %v10715_v45  ;;  %v4563_v35 = vadd.f32 %v4562_v28, %v4550_v27  ;;  %v12530_v45 = vld [vmem:[%s13800_s4 + $0xac4] sm:$0xf]  ;;  %v9439_v27 = vor.u32 %v12481_v21, %v9438_v19  ;;  %v9838_v62 = vld [vmem:[%s13800_s4 + $0xc08] sm:$0xf]  ;;  %v12721_v19 = vld [vmem:[%s13800_s4 + $0x10b4] sm:$0xf0] }
 0x19d   : > { %4776 = vmatpush.bf16.msrb.mxu0 %v8715_v51  ;;  %v12190_v51 = vld [vmem:[%s13800_s4 + $0x24] sm:$0xf]  ;;  %v9675_v54 = vor.u32 %v12530_v45, %v9672_v46  ;;  %v9278_v45 = vld [vmem:[%s13800_s4 + $0x7a8] sm:$0xf] }
 0x19e   : > { %4789 = vmatpush.bf16.msrb.mxu1 %v9355_v52  ;;  %v5350_v47 = vadd.f32 %v4563_v35, %v434_v33  ;;  %v8312_v52 = vld [vmem:[%s13800_s4 + $0x70] sm:$0xf0]  ;;  %v9358_v33 = vld [vmem:[%s13800_s4 + $0x848] sm:$0xf]  ;;  %v12461_v35 = vld [vmem:[%s13800_s4 + $0x894] sm:$0xf0] }
 0x19f   : > { %4802 = vmatpush.bf16.msrb.mxu2 %v9995_v53  ;;  %v9035_v53 = vor.u32 %v12370_v41, %v9032_v44  ;;  %v8315_v3 = vor.u32 %v12190_v51, %v8312_v52  ;;  %v9359_v41 = vor.u32 %v12461_v35, %v9358_v33  ;;  %v12281_v44 = vld [vmem:[%s13800_s4 + $0x2f4] sm:$0xf0] }
 0x1a0   : > { %4815 = vmatpush.bf16.msrb.mxu3 %v10635_v57  ;;  %5370 = vst [vmem:[#allocation2 + $0x30] sm:$0xff] %v5350_v47  ;;  %v12510_v57 = vld [vmem:[%s13800_s4 + $0xa24] sm:$0xf]  ;;  %v12441_v47 = vld [vmem:[%s13800_s4 + $0x7f4] sm:$0xf0] }
 0x1a1   : > { %4777 = vmatpush.bf16.msrb.mxu0 %v8635_v63  ;;  %v4551_v58 = vpop.f32.mrf.mxu2  ;;  %v9595_v8 = vor.u32 %v12510_v57, %v9592_v60  ;;  %v12761_v51 = vld [vmem:[%s13800_s4 + $0x11f4] sm:$0xf0] }
 0x1a2   : > { %4790 = vmatpush.bf16.msrb.mxu1 %v9275_v1  ;;  %v4564_v63 = vpop.f32.mrf.mxu3  ;;  %v12341_v1 = vld [vmem:[%s13800_s4 + $0x4d4] sm:$0xf0]  ;;  %v9198_v58 = vld [vmem:[%s13800_s4 + $0x708] sm:$0xf] }
 0x1a3   : > { %4803 = vmatpush.bf16.msrb.mxu2 %v9915_v2  ;;  %v9518_v2 = vld [vmem:[%s13800_s4 + $0x988] sm:$0xf]  ;;  %v8879_v12 = vor.u32 %v12341_v1, %v8878_v0  ;;  %v12261_v57 = vld [vmem:[%s13800_s4 + $0x254] sm:$0xf0] }
 0x1a4   : > { %4816 = vmatpush.bf16.msrb.mxu3 %v10555_v7  ;;  %v8955_v7 = vor.u32 %v12350_v55, %v8952_v56  ;;  %v9519_v13 = vor.u32 %v12501_v4, %v9518_v2  ;;  %v9919_v55 = vor.u32 %v12601_v49, %v9918_v48  ;;  %v8558_v56 = vld [vmem:[%s13800_s4 + $0x208] sm:$0xf]  ;;  %v12581_v63 = vld [vmem:[%s13800_s4 + $0xc54] sm:$0xf0]  ;;  %v9199_v4 = vor.u32 %v12421_v61, %v9198_v58  ;;  %v12651_v58 = vld [vmem:[%s13800_s4 + $0xe8c] sm:$0xf] }
 0x1a5   : > { %4778 = vmatpush.bf16.msrb.mxu0 %v8555_v14  ;;  %v10159_v14 = vor.u32 %v12661_v6, %v10158_v5  ;;  %v10478_v1 = vld [vmem:[%s13800_s4 + $0x1108] sm:$0xf]  ;;  %v12741_v2 = vld [vmem:[%s13800_s4 + $0x1154] sm:$0xf0]  ;;  %v9839_v5 = vor.u32 %v12581_v63, %v9838_v62  ;;  %v12811_v62 = vld [vmem:[%s13800_s4 + $0x138c] sm:$0xf] }
 0x1a6   : > { %4791 = vmatpush.bf16.msrb.mxu1 %v9195_v15  ;;  %v8798_v15 = vld [vmem:[%s13800_s4 + $0x3e8] sm:$0xf]  ;;  %v10479_v10 = vor.u32 %v12741_v2, %v10478_v1  ;;  %v12381_v33 = vld [vmem:[%s13800_s4 + $0x614] sm:$0xf0]  ;;  %v10800_v63 = vld [vmem:[%s13800_s4 + $0x13d8] sm:$0xf0] }
 0x1a7   : > { %4804 = vmatpush.bf16.msrb.mxu2 %v9835_v18  ;;  %v12321_v18 = vld [vmem:[%s13800_s4 + $0x434] sm:$0xf0]  ;;  %v8478_v6 = vld [vmem:[%s13800_s4 + $0x168] sm:$0xf] }
 0x1a8   : > { %4817 = vmatpush.bf16.msrb.mxu3 %v10475_v23  ;;  %v12641_v23 = vld [vmem:[%s13800_s4 + $0xe34] sm:$0xf0]  ;;  %v8799_v26 = vor.u32 %v12321_v18, %v8798_v15  ;;  %v10398_v18 = vld [vmem:[%s13800_s4 + $0x1068] sm:$0xf] }
 0x1a9   : > { %4779 = vmatpush.bf16.msrb.mxu0 %v8475_v34  ;;  %v10079_v28 = vor.u32 %v12641_v23, %v10078_v22  ;;  %v10719_v34 = vor.u32 %v12801_v25, %v10718_v24  ;;  %v10399_v30 = vor.u32 %v12721_v19, %v10398_v18  ;;  %v12541_v35 = vld [vmem:[%s13800_s4 + $0xb14] sm:$0xf0]  ;;  %v12291_v18 = vld [vmem:[%s13800_s4 + $0x34c] sm:$0xf]  ;;  %v8720_v19 = vld [vmem:[%s13800_s4 + $0x398] sm:$0xf0] }
 0x1aa   : > { %4792 = vmatpush.bf16.msrb.mxu1 %v9115_v37  ;;  %v12621_v37 = vld [vmem:[%s13800_s4 + $0xd94] sm:$0xf0] }
 0x1ab   : > { %4805 = vmatpush.bf16.msrb.mxu2 %v9755_v38  ;;  %v10638_v38 = vld [vmem:[%s13800_s4 + $0x1248] sm:$0xf]  ;;  %v9999_v42 = vor.u32 %v12621_v37, %v9998_v36  ;;  %v12521_v49 = vld [vmem:[%s13800_s4 + $0xa74] sm:$0xf0] }
 0x1ac   : > { %4818 = vmatpush.bf16.msrb.mxu3 %v10395_v43  ;;  %v8638_v43 = vld [vmem:[%s13800_s4 + $0x2a8] sm:$0xf]  ;;  %v10639_v46 = vor.u32 %v12781_v39, %v10638_v38  ;;  %v12701_v38 = vld [vmem:[%s13800_s4 + $0x1014] sm:$0xf0] }
 0x1ad   : > { %4780 = vmatpush.bf16.msrb.mxu0 %v8395_v50  ;;  %v10558_v50 = vld [vmem:[%s13800_s4 + $0x11a8] sm:$0xf]  ;;  %v8639_v52 = vor.u32 %v12281_v44, %v8638_v43 }
 0x1ae   : > { %4793 = vmatpush.bf16.msrb.mxu1 %v9035_v53  ;;  %v10559_v60 = vor.u32 %v12761_v51, %v10558_v50  ;;  %v10318_v37 = vld [vmem:[%s13800_s4 + $0xfc8] sm:$0xf]  ;;  %v12681_v51 = vld [vmem:[%s13800_s4 + $0xf74] sm:$0xf0] }
 0x1af   : > { %4806 = vmatpush.bf16.msrb.mxu2 %v9675_v54  ;;  %v9279_v54 = vor.u32 %v12441_v47, %v9278_v45  ;;  %v8958_v44 = vld [vmem:[%s13800_s4 + $0x528] sm:$0xf]  ;;  %v12361_v45 = vld [vmem:[%s13800_s4 + $0x574] sm:$0xf0]  ;;  %v10319_v48 = vor.u32 %v12701_v38, %v10318_v37  ;;  %v12591_v37 = vld [vmem:[%s13800_s4 + $0xcac] sm:$0xf] }
 0x1b0   : > { %4819 = vmatpush.bf16.msrb.mxu3 %v10315_v59  ;;  %v10238_v50 = vld [vmem:[%s13800_s4 + $0xf28] sm:$0xf]  ;;  %v9920_v38 = vld [vmem:[%s13800_s4 + $0xcf8] sm:$0xf0] }
 0x1b1   : > { %4781 = vmatpush.bf16.msrb.mxu0 %v8315_v3  ;;  %v4575_v53 = vpop.f32.mrf.mxu0  ;;  %v8559_v3 = vor.u32 %v12261_v57, %v8558_v56  ;;  %v9520_v57 = vld [vmem:[%s13800_s4 + $0x9d8] sm:$0xf0] }
 0x1b2   : > { %4794 = vmatpush.bf16.msrb.mxu1 %v8955_v7  ;;  %v4588_v59 = vpop.f32.mrf.mxu1  ;;  %v12241_v7 = vld [vmem:[%s13800_s4 + $0x1b4] sm:$0xf0] }
 0x1b3   : > { %4807 = vmatpush.bf16.msrb.mxu2 %v9595_v8  ;;  %v4589_v0 = vadd.f32 %v4588_v59, %v4575_v53  ;;  %v9118_v8 = vld [vmem:[%s13800_s4 + $0x668] sm:$0xf]  ;;  %v8479_v21 = vor.u32 %v12241_v7, %v8478_v6  ;;  %v12331_v53 = vld [vmem:[%s13800_s4 + $0x48c] sm:$0xf]  ;;  %v10160_v59 = vld [vmem:[%s13800_s4 + $0xed8] sm:$0xf0]  ;;  %v10803_v7 = vor.u32 %v12811_v62, %v10800_v63 }
 0x1b4   : > { %4820 = vmatpush.bf16.msrb.mxu3 %v10235_v11  ;;  %4782 = vmatmul.bf16.vlgmr.msrb.gmra.mxu0 %v13929_v31  ;;  %v12401_v11 = vld [vmem:[%s13800_s4 + $0x6b4] sm:$0xf0]  ;;  %v12471_v6 = vld [vmem:[%s13800_s4 + $0x8ec] sm:$0xf] }
 0x1b5   : > { %4826 = vmatpush.bf16.msra.mxu0 %v8879_v12  ;;  %4795 = vmatmul.bf16.vlgmr.msrb.gmra.mxu1 %v13931_v32  ;;  %v9758_v12 = vld [vmem:[%s13800_s4 + $0xb68] sm:$0xf]  ;;  %v9119_v24 = vor.u32 %v12401_v11, %v9118_v8  ;;  %v9440_v8 = vld [vmem:[%s13800_s4 + $0x938] sm:$0xf0]  ;;  %v12791_v11 = vld [vmem:[%s13800_s4 + $0x12ec] sm:$0xf] }
 0x1b6   : > { %4839 = vmatpush.bf16.msra.mxu1 %v9519_v13  ;;  %4808 = vmatmul.bf16.vlgmr.msrb.gmra.mxu2 %v13917_v16  ;;  %v12561_v13 = vld [vmem:[%s13800_s4 + $0xbb4] sm:$0xf0] }
 0x1b7   : > { %4852 = vmatpush.bf16.msra.mxu2 %v10159_v14  ;;  %4821 = vmatmul.bf16.vlgmr.msrb.gmra.mxu3 %v13919_v17  ;;  %v9759_v25 = vor.u32 %v12561_v13, %v9758_v12  ;;  %v10720_v12 = vld [vmem:[%s13800_s4 + $0x1338] sm:$0xf0] }
 0x1b8   : > { %4865 = vmatpush.bf16.msra.mxu3 %v10799_v20  ;;  %v435_v20 = vld [vmem:[#allocation2 + $0x68] sm:$0xff] }
 0x1b9   : > { %4827 = vmatpush.bf16.msra.mxu0 %v8799_v26  ;;  %v4601_v9 = vpop.f32.mrf.mxu2  ;;  %v4577_v23 = vpop.f32.mrf.mxu0  ;;  %v8398_v26 = vld [vmem:[%s13800_s4 + $0xc8] sm:$0xf] }
 0x1ba   : > { %4840 = vmatpush.bf16.msra.mxu1 %v9439_v27  ;;  %v4602_v14 = vadd.f32 %v4601_v9, %v4589_v0  ;;  %v4614_v15 = vpop.f32.mrf.mxu3  ;;  %v12221_v27 = vld [vmem:[%s13800_s4 + $0x114] sm:$0xf0]  ;;  %v4590_v29 = vpop.f32.mrf.mxu1  ;;  %v10239_v0 = vor.u32 %v12681_v51, %v10238_v50  ;;  %v12631_v9 = vld [vmem:[%s13800_s4 + $0xdec] sm:$0xf]  ;;  %v9200_v50 = vld [vmem:[%s13800_s4 + $0x758] sm:$0xf0] }
 0x1bb   : > { %4853 = vmatpush.bf16.msra.mxu2 %v10079_v28  ;;  %v9038_v28 = vld [vmem:[%s13800_s4 + $0x5c8] sm:$0xf]  ;;  %v8399_v39 = vor.u32 %v12221_v27, %v8398_v26  ;;  %v12611_v23 = vld [vmem:[%s13800_s4 + $0xd4c] sm:$0xf]  ;;  %v10640_v26 = vld [vmem:[%s13800_s4 + $0x1298] sm:$0xf0]  ;;  %v8723_v27 = vor.u32 %v12291_v18, %v8720_v19 }
 0x1bc   : > { %4866 = vmatpush.bf16.msra.mxu3 %v10719_v34  ;;  %v4615_v22 = vadd.f32 %v4614_v15, %v4602_v14  ;;  %v9678_v34 = vld [vmem:[%s13800_s4 + $0xac8] sm:$0xf]  ;;  %v9443_v14 = vor.u32 %v12471_v6, %v9440_v8  ;;  %v12571_v51 = vld [vmem:[%s13800_s4 + $0xc0c] sm:$0xf]  ;;  %v10400_v6 = vld [vmem:[%s13800_s4 + $0x10b8] sm:$0xf0] }
 0x1bd   : > { %4828 = vmatpush.bf16.msra.mxu0 %v8719_v40  ;;  %v8318_v40 = vld [vmem:[%s13800_s4 + $0x28] sm:$0xf]  ;;  %v9679_v43 = vor.u32 %v12541_v35, %v9678_v34  ;;  %v12431_v34 = vld [vmem:[%s13800_s4 + $0x7ac] sm:$0xf] }
 0x1be   : > { %4841 = vmatpush.bf16.msra.mxu1 %v9359_v41  ;;  %v5351_v36 = vadd.f32 %v4615_v22, %v435_v20  ;;  %v12201_v41 = vld [vmem:[%s13800_s4 + $0x74] sm:$0xf0]  ;;  %v12451_v20 = vld [vmem:[%s13800_s4 + $0x84c] sm:$0xf]  ;;  %v9360_v22 = vld [vmem:[%s13800_s4 + $0x898] sm:$0xf0] }
 0x1bf   : > { %4854 = vmatpush.bf16.msra.mxu2 %v9999_v42  ;;  %v9039_v42 = vor.u32 %v12381_v33, %v9038_v28  ;;  %v8319_v56 = vor.u32 %v12201_v41, %v8318_v40  ;;  %v9363_v28 = vor.u32 %v12451_v20, %v9360_v22  ;;  %v8640_v33 = vld [vmem:[%s13800_s4 + $0x2f8] sm:$0xf0] }
 0x1c0   : > { %4867 = vmatpush.bf16.msra.mxu3 %v10639_v46  ;;  %5371 = vst [vmem:[#allocation2 + $0x68] sm:$0xff] %v5351_v36  ;;  %v9598_v46 = vld [vmem:[%s13800_s4 + $0xa28] sm:$0xf]  ;;  %v9280_v36 = vld [vmem:[%s13800_s4 + $0x7f8] sm:$0xf0] }
 0x1c1   : > { %4829 = vmatpush.bf16.msra.mxu0 %v8639_v52  ;;  %v4603_v47 = vpop.f32.mrf.mxu2  ;;  %v9599_v61 = vor.u32 %v12521_v49, %v9598_v46  ;;  %v10560_v40 = vld [vmem:[%s13800_s4 + $0x11f8] sm:$0xf0] }
 0x1c2   : > { %4842 = vmatpush.bf16.msra.mxu1 %v9279_v54  ;;  %v4616_v52 = vpop.f32.mrf.mxu3  ;;  %v8880_v54 = vld [vmem:[%s13800_s4 + $0x4d8] sm:$0xf0]  ;;  %v12411_v47 = vld [vmem:[%s13800_s4 + $0x70c] sm:$0xf] }
 0x1c3   : > { %4855 = vmatpush.bf16.msra.mxu2 %v9919_v55  ;;  %v12491_v55 = vld [vmem:[%s13800_s4 + $0x98c] sm:$0xf]  ;;  %v8883_v1 = vor.u32 %v12331_v53, %v8880_v54  ;;  %v8560_v46 = vld [vmem:[%s13800_s4 + $0x258] sm:$0xf0] }
 0x1c4   : > { %4868 = vmatpush.bf16.msra.mxu3 %v10559_v60  ;;  %v8959_v60 = vor.u32 %v12361_v45, %v8958_v44  ;;  %v9523_v2 = vor.u32 %v12491_v55, %v9520_v57  ;;  %v9923_v44 = vor.u32 %v12591_v37, %v9920_v38  ;;  %v12251_v45 = vld [vmem:[%s13800_s4 + $0x20c] sm:$0xf]  ;;  %v9840_v52 = vld [vmem:[%s13800_s4 + $0xc58] sm:$0xf0]  ;;  %v9203_v57 = vor.u32 %v12411_v47, %v9200_v50  ;;  %v10166_v47 = vld [vmem:[%s13800_s4 + $0xe90] sm:$0xf] }
 0x1c5   : > { %4830 = vmatpush.bf16.msra.mxu0 %v8559_v3  ;;  %v10163_v3 = vor.u32 %v12651_v58, %v10160_v59  ;;  %v12731_v54 = vld [vmem:[%s13800_s4 + $0x110c] sm:$0xf]  ;;  %v10480_v55 = vld [vmem:[%s13800_s4 + $0x1158] sm:$0xf0]  ;;  %v9843_v58 = vor.u32 %v12571_v51, %v9840_v52  ;;  %v10806_v51 = vld [vmem:[%s13800_s4 + $0x1390] sm:$0xf] }
 0x1c6   : > { %4843 = vmatpush.bf16.msra.mxu1 %v9199_v4  ;;  %v12311_v4 = vld [vmem:[%s13800_s4 + $0x3ec] sm:$0xf]  ;;  %v10483_v63 = vor.u32 %v12731_v54, %v10480_v55  ;;  %v9040_v20 = vld [vmem:[%s13800_s4 + $0x618] sm:$0xf0]  ;;  %v12822_v52 = vld [vmem:[%s13800_s4 + $0x13dc] sm:$0xf0] }
 0x1c7   : > { %4856 = vmatpush.bf16.msra.mxu2 %v9839_v5  ;;  %v8800_v5 = vld [vmem:[%s13800_s4 + $0x438] sm:$0xf0]  ;;  %v12231_v59 = vld [vmem:[%s13800_s4 + $0x16c] sm:$0xf] }
 0x1c8   : > { %4869 = vmatpush.bf16.msra.mxu3 %v10479_v10  ;;  %v10080_v10 = vld [vmem:[%s13800_s4 + $0xe38] sm:$0xf0]  ;;  %v8803_v13 = vor.u32 %v12311_v4, %v8800_v5  ;;  %v12711_v5 = vld [vmem:[%s13800_s4 + $0x106c] sm:$0xf] }
 0x1c9   : > { %4831 = vmatpush.bf16.msra.mxu0 %v8479_v21  ;;  %v10083_v15 = vor.u32 %v12631_v9, %v10080_v10  ;;  %v10723_v21 = vor.u32 %v12791_v11, %v10720_v12  ;;  %v10403_v19 = vor.u32 %v12711_v5, %v10400_v6  ;;  %v9680_v22 = vld [vmem:[%s13800_s4 + $0xb18] sm:$0xf0]  ;;  %v8726_v5 = vld [vmem:[%s13800_s4 + $0x350] sm:$0xf]  ;;  %v12302_v6 = vld [vmem:[%s13800_s4 + $0x39c] sm:$0xf0] }
 0x1ca   : > { %4844 = vmatpush.bf16.msra.mxu1 %v9119_v24  ;;  %v10000_v24 = vld [vmem:[%s13800_s4 + $0xd98] sm:$0xf0] }
 0x1cb   : > { %4857 = vmatpush.bf16.msra.mxu2 %v9759_v25  ;;  %v12771_v25 = vld [vmem:[%s13800_s4 + $0x124c] sm:$0xf]  ;;  %v10003_v29 = vor.u32 %v12611_v23, %v10000_v24  ;;  %v9600_v38 = vld [vmem:[%s13800_s4 + $0xa78] sm:$0xf0] }
 0x1cc   : > { %4870 = vmatpush.bf16.msra.mxu3 %v10399_v30  ;;  %v12271_v30 = vld [vmem:[%s13800_s4 + $0x2ac] sm:$0xf]  ;;  %v10643_v35 = vor.u32 %v12771_v25, %v10640_v26  ;;  %v10320_v25 = vld [vmem:[%s13800_s4 + $0x1018] sm:$0xf0] }
 0x1cd   : > { %4832 = vmatpush.bf16.msra.mxu0 %v8399_v39  ;;  %v12751_v39 = vld [vmem:[%s13800_s4 + $0x11ac] sm:$0xf]  ;;  %v8643_v41 = vor.u32 %v12271_v30, %v8640_v33 }
 0x1ce   : > { %4845 = vmatpush.bf16.msra.mxu1 %v9039_v42  ;;  %v10563_v49 = vor.u32 %v12751_v39, %v10560_v40  ;;  %v12691_v24 = vld [vmem:[%s13800_s4 + $0xfcc] sm:$0xf]  ;;  %v10240_v40 = vld [vmem:[%s13800_s4 + $0xf78] sm:$0xf0] }
 0x1cf   : > { %4858 = vmatpush.bf16.msra.mxu2 %v9679_v43  ;;  %v9283_v43 = vor.u32 %v12431_v34, %v9280_v36  ;;  %v12351_v33 = vld [vmem:[%s13800_s4 + $0x52c] sm:$0xf]  ;;  %v8960_v34 = vld [vmem:[%s13800_s4 + $0x578] sm:$0xf0]  ;;  %v10323_v37 = vor.u32 %v12691_v24, %v10320_v25  ;;  %v9926_v24 = vld [vmem:[%s13800_s4 + $0xcb0] sm:$0xf] }
 0x1d0   : > { %4871 = vmatpush.bf16.msra.mxu3 %v10319_v48  ;;  %v12671_v39 = vld [vmem:[%s13800_s4 + $0xf2c] sm:$0xf]  ;;  %v12602_v25 = vld [vmem:[%s13800_s4 + $0xcfc] sm:$0xf0] }
 0x1d1   : > { %4833 = vmatpush.bf16.msra.mxu0 %v8319_v56  ;;  %v4627_v42 = vpop.f32.mrf.mxu0  ;;  %v8563_v56 = vor.u32 %v12251_v45, %v8560_v46  ;;  %v12502_v46 = vld [vmem:[%s13800_s4 + $0x9dc] sm:$0xf0] }
 0x1d2   : > { %4846 = vmatpush.bf16.msra.mxu1 %v8959_v60  ;;  %v4640_v48 = vpop.f32.mrf.mxu1  ;;  %v8480_v60 = vld [vmem:[%s13800_s4 + $0x1b8] sm:$0xf0] }
 0x1d3   : > { %4859 = vmatpush.bf16.msra.mxu2 %v9599_v61  ;;  %v4641_v53 = vadd.f32 %v4640_v48, %v4627_v42  ;;  %v12391_v61 = vld [vmem:[%s13800_s4 + $0x66c] sm:$0xf]  ;;  %v8483_v8 = vor.u32 %v12231_v59, %v8480_v60  ;;  %v8886_v42 = vld [vmem:[%s13800_s4 + $0x490] sm:$0xf]  ;;  %v12662_v48 = vld [vmem:[%s13800_s4 + $0xedc] sm:$0xf0]  ;;  %v10807_v60 = vor.u32 %v12822_v52, %v10806_v51 }
 0x1d4   : > { %4872 = vmatpush.bf16.msra.mxu3 %v10239_v0  ;;  %4834 = vmatmul.bf16.vlgmr.msra.gmra.mxu0 %v13929_v31  ;;  %v9120_v0 = vld [vmem:[%s13800_s4 + $0x6b8] sm:$0xf0]  ;;  %v9446_v59 = vld [vmem:[%s13800_s4 + $0x8f0] sm:$0xf] }
 0x1d5   : > { %4878 = vmatpush.bf16.msrb.mxu0 %v8883_v1  ;;  %4847 = vmatmul.bf16.vlgmr.msra.gmra.mxu1 %v13931_v32  ;;  %v12551_v1 = vld [vmem:[%s13800_s4 + $0xb6c] sm:$0xf]  ;;  %v9123_v11 = vor.u32 %v12391_v61, %v9120_v0  ;;  %v12482_v61 = vld [vmem:[%s13800_s4 + $0x93c] sm:$0xf0]  ;;  %v10726_v0 = vld [vmem:[%s13800_s4 + $0x12f0] sm:$0xf] }
 0x1d6   : > { %4891 = vmatpush.bf16.msrb.mxu1 %v9523_v2  ;;  %4860 = vmatmul.bf16.vlgmr.msra.gmra.mxu2 %v13917_v16  ;;  %v9760_v2 = vld [vmem:[%s13800_s4 + $0xbb8] sm:$0xf0] }
 0x1d7   : > { %4904 = vmatpush.bf16.msrb.mxu2 %v10163_v3  ;;  %4873 = vmatmul.bf16.vlgmr.msra.gmra.mxu3 %v13919_v17  ;;  %v9763_v12 = vor.u32 %v12551_v1, %v9760_v2  ;;  %v12802_v1 = vld [vmem:[%s13800_s4 + $0x133c] sm:$0xf0] }
 0x1d8   : > { %4917 = vmatpush.bf16.msrb.mxu3 %v10803_v7  ;;  %v436_v7 = vld [vmem:[#allocation2 + $0x78] sm:$0xff] }
 0x1d9   : > { %4879 = vmatpush.bf16.msrb.mxu0 %v8803_v13  ;;  %v4653_v62 = vpop.f32.mrf.mxu2  ;;  %v4629_v10 = vpop.f32.mrf.mxu0  ;;  %v12211_v13 = vld [vmem:[%s13800_s4 + $0xcc] sm:$0xf] }
 0x1da   : > { %4892 = vmatpush.bf16.msrb.mxu1 %v9443_v14  ;;  %v4654_v3 = vadd.f32 %v4653_v62, %v4641_v53  ;;  %v4666_v4 = vpop.f32.mrf.mxu3  ;;  %v8400_v14 = vld [vmem:[%s13800_s4 + $0x118] sm:$0xf0]  ;;  %v4642_v18 = vpop.f32.mrf.mxu1  ;;  %v10243_v53 = vor.u32 %v12671_v39, %v10240_v40  ;;  %v10086_v62 = vld [vmem:[%s13800_s4 + $0xdf0] sm:$0xf]  ;;  %v12422_v39 = vld [vmem:[%s13800_s4 + $0x75c] sm:$0xf0] }
 0x1db   : > { %4905 = vmatpush.bf16.msrb.mxu2 %v10083_v15  ;;  %v12371_v15 = vld [vmem:[%s13800_s4 + $0x5cc] sm:$0xf]  ;;  %v8403_v26 = vor.u32 %v12211_v13, %v8400_v14  ;;  %v10006_v10 = vld [vmem:[%s13800_s4 + $0xd50] sm:$0xf]  ;;  %v12782_v13 = vld [vmem:[%s13800_s4 + $0x129c] sm:$0xf0]  ;;  %v8727_v14 = vor.u32 %v12302_v6, %v8726_v5 }
 0x1dc   : > { %4918 = vmatpush.bf16.msrb.mxu3 %v10723_v21  ;;  %v4667_v9 = vadd.f32 %v4666_v4, %v4654_v3  ;;  %v12531_v21 = vld [vmem:[%s13800_s4 + $0xacc] sm:$0xf]  ;;  %v9447_v3 = vor.u32 %v12482_v61, %v9446_v59  ;;  %v9846_v40 = vld [vmem:[%s13800_s4 + $0xc10] sm:$0xf]  ;;  %v12722_v59 = vld [vmem:[%s13800_s4 + $0x10bc] sm:$0xf0] }
 0x1dd   : > { %4880 = vmatpush.bf16.msrb.mxu0 %v8723_v27  ;;  %v12191_v27 = vld [vmem:[%s13800_s4 + $0x2c] sm:$0xf]  ;;  %v9683_v30 = vor.u32 %v12531_v21, %v9680_v22  ;;  %v9286_v21 = vld [vmem:[%s13800_s4 + $0x7b0] sm:$0xf] }
 0x1de   : > { %4893 = vmatpush.bf16.msrb.mxu1 %v9363_v28  ;;  %v5352_v23 = vadd.f32 %v4667_v9, %v436_v7  ;;  %v8320_v28 = vld [vmem:[%s13800_s4 + $0x78] sm:$0xf0]  ;;  %v9366_v7 = vld [vmem:[%s13800_s4 + $0x850] sm:$0xf]  ;;  %v12462_v9 = vld [vmem:[%s13800_s4 + $0x89c] sm:$0xf0] }
 0x1df   : > { %4906 = vmatpush.bf16.msrb.mxu2 %v10003_v29  ;;  %v9043_v29 = vor.u32 %v12371_v15, %v9040_v20  ;;  %v8323_v45 = vor.u32 %v12191_v27, %v8320_v28  ;;  %v9367_v15 = vor.u32 %v12462_v9, %v9366_v7  ;;  %v12282_v20 = vld [vmem:[%s13800_s4 + $0x2fc] sm:$0xf0] }
 0x1e0   : > { %4919 = vmatpush.bf16.msrb.mxu3 %v10643_v35  ;;  %5372 = vst [vmem:[#allocation2 + $0x78] sm:$0xff] %v5352_v23  ;;  %v12511_v35 = vld [vmem:[%s13800_s4 + $0xa2c] sm:$0xf]  ;;  %v12442_v23 = vld [vmem:[%s13800_s4 + $0x7fc] sm:$0xf0] }
 0x1e1   : > { %4881 = vmatpush.bf16.msrb.mxu0 %v8643_v41  ;;  %v4655_v36 = vpop.f32.mrf.mxu2  ;;  %v9603_v50 = vor.u32 %v12511_v35, %v9600_v38  ;;  %v12762_v27 = vld [vmem:[%s13800_s4 + $0x11fc] sm:$0xf0] }
 0x1e2   : > { %4894 = vmatpush.bf16.msrb.mxu1 %v9283_v43  ;;  %v4668_v41 = vpop.f32.mrf.mxu3  ;;  %v12342_v43 = vld [vmem:[%s13800_s4 + $0x4dc] sm:$0xf0]  ;;  %v9206_v36 = vld [vmem:[%s13800_s4 + $0x710] sm:$0xf] }
 0x1e3   : > { %4907 = vmatpush.bf16.msrb.mxu2 %v9923_v44  ;;  %v9526_v44 = vld [vmem:[%s13800_s4 + $0x990] sm:$0xf]  ;;  %v8887_v54 = vor.u32 %v12342_v43, %v8886_v42  ;;  %v12262_v35 = vld [vmem:[%s13800_s4 + $0x25c] sm:$0xf0] }
 0x1e4   : > { %4920 = vmatpush.bf16.msrb.mxu3 %v10563_v49  ;;  %v8963_v49 = vor.u32 %v12351_v33, %v8960_v34  ;;  %v9527_v55 = vor.u32 %v12502_v46, %v9526_v44  ;;  %v9927_v33 = vor.u32 %v12602_v25, %v9926_v24  ;;  %v8566_v34 = vld [vmem:[%s13800_s4 + $0x210] sm:$0xf]  ;;  %v12582_v41 = vld [vmem:[%s13800_s4 + $0xc5c] sm:$0xf0]  ;;  %v9207_v46 = vor.u32 %v12422_v39, %v9206_v36  ;;  %v12652_v36 = vld [vmem:[%s13800_s4 + $0xe94] sm:$0xf] }
 0x1e5   : > { %4882 = vmatpush.bf16.msrb.mxu0 %v8563_v56  ;;  %v10167_v56 = vor.u32 %v12662_v48, %v10166_v47  ;;  %v10486_v43 = vld [vmem:[%s13800_s4 + $0x1110] sm:$0xf]  ;;  %v12742_v44 = vld [vmem:[%s13800_s4 + $0x115c] sm:$0xf0]  ;;  %v9847_v47 = vor.u32 %v12582_v41, %v9846_v40  ;;  %v12812_v40 = vld [vmem:[%s13800_s4 + $0x1394] sm:$0xf] }
 0x1e6   : > { %4895 = vmatpush.bf16.msrb.mxu1 %v9203_v57  ;;  %v8806_v57 = vld [vmem:[%s13800_s4 + $0x3f0] sm:$0xf]  ;;  %v10487_v52 = vor.u32 %v12742_v44, %v10486_v43  ;;  %v12382_v7 = vld [vmem:[%s13800_s4 + $0x61c] sm:$0xf0]  ;;  %v10808_v41 = vld [vmem:[%s13800_s4 + $0x13e0] sm:$0xf0] }
 0x1e7   : > { %4908 = vmatpush.bf16.msrb.mxu2 %v9843_v58  ;;  %v12322_v58 = vld [vmem:[%s13800_s4 + $0x43c] sm:$0xf0]  ;;  %v8486_v48 = vld [vmem:[%s13800_s4 + $0x170] sm:$0xf] }
 0x1e8   : > { %4921 = vmatpush.bf16.msrb.mxu3 %v10483_v63  ;;  %v12642_v63 = vld [vmem:[%s13800_s4 + $0xe3c] sm:$0xf0]  ;;  %v8807_v2 = vor.u32 %v12322_v58, %v8806_v57  ;;  %v10406_v58 = vld [vmem:[%s13800_s4 + $0x1070] sm:$0xf] }
 0x1e9   : > { %4883 = vmatpush.bf16.msrb.mxu0 %v8483_v8  ;;  %v10087_v4 = vor.u32 %v12642_v63, %v10086_v62  ;;  %v10727_v8 = vor.u32 %v12802_v1, %v10726_v0  ;;  %v10407_v6 = vor.u32 %v12722_v59, %v10406_v58  ;;  %v12542_v9 = vld [vmem:[%s13800_s4 + $0xb1c] sm:$0xf0]  ;;  %v12292_v58 = vld [vmem:[%s13800_s4 + $0x354] sm:$0xf]  ;;  %v8728_v59 = vld [vmem:[%s13800_s4 + $0x3a0] sm:$0xf0] }
 0x1ea   : > { %4896 = vmatpush.bf16.msrb.mxu1 %v9123_v11  ;;  %v12622_v11 = vld [vmem:[%s13800_s4 + $0xd9c] sm:$0xf0] }
 0x1eb   : > { %4909 = vmatpush.bf16.msrb.mxu2 %v9763_v12  ;;  %v10646_v12 = vld [vmem:[%s13800_s4 + $0x1250] sm:$0xf]  ;;  %v10007_v18 = vor.u32 %v12622_v11, %v10006_v10  ;;  %v12522_v25 = vld [vmem:[%s13800_s4 + $0xa7c] sm:$0xf0] }
 0x1ec   : > { %4922 = vmatpush.bf16.msrb.mxu3 %v10403_v19  ;;  %v8646_v19 = vld [vmem:[%s13800_s4 + $0x2b0] sm:$0xf]  ;;  %v10647_v22 = vor.u32 %v12782_v13, %v10646_v12  ;;  %v12702_v12 = vld [vmem:[%s13800_s4 + $0x101c] sm:$0xf0] }
 0x1ed   : > { %4884 = vmatpush.bf16.msrb.mxu0 %v8403_v26  ;;  %v10566_v26 = vld [vmem:[%s13800_s4 + $0x11b0] sm:$0xf]  ;;  %v8647_v28 = vor.u32 %v12282_v20, %v8646_v19 }
 0x1ee   : > { %4897 = vmatpush.bf16.msrb.mxu1 %v9043_v29  ;;  %v10567_v38 = vor.u32 %v12762_v27, %v10566_v26  ;;  %v10326_v11 = vld [vmem:[%s13800_s4 + $0xfd0] sm:$0xf]  ;;  %v12682_v27 = vld [vmem:[%s13800_s4 + $0xf7c] sm:$0xf0] }
 0x1ef   : > { %4910 = vmatpush.bf16.msrb.mxu2 %v9683_v30  ;;  %v9287_v30 = vor.u32 %v12442_v23, %v9286_v21  ;;  %v8966_v20 = vld [vmem:[%s13800_s4 + $0x530] sm:$0xf]  ;;  %v12362_v21 = vld [vmem:[%s13800_s4 + $0x57c] sm:$0xf0]  ;;  %v10327_v24 = vor.u32 %v12702_v12, %v10326_v11  ;;  %v12592_v11 = vld [vmem:[%s13800_s4 + $0xcb4] sm:$0xf] }
 0x1f0   : > { %4923 = vmatpush.bf16.msrb.mxu3 %v10323_v37  ;;  %v10246_v26 = vld [vmem:[%s13800_s4 + $0xf30] sm:$0xf]  ;;  %v9928_v12 = vld [vmem:[%s13800_s4 + $0xd00] sm:$0xf0] }
 0x1f1   : > { %4885 = vmatpush.bf16.msrb.mxu0 %v8323_v45  ;;  %v4679_v29 = vpop.f32.mrf.mxu0  ;;  %v8567_v45 = vor.u32 %v12262_v35, %v8566_v34  ;;  %v9528_v35 = vld [vmem:[%s13800_s4 + $0x9e0] sm:$0xf0] }
 0x1f2   : > { %4898 = vmatpush.bf16.msrb.mxu1 %v8963_v49  ;;  %v4692_v37 = vpop.f32.mrf.mxu1  ;;  %v12242_v49 = vld [vmem:[%s13800_s4 + $0x1bc] sm:$0xf0] }
 0x1f3   : > { %4911 = vmatpush.bf16.msrb.mxu2 %v9603_v50  ;;  %v4693_v42 = vadd.f32 %v4692_v37, %v4679_v29  ;;  %v9126_v50 = vld [vmem:[%s13800_s4 + $0x670] sm:$0xf]  ;;  %v8487_v61 = vor.u32 %v12242_v49, %v8486_v48  ;;  %v12332_v29 = vld [vmem:[%s13800_s4 + $0x494] sm:$0xf]  ;;  %v10168_v37 = vld [vmem:[%s13800_s4 + $0xee0] sm:$0xf0]  ;;  %v10811_v49 = vor.u32 %v12812_v40, %v10808_v41 }
 0x1f4   : > { %4924 = vmatpush.bf16.msrb.mxu3 %v10243_v53  ;;  %4886 = vmatmul.bf16.vlgmr.msrb.gmra.mxu0 %v13929_v31  ;;  %v12402_v53 = vld [vmem:[%s13800_s4 + $0x6bc] sm:$0xf0]  ;;  %v12472_v48 = vld [vmem:[%s13800_s4 + $0x8f4] sm:$0xf] }
 0x1f5   : > { %4930 = vmatpush.bf16.msra.mxu0 %v8887_v54  ;;  %4899 = vmatmul.bf16.vlgmr.msrb.gmra.mxu1 %v13931_v32  ;;  %v9766_v54 = vld [vmem:[%s13800_s4 + $0xb70] sm:$0xf]  ;;  %v9127_v0 = vor.u32 %v12402_v53, %v9126_v50  ;;  %v9448_v50 = vld [vmem:[%s13800_s4 + $0x940] sm:$0xf0]  ;;  %v12792_v53 = vld [vmem:[%s13800_s4 + $0x12f4] sm:$0xf] }
 0x1f6   : > { %4943 = vmatpush.bf16.msra.mxu1 %v9527_v55  ;;  %4912 = vmatmul.bf16.vlgmr.msrb.gmra.mxu2 %v13917_v16  ;;  %v12562_v55 = vld [vmem:[%s13800_s4 + $0xbbc] sm:$0xf0] }
 0x1f7   : > { %4956 = vmatpush.bf16.msra.mxu2 %v10167_v56  ;;  %4925 = vmatmul.bf16.vlgmr.msrb.gmra.mxu3 %v13919_v17  ;;  %v9767_v1 = vor.u32 %v12562_v55, %v9766_v54  ;;  %v10728_v54 = vld [vmem:[%s13800_s4 + $0x1340] sm:$0xf0] }
 0x1f8   : > { %4969 = vmatpush.bf16.msra.mxu3 %v10807_v60  ;;  %v437_v60 = vld [vmem:[#allocation2 + $0x80] sm:$0xff] }
 0x1f9   : > { %4931 = vmatpush.bf16.msra.mxu0 %v8807_v2  ;;  %v4705_v51 = vpop.f32.mrf.mxu2  ;;  %v4681_v63 = vpop.f32.mrf.mxu0  ;;  %v8406_v2 = vld [vmem:[%s13800_s4 + $0xd0] sm:$0xf] }
 0x1fa   : > { %4944 = vmatpush.bf16.msra.mxu1 %v9447_v3  ;;  %v4706_v56 = vadd.f32 %v4705_v51, %v4693_v42  ;;  %v4718_v57 = vpop.f32.mrf.mxu3  ;;  %v12222_v3 = vld [vmem:[%s13800_s4 + $0x11c] sm:$0xf0]  ;;  %v4694_v5 = vpop.f32.mrf.mxu1  ;;  %v10247_v42 = vor.u32 %v12682_v27, %v10246_v26  ;;  %v12632_v51 = vld [vmem:[%s13800_s4 + $0xdf4] sm:$0xf]  ;;  %v9208_v26 = vld [vmem:[%s13800_s4 + $0x760] sm:$0xf0] }
 0x1fb   : > { %4957 = vmatpush.bf16.msra.mxu2 %v10087_v4  ;;  %v9046_v4 = vld [vmem:[%s13800_s4 + $0x5d0] sm:$0xf]  ;;  %v8407_v13 = vor.u32 %v12222_v3, %v8406_v2  ;;  %v12612_v63 = vld [vmem:[%s13800_s4 + $0xd54] sm:$0xf]  ;;  %v10648_v2 = vld [vmem:[%s13800_s4 + $0x12a0] sm:$0xf0]  ;;  %v8731_v3 = vor.u32 %v12292_v58, %v8728_v59 }
 0x1fc   : > { %4970 = vmatpush.bf16.msra.mxu3 %v10727_v8  ;;  %v4719_v62 = vadd.f32 %v4718_v57, %v4706_v56  ;;  %v9686_v8 = vld [vmem:[%s13800_s4 + $0xad0] sm:$0xf]  ;;  %v9451_v56 = vor.u32 %v12472_v48, %v9448_v50  ;;  %v12572_v27 = vld [vmem:[%s13800_s4 + $0xc14] sm:$0xf]  ;;  %v10408_v48 = vld [vmem:[%s13800_s4 + $0x10c0] sm:$0xf0] }
 0x1fd   : > { %4932 = vmatpush.bf16.msra.mxu0 %v8727_v14  ;;  %v8326_v14 = vld [vmem:[%s13800_s4 + $0x30] sm:$0xf]  ;;  %v9687_v19 = vor.u32 %v12542_v9, %v9686_v8  ;;  %v12432_v8 = vld [vmem:[%s13800_s4 + $0x7b4] sm:$0xf] }
 0x1fe   : > { %4945 = vmatpush.bf16.msra.mxu1 %v9367_v15  ;;  %v5353_v10 = vadd.f32 %v4719_v62, %v437_v60  ;;  %v12202_v15 = vld [vmem:[%s13800_s4 + $0x7c] sm:$0xf0]  ;;  %v12452_v60 = vld [vmem:[%s13800_s4 + $0x854] sm:$0xf]  ;;  %v9368_v62 = vld [vmem:[%s13800_s4 + $0x8a0] sm:$0xf0] }
 0x1ff   : > { %4958 = vmatpush.bf16.msra.mxu2 %v10007_v18  ;;  %v9047_v18 = vor.u32 %v12382_v7, %v9046_v4  ;;  %v8327_v34 = vor.u32 %v12202_v15, %v8326_v14  ;;  %v9371_v4 = vor.u32 %v12452_v60, %v9368_v62  ;;  %v8648_v7 = vld [vmem:[%s13800_s4 + $0x300] sm:$0xf0] }
 0x200   : > { %4971 = vmatpush.bf16.msra.mxu3 %v10647_v22  ;;  %5373 = vst [vmem:[#allocation2 + $0x80] sm:$0xff] %v5353_v10  ;;  %v9606_v22 = vld [vmem:[%s13800_s4 + $0xa30] sm:$0xf]  ;;  %v9288_v10 = vld [vmem:[%s13800_s4 + $0x800] sm:$0xf0] }
 0x201   : > { %4933 = vmatpush.bf16.msra.mxu0 %v8647_v28  ;;  %v4707_v23 = vpop.f32.mrf.mxu2  ;;  %v9607_v39 = vor.u32 %v12522_v25, %v9606_v22  ;;  %v10568_v14 = vld [vmem:[%s13800_s4 + $0x1200] sm:$0xf0] }
 0x202   : > { %4946 = vmatpush.bf16.msra.mxu1 %v9287_v30  ;;  %v4720_v28 = vpop.f32.mrf.mxu3  ;;  %v8888_v30 = vld [vmem:[%s13800_s4 + $0x4e0] sm:$0xf0]  ;;  %v12412_v23 = vld [vmem:[%s13800_s4 + $0x714] sm:$0xf] }
 0x203   : > { %4959 = vmatpush.bf16.msra.mxu2 %v9927_v33  ;;  %v12492_v33 = vld [vmem:[%s13800_s4 + $0x994] sm:$0xf]  ;;  %v8891_v43 = vor.u32 %v12332_v29, %v8888_v30  ;;  %v8568_v22 = vld [vmem:[%s13800_s4 + $0x260] sm:$0xf0] }
 0x204   : > { %4972 = vmatpush.bf16.msra.mxu3 %v10567_v38  ;;  %v8967_v38 = vor.u32 %v12362_v21, %v8966_v20  ;;  %v9531_v44 = vor.u32 %v12492_v33, %v9528_v35  ;;  %v9931_v20 = vor.u32 %v12592_v11, %v9928_v12  ;;  %v12252_v21 = vld [vmem:[%s13800_s4 + $0x214] sm:$0xf]  ;;  %v9848_v28 = vld [vmem:[%s13800_s4 + $0xc60] sm:$0xf0]  ;;  %v9211_v35 = vor.u32 %v12412_v23, %v9208_v26  ;;  %v10174_v23 = vld [vmem:[%s13800_s4 + $0xe98] sm:$0xf] }
 0x205   : > { %4934 = vmatpush.bf16.msra.mxu0 %v8567_v45  ;;  %v10171_v45 = vor.u32 %v12652_v36, %v10168_v37  ;;  %v12732_v30 = vld [vmem:[%s13800_s4 + $0x1114] sm:$0xf]  ;;  %v10488_v33 = vld [vmem:[%s13800_s4 + $0x1160] sm:$0xf0]  ;;  %v9851_v36 = vor.u32 %v12572_v27, %v9848_v28  ;;  %v10814_v27 = vld [vmem:[%s13800_s4 + $0x1398] sm:$0xf] }
 0x206   : > { %4947 = vmatpush.bf16.msra.mxu1 %v9207_v46  ;;  %v12312_v46 = vld [vmem:[%s13800_s4 + $0x3f4] sm:$0xf]  ;;  %v10491_v41 = vor.u32 %v12732_v30, %v10488_v33  ;;  %v9048_v60 = vld [vmem:[%s13800_s4 + $0x620] sm:$0xf0]  ;;  %v12823_v28 = vld [vmem:[%s13800_s4 + $0x13e4] sm:$0xf0] }
 0x207   : > { %4960 = vmatpush.bf16.msra.mxu2 %v9847_v47  ;;  %v8808_v47 = vld [vmem:[%s13800_s4 + $0x440] sm:$0xf0]  ;;  %v12232_v37 = vld [vmem:[%s13800_s4 + $0x174] sm:$0xf] }
 0x208   : > { %4973 = vmatpush.bf16.msra.mxu3 %v10487_v52  ;;  %v10088_v52 = vld [vmem:[%s13800_s4 + $0xe40] sm:$0xf0]  ;;  %v8811_v55 = vor.u32 %v12312_v46, %v8808_v47  ;;  %v12712_v47 = vld [vmem:[%s13800_s4 + $0x1074] sm:$0xf] }
 0x209   : > { %4935 = vmatpush.bf16.msra.mxu0 %v8487_v61  ;;  %v10091_v57 = vor.u32 %v12632_v51, %v10088_v52  ;;  %v10731_v61 = vor.u32 %v12792_v53, %v10728_v54  ;;  %v10411_v59 = vor.u32 %v12712_v47, %v10408_v48  ;;  %v9688_v62 = vld [vmem:[%s13800_s4 + $0xb20] sm:$0xf0]  ;;  %v8734_v47 = vld [vmem:[%s13800_s4 + $0x358] sm:$0xf]  ;;  %v12303_v48 = vld [vmem:[%s13800_s4 + $0x3a4] sm:$0xf0] }
 0x20a   : > { %4948 = vmatpush.bf16.msra.mxu1 %v9127_v0  ;;  %v10008_v0 = vld [vmem:[%s13800_s4 + $0xda0] sm:$0xf0] }
 0x20b   : > { %4961 = vmatpush.bf16.msra.mxu2 %v9767_v1  ;;  %v12772_v1 = vld [vmem:[%s13800_s4 + $0x1254] sm:$0xf]  ;;  %v10011_v5 = vor.u32 %v12612_v63, %v10008_v0  ;;  %v9608_v12 = vld [vmem:[%s13800_s4 + $0xa80] sm:$0xf0] }
 0x20c   : > { %4974 = vmatpush.bf16.msra.mxu3 %v10407_v6  ;;  %v12272_v6 = vld [vmem:[%s13800_s4 + $0x2b4] sm:$0xf]  ;;  %v10651_v9 = vor.u32 %v12772_v1, %v10648_v2  ;;  %v10328_v1 = vld [vmem:[%s13800_s4 + $0x1020] sm:$0xf0] }
 0x20d   : > { %4936 = vmatpush.bf16.msra.mxu0 %v8407_v13  ;;  %v12752_v13 = vld [vmem:[%s13800_s4 + $0x11b4] sm:$0xf]  ;;  %v8651_v15 = vor.u32 %v12272_v6, %v8648_v7 }
 0x20e   : > { %4949 = vmatpush.bf16.msra.mxu1 %v9047_v18  ;;  %v10571_v25 = vor.u32 %v12752_v13, %v10568_v14  ;;  %v12692_v0 = vld [vmem:[%s13800_s4 + $0xfd4] sm:$0xf]  ;;  %v10248_v14 = vld [vmem:[%s13800_s4 + $0xf80] sm:$0xf0] }
 0x20f   : > { %4962 = vmatpush.bf16.msra.mxu2 %v9687_v19  ;;  %v9291_v19 = vor.u32 %v12432_v8, %v9288_v10  ;;  %v12352_v7 = vld [vmem:[%s13800_s4 + $0x534] sm:$0xf]  ;;  %v8968_v8 = vld [vmem:[%s13800_s4 + $0x580] sm:$0xf0]  ;;  %v10331_v11 = vor.u32 %v12692_v0, %v10328_v1  ;;  %v9934_v0 = vld [vmem:[%s13800_s4 + $0xcb8] sm:$0xf] }
 0x210   : > { %4975 = vmatpush.bf16.msra.mxu3 %v10327_v24  ;;  %v12672_v13 = vld [vmem:[%s13800_s4 + $0xf34] sm:$0xf]  ;;  %v12603_v1 = vld [vmem:[%s13800_s4 + $0xd04] sm:$0xf0] }
 0x211   : > { %4937 = vmatpush.bf16.msra.mxu0 %v8327_v34  ;;  %v4731_v18 = vpop.f32.mrf.mxu0  ;;  %v8571_v34 = vor.u32 %v12252_v21, %v8568_v22  ;;  %v12503_v22 = vld [vmem:[%s13800_s4 + $0x9e4] sm:$0xf0] }
 0x212   : > { %4950 = vmatpush.bf16.msra.mxu1 %v8967_v38  ;;  %v4744_v24 = vpop.f32.mrf.mxu1  ;;  %v8488_v38 = vld [vmem:[%s13800_s4 + $0x1c0] sm:$0xf0] }
 0x213   : > { %4963 = vmatpush.bf16.msra.mxu2 %v9607_v39  ;;  %v4745_v29 = vadd.f32 %v4744_v24, %v4731_v18  ;;  %v12392_v39 = vld [vmem:[%s13800_s4 + $0x674] sm:$0xf]  ;;  %v8491_v50 = vor.u32 %v12232_v37, %v8488_v38  ;;  %v8894_v18 = vld [vmem:[%s13800_s4 + $0x498] sm:$0xf]  ;;  %v12663_v24 = vld [vmem:[%s13800_s4 + $0xee4] sm:$0xf0]  ;;  %v10815_v38 = vor.u32 %v12823_v28, %v10814_v27 }
 0x214   : > { %4976 = vmatpush.bf16.msra.mxu3 %v10247_v42  ;;  %4938 = vmatmul.bf16.vlgmr.msra.gmra.mxu0 %v13929_v31  ;;  %v9128_v42 = vld [vmem:[%s13800_s4 + $0x6c0] sm:$0xf0]  ;;  %v9454_v37 = vld [vmem:[%s13800_s4 + $0x8f8] sm:$0xf] }
 0x215   : > { %4982 = vmatpush.bf16.msrb.mxu0 %v8891_v43  ;;  %4951 = vmatmul.bf16.vlgmr.msra.gmra.mxu1 %v13931_v32  ;;  %v12552_v43 = vld [vmem:[%s13800_s4 + $0xb74] sm:$0xf]  ;;  %v9131_v53 = vor.u32 %v12392_v39, %v9128_v42  ;;  %v12483_v39 = vld [vmem:[%s13800_s4 + $0x944] sm:$0xf0]  ;;  %v10734_v42 = vld [vmem:[%s13800_s4 + $0x12f8] sm:$0xf] }
 0x216   : > { %4995 = vmatpush.bf16.msrb.mxu1 %v9531_v44  ;;  %4964 = vmatmul.bf16.vlgmr.msra.gmra.mxu2 %v13917_v16  ;;  %v9768_v44 = vld [vmem:[%s13800_s4 + $0xbc0] sm:$0xf0] }
 0x217   : > { %5008 = vmatpush.bf16.msrb.mxu2 %v10171_v45  ;;  %4977 = vmatmul.bf16.vlgmr.msra.gmra.mxu3 %v13919_v17  ;;  %v9771_v54 = vor.u32 %v12552_v43, %v9768_v44  ;;  %v12803_v43 = vld [vmem:[%s13800_s4 + $0x1344] sm:$0xf0] }
 0x218   : > { %5021 = vmatpush.bf16.msrb.mxu3 %v10811_v49  ;;  %v438_v49 = vld [vmem:[#allocation2 + $0x8] sm:$0xff] }
 0x219   : > { %4983 = vmatpush.bf16.msrb.mxu0 %v8811_v55  ;;  %v4757_v40 = vpop.f32.mrf.mxu2  ;;  %v4733_v52 = vpop.f32.mrf.mxu0  ;;  %v12212_v55 = vld [vmem:[%s13800_s4 + $0xd4] sm:$0xf] }
 0x21a   : > { %4996 = vmatpush.bf16.msrb.mxu1 %v9451_v56  ;;  %v4758_v45 = vadd.f32 %v4757_v40, %v4745_v29  ;;  %v4770_v46 = vpop.f32.mrf.mxu3  ;;  %v8408_v56 = vld [vmem:[%s13800_s4 + $0x120] sm:$0xf0]  ;;  %v4746_v58 = vpop.f32.mrf.mxu1  ;;  %v10251_v29 = vor.u32 %v12672_v13, %v10248_v14  ;;  %v10094_v40 = vld [vmem:[%s13800_s4 + $0xdf8] sm:$0xf]  ;;  %v12423_v13 = vld [vmem:[%s13800_s4 + $0x764] sm:$0xf0] }
 0x21b   : > { %5009 = vmatpush.bf16.msrb.mxu2 %v10091_v57  ;;  %v12372_v57 = vld [vmem:[%s13800_s4 + $0x5d4] sm:$0xf]  ;;  %v8411_v2 = vor.u32 %v12212_v55, %v8408_v56  ;;  %v10014_v52 = vld [vmem:[%s13800_s4 + $0xd58] sm:$0xf]  ;;  %v12783_v55 = vld [vmem:[%s13800_s4 + $0x12a4] sm:$0xf0]  ;;  %v8735_v56 = vor.u32 %v12303_v48, %v8734_v47 }
 0x21c   : > { %5022 = vmatpush.bf16.msrb.mxu3 %v10731_v61  ;;  %v4771_v51 = vadd.f32 %v4770_v46, %v4758_v45  ;;  %v12532_v61 = vld [vmem:[%s13800_s4 + $0xad4] sm:$0xf]  ;;  %v9455_v45 = vor.u32 %v12483_v39, %v9454_v37  ;;  %v9854_v14 = vld [vmem:[%s13800_s4 + $0xc18] sm:$0xf]  ;;  %v12723_v37 = vld [vmem:[%s13800_s4 + $0x10c4] sm:$0xf0] }
 0x21d   : > { %4984 = vmatpush.bf16.msrb.mxu0 %v8731_v3  ;;  %v12192_v3 = vld [vmem:[%s13800_s4 + $0x34] sm:$0xf]  ;;  %v9691_v6 = vor.u32 %v12532_v61, %v9688_v62  ;;  %v9294_v61 = vld [vmem:[%s13800_s4 + $0x7b8] sm:$0xf] }
 0x21e   : > { %4997 = vmatpush.bf16.msrb.mxu1 %v9371_v4  ;;  %v5354_v63 = vadd.f32 %v4771_v51, %v438_v49  ;;  %v8328_v4 = vld [vmem:[%s13800_s4 + $0x80] sm:$0xf0]  ;;  %v9374_v49 = vld [vmem:[%s13800_s4 + $0x858] sm:$0xf]  ;;  %v12463_v51 = vld [vmem:[%s13800_s4 + $0x8a4] sm:$0xf0] }
 0x21f   : > { %5010 = vmatpush.bf16.msrb.mxu2 %v10011_v5  ;;  %v9051_v5 = vor.u32 %v12372_v57, %v9048_v60  ;;  %v8331_v21 = vor.u32 %v12192_v3, %v8328_v4  ;;  %v9375_v57 = vor.u32 %v12463_v51, %v9374_v49  ;;  %v12283_v60 = vld [vmem:[%s13800_s4 + $0x304] sm:$0xf0] }
 0x220   : > { %5023 = vmatpush.bf16.msrb.mxu3 %v10651_v9  ;;  %5374 = vst [vmem:[#allocation2 + $0x8] sm:$0xff] %v5354_v63  ;;  %v12512_v9 = vld [vmem:[%s13800_s4 + $0xa34] sm:$0xf]  ;;  %v12443_v63 = vld [vmem:[%s13800_s4 + $0x804] sm:$0xf0] }
 0x221   : > { %4985 = vmatpush.bf16.msrb.mxu0 %v8651_v15  ;;  %v4759_v10 = vpop.f32.mrf.mxu2  ;;  %v9611_v26 = vor.u32 %v12512_v9, %v9608_v12  ;;  %v12763_v3 = vld [vmem:[%s13800_s4 + $0x1204] sm:$0xf0] }
 0x222   : > { %4998 = vmatpush.bf16.msrb.mxu1 %v9291_v19  ;;  %v4772_v15 = vpop.f32.mrf.mxu3  ;;  %v12343_v19 = vld [vmem:[%s13800_s4 + $0x4e4] sm:$0xf0]  ;;  %v9214_v10 = vld [vmem:[%s13800_s4 + $0x718] sm:$0xf] }
 0x223   : > { %5011 = vmatpush.bf16.msrb.mxu2 %v9931_v20  ;;  %v9534_v20 = vld [vmem:[%s13800_s4 + $0x998] sm:$0xf]  ;;  %v8895_v30 = vor.u32 %v12343_v19, %v8894_v18  ;;  %v12263_v9 = vld [vmem:[%s13800_s4 + $0x264] sm:$0xf0] }
 0x224   : > { %5024 = vmatpush.bf16.msrb.mxu3 %v10571_v25  ;;  %v8971_v25 = vor.u32 %v12352_v7, %v8968_v8  ;;  %v9535_v33 = vor.u32 %v12503_v22, %v9534_v20  ;;  %v9935_v7 = vor.u32 %v12603_v1, %v9934_v0  ;;  %v8574_v8 = vld [vmem:[%s13800_s4 + $0x218] sm:$0xf]  ;;  %v12583_v15 = vld [vmem:[%s13800_s4 + $0xc64] sm:$0xf0]  ;;  %v9215_v22 = vor.u32 %v12423_v13, %v9214_v10  ;;  %v12653_v10 = vld [vmem:[%s13800_s4 + $0xe9c] sm:$0xf] }
 0x225   : > { %4986 = vmatpush.bf16.msrb.mxu0 %v8571_v34  ;;  %v10175_v34 = vor.u32 %v12663_v24, %v10174_v23  ;;  %v10494_v19 = vld [vmem:[%s13800_s4 + $0x1118] sm:$0xf]  ;;  %v12743_v20 = vld [vmem:[%s13800_s4 + $0x1164] sm:$0xf0]  ;;  %v9855_v23 = vor.u32 %v12583_v15, %v9854_v14  ;;  %v12813_v14 = vld [vmem:[%s13800_s4 + $0x139c] sm:$0xf] }
 0x226   : > { %4999 = vmatpush.bf16.msrb.mxu1 %v9211_v35  ;;  %v8814_v35 = vld [vmem:[%s13800_s4 + $0x3f8] sm:$0xf]  ;;  %v10495_v28 = vor.u32 %v12743_v20, %v10494_v19  ;;  %v12383_v49 = vld [vmem:[%s13800_s4 + $0x624] sm:$0xf0]  ;;  %v10816_v15 = vld [vmem:[%s13800_s4 + $0x13e8] sm:$0xf0] }
 0x227   : > { %5012 = vmatpush.bf16.msrb.mxu2 %v9851_v36  ;;  %v12323_v36 = vld [vmem:[%s13800_s4 + $0x444] sm:$0xf0]  ;;  %v8494_v24 = vld [vmem:[%s13800_s4 + $0x178] sm:$0xf] }
 0x228   : > { %5025 = vmatpush.bf16.msrb.mxu3 %v10491_v41  ;;  %v12643_v41 = vld [vmem:[%s13800_s4 + $0xe44] sm:$0xf0]  ;;  %v8815_v44 = vor.u32 %v12323_v36, %v8814_v35  ;;  %v10414_v36 = vld [vmem:[%s13800_s4 + $0x1078] sm:$0xf] }
 0x229   : > { %4987 = vmatpush.bf16.msrb.mxu0 %v8491_v50  ;;  %v10095_v46 = vor.u32 %v12643_v41, %v10094_v40  ;;  %v10735_v50 = vor.u32 %v12803_v43, %v10734_v42  ;;  %v10415_v48 = vor.u32 %v12723_v37, %v10414_v36  ;;  %v12543_v51 = vld [vmem:[%s13800_s4 + $0xb24] sm:$0xf0]  ;;  %v12293_v36 = vld [vmem:[%s13800_s4 + $0x35c] sm:$0xf]  ;;  %v8736_v37 = vld [vmem:[%s13800_s4 + $0x3a8] sm:$0xf0] }
 0x22a   : > { %5000 = vmatpush.bf16.msrb.mxu1 %v9131_v53  ;;  %v12623_v53 = vld [vmem:[%s13800_s4 + $0xda4] sm:$0xf0] }
 0x22b   : > { %5013 = vmatpush.bf16.msrb.mxu2 %v9771_v54  ;;  %v10654_v54 = vld [vmem:[%s13800_s4 + $0x1258] sm:$0xf]  ;;  %v10015_v58 = vor.u32 %v12623_v53, %v10014_v52  ;;  %v12523_v1 = vld [vmem:[%s13800_s4 + $0xa84] sm:$0xf0] }
 0x22c   : > { %5026 = vmatpush.bf16.msrb.mxu3 %v10411_v59  ;;  %v8654_v59 = vld [vmem:[%s13800_s4 + $0x2b8] sm:$0xf]  ;;  %v10655_v62 = vor.u32 %v12783_v55, %v10654_v54  ;;  %v12703_v54 = vld [vmem:[%s13800_s4 + $0x1024] sm:$0xf0] }
 0x22d   : > { %4988 = vmatpush.bf16.msrb.mxu0 %v8411_v2  ;;  %v10574_v2 = vld [vmem:[%s13800_s4 + $0x11b8] sm:$0xf]  ;;  %v8655_v4 = vor.u32 %v12283_v60, %v8654_v59 }
 0x22e   : > { %5001 = vmatpush.bf16.msrb.mxu1 %v9051_v5  ;;  %v10575_v12 = vor.u32 %v12763_v3, %v10574_v2  ;;  %v10334_v53 = vld [vmem:[%s13800_s4 + $0xfd8] sm:$0xf]  ;;  %v12683_v3 = vld [vmem:[%s13800_s4 + $0xf84] sm:$0xf0] }
 0x22f   : > { %5014 = vmatpush.bf16.msrb.mxu2 %v9691_v6  ;;  %v9295_v6 = vor.u32 %v12443_v63, %v9294_v61  ;;  %v8974_v60 = vld [vmem:[%s13800_s4 + $0x538] sm:$0xf]  ;;  %v12363_v61 = vld [vmem:[%s13800_s4 + $0x584] sm:$0xf0]  ;;  %v10335_v0 = vor.u32 %v12703_v54, %v10334_v53  ;;  %v12593_v53 = vld [vmem:[%s13800_s4 + $0xcbc] sm:$0xf] }
 0x230   : > { %5027 = vmatpush.bf16.msrb.mxu3 %v10331_v11  ;;  %v10254_v2 = vld [vmem:[%s13800_s4 + $0xf38] sm:$0xf]  ;;  %v9936_v54 = vld [vmem:[%s13800_s4 + $0xd08] sm:$0xf0] }
 0x231   : > { %4989 = vmatpush.bf16.msrb.mxu0 %v8331_v21  ;;  %v4783_v5 = vpop.f32.mrf.mxu0  ;;  %v8575_v21 = vor.u32 %v12263_v9, %v8574_v8  ;;  %v9536_v9 = vld [vmem:[%s13800_s4 + $0x9e8] sm:$0xf0] }
 0x232   : > { %5002 = vmatpush.bf16.msrb.mxu1 %v8971_v25  ;;  %v4796_v11 = vpop.f32.mrf.mxu1  ;;  %v12243_v25 = vld [vmem:[%s13800_s4 + $0x1c4] sm:$0xf0] }
 0x233   : > { %5015 = vmatpush.bf16.msrb.mxu2 %v9611_v26  ;;  %v4797_v18 = vadd.f32 %v4796_v11, %v4783_v5  ;;  %v9134_v26 = vld [vmem:[%s13800_s4 + $0x678] sm:$0xf]  ;;  %v8495_v39 = vor.u32 %v12243_v25, %v8494_v24  ;;  %v12333_v5 = vld [vmem:[%s13800_s4 + $0x49c] sm:$0xf]  ;;  %v10176_v11 = vld [vmem:[%s13800_s4 + $0xee8] sm:$0xf0]  ;;  %v10819_v25 = vor.u32 %v12813_v14, %v10816_v15 }
 0x234   : > { %5028 = vmatpush.bf16.msrb.mxu3 %v10251_v29  ;;  %4990 = vmatmul.bf16.vlgmr.msrb.gmra.mxu0 %v13929_v31  ;;  %v12403_v29 = vld [vmem:[%s13800_s4 + $0x6c4] sm:$0xf0]  ;;  %v12473_v24 = vld [vmem:[%s13800_s4 + $0x8fc] sm:$0xf] }
 0x235   : > { %5034 = vmatpush.bf16.msra.mxu0 %v8895_v30  ;;  %5003 = vmatmul.bf16.vlgmr.msrb.gmra.mxu1 %v13931_v32  ;;  %v9774_v30 = vld [vmem:[%s13800_s4 + $0xb78] sm:$0xf]  ;;  %v9135_v42 = vor.u32 %v12403_v29, %v9134_v26  ;;  %v9456_v26 = vld [vmem:[%s13800_s4 + $0x948] sm:$0xf0]  ;;  %v12793_v29 = vld [vmem:[%s13800_s4 + $0x12fc] sm:$0xf] }
 0x236   : > { %5047 = vmatpush.bf16.msra.mxu1 %v9535_v33  ;;  %5016 = vmatmul.bf16.vlgmr.msrb.gmra.mxu2 %v13917_v16  ;;  %v12563_v33 = vld [vmem:[%s13800_s4 + $0xbc4] sm:$0xf0] }
 0x237   : > { %5060 = vmatpush.bf16.msra.mxu2 %v10175_v34  ;;  %5029 = vmatmul.bf16.vlgmr.msrb.gmra.mxu3 %v13919_v17  ;;  %v9775_v43 = vor.u32 %v12563_v33, %v9774_v30  ;;  %v10736_v30 = vld [vmem:[%s13800_s4 + $0x1348] sm:$0xf0] }
 0x238   : > { %5073 = vmatpush.bf16.msra.mxu3 %v10815_v38  ;;  %v439_v38 = vld [vmem:[#allocation2 + $0x88] sm:$0xff] }
 0x239   : > { %5035 = vmatpush.bf16.msra.mxu0 %v8815_v44  ;;  %v4809_v27 = vpop.f32.mrf.mxu2  ;;  %v4785_v41 = vpop.f32.mrf.mxu0  ;;  %v8414_v44 = vld [vmem:[%s13800_s4 + $0xd8] sm:$0xf] }
 0x23a   : > { %5048 = vmatpush.bf16.msra.mxu1 %v9455_v45  ;;  %v4810_v34 = vadd.f32 %v4809_v27, %v4797_v18  ;;  %v4822_v35 = vpop.f32.mrf.mxu3  ;;  %v12223_v45 = vld [vmem:[%s13800_s4 + $0x124] sm:$0xf0]  ;;  %v4798_v47 = vpop.f32.mrf.mxu1  ;;  %v10255_v18 = vor.u32 %v12683_v3, %v10254_v2  ;;  %v12633_v27 = vld [vmem:[%s13800_s4 + $0xdfc] sm:$0xf]  ;;  %v9216_v2 = vld [vmem:[%s13800_s4 + $0x768] sm:$0xf0] }
 0x23b   : > { %5061 = vmatpush.bf16.msra.mxu2 %v10095_v46  ;;  %v9054_v46 = vld [vmem:[%s13800_s4 + $0x5d8] sm:$0xf]  ;;  %v8415_v55 = vor.u32 %v12223_v45, %v8414_v44  ;;  %v12613_v41 = vld [vmem:[%s13800_s4 + $0xd5c] sm:$0xf]  ;;  %v10656_v44 = vld [vmem:[%s13800_s4 + $0x12a8] sm:$0xf0]  ;;  %v8739_v45 = vor.u32 %v12293_v36, %v8736_v37 }
 0x23c   : > { %5074 = vmatpush.bf16.msra.mxu3 %v10735_v50  ;;  %v4823_v40 = vadd.f32 %v4822_v35, %v4810_v34  ;;  %v9694_v50 = vld [vmem:[%s13800_s4 + $0xad8] sm:$0xf]  ;;  %v9459_v34 = vor.u32 %v12473_v24, %v9456_v26  ;;  %v12573_v3 = vld [vmem:[%s13800_s4 + $0xc1c] sm:$0xf]  ;;  %v10416_v24 = vld [vmem:[%s13800_s4 + $0x10c8] sm:$0xf0] }
 0x23d   : > { %5036 = vmatpush.bf16.msra.mxu0 %v8735_v56  ;;  %v8334_v56 = vld [vmem:[%s13800_s4 + $0x38] sm:$0xf]  ;;  %v9695_v59 = vor.u32 %v12543_v51, %v9694_v50  ;;  %v12433_v50 = vld [vmem:[%s13800_s4 + $0x7bc] sm:$0xf] }
 0x23e   : > { %5049 = vmatpush.bf16.msra.mxu1 %v9375_v57  ;;  %v5355_v52 = vadd.f32 %v4823_v40, %v439_v38  ;;  %v12203_v57 = vld [vmem:[%s13800_s4 + $0x84] sm:$0xf0]  ;;  %v12453_v38 = vld [vmem:[%s13800_s4 + $0x85c] sm:$0xf]  ;;  %v9376_v40 = vld [vmem:[%s13800_s4 + $0x8a8] sm:$0xf0] }
 0x23f   : > { %5062 = vmatpush.bf16.msra.mxu2 %v10015_v58  ;;  %v9055_v58 = vor.u32 %v12383_v49, %v9054_v46  ;;  %v8335_v8 = vor.u32 %v12203_v57, %v8334_v56  ;;  %v9379_v46 = vor.u32 %v12453_v38, %v9376_v40  ;;  %v8656_v49 = vld [vmem:[%s13800_s4 + $0x308] sm:$0xf0] }
 0x240   : > { %5075 = vmatpush.bf16.msra.mxu3 %v10655_v62  ;;  %5375 = vst [vmem:[#allocation2 + $0x88] sm:$0xff] %v5355_v52  ;;  %v9614_v62 = vld [vmem:[%s13800_s4 + $0xa38] sm:$0xf]  ;;  %v9296_v52 = vld [vmem:[%s13800_s4 + $0x808] sm:$0xf0] }
 0x241   : > { %5037 = vmatpush.bf16.msra.mxu0 %v8655_v4  ;;  %v4811_v63 = vpop.f32.mrf.mxu2  ;;  %v9615_v13 = vor.u32 %v12523_v1, %v9614_v62  ;;  %v10576_v56 = vld [vmem:[%s13800_s4 + $0x1208] sm:$0xf0] }
 0x242   : > { %5050 = vmatpush.bf16.msra.mxu1 %v9295_v6  ;;  %v4824_v4 = vpop.f32.mrf.mxu3  ;;  %v8896_v6 = vld [vmem:[%s13800_s4 + $0x4e8] sm:$0xf0]  ;;  %v12413_v63 = vld [vmem:[%s13800_s4 + $0x71c] sm:$0xf] }
 0x243   : > { %5063 = vmatpush.bf16.msra.mxu2 %v9935_v7  ;;  %v12493_v7 = vld [vmem:[%s13800_s4 + $0x99c] sm:$0xf]  ;;  %v8899_v19 = vor.u32 %v12333_v5, %v8896_v6  ;;  %v8576_v62 = vld [vmem:[%s13800_s4 + $0x268] sm:$0xf0] }
 0x244   : > { %5076 = vmatpush.bf16.msra.mxu3 %v10575_v12  ;;  %v8975_v12 = vor.u32 %v12363_v61, %v8974_v60  ;;  %v9539_v20 = vor.u32 %v12493_v7, %v9536_v9  ;;  %v9939_v60 = vor.u32 %v12593_v53, %v9936_v54  ;;  %v12253_v61 = vld [vmem:[%s13800_s4 + $0x21c] sm:$0xf]  ;;  %v9856_v4 = vld [vmem:[%s13800_s4 + $0xc68] sm:$0xf0]  ;;  %v9219_v9 = vor.u32 %v12413_v63, %v9216_v2  ;;  %v10182_v63 = vld [vmem:[%s13800_s4 + $0xea0] sm:$0xf] }
 0x245   : > { %5038 = vmatpush.bf16.msra.mxu0 %v8575_v21  ;;  %v10179_v21 = vor.u32 %v12653_v10, %v10176_v11  ;;  %v12733_v6 = vld [vmem:[%s13800_s4 + $0x111c] sm:$0xf]  ;;  %v10496_v7 = vld [vmem:[%s13800_s4 + $0x1168] sm:$0xf0]  ;;  %v9859_v10 = vor.u32 %v12573_v3, %v9856_v4  ;;  %v10822_v3 = vld [vmem:[%s13800_s4 + $0x13a0] sm:$0xf] }
 0x246   : > { %5051 = vmatpush.bf16.msra.mxu1 %v9215_v22  ;;  %v12313_v22 = vld [vmem:[%s13800_s4 + $0x3fc] sm:$0xf]  ;;  %v10499_v15 = vor.u32 %v12733_v6, %v10496_v7  ;;  %v9056_v38 = vld [vmem:[%s13800_s4 + $0x628] sm:$0xf0]  ;;  %v12824_v4 = vld [vmem:[%s13800_s4 + $0x13ec] sm:$0xf0] }
 0x247   : > { %5064 = vmatpush.bf16.msra.mxu2 %v9855_v23  ;;  %v8816_v23 = vld [vmem:[%s13800_s4 + $0x448] sm:$0xf0]  ;;  %v12233_v11 = vld [vmem:[%s13800_s4 + $0x17c] sm:$0xf] }
 0x248   : > { %5077 = vmatpush.bf16.msra.mxu3 %v10495_v28  ;;  %v10096_v28 = vld [vmem:[%s13800_s4 + $0xe48] sm:$0xf0]  ;;  %v8819_v33 = vor.u32 %v12313_v22, %v8816_v23  ;;  %v12713_v23 = vld [vmem:[%s13800_s4 + $0x107c] sm:$0xf] }
 0x249   : > { %5039 = vmatpush.bf16.msra.mxu0 %v8495_v39  ;;  %v10099_v35 = vor.u32 %v12633_v27, %v10096_v28  ;;  %v10739_v39 = vor.u32 %v12793_v29, %v10736_v30  ;;  %v10419_v37 = vor.u32 %v12713_v23, %v10416_v24  ;;  %v9696_v40 = vld [vmem:[%s13800_s4 + $0xb28] sm:$0xf0]  ;;  %v8742_v23 = vld [vmem:[%s13800_s4 + $0x360] sm:$0xf]  ;;  %v12304_v24 = vld [vmem:[%s13800_s4 + $0x3ac] sm:$0xf0] }
 0x24a   : > { %5052 = vmatpush.bf16.msra.mxu1 %v9135_v42  ;;  %v10016_v42 = vld [vmem:[%s13800_s4 + $0xda8] sm:$0xf0] }
 0x24b   : > { %5065 = vmatpush.bf16.msra.mxu2 %v9775_v43  ;;  %v12773_v43 = vld [vmem:[%s13800_s4 + $0x125c] sm:$0xf]  ;;  %v10019_v47 = vor.u32 %v12613_v41, %v10016_v42  ;;  %v9616_v54 = vld [vmem:[%s13800_s4 + $0xa88] sm:$0xf0] }
 0x24c   : > { %5078 = vmatpush.bf16.msra.mxu3 %v10415_v48  ;;  %v12273_v48 = vld [vmem:[%s13800_s4 + $0x2bc] sm:$0xf]  ;;  %v10659_v51 = vor.u32 %v12773_v43, %v10656_v44  ;;  %v10336_v43 = vld [vmem:[%s13800_s4 + $0x1028] sm:$0xf0] }
 0x24d   : > { %5040 = vmatpush.bf16.msra.mxu0 %v8415_v55  ;;  %v12753_v55 = vld [vmem:[%s13800_s4 + $0x11bc] sm:$0xf]  ;;  %v8659_v57 = vor.u32 %v12273_v48, %v8656_v49 }
 0x24e   : > { %5053 = vmatpush.bf16.msra.mxu1 %v9055_v58  ;;  %v10579_v1 = vor.u32 %v12753_v55, %v10576_v56  ;;  %v12693_v42 = vld [vmem:[%s13800_s4 + $0xfdc] sm:$0xf]  ;;  %v10256_v56 = vld [vmem:[%s13800_s4 + $0xf88] sm:$0xf0] }
 0x24f   : > { %5066 = vmatpush.bf16.msra.mxu2 %v9695_v59  ;;  %v9299_v59 = vor.u32 %v12433_v50, %v9296_v52  ;;  %v12353_v49 = vld [vmem:[%s13800_s4 + $0x53c] sm:$0xf]  ;;  %v8976_v50 = vld [vmem:[%s13800_s4 + $0x588] sm:$0xf0]  ;;  %v10339_v53 = vor.u32 %v12693_v42, %v10336_v43  ;;  %v9942_v42 = vld [vmem:[%s13800_s4 + $0xcc0] sm:$0xf] }
 0x250   : > { %5079 = vmatpush.bf16.msra.mxu3 %v10335_v0  ;;  %v12673_v55 = vld [vmem:[%s13800_s4 + $0xf3c] sm:$0xf]  ;;  %v12604_v43 = vld [vmem:[%s13800_s4 + $0xd0c] sm:$0xf0] }
 0x251   : > { %5041 = vmatpush.bf16.msra.mxu0 %v8335_v8  ;;  %v4835_v58 = vpop.f32.mrf.mxu0  ;;  %v8579_v8 = vor.u32 %v12253_v61, %v8576_v62  ;;  %v12504_v62 = vld [vmem:[%s13800_s4 + $0x9ec] sm:$0xf0] }
 0x252   : > { %5054 = vmatpush.bf16.msra.mxu1 %v8975_v12  ;;  %v4848_v0 = vpop.f32.mrf.mxu1  ;;  %v8496_v12 = vld [vmem:[%s13800_s4 + $0x1c8] sm:$0xf0] }
 0x253   : > { %5067 = vmatpush.bf16.msra.mxu2 %v9615_v13  ;;  %v4849_v5 = vadd.f32 %v4848_v0, %v4835_v58  ;;  %v12393_v13 = vld [vmem:[%s13800_s4 + $0x67c] sm:$0xf]  ;;  %v8499_v26 = vor.u32 %v12233_v11, %v8496_v12  ;;  %v8902_v58 = vld [vmem:[%s13800_s4 + $0x4a0] sm:$0xf]  ;;  %v12664_v0 = vld [vmem:[%s13800_s4 + $0xeec] sm:$0xf0]  ;;  %v10823_v12 = vor.u32 %v12824_v4, %v10822_v3 }
 0x254   : > { %5080 = vmatpush.bf16.msra.mxu3 %v10255_v18  ;;  %5042 = vmatmul.bf16.vlgmr.msra.gmra.mxu0 %v13929_v31  ;;  %v9136_v18 = vld [vmem:[%s13800_s4 + $0x6c8] sm:$0xf0]  ;;  %v9462_v11 = vld [vmem:[%s13800_s4 + $0x900] sm:$0xf] }
 0x255   : > { %5086 = vmatpush.bf16.msrb.mxu0 %v8899_v19  ;;  %5055 = vmatmul.bf16.vlgmr.msra.gmra.mxu1 %v13931_v32  ;;  %v12553_v19 = vld [vmem:[%s13800_s4 + $0xb7c] sm:$0xf]  ;;  %v9139_v29 = vor.u32 %v12393_v13, %v9136_v18  ;;  %v12484_v13 = vld [vmem:[%s13800_s4 + $0x94c] sm:$0xf0]  ;;  %v10742_v18 = vld [vmem:[%s13800_s4 + $0x1300] sm:$0xf] }
 0x256   : > { %5099 = vmatpush.bf16.msrb.mxu1 %v9539_v20  ;;  %5068 = vmatmul.bf16.vlgmr.msra.gmra.mxu2 %v13917_v16  ;;  %v9776_v20 = vld [vmem:[%s13800_s4 + $0xbc8] sm:$0xf0] }
 0x257   : > { %5112 = vmatpush.bf16.msrb.mxu2 %v10179_v21  ;;  %5081 = vmatmul.bf16.vlgmr.msra.gmra.mxu3 %v13919_v17  ;;  %v9779_v30 = vor.u32 %v12553_v19, %v9776_v20  ;;  %v12804_v19 = vld [vmem:[%s13800_s4 + $0x134c] sm:$0xf0] }
 0x258   : > { %5125 = vmatpush.bf16.msrb.mxu3 %v10819_v25  ;;  %v440_v25 = vld [vmem:[#allocation2 + $0x28] sm:$0xff] }
 0x259   : > { %5087 = vmatpush.bf16.msrb.mxu0 %v8819_v33  ;;  %v4861_v14 = vpop.f32.mrf.mxu2  ;;  %v4837_v28 = vpop.f32.mrf.mxu0  ;;  %v12213_v33 = vld [vmem:[%s13800_s4 + $0xdc] sm:$0xf] }
 0x25a   : > { %5100 = vmatpush.bf16.msrb.mxu1 %v9459_v34  ;;  %v4862_v21 = vadd.f32 %v4861_v14, %v4849_v5  ;;  %v4874_v22 = vpop.f32.mrf.mxu3  ;;  %v8416_v34 = vld [vmem:[%s13800_s4 + $0x128] sm:$0xf0]  ;;  %v4850_v36 = vpop.f32.mrf.mxu1  ;;  %v10259_v5 = vor.u32 %v12673_v55, %v10256_v56  ;;  %v10102_v14 = vld [vmem:[%s13800_s4 + $0xe00] sm:$0xf]  ;;  %v12424_v55 = vld [vmem:[%s13800_s4 + $0x76c] sm:$0xf0] }
 0x25b   : > { %5113 = vmatpush.bf16.msrb.mxu2 %v10099_v35  ;;  %v12373_v35 = vld [vmem:[%s13800_s4 + $0x5dc] sm:$0xf]  ;;  %v8419_v44 = vor.u32 %v12213_v33, %v8416_v34  ;;  %v10022_v28 = vld [vmem:[%s13800_s4 + $0xd60] sm:$0xf]  ;;  %v12784_v33 = vld [vmem:[%s13800_s4 + $0x12ac] sm:$0xf0]  ;;  %v8743_v34 = vor.u32 %v12304_v24, %v8742_v23 }
 0x25c   : > { %5126 = vmatpush.bf16.msrb.mxu3 %v10739_v39  ;;  %v4875_v27 = vadd.f32 %v4874_v22, %v4862_v21  ;;  %v12533_v39 = vld [vmem:[%s13800_s4 + $0xadc] sm:$0xf]  ;;  %v9463_v21 = vor.u32 %v12484_v13, %v9462_v11  ;;  %v9862_v56 = vld [vmem:[%s13800_s4 + $0xc20] sm:$0xf]  ;;  %v12724_v11 = vld [vmem:[%s13800_s4 + $0x10cc] sm:$0xf0] }
 0x25d   : > { %5088 = vmatpush.bf16.msrb.mxu0 %v8739_v45  ;;  %v12193_v45 = vld [vmem:[%s13800_s4 + $0x3c] sm:$0xf]  ;;  %v9699_v48 = vor.u32 %v12533_v39, %v9696_v40  ;;  %v9302_v39 = vld [vmem:[%s13800_s4 + $0x7c0] sm:$0xf] }
 0x25e   : > { %5101 = vmatpush.bf16.msrb.mxu1 %v9379_v46  ;;  %v5356_v41 = vadd.f32 %v4875_v27, %v440_v25  ;;  %v8336_v46 = vld [vmem:[%s13800_s4 + $0x88] sm:$0xf0]  ;;  %v9382_v25 = vld [vmem:[%s13800_s4 + $0x860] sm:$0xf]  ;;  %v12464_v27 = vld [vmem:[%s13800_s4 + $0x8ac] sm:$0xf0] }
 0x25f   : > { %5114 = vmatpush.bf16.msrb.mxu2 %v10019_v47  ;;  %v9059_v47 = vor.u32 %v12373_v35, %v9056_v38  ;;  %v8339_v61 = vor.u32 %v12193_v45, %v8336_v46  ;;  %v9383_v35 = vor.u32 %v12464_v27, %v9382_v25  ;;  %v12284_v38 = vld [vmem:[%s13800_s4 + $0x30c] sm:$0xf0] }
 0x260   : > { %5127 = vmatpush.bf16.msrb.mxu3 %v10659_v51  ;;  %5376 = vst [vmem:[#allocation2 + $0x28] sm:$0xff] %v5356_v41  ;;  %v12513_v51 = vld [vmem:[%s13800_s4 + $0xa3c] sm:$0xf]  ;;  %v12444_v41 = vld [vmem:[%s13800_s4 + $0x80c] sm:$0xf0] }
 0x261   : > { %5089 = vmatpush.bf16.msrb.mxu0 %v8659_v57  ;;  %v4863_v52 = vpop.f32.mrf.mxu2  ;;  %v9619_v2 = vor.u32 %v12513_v51, %v9616_v54  ;;  %v12764_v45 = vld [vmem:[%s13800_s4 + $0x120c] sm:$0xf0] }
 0x262   : > { %5102 = vmatpush.bf16.msrb.mxu1 %v9299_v59  ;;  %v4876_v57 = vpop.f32.mrf.mxu3  ;;  %v12344_v59 = vld [vmem:[%s13800_s4 + $0x4ec] sm:$0xf0]  ;;  %v9222_v52 = vld [vmem:[%s13800_s4 + $0x720] sm:$0xf] }
 0x263   : > { %5115 = vmatpush.bf16.msrb.mxu2 %v9939_v60  ;;  %v9542_v60 = vld [vmem:[%s13800_s4 + $0x9a0] sm:$0xf]  ;;  %v8903_v6 = vor.u32 %v12344_v59, %v8902_v58  ;;  %v12264_v51 = vld [vmem:[%s13800_s4 + $0x26c] sm:$0xf0] }
 0x264   : > { %5128 = vmatpush.bf16.msrb.mxu3 %v10579_v1  ;;  %v8979_v1 = vor.u32 %v12353_v49, %v8976_v50  ;;  %v9543_v7 = vor.u32 %v12504_v62, %v9542_v60  ;;  %v9943_v49 = vor.u32 %v12604_v43, %v9942_v42  ;;  %v8582_v50 = vld [vmem:[%s13800_s4 + $0x220] sm:$0xf]  ;;  %v12584_v57 = vld [vmem:[%s13800_s4 + $0xc6c] sm:$0xf0]  ;;  %v9223_v62 = vor.u32 %v12424_v55, %v9222_v52  ;;  %v12654_v52 = vld [vmem:[%s13800_s4 + $0xea4] sm:$0xf] }
 0x265   : > { %5090 = vmatpush.bf16.msrb.mxu0 %v8579_v8  ;;  %v10183_v8 = vor.u32 %v12664_v0, %v10182_v63  ;;  %v10502_v59 = vld [vmem:[%s13800_s4 + $0x1120] sm:$0xf]  ;;  %v12744_v60 = vld [vmem:[%s13800_s4 + $0x116c] sm:$0xf0]  ;;  %v9863_v63 = vor.u32 %v12584_v57, %v9862_v56  ;;  %v12814_v56 = vld [vmem:[%s13800_s4 + $0x13a4] sm:$0xf] }
 0x266   : > { %5103 = vmatpush.bf16.msrb.mxu1 %v9219_v9  ;;  %v8822_v9 = vld [vmem:[%s13800_s4 + $0x400] sm:$0xf]  ;;  %v10503_v4 = vor.u32 %v12744_v60, %v10502_v59  ;;  %v12384_v25 = vld [vmem:[%s13800_s4 + $0x62c] sm:$0xf0]  ;;  %v10824_v57 = vld [vmem:[%s13800_s4 + $0x13f0] sm:$0xf0] }
 0x267   : > { %5116 = vmatpush.bf16.msrb.mxu2 %v9859_v10  ;;  %v12324_v10 = vld [vmem:[%s13800_s4 + $0x44c] sm:$0xf0]  ;;  %v8502_v0 = vld [vmem:[%s13800_s4 + $0x180] sm:$0xf] }
 0x268   : > { %5129 = vmatpush.bf16.msrb.mxu3 %v10499_v15  ;;  %v12644_v15 = vld [vmem:[%s13800_s4 + $0xe4c] sm:$0xf0]  ;;  %v8823_v20 = vor.u32 %v12324_v10, %v8822_v9  ;;  %v10422_v10 = vld [vmem:[%s13800_s4 + $0x1080] sm:$0xf] }
 0x269   : > { %5091 = vmatpush.bf16.msrb.mxu0 %v8499_v26  ;;  %v10103_v22 = vor.u32 %v12644_v15, %v10102_v14  ;;  %v10743_v26 = vor.u32 %v12804_v19, %v10742_v18  ;;  %v10423_v24 = vor.u32 %v12724_v11, %v10422_v10  ;;  %v12544_v27 = vld [vmem:[%s13800_s4 + $0xb2c] sm:$0xf0]  ;;  %v12294_v10 = vld [vmem:[%s13800_s4 + $0x364] sm:$0xf]  ;;  %v8744_v11 = vld [vmem:[%s13800_s4 + $0x3b0] sm:$0xf0] }
 0x26a   : > { %5104 = vmatpush.bf16.msrb.mxu1 %v9139_v29  ;;  %v12624_v29 = vld [vmem:[%s13800_s4 + $0xdac] sm:$0xf0] }
 0x26b   : > { %5117 = vmatpush.bf16.msrb.mxu2 %v9779_v30  ;;  %v10662_v30 = vld [vmem:[%s13800_s4 + $0x1260] sm:$0xf]  ;;  %v10023_v36 = vor.u32 %v12624_v29, %v10022_v28  ;;  %v12524_v43 = vld [vmem:[%s13800_s4 + $0xa8c] sm:$0xf0] }
 0x26c   : > { %5130 = vmatpush.bf16.msrb.mxu3 %v10419_v37  ;;  %v8662_v37 = vld [vmem:[%s13800_s4 + $0x2c0] sm:$0xf]  ;;  %v10663_v40 = vor.u32 %v12784_v33, %v10662_v30  ;;  %v12704_v30 = vld [vmem:[%s13800_s4 + $0x102c] sm:$0xf0] }
 0x26d   : > { %5092 = vmatpush.bf16.msrb.mxu0 %v8419_v44  ;;  %v10582_v44 = vld [vmem:[%s13800_s4 + $0x11c0] sm:$0xf]  ;;  %v8663_v46 = vor.u32 %v12284_v38, %v8662_v37 }
 0x26e   : > { %5105 = vmatpush.bf16.msrb.mxu1 %v9059_v47  ;;  %v10583_v54 = vor.u32 %v12764_v45, %v10582_v44  ;;  %v10342_v29 = vld [vmem:[%s13800_s4 + $0xfe0] sm:$0xf]  ;;  %v12684_v45 = vld [vmem:[%s13800_s4 + $0xf8c] sm:$0xf0] }
 0x26f   : > { %5118 = vmatpush.bf16.msrb.mxu2 %v9699_v48  ;;  %v9303_v48 = vor.u32 %v12444_v41, %v9302_v39  ;;  %v8982_v38 = vld [vmem:[%s13800_s4 + $0x540] sm:$0xf]  ;;  %v12364_v39 = vld [vmem:[%s13800_s4 + $0x58c] sm:$0xf0]  ;;  %v10343_v42 = vor.u32 %v12704_v30, %v10342_v29  ;;  %v12594_v29 = vld [vmem:[%s13800_s4 + $0xcc4] sm:$0xf] }
 0x270   : > { %5131 = vmatpush.bf16.msrb.mxu3 %v10339_v53  ;;  %v10262_v44 = vld [vmem:[%s13800_s4 + $0xf40] sm:$0xf]  ;;  %v9944_v30 = vld [vmem:[%s13800_s4 + $0xd10] sm:$0xf0] }
 0x271   : > { %5093 = vmatpush.bf16.msrb.mxu0 %v8339_v61  ;;  %v4887_v47 = vpop.f32.mrf.mxu0  ;;  %v8583_v61 = vor.u32 %v12264_v51, %v8582_v50  ;;  %v9544_v51 = vld [vmem:[%s13800_s4 + $0x9f0] sm:$0xf0] }
 0x272   : > { %5106 = vmatpush.bf16.msrb.mxu1 %v8979_v1  ;;  %v4900_v53 = vpop.f32.mrf.mxu1  ;;  %v12244_v1 = vld [vmem:[%s13800_s4 + $0x1cc] sm:$0xf0] }
 0x273   : > { %5119 = vmatpush.bf16.msrb.mxu2 %v9619_v2  ;;  %v4901_v58 = vadd.f32 %v4900_v53, %v4887_v47  ;;  %v9142_v2 = vld [vmem:[%s13800_s4 + $0x680] sm:$0xf]  ;;  %v8503_v13 = vor.u32 %v12244_v1, %v8502_v0  ;;  %v12334_v47 = vld [vmem:[%s13800_s4 + $0x4a4] sm:$0xf]  ;;  %v10184_v53 = vld [vmem:[%s13800_s4 + $0xef0] sm:$0xf0]  ;;  %v10827_v1 = vor.u32 %v12814_v56, %v10824_v57 }
 0x274   : > { %5132 = vmatpush.bf16.msrb.mxu3 %v10259_v5  ;;  %5094 = vmatmul.bf16.vlgmr.msrb.gmra.mxu0 %v13929_v31  ;;  %v12404_v5 = vld [vmem:[%s13800_s4 + $0x6cc] sm:$0xf0]  ;;  %v12474_v0 = vld [vmem:[%s13800_s4 + $0x904] sm:$0xf] }
 0x275   : > { %5138 = vmatpush.bf16.msra.mxu0 %v8903_v6  ;;  %5107 = vmatmul.bf16.vlgmr.msrb.gmra.mxu1 %v13931_v32  ;;  %v9782_v6 = vld [vmem:[%s13800_s4 + $0xb80] sm:$0xf]  ;;  %v9143_v18 = vor.u32 %v12404_v5, %v9142_v2  ;;  %v9464_v2 = vld [vmem:[%s13800_s4 + $0x950] sm:$0xf0]  ;;  %v12794_v5 = vld [vmem:[%s13800_s4 + $0x1304] sm:$0xf] }
 0x276   : > { %5151 = vmatpush.bf16.msra.mxu1 %v9543_v7  ;;  %5120 = vmatmul.bf16.vlgmr.msrb.gmra.mxu2 %v13917_v16  ;;  %v12564_v7 = vld [vmem:[%s13800_s4 + $0xbcc] sm:$0xf0] }
 0x277   : > { %5164 = vmatpush.bf16.msra.mxu2 %v10183_v8  ;;  %5133 = vmatmul.bf16.vlgmr.msrb.gmra.mxu3 %v13919_v17  ;;  %v9783_v19 = vor.u32 %v12564_v7, %v9782_v6  ;;  %v10744_v6 = vld [vmem:[%s13800_s4 + $0x1350] sm:$0xf0] }
 0x278   : > { %5177 = vmatpush.bf16.msra.mxu3 %v10823_v12  ;;  %v441_v12 = vld [vmem:[#allocation2 + $0x40] sm:$0xff] }
 0x279   : > { %5139 = vmatpush.bf16.msra.mxu0 %v8823_v20  ;;  %v4913_v3 = vpop.f32.mrf.mxu2  ;;  %v4889_v15 = vpop.f32.mrf.mxu0  ;;  %v8422_v20 = vld [vmem:[%s13800_s4 + $0xe0] sm:$0xf] }
 0x27a   : > { %5152 = vmatpush.bf16.msra.mxu1 %v9463_v21  ;;  %v4914_v8 = vadd.f32 %v4913_v3, %v4901_v58  ;;  %v4926_v9 = vpop.f32.mrf.mxu3  ;;  %v12224_v21 = vld [vmem:[%s13800_s4 + $0x12c] sm:$0xf0]  ;;  %v4902_v23 = vpop.f32.mrf.mxu1  ;;  %v10263_v58 = vor.u32 %v12684_v45, %v10262_v44  ;;  %v12634_v3 = vld [vmem:[%s13800_s4 + $0xe04] sm:$0xf]  ;;  %v9224_v44 = vld [vmem:[%s13800_s4 + $0x770] sm:$0xf0] }
 0x27b   : > { %5165 = vmatpush.bf16.msra.mxu2 %v10103_v22  ;;  %v9062_v22 = vld [vmem:[%s13800_s4 + $0x5e0] sm:$0xf]  ;;  %v8423_v33 = vor.u32 %v12224_v21, %v8422_v20  ;;  %v12614_v15 = vld [vmem:[%s13800_s4 + $0xd64] sm:$0xf]  ;;  %v10664_v20 = vld [vmem:[%s13800_s4 + $0x12b0] sm:$0xf0]  ;;  %v8747_v21 = vor.u32 %v12294_v10, %v8744_v11 }
 0x27c   : > { %5178 = vmatpush.bf16.msra.mxu3 %v10743_v26  ;;  %v4927_v14 = vadd.f32 %v4926_v9, %v4914_v8  ;;  %v9702_v26 = vld [vmem:[%s13800_s4 + $0xae0] sm:$0xf]  ;;  %v9467_v8 = vor.u32 %v12474_v0, %v9464_v2  ;;  %v12574_v45 = vld [vmem:[%s13800_s4 + $0xc24] sm:$0xf]  ;;  %v10424_v0 = vld [vmem:[%s13800_s4 + $0x10d0] sm:$0xf0] }
 0x27d   : > { %5140 = vmatpush.bf16.msra.mxu0 %v8743_v34  ;;  %v8342_v34 = vld [vmem:[%s13800_s4 + $0x40] sm:$0xf]  ;;  %v9703_v37 = vor.u32 %v12544_v27, %v9702_v26  ;;  %v12434_v26 = vld [vmem:[%s13800_s4 + $0x7c4] sm:$0xf] }
 0x27e   : > { %5153 = vmatpush.bf16.msra.mxu1 %v9383_v35  ;;  %v5357_v28 = vadd.f32 %v4927_v14, %v441_v12  ;;  %v12204_v35 = vld [vmem:[%s13800_s4 + $0x8c] sm:$0xf0]  ;;  %v12454_v12 = vld [vmem:[%s13800_s4 + $0x864] sm:$0xf]  ;;  %v9384_v14 = vld [vmem:[%s13800_s4 + $0x8b0] sm:$0xf0] }
 0x27f   : > { %5166 = vmatpush.bf16.msra.mxu2 %v10023_v36  ;;  %v9063_v36 = vor.u32 %v12384_v25, %v9062_v22  ;;  %v8343_v50 = vor.u32 %v12204_v35, %v8342_v34  ;;  %v9387_v22 = vor.u32 %v12454_v12, %v9384_v14  ;;  %v8664_v25 = vld [vmem:[%s13800_s4 + $0x310] sm:$0xf0] }
 0x280   : > { %5179 = vmatpush.bf16.msra.mxu3 %v10663_v40  ;;  %5377 = vst [vmem:[#allocation2 + $0x40] sm:$0xff] %v5357_v28  ;;  %v9622_v40 = vld [vmem:[%s13800_s4 + $0xa40] sm:$0xf]  ;;  %v9304_v28 = vld [vmem:[%s13800_s4 + $0x810] sm:$0xf0] }
 0x281   : > { %5141 = vmatpush.bf16.msra.mxu0 %v8663_v46  ;;  %v4915_v41 = vpop.f32.mrf.mxu2  ;;  %v9623_v55 = vor.u32 %v12524_v43, %v9622_v40  ;;  %v10584_v34 = vld [vmem:[%s13800_s4 + $0x1210] sm:$0xf0] }
 0x282   : > { %5154 = vmatpush.bf16.msra.mxu1 %v9303_v48  ;;  %v4928_v46 = vpop.f32.mrf.mxu3  ;;  %v8904_v48 = vld [vmem:[%s13800_s4 + $0x4f0] sm:$0xf0]  ;;  %v12414_v41 = vld [vmem:[%s13800_s4 + $0x724] sm:$0xf] }
 0x283   : > { %5167 = vmatpush.bf16.msra.mxu2 %v9943_v49  ;;  %v12494_v49 = vld [vmem:[%s13800_s4 + $0x9a4] sm:$0xf]  ;;  %v8907_v59 = vor.u32 %v12334_v47, %v8904_v48  ;;  %v8584_v40 = vld [vmem:[%s13800_s4 + $0x270] sm:$0xf0] }
 0x284   : > { %5180 = vmatpush.bf16.msra.mxu3 %v10583_v54  ;;  %v8983_v54 = vor.u32 %v12364_v39, %v8982_v38  ;;  %v9547_v60 = vor.u32 %v12494_v49, %v9544_v51  ;;  %v9947_v38 = vor.u32 %v12594_v29, %v9944_v30  ;;  %v12254_v39 = vld [vmem:[%s13800_s4 + $0x224] sm:$0xf]  ;;  %v9864_v46 = vld [vmem:[%s13800_s4 + $0xc70] sm:$0xf0]  ;;  %v9227_v51 = vor.u32 %v12414_v41, %v9224_v44  ;;  %v10190_v41 = vld [vmem:[%s13800_s4 + $0xea8] sm:$0xf] }
 0x285   : > { %5142 = vmatpush.bf16.msra.mxu0 %v8583_v61  ;;  %v10187_v61 = vor.u32 %v12654_v52, %v10184_v53  ;;  %v12734_v48 = vld [vmem:[%s13800_s4 + $0x1124] sm:$0xf]  ;;  %v10504_v49 = vld [vmem:[%s13800_s4 + $0x1170] sm:$0xf0]  ;;  %v9867_v52 = vor.u32 %v12574_v45, %v9864_v46  ;;  %v10830_v45 = vld [vmem:[%s13800_s4 + $0x13a8] sm:$0xf] }
 0x286   : > { %5155 = vmatpush.bf16.msra.mxu1 %v9223_v62  ;;  %v12314_v62 = vld [vmem:[%s13800_s4 + $0x404] sm:$0xf]  ;;  %v10507_v57 = vor.u32 %v12734_v48, %v10504_v49  ;;  %v9064_v12 = vld [vmem:[%s13800_s4 + $0x630] sm:$0xf0]  ;;  %v12825_v46 = vld [vmem:[%s13800_s4 + $0x13f4] sm:$0xf0] }
 0x287   : > { %5168 = vmatpush.bf16.msra.mxu2 %v9863_v63  ;;  %v8824_v63 = vld [vmem:[%s13800_s4 + $0x450] sm:$0xf0]  ;;  %v12234_v53 = vld [vmem:[%s13800_s4 + $0x184] sm:$0xf] }
 0x288   : > { %5181 = vmatpush.bf16.msra.mxu3 %v10503_v4  ;;  %v10104_v4 = vld [vmem:[%s13800_s4 + $0xe50] sm:$0xf0]  ;;  %v8827_v7 = vor.u32 %v12314_v62, %v8824_v63  ;;  %v12714_v63 = vld [vmem:[%s13800_s4 + $0x1084] sm:$0xf] }
 0x289   : > { %5143 = vmatpush.bf16.msra.mxu0 %v8503_v13  ;;  %v10107_v9 = vor.u32 %v12634_v3, %v10104_v4  ;;  %v10747_v13 = vor.u32 %v12794_v5, %v10744_v6  ;;  %v10427_v11 = vor.u32 %v12714_v63, %v10424_v0  ;;  %v9704_v14 = vld [vmem:[%s13800_s4 + $0xb30] sm:$0xf0]  ;;  %v8750_v63 = vld [vmem:[%s13800_s4 + $0x368] sm:$0xf]  ;;  %v12305_v0 = vld [vmem:[%s13800_s4 + $0x3b4] sm:$0xf0] }
 0x28a   : > { %5156 = vmatpush.bf16.msra.mxu1 %v9143_v18  ;;  %v10024_v18 = vld [vmem:[%s13800_s4 + $0xdb0] sm:$0xf0] }
 0x28b   : > { %5169 = vmatpush.bf16.msra.mxu2 %v9783_v19  ;;  %v12774_v19 = vld [vmem:[%s13800_s4 + $0x1264] sm:$0xf]  ;;  %v10027_v23 = vor.u32 %v12614_v15, %v10024_v18  ;;  %v9624_v30 = vld [vmem:[%s13800_s4 + $0xa90] sm:$0xf0] }
 0x28c   : > { %5182 = vmatpush.bf16.msra.mxu3 %v10423_v24  ;;  %v12274_v24 = vld [vmem:[%s13800_s4 + $0x2c4] sm:$0xf]  ;;  %v10667_v27 = vor.u32 %v12774_v19, %v10664_v20  ;;  %v10344_v19 = vld [vmem:[%s13800_s4 + $0x1030] sm:$0xf0] }
 0x28d   : > { %5144 = vmatpush.bf16.msra.mxu0 %v8423_v33  ;;  %v12754_v33 = vld [vmem:[%s13800_s4 + $0x11c4] sm:$0xf]  ;;  %v8667_v35 = vor.u32 %v12274_v24, %v8664_v25 }
 0x28e   : > { %5157 = vmatpush.bf16.msra.mxu1 %v9063_v36  ;;  %v10587_v43 = vor.u32 %v12754_v33, %v10584_v34  ;;  %v12694_v18 = vld [vmem:[%s13800_s4 + $0xfe4] sm:$0xf]  ;;  %v10264_v34 = vld [vmem:[%s13800_s4 + $0xf90] sm:$0xf0] }
 0x28f   : > { %5170 = vmatpush.bf16.msra.mxu2 %v9703_v37  ;;  %v9307_v37 = vor.u32 %v12434_v26, %v9304_v28  ;;  %v12354_v25 = vld [vmem:[%s13800_s4 + $0x544] sm:$0xf]  ;;  %v8984_v26 = vld [vmem:[%s13800_s4 + $0x590] sm:$0xf0]  ;;  %v10347_v29 = vor.u32 %v12694_v18, %v10344_v19  ;;  %v9950_v18 = vld [vmem:[%s13800_s4 + $0xcc8] sm:$0xf] }
 0x290   : > { %5183 = vmatpush.bf16.msra.mxu3 %v10343_v42  ;;  %v12674_v33 = vld [vmem:[%s13800_s4 + $0xf44] sm:$0xf]  ;;  %v12605_v19 = vld [vmem:[%s13800_s4 + $0xd14] sm:$0xf0] }
 0x291   : > { %5145 = vmatpush.bf16.msra.mxu0 %v8343_v50  ;;  %v4939_v36 = vpop.f32.mrf.mxu0  ;;  %v8587_v50 = vor.u32 %v12254_v39, %v8584_v40  ;;  %v12505_v40 = vld [vmem:[%s13800_s4 + $0x9f4] sm:$0xf0] }
 0x292   : > { %5158 = vmatpush.bf16.msra.mxu1 %v8983_v54  ;;  %v4952_v42 = vpop.f32.mrf.mxu1  ;;  %v8504_v54 = vld [vmem:[%s13800_s4 + $0x1d0] sm:$0xf0] }
 0x293   : > { %5171 = vmatpush.bf16.msra.mxu2 %v9623_v55  ;;  %v4953_v47 = vadd.f32 %v4952_v42, %v4939_v36  ;;  %v12394_v55 = vld [vmem:[%s13800_s4 + $0x684] sm:$0xf]  ;;  %v8507_v2 = vor.u32 %v12234_v53, %v8504_v54  ;;  %v8910_v36 = vld [vmem:[%s13800_s4 + $0x4a8] sm:$0xf]  ;;  %v12665_v42 = vld [vmem:[%s13800_s4 + $0xef4] sm:$0xf0]  ;;  %v10831_v54 = vor.u32 %v12825_v46, %v10830_v45 }
 0x294   : > { %5184 = vmatpush.bf16.msra.mxu3 %v10263_v58  ;;  %5146 = vmatmul.bf16.vlgmr.msra.gmra.mxu0 %v13929_v31  ;;  %v9144_v58 = vld [vmem:[%s13800_s4 + $0x6d0] sm:$0xf0]  ;;  %v9470_v53 = vld [vmem:[%s13800_s4 + $0x908] sm:$0xf] }
 0x295   : > { %5190 = vmatpush.bf16.msrb.mxu0 %v8907_v59  ;;  %5159 = vmatmul.bf16.vlgmr.msra.gmra.mxu1 %v13931_v32  ;;  %v12554_v59 = vld [vmem:[%s13800_s4 + $0xb84] sm:$0xf]  ;;  %v9147_v5 = vor.u32 %v12394_v55, %v9144_v58  ;;  %v12485_v55 = vld [vmem:[%s13800_s4 + $0x954] sm:$0xf0]  ;;  %v10750_v58 = vld [vmem:[%s13800_s4 + $0x1308] sm:$0xf] }
 0x296   : > { %5203 = vmatpush.bf16.msrb.mxu1 %v9547_v60  ;;  %5172 = vmatmul.bf16.vlgmr.msra.gmra.mxu2 %v13917_v16  ;;  %v9784_v60 = vld [vmem:[%s13800_s4 + $0xbd0] sm:$0xf0] }
 0x297   : > { %5216 = vmatpush.bf16.msrb.mxu2 %v10187_v61  ;;  %5185 = vmatmul.bf16.vlgmr.msra.gmra.mxu3 %v13919_v17  ;;  %v9787_v6 = vor.u32 %v12554_v59, %v9784_v60  ;;  %v12805_v59 = vld [vmem:[%s13800_s4 + $0x1354] sm:$0xf0] }
 0x298   : > { %5229 = vmatpush.bf16.msrb.mxu3 %v10827_v1  ;;  %v442_v1 = vld [vmem:[#allocation2 + $0x58] sm:$0xff] }
 0x299   : > { %5191 = vmatpush.bf16.msrb.mxu0 %v8827_v7  ;;  %v4965_v56 = vpop.f32.mrf.mxu2  ;;  %v4941_v4 = vpop.f32.mrf.mxu0  ;;  %v12214_v7 = vld [vmem:[%s13800_s4 + $0xe4] sm:$0xf] }
 0x29a   : > { %5204 = vmatpush.bf16.msrb.mxu1 %v9467_v8  ;;  %v4966_v61 = vadd.f32 %v4965_v56, %v4953_v47  ;;  %v4978_v62 = vpop.f32.mrf.mxu3  ;;  %v8424_v8 = vld [vmem:[%s13800_s4 + $0x130] sm:$0xf0]  ;;  %v4954_v10 = vpop.f32.mrf.mxu1  ;;  %v10267_v47 = vor.u32 %v12674_v33, %v10264_v34  ;;  %v10110_v56 = vld [vmem:[%s13800_s4 + $0xe08] sm:$0xf]  ;;  %v12425_v33 = vld [vmem:[%s13800_s4 + $0x774] sm:$0xf0] }
 0x29b   : > { %5217 = vmatpush.bf16.msrb.mxu2 %v10107_v9  ;;  %v12374_v9 = vld [vmem:[%s13800_s4 + $0x5e4] sm:$0xf]  ;;  %v8427_v20 = vor.u32 %v12214_v7, %v8424_v8  ;;  %v10030_v4 = vld [vmem:[%s13800_s4 + $0xd68] sm:$0xf]  ;;  %v12785_v7 = vld [vmem:[%s13800_s4 + $0x12b4] sm:$0xf0]  ;;  %v8751_v8 = vor.u32 %v12305_v0, %v8750_v63 }
 0x29c   : > { %5230 = vmatpush.bf16.msrb.mxu3 %v10747_v13  ;;  %v4979_v3 = vadd.f32 %v4978_v62, %v4966_v61  ;;  %v12534_v13 = vld [vmem:[%s13800_s4 + $0xae4] sm:$0xf]  ;;  %v9471_v61 = vor.u32 %v12485_v55, %v9470_v53  ;;  %v9870_v34 = vld [vmem:[%s13800_s4 + $0xc28] sm:$0xf]  ;;  %v12725_v53 = vld [vmem:[%s13800_s4 + $0x10d4] sm:$0xf0] }
 0x29d   : > { %5192 = vmatpush.bf16.msrb.mxu0 %v8747_v21  ;;  %v12194_v21 = vld [vmem:[%s13800_s4 + $0x44] sm:$0xf]  ;;  %v9707_v24 = vor.u32 %v12534_v13, %v9704_v14  ;;  %v9310_v13 = vld [vmem:[%s13800_s4 + $0x7c8] sm:$0xf] }
 0x29e   : > { %5205 = vmatpush.bf16.msrb.mxu1 %v9387_v22  ;;  %v5358_v15 = vadd.f32 %v4979_v3, %v442_v1  ;;  %v8344_v22 = vld [vmem:[%s13800_s4 + $0x90] sm:$0xf0]  ;;  %v9390_v1 = vld [vmem:[%s13800_s4 + $0x868] sm:$0xf]  ;;  %v12465_v3 = vld [vmem:[%s13800_s4 + $0x8b4] sm:$0xf0] }
 0x29f   : > { %5218 = vmatpush.bf16.msrb.mxu2 %v10027_v23  ;;  %v9067_v23 = vor.u32 %v12374_v9, %v9064_v12  ;;  %v8347_v39 = vor.u32 %v12194_v21, %v8344_v22  ;;  %v9391_v9 = vor.u32 %v12465_v3, %v9390_v1  ;;  %v12285_v12 = vld [vmem:[%s13800_s4 + $0x314] sm:$0xf0] }
 0x2a0   : > { %5231 = vmatpush.bf16.msrb.mxu3 %v10667_v27  ;;  %5378 = vst [vmem:[#allocation2 + $0x58] sm:$0xff] %v5358_v15  ;;  %v12514_v27 = vld [vmem:[%s13800_s4 + $0xa44] sm:$0xf]  ;;  %v12445_v15 = vld [vmem:[%s13800_s4 + $0x814] sm:$0xf0] }
 0x2a1   : > { %5193 = vmatpush.bf16.msrb.mxu0 %v8667_v35  ;;  %v4967_v28 = vpop.f32.mrf.mxu2  ;;  %v9627_v44 = vor.u32 %v12514_v27, %v9624_v30  ;;  %v12765_v21 = vld [vmem:[%s13800_s4 + $0x1214] sm:$0xf0] }
 0x2a2   : > { %5206 = vmatpush.bf16.msrb.mxu1 %v9307_v37  ;;  %v4980_v35 = vpop.f32.mrf.mxu3  ;;  %v12345_v37 = vld [vmem:[%s13800_s4 + $0x4f4] sm:$0xf0]  ;;  %v9230_v28 = vld [vmem:[%s13800_s4 + $0x728] sm:$0xf] }
 0x2a3   : > { %5219 = vmatpush.bf16.msrb.mxu2 %v9947_v38  ;;  %v9550_v38 = vld [vmem:[%s13800_s4 + $0x9a8] sm:$0xf]  ;;  %v8911_v48 = vor.u32 %v12345_v37, %v8910_v36  ;;  %v12265_v27 = vld [vmem:[%s13800_s4 + $0x274] sm:$0xf0] }
 0x2a4   : > { %5232 = vmatpush.bf16.msrb.mxu3 %v10587_v43  ;;  %v8987_v43 = vor.u32 %v12354_v25, %v8984_v26  ;;  %v9551_v49 = vor.u32 %v12505_v40, %v9550_v38  ;;  %v9951_v25 = vor.u32 %v12605_v19, %v9950_v18  ;;  %v8590_v26 = vld [vmem:[%s13800_s4 + $0x228] sm:$0xf]  ;;  %v12585_v35 = vld [vmem:[%s13800_s4 + $0xc74] sm:$0xf0]  ;;  %v9231_v40 = vor.u32 %v12425_v33, %v9230_v28  ;;  %v12655_v28 = vld [vmem:[%s13800_s4 + $0xeac] sm:$0xf] }
 0x2a5   : > { %5194 = vmatpush.bf16.msrb.mxu0 %v8587_v50  ;;  %v10191_v50 = vor.u32 %v12665_v42, %v10190_v41  ;;  %v10510_v37 = vld [vmem:[%s13800_s4 + $0x1128] sm:$0xf]  ;;  %v12745_v38 = vld [vmem:[%s13800_s4 + $0x1174] sm:$0xf0]  ;;  %v9871_v41 = vor.u32 %v12585_v35, %v9870_v34  ;;  %v12815_v34 = vld [vmem:[%s13800_s4 + $0x13ac] sm:$0xf] }
 0x2a6   : > { %5207 = vmatpush.bf16.msrb.mxu1 %v9227_v51  ;;  %v8830_v51 = vld [vmem:[%s13800_s4 + $0x408] sm:$0xf]  ;;  %v10511_v46 = vor.u32 %v12745_v38, %v10510_v37  ;;  %v12385_v1 = vld [vmem:[%s13800_s4 + $0x634] sm:$0xf0]  ;;  %v10832_v35 = vld [vmem:[%s13800_s4 + $0x13f8] sm:$0xf0] }
 0x2a7   : > { %5220 = vmatpush.bf16.msrb.mxu2 %v9867_v52  ;;  %v12325_v52 = vld [vmem:[%s13800_s4 + $0x454] sm:$0xf0]  ;;  %v8510_v42 = vld [vmem:[%s13800_s4 + $0x188] sm:$0xf] }
 0x2a8   : > { %5233 = vmatpush.bf16.msrb.mxu3 %v10507_v57  ;;  %v12645_v57 = vld [vmem:[%s13800_s4 + $0xe54] sm:$0xf0]  ;;  %v8831_v60 = vor.u32 %v12325_v52, %v8830_v51  ;;  %v10430_v52 = vld [vmem:[%s13800_s4 + $0x1088] sm:$0xf] }
 0x2a9   : > { %5195 = vmatpush.bf16.msrb.mxu0 %v8507_v2  ;;  %v10111_v62 = vor.u32 %v12645_v57, %v10110_v56  ;;  %v10751_v2 = vor.u32 %v12805_v59, %v10750_v58  ;;  %v10431_v0 = vor.u32 %v12725_v53, %v10430_v52  ;;  %v12545_v3 = vld [vmem:[%s13800_s4 + $0xb34] sm:$0xf0]  ;;  %v12295_v52 = vld [vmem:[%s13800_s4 + $0x36c] sm:$0xf]  ;;  %v8752_v53 = vld [vmem:[%s13800_s4 + $0x3b8] sm:$0xf0] }
 0x2aa   : > { %5208 = vmatpush.bf16.msrb.mxu1 %v9147_v5  ;;  %v12625_v5 = vld [vmem:[%s13800_s4 + $0xdb4] sm:$0xf0] }
 0x2ab   : > { %5221 = vmatpush.bf16.msrb.mxu2 %v9787_v6  ;;  %v10670_v6 = vld [vmem:[%s13800_s4 + $0x1268] sm:$0xf]  ;;  %v10031_v10 = vor.u32 %v12625_v5, %v10030_v4  ;;  %v12525_v19 = vld [vmem:[%s13800_s4 + $0xa94] sm:$0xf0] }
 0x2ac   : > { %5234 = vmatpush.bf16.msrb.mxu3 %v10427_v11  ;;  %v8670_v11 = vld [vmem:[%s13800_s4 + $0x2c8] sm:$0xf]  ;;  %v10671_v14 = vor.u32 %v12785_v7, %v10670_v6  ;;  %v12705_v6 = vld [vmem:[%s13800_s4 + $0x1034] sm:$0xf0] }
 0x2ad   : > { %5196 = vmatpush.bf16.msrb.mxu0 %v8427_v20  ;;  %v10590_v20 = vld [vmem:[%s13800_s4 + $0x11c8] sm:$0xf]  ;;  %v8671_v22 = vor.u32 %v12285_v12, %v8670_v11 }
 0x2ae   : > { %5209 = vmatpush.bf16.msrb.mxu1 %v9067_v23  ;;  %v10591_v30 = vor.u32 %v12765_v21, %v10590_v20  ;;  %v10350_v5 = vld [vmem:[%s13800_s4 + $0xfe8] sm:$0xf]  ;;  %v12685_v21 = vld [vmem:[%s13800_s4 + $0xf94] sm:$0xf0] }
 0x2af   : > { %5222 = vmatpush.bf16.msrb.mxu2 %v9707_v24  ;;  %v9311_v24 = vor.u32 %v12445_v15, %v9310_v13  ;;  %v8990_v12 = vld [vmem:[%s13800_s4 + $0x548] sm:$0xf]  ;;  %v12365_v13 = vld [vmem:[%s13800_s4 + $0x594] sm:$0xf0]  ;;  %v10351_v18 = vor.u32 %v12705_v6, %v10350_v5  ;;  %v12595_v5 = vld [vmem:[%s13800_s4 + $0xccc] sm:$0xf] }
 0x2b0   : > { %5235 = vmatpush.bf16.msrb.mxu3 %v10347_v29  ;;  %v10270_v20 = vld [vmem:[%s13800_s4 + $0xf48] sm:$0xf]  ;;  %v9952_v6 = vld [vmem:[%s13800_s4 + $0xd18] sm:$0xf0] }
 0x2b1   : > { %5197 = vmatpush.bf16.msrb.mxu0 %v8347_v39  ;;  %v4991_v23 = vpop.f32.mrf.mxu0  ;;  %v8591_v39 = vor.u32 %v12265_v27, %v8590_v26  ;;  %v9552_v27 = vld [vmem:[%s13800_s4 + $0x9f8] sm:$0xf0] }
 0x2b2   : > { %5210 = vmatpush.bf16.msrb.mxu1 %v8987_v43  ;;  %v5004_v29 = vpop.f32.mrf.mxu1  ;;  %v12245_v43 = vld [vmem:[%s13800_s4 + $0x1d4] sm:$0xf0] }
 0x2b3   : > { %5223 = vmatpush.bf16.msrb.mxu2 %v9627_v44  ;;  %v5005_v36 = vadd.f32 %v5004_v29, %v4991_v23  ;;  %v9150_v44 = vld [vmem:[%s13800_s4 + $0x688] sm:$0xf]  ;;  %v8511_v55 = vor.u32 %v12245_v43, %v8510_v42  ;;  %v12335_v23 = vld [vmem:[%s13800_s4 + $0x4ac] sm:$0xf]  ;;  %v10192_v29 = vld [vmem:[%s13800_s4 + $0xef8] sm:$0xf0]  ;;  %v10835_v43 = vor.u32 %v12815_v34, %v10832_v35 }
 0x2b4   : > { %5236 = vmatpush.bf16.msrb.mxu3 %v10267_v47  ;;  %5198 = vmatmul.bf16.vlgmr.msrb.gmra.mxu0 %v13929_v31  ;;  %v12405_v47 = vld [vmem:[%s13800_s4 + $0x6d4] sm:$0xf0]  ;;  %v12475_v42 = vld [vmem:[%s13800_s4 + $0x90c] sm:$0xf] }
 0x2b5   : > { %5242 = vmatpush.bf16.msra.mxu0 %v8911_v48  ;;  %5211 = vmatmul.bf16.vlgmr.msrb.gmra.mxu1 %v13931_v32  ;;  %v9790_v48 = vld [vmem:[%s13800_s4 + $0xb88] sm:$0xf]  ;;  %v9151_v58 = vor.u32 %v12405_v47, %v9150_v44  ;;  %v9472_v44 = vld [vmem:[%s13800_s4 + $0x958] sm:$0xf0]  ;;  %v12795_v47 = vld [vmem:[%s13800_s4 + $0x130c] sm:$0xf] }
 0x2b6   : > { %5255 = vmatpush.bf16.msra.mxu1 %v9551_v49  ;;  %5224 = vmatmul.bf16.vlgmr.msrb.gmra.mxu2 %v13917_v16  ;;  %v12565_v49 = vld [vmem:[%s13800_s4 + $0xbd4] sm:$0xf0] }
 0x2b7   : > { %5268 = vmatpush.bf16.msra.mxu2 %v10191_v50  ;;  %5237 = vmatmul.bf16.vlgmr.msrb.gmra.mxu3 %v13919_v17  ;;  %v9791_v59 = vor.u32 %v12565_v49, %v9790_v48  ;;  %v10752_v48 = vld [vmem:[%s13800_s4 + $0x1358] sm:$0xf0] }
 0x2b8   : > { %5281 = vmatpush.bf16.msra.mxu3 %v10831_v54  ;;  %v443_v54 = vld [vmem:[#allocation2 + $0x10] sm:$0xff] }
 0x2b9   : > { %5243 = vmatpush.bf16.msra.mxu0 %v8831_v60  ;;  %v5017_v45 = vpop.f32.mrf.mxu2  ;;  %v4993_v57 = vpop.f32.mrf.mxu0  ;;  %v8430_v60 = vld [vmem:[%s13800_s4 + $0xe8] sm:$0xf] }
 0x2ba   : > { %5256 = vmatpush.bf16.msra.mxu1 %v9471_v61  ;;  %v5018_v50 = vadd.f32 %v5017_v45, %v5005_v36  ;;  %v5030_v51 = vpop.f32.mrf.mxu3  ;;  %v12225_v61 = vld [vmem:[%s13800_s4 + $0x134] sm:$0xf0]  ;;  %v5006_v63 = vpop.f32.mrf.mxu1  ;;  %v10271_v36 = vor.u32 %v12685_v21, %v10270_v20  ;;  %v12635_v45 = vld [vmem:[%s13800_s4 + $0xe0c] sm:$0xf]  ;;  %v9232_v20 = vld [vmem:[%s13800_s4 + $0x778] sm:$0xf0] }
 0x2bb   : > { %5269 = vmatpush.bf16.msra.mxu2 %v10111_v62  ;;  %v9070_v62 = vld [vmem:[%s13800_s4 + $0x5e8] sm:$0xf]  ;;  %v8431_v7 = vor.u32 %v12225_v61, %v8430_v60  ;;  %v12615_v57 = vld [vmem:[%s13800_s4 + $0xd6c] sm:$0xf]  ;;  %v10672_v60 = vld [vmem:[%s13800_s4 + $0x12b8] sm:$0xf0]  ;;  %v8755_v61 = vor.u32 %v12295_v52, %v8752_v53 }
 0x2bc   : > { %5282 = vmatpush.bf16.msra.mxu3 %v10751_v2  ;;  %v5031_v56 = vadd.f32 %v5030_v51, %v5018_v50  ;;  %v9710_v2 = vld [vmem:[%s13800_s4 + $0xae8] sm:$0xf]  ;;  %v9475_v50 = vor.u32 %v12475_v42, %v9472_v44  ;;  %v12575_v21 = vld [vmem:[%s13800_s4 + $0xc2c] sm:$0xf]  ;;  %v10432_v42 = vld [vmem:[%s13800_s4 + $0x10d8] sm:$0xf0] }
 0x2bd   : > { %5244 = vmatpush.bf16.msra.mxu0 %v8751_v8  ;;  %v8350_v8 = vld [vmem:[%s13800_s4 + $0x48] sm:$0xf]  ;;  %v9711_v11 = vor.u32 %v12545_v3, %v9710_v2  ;;  %v12435_v2 = vld [vmem:[%s13800_s4 + $0x7cc] sm:$0xf] }
 0x2be   : > { %5257 = vmatpush.bf16.msra.mxu1 %v9391_v9  ;;  %v5359_v4 = vadd.f32 %v5031_v56, %v443_v54  ;;  %v12205_v9 = vld [vmem:[%s13800_s4 + $0x94] sm:$0xf0]  ;;  %v12455_v54 = vld [vmem:[%s13800_s4 + $0x86c] sm:$0xf]  ;;  %v9392_v56 = vld [vmem:[%s13800_s4 + $0x8b8] sm:$0xf0] }
 0x2bf   : > { %5270 = vmatpush.bf16.msra.mxu2 %v10031_v10  ;;  %v9071_v10 = vor.u32 %v12385_v1, %v9070_v62  ;;  %v8351_v26 = vor.u32 %v12205_v9, %v8350_v8  ;;  %v9395_v62 = vor.u32 %v12455_v54, %v9392_v56  ;;  %v8672_v1 = vld [vmem:[%s13800_s4 + $0x318] sm:$0xf0] }
 0x2c0   : > { %5283 = vmatpush.bf16.msra.mxu3 %v10671_v14  ;;  %5379 = vst [vmem:[#allocation2 + $0x10] sm:$0xff] %v5359_v4  ;;  %v9630_v14 = vld [vmem:[%s13800_s4 + $0xa48] sm:$0xf]  ;;  %v9312_v4 = vld [vmem:[%s13800_s4 + $0x818] sm:$0xf0] }
 0x2c1   : > { %5245 = vmatpush.bf16.msra.mxu0 %v8671_v22  ;;  %v5019_v15 = vpop.f32.mrf.mxu2  ;;  %v9631_v33 = vor.u32 %v12525_v19, %v9630_v14  ;;  %v10592_v8 = vld [vmem:[%s13800_s4 + $0x1218] sm:$0xf0] }
 0x2c2   : > { %5258 = vmatpush.bf16.msra.mxu1 %v9311_v24  ;;  %v5032_v22 = vpop.f32.mrf.mxu3  ;;  %v8912_v24 = vld [vmem:[%s13800_s4 + $0x4f8] sm:$0xf0]  ;;  %v12415_v15 = vld [vmem:[%s13800_s4 + $0x72c] sm:$0xf] }
 0x2c3   : > { %5271 = vmatpush.bf16.msra.mxu2 %v9951_v25  ;;  %v12495_v25 = vld [vmem:[%s13800_s4 + $0x9ac] sm:$0xf]  ;;  %v8915_v37 = vor.u32 %v12335_v23, %v8912_v24  ;;  %v8592_v14 = vld [vmem:[%s13800_s4 + $0x278] sm:$0xf0] }
 0x2c4   : > { %5284 = vmatpush.bf16.msra.mxu3 %v10591_v30  ;;  %v8991_v30 = vor.u32 %v12365_v13, %v8990_v12  ;;  %v9555_v38 = vor.u32 %v12495_v25, %v9552_v27  ;;  %v9955_v12 = vor.u32 %v12595_v5, %v9952_v6  ;;  %v12255_v13 = vld [vmem:[%s13800_s4 + $0x22c] sm:$0xf]  ;;  %v9872_v22 = vld [vmem:[%s13800_s4 + $0xc78] sm:$0xf0]  ;;  %v9235_v27 = vor.u32 %v12415_v15, %v9232_v20 }
 0x2c5   : > { %5246 = vmatpush.bf16.msra.mxu0 %v8591_v39  ;;  %v10195_v39 = vor.u32 %v12655_v28, %v10192_v29  ;;  %v12735_v24 = vld [vmem:[%s13800_s4 + $0x112c] sm:$0xf]  ;;  %v10512_v25 = vld [vmem:[%s13800_s4 + $0x1178] sm:$0xf0]  ;;  %v9875_v28 = vor.u32 %v12575_v21, %v9872_v22  ;;  %v445_v22 = vld [vmem:[#allocation2 + $0x60] sm:$0xff] }
 0x2c6   : > { %5259 = vmatpush.bf16.msra.mxu1 %v9231_v40  ;;  %v12315_v40 = vld [vmem:[%s13800_s4 + $0x40c] sm:$0xf]  ;;  %v10515_v35 = vor.u32 %v12735_v24, %v10512_v25  ;;  %v9072_v54 = vld [vmem:[%s13800_s4 + $0x638] sm:$0xf0] }
 0x2c7   : > { %5272 = vmatpush.bf16.msra.mxu2 %v9871_v41  ;;  %v8832_v41 = vld [vmem:[%s13800_s4 + $0x458] sm:$0xf0]  ;;  %v12235_v29 = vld [vmem:[%s13800_s4 + $0x18c] sm:$0xf] }
 0x2c8   : > { %5285 = vmatpush.bf16.msra.mxu3 %v10511_v46  ;;  %v10112_v46 = vld [vmem:[%s13800_s4 + $0xe58] sm:$0xf0]  ;;  %v8835_v49 = vor.u32 %v12315_v40, %v8832_v41  ;;  %v12715_v41 = vld [vmem:[%s13800_s4 + $0x108c] sm:$0xf] }
 0x2c9   : > { %5247 = vmatpush.bf16.msra.mxu0 %v8511_v55  ;;  %v10115_v51 = vor.u32 %v12635_v45, %v10112_v46  ;;  %v10755_v55 = vor.u32 %v12795_v47, %v10752_v48  ;;  %v10435_v53 = vor.u32 %v12715_v41, %v10432_v42  ;;  %v9712_v56 = vld [vmem:[%s13800_s4 + $0xb38] sm:$0xf0]  ;;  %v12515_v5 = vld [vmem:[%s13800_s4 + $0xa4c] sm:$0xf] }
 0x2ca   : > { %5260 = vmatpush.bf16.msra.mxu1 %v9151_v58  ;;  %v10032_v58 = vld [vmem:[%s13800_s4 + $0xdb8] sm:$0xf0] }
 0x2cb   : > { %5273 = vmatpush.bf16.msra.mxu2 %v9791_v59  ;;  %v12775_v59 = vld [vmem:[%s13800_s4 + $0x126c] sm:$0xf]  ;;  %v10035_v63 = vor.u32 %v12615_v57, %v10032_v58  ;;  %v9632_v6 = vld [vmem:[%s13800_s4 + $0xa98] sm:$0xf0] }
 0x2cc   : > { %5286 = vmatpush.bf16.msra.mxu3 %v10431_v0  ;;  %v12275_v0 = vld [vmem:[%s13800_s4 + $0x2cc] sm:$0xf]  ;;  %v10675_v3 = vor.u32 %v12775_v59, %v10672_v60  ;;  %v10352_v59 = vld [vmem:[%s13800_s4 + $0x1038] sm:$0xf0] }
 0x2cd   : > { %5248 = vmatpush.bf16.msra.mxu0 %v8431_v7  ;;  %v12755_v7 = vld [vmem:[%s13800_s4 + $0x11cc] sm:$0xf]  ;;  %v8675_v9 = vor.u32 %v12275_v0, %v8672_v1  ;;  %v8352_v0 = vld [vmem:[%s13800_s4 + $0x98] sm:$0xf0] }
 0x2ce   : > { %5261 = vmatpush.bf16.msra.mxu1 %v9071_v10  ;;  %v10595_v19 = vor.u32 %v12755_v7, %v10592_v8  ;;  %v12695_v58 = vld [vmem:[%s13800_s4 + $0xfec] sm:$0xf] }
 0x2cf   : > { %5274 = vmatpush.bf16.msra.mxu2 %v9711_v11  ;;  %v9315_v11 = vor.u32 %v12435_v2, %v9312_v4  ;;  %v12355_v1 = vld [vmem:[%s13800_s4 + $0x54c] sm:$0xf]  ;;  %v8992_v4 = vld [vmem:[%s13800_s4 + $0x598] sm:$0xf0] }
 0x2d0   : > { %5287 = vmatpush.bf16.msra.mxu3 %v10351_v18  ;;  %v12675_v8 = vld [vmem:[%s13800_s4 + $0xf4c] sm:$0xf] }
 0x2d1   : > { %5249 = vmatpush.bf16.msra.mxu0 %v8351_v26  ;;  %v5043_v10 = vpop.f32.mrf.mxu0  ;;  %v8595_v26 = vor.u32 %v12255_v13, %v8592_v14 }
 0x2d2   : > { %5262 = vmatpush.bf16.msra.mxu1 %v8991_v30  ;;  %v5056_v18 = vpop.f32.mrf.mxu1  ;;  %v8512_v30 = vld [vmem:[%s13800_s4 + $0x1d8] sm:$0xf0] }
 0x2d3   : > { %5275 = vmatpush.bf16.msra.mxu2 %v9631_v33  ;;  %v5057_v23 = vadd.f32 %v5056_v18, %v5043_v10  ;;  %v12395_v33 = vld [vmem:[%s13800_s4 + $0x68c] sm:$0xf]  ;;  %v8515_v44 = vor.u32 %v12235_v29, %v8512_v30 }
 0x2d4   : > { %5288 = vmatpush.bf16.msra.mxu3 %v10271_v36  ;;  %5250 = vmatmul.bf16.vlgmr.msra.gmra.mxu0 %v13929_v31  ;;  %v9152_v36 = vld [vmem:[%s13800_s4 + $0x6d8] sm:$0xf0] }
 0x2d5   : > { %5294 = vmatpush.bf16.msrb.mxu0 %v8915_v37  ;;  %5263 = vmatmul.bf16.vlgmr.msra.gmra.mxu1 %v13931_v32  ;;  %v12555_v37 = vld [vmem:[%s13800_s4 + $0xb8c] sm:$0xf]  ;;  %v9155_v47 = vor.u32 %v12395_v33, %v9152_v36  ;;  %v446_v33 = vld [vmem:[#allocation2 + $0x20] sm:$0xff] }
 0x2d6   : > { %5307 = vmatpush.bf16.msrb.mxu1 %v9555_v38  ;;  %5276 = vmatmul.bf16.vlgmr.msra.gmra.mxu2 %v13917_v16  ;;  %v9792_v38 = vld [vmem:[%s13800_s4 + $0xbd8] sm:$0xf0] }
 0x2d7   : > { %5320 = vmatpush.bf16.msrb.mxu2 %v10195_v39  ;;  %5289 = vmatmul.bf16.vlgmr.msra.gmra.mxu3 %v13919_v17  ;;  %v9795_v48 = vor.u32 %v12555_v37, %v9792_v38 }
 0x2d8   : > { %5333 = vmatpush.bf16.msrb.mxu3 %v10835_v43  ;;  %v444_v43 = vld [vmem:[#allocation2 + $0x98] sm:$0xff] }
 0x2d9   : > { %5295 = vmatpush.bf16.msrb.mxu0 %v8835_v49  ;;  %v5069_v34 = vpop.f32.mrf.mxu2  ;;  %v5045_v46 = vpop.f32.mrf.mxu0  ;;  %v12215_v49 = vld [vmem:[%s13800_s4 + $0xec] sm:$0xf] }
 0x2da   : > { %5308 = vmatpush.bf16.msrb.mxu1 %v9475_v50  ;;  %v5070_v39 = vadd.f32 %v5069_v34, %v5057_v23  ;;  %v5082_v40 = vpop.f32.mrf.mxu3  ;;  %v8432_v50 = vld [vmem:[%s13800_s4 + $0x138] sm:$0xf0]  ;;  %v5058_v52 = vpop.f32.mrf.mxu1  ;;  %v447_v46 = vld [vmem:[#allocation2 + $0x48] sm:$0xff] }
 0x2db   : > { %5321 = vmatpush.bf16.msrb.mxu2 %v10115_v51  ;;  %v12375_v51 = vld [vmem:[%s13800_s4 + $0x5ec] sm:$0xf]  ;;  %v8435_v60 = vor.u32 %v12215_v49, %v8432_v50 }
 0x2dc   : > { %5334 = vmatpush.bf16.msrb.mxu3 %v10755_v55  ;;  %v5083_v45 = vadd.f32 %v5082_v40, %v5070_v39  ;;  %v12535_v55 = vld [vmem:[%s13800_s4 + $0xaec] sm:$0xf] }
 0x2dd   : > { %5296 = vmatpush.bf16.msrb.mxu0 %v8755_v61  ;;  %v9075_v61 = vor.u32 %v12375_v51, %v9072_v54 }
 0x2de   : > { %5309 = vmatpush.bf16.msrb.mxu1 %v9395_v62  ;;  %v5360_v57 = vadd.f32 %v5083_v45, %v444_v43  ;;  %v9715_v62 = vor.u32 %v12535_v55, %v9712_v56 }
 0x2df   : > { %5322 = vmatpush.bf16.msrb.mxu2 %v10035_v63  ;;  %v12195_v63 = vld [vmem:[%s13800_s4 + $0x4c] sm:$0xf] }
 0x2e0   : > { %5335 = vmatpush.bf16.msrb.mxu3 %v10675_v3  ;;  %5380 = vst [vmem:[#allocation2 + $0x98] sm:$0xff] %v5360_v57  ;;  %v10355_v3 = vor.u32 %v12695_v58, %v10352_v59  ;;  %v8355_v10 = vor.u32 %v12195_v63, %v8352_v0  ;;  %v448_v59 = vld [vmem:[#allocation2 + $0x70] sm:$0xff] }
 0x2e1   : > { %5297 = vmatpush.bf16.msrb.mxu0 %v8675_v9  ;;  %v5071_v2 = vpop.f32.mrf.mxu2  ;;  %v10272_v9 = vld [vmem:[%s13800_s4 + $0xf98] sm:$0xf0] }
 0x2e2   : > { %5310 = vmatpush.bf16.msrb.mxu1 %v9315_v11  ;;  %v5084_v7 = vpop.f32.mrf.mxu3  ;;  %v8995_v11 = vor.u32 %v12355_v1, %v8992_v4  ;;  %v10275_v13 = vor.u32 %v12675_v8, %v10272_v9  ;;  %v449_v9 = vld [vmem:[#allocation2 + $0x90] sm:$0xff] }
 0x2e3   : > { %5323 = vmatpush.bf16.msrb.mxu2 %v9955_v12  ;;  %v9635_v12 = vor.u32 %v12515_v5, %v9632_v6 }
 0x2e4   : > { %5336 = vmatpush.bf16.msrb.mxu3 %v10595_v19 }
 0x2e5   : > { %5298 = vmatpush.bf16.msrb.mxu0 %v8595_v26 }
 0x2e6   : > { %5311 = vmatpush.bf16.msrb.mxu1 %v9235_v27 }
 0x2e7   : > { %5324 = vmatpush.bf16.msrb.mxu2 %v9875_v28 }
 0x2e8   : > { %5337 = vmatpush.bf16.msrb.mxu3 %v10515_v35 }
 0x2e9   : > { %5299 = vmatpush.bf16.msrb.mxu0 %v8515_v44 }
 0x2ea   : > { %5312 = vmatpush.bf16.msrb.mxu1 %v9155_v47 }
 0x2eb   : > { %5325 = vmatpush.bf16.msrb.mxu2 %v9795_v48 }
 0x2ec   : > { %5338 = vmatpush.bf16.msrb.mxu3 %v10435_v53 }
 0x2ed   : > { %5300 = vmatpush.bf16.msrb.mxu0 %v8435_v60 }
 0x2ee   : > { %5313 = vmatpush.bf16.msrb.mxu1 %v9075_v61 }
 0x2ef   : > { %5326 = vmatpush.bf16.msrb.mxu2 %v9715_v62 }
 0x2f0   : > { %5339 = vmatpush.bf16.msrb.mxu3 %v10355_v3 }
 0x2f1   : > { %5301 = vmatpush.bf16.msrb.mxu0 %v8355_v10  ;;  %v5095_v14 = vpop.f32.mrf.mxu0 }
 0x2f2   : > { %5314 = vmatpush.bf16.msrb.mxu1 %v8995_v11  ;;  %v5108_v15 = vpop.f32.mrf.mxu1 }
 0x2f3   : > { %5327 = vmatpush.bf16.msrb.mxu2 %v9635_v12  ;;  %v5109_v18 = vadd.f32 %v5108_v15, %v5095_v14 }
 0x2f4   : > { %5340 = vmatpush.bf16.msrb.mxu3 %v10275_v13  ;;  %5302 = vmatmul.bf16.vlgmr.msrb.gmra.mxu0 %v13929_v31 }
 0x2f5   : > { %5315 = vmatmul.bf16.vlgmr.msrb.gmra.mxu1 %v13931_v32 }
 0x2f6   : > { %5328 = vmatmul.bf16.vlgmr.msrb.gmra.mxu2 %v13917_v16 }
 0x2f7   : > { %5341 = vmatmul.bf16.vlgmr.msrb.gmra.mxu3 %v13919_v17 }
 0x2f9   : > { %v5121_v19 = vpop.f32.mrf.mxu2  ;;  %v5097_v24 = vpop.f32.mrf.mxu0 }
 0x2fa   : > { %v5122_v20 = vadd.f32 %v5121_v19, %v5109_v18  ;;  %v5134_v21 = vpop.f32.mrf.mxu3  ;;  %v5110_v25 = vpop.f32.mrf.mxu1 }
 0x2fc   : > { %v5135_v23 = vadd.f32 %v5134_v21, %v5122_v20 }
 0x2fe   : > { %v5361_v26 = vadd.f32 %v5135_v23, %v445_v22 }
 0x300   : > { %5381 = vst [vmem:[#allocation2 + $0x60] sm:$0xff] %v5361_v26 }
 0x301   : > { %v5123_v27 = vpop.f32.mrf.mxu2 }
 0x302   : > { %v5136_v31 = vpop.f32.mrf.mxu3 }
 0x311   : > { %v5147_v28 = vpop.f32.mrf.mxu0 }
 0x312   : > { %v5160_v32 = vpop.f32.mrf.mxu1 }
 0x313   : > { %v5161_v29 = vadd.f32 %v5160_v32, %v5147_v28 }
 0x319   : > { %v5173_v16 = vpop.f32.mrf.mxu2  ;;  %v5149_v35 = vpop.f32.mrf.mxu0 }
 0x31a   : > { %v5174_v30 = vadd.f32 %v5173_v16, %v5161_v29  ;;  %v5186_v17 = vpop.f32.mrf.mxu3  ;;  %v5162_v36 = vpop.f32.mrf.mxu1 }
 0x31c   : > { %v5187_v34 = vadd.f32 %v5186_v17, %v5174_v30 }
 0x31e   : > { %v5362_v37 = vadd.f32 %v5187_v34, %v446_v33 }
 0x320   : > { %5382 = vst [vmem:[#allocation2 + $0x20] sm:$0xff] %v5362_v37 }
 0x321   : > { %v5175_v38 = vpop.f32.mrf.mxu2 }
 0x322   : > { %v5188_v39 = vpop.f32.mrf.mxu3 }
 0x331   : > { %v5199_v40 = vpop.f32.mrf.mxu0 }
 0x332   : > { %v5212_v41 = vpop.f32.mrf.mxu1 }
 0x333   : > { %v5213_v42 = vadd.f32 %v5212_v41, %v5199_v40 }
 0x339   : > { %v5225_v43 = vpop.f32.mrf.mxu2  ;;  %v5201_v48 = vpop.f32.mrf.mxu0 }
 0x33a   : > { %v5226_v44 = vadd.f32 %v5225_v43, %v5213_v42  ;;  %v5238_v45 = vpop.f32.mrf.mxu3  ;;  %v5214_v49 = vpop.f32.mrf.mxu1 }
 0x33c   : > { %v5239_v47 = vadd.f32 %v5238_v45, %v5226_v44 }
 0x33e   : > { %v5363_v50 = vadd.f32 %v5239_v47, %v447_v46 }
 0x340   : > { %5383 = vst [vmem:[#allocation2 + $0x48] sm:$0xff] %v5363_v50 }
 0x341   : > { %v5227_v51 = vpop.f32.mrf.mxu2 }
 0x342   : > { %v5240_v52 = vpop.f32.mrf.mxu3 }
 0x351   : > { %v5251_v53 = vpop.f32.mrf.mxu0 }
 0x352   : > { %v5264_v54 = vpop.f32.mrf.mxu1 }
 0x353   : > { %v5265_v55 = vadd.f32 %v5264_v54, %v5251_v53 }
 0x359   : > { %v5277_v56 = vpop.f32.mrf.mxu2  ;;  %v5253_v61 = vpop.f32.mrf.mxu0 }
 0x35a   : > { %v5278_v57 = vadd.f32 %v5277_v56, %v5265_v55  ;;  %v5290_v58 = vpop.f32.mrf.mxu3  ;;  %v5266_v62 = vpop.f32.mrf.mxu1 }
 0x35c   : > { %v5291_v60 = vadd.f32 %v5290_v58, %v5278_v57 }
 0x35e   : > { %v5364_v63 = vadd.f32 %v5291_v60, %v448_v59 }
 0x360   : > { %5384 = vst [vmem:[#allocation2 + $0x70] sm:$0xff] %v5364_v63 }
 0x361   : > { %v5279_v0 = vpop.f32.mrf.mxu2 }
 0x362   : > { %v5292_v1 = vpop.f32.mrf.mxu3 }
 0x371   : > { %v5303_v2 = vpop.f32.mrf.mxu0 }
 0x372   : > { %v5316_v3 = vpop.f32.mrf.mxu1 }
 0x373   : > { %v5317_v4 = vadd.f32 %v5316_v3, %v5303_v2 }
 0x379   : > { %v5329_v5 = vpop.f32.mrf.mxu2  ;;  %v5305_v8 = vpop.f32.mrf.mxu0 }
 0x37a   : > { %v5330_v6 = vadd.f32 %v5329_v5, %v5317_v4  ;;  %v5342_v7 = vpop.f32.mrf.mxu3  ;;  %v5318_v10 = vpop.f32.mrf.mxu1 }
 0x37c   : > { %v5343_v11 = vadd.f32 %v5342_v7, %v5330_v6 }
 0x37e   : > { %v5365_v12 = vadd.f32 %v5343_v11, %v449_v9  ;;  %5389 = sbr.rel (%p10836_p1) target bundleno = 1502 (0x5de), region = 84 }
 0x380   : > { %5385 = vst [vmem:[#allocation2 + $0x90] sm:$0xff] %v5365_v12 }
 0x381   : > { %v5331_v13 = vpop.f32.mrf.mxu2 }
 0x382   : > { %v5344_v14 = vpop.f32.mrf.mxu3 }
 0x383   : > { %v10895_v15 = vld [vmem:[#allocation9 + $0x70] sm:$0xf]  ;;  %v12841_v18 = vld [vmem:[#allocation9 + $0x74] sm:$0xf0]  ;;  %v10887_v31 = vld [vmem:[#allocation9 + $0x60] sm:$0xf] }
 0x384   : > { %v10959_v19 = vld [vmem:[#allocation9 + $0xf0] sm:$0xf]  ;;  %v10896_v20 = vor.u32 %v12841_v18, %v10895_v15  ;;  %v12857_v21 = vld [vmem:[#allocation9 + $0xf4] sm:$0xf0]  ;;  %v12839_v32 = vld [vmem:[#allocation9 + $0x64] sm:$0xf0] }
 0x385   : > { %v11023_v22 = vld [vmem:[#allocation9 + $0x170] sm:$0xf]  ;;  %v12873_v23 = vld [vmem:[#allocation9 + $0x174] sm:$0xf0]  ;;  %v10960_v24 = vor.u32 %v12857_v21, %v10959_v19  ;;  %v10951_v29 = vld [vmem:[#allocation9 + $0xe0] sm:$0xf]  ;;  %v10888_v30 = vor.u32 %v12839_v32, %v10887_v31 }
 0x386   : > { %v11024_v25 = vor.u32 %v12873_v23, %v11023_v22  ;;  %v11087_v26 = vld [vmem:[#allocation9 + $0x1f0] sm:$0xf]  ;;  %v12889_v27 = vld [vmem:[#allocation9 + $0x1f4] sm:$0xf0]  ;;  %7442 = vmatpush.bf16.msra.mxu0 %v10896_v20  ;;  %v12855_v16 = vld [vmem:[#allocation9 + $0xe4] sm:$0xf0] }
 0x387   : > { %v11088_v28 = vor.u32 %v12889_v27, %v11087_v26  ;;  %7455 = vmatpush.bf16.msra.mxu1 %v10960_v24  ;;  %v10952_v17 = vor.u32 %v12855_v16, %v10951_v29  ;;  %v11015_v33 = vld [vmem:[#allocation9 + $0x160] sm:$0xf]  ;;  %v12871_v34 = vld [vmem:[#allocation9 + $0x164] sm:$0xf0]  ;;  %v10879_v38 = vld [vmem:[#allocation9 + $0x50] sm:$0xf] }
 0x388   : > { %7468 = vmatpush.bf16.msra.mxu2 %v11024_v25  ;;  %v11079_v35 = vld [vmem:[#allocation9 + $0x1e0] sm:$0xf]  ;;  %v11016_v36 = vor.u32 %v12871_v34, %v11015_v33  ;;  %v12887_v37 = vld [vmem:[#allocation9 + $0x1e4] sm:$0xf0]  ;;  %v12837_v39 = vld [vmem:[#allocation9 + $0x54] sm:$0xf0] }
 0x389   : > { %7481 = vmatpush.bf16.msra.mxu3 %v11088_v28  ;;  %v11080_v40 = vor.u32 %v12887_v37, %v11079_v35  ;;  %v10943_v41 = vld [vmem:[#allocation9 + $0xd0] sm:$0xf]  ;;  %v12853_v42 = vld [vmem:[#allocation9 + $0xd4] sm:$0xf0]  ;;  %v10880_v44 = vor.u32 %v12837_v39, %v10879_v38  ;;  %v10871_v50 = vld [vmem:[#allocation9 + $0x40] sm:$0xf] }
 0x38a   : > { %v11007_v43 = vld [vmem:[#allocation9 + $0x150] sm:$0xf]  ;;  %7443 = vmatpush.bf16.msra.mxu0 %v10888_v30  ;;  %v12869_v45 = vld [vmem:[#allocation9 + $0x154] sm:$0xf0]  ;;  %v10944_v48 = vor.u32 %v12853_v42, %v10943_v41  ;;  %v12835_v51 = vld [vmem:[#allocation9 + $0x44] sm:$0xf0] }
 0x38b   : > { %v11071_v46 = vld [vmem:[#allocation9 + $0x1d0] sm:$0xf]  ;;  %v12885_v47 = vld [vmem:[#allocation9 + $0x1d4] sm:$0xf0]  ;;  %7456 = vmatpush.bf16.msra.mxu1 %v10952_v17  ;;  %v11008_v49 = vor.u32 %v12869_v45, %v11007_v43  ;;  %v10935_v52 = vld [vmem:[#allocation9 + $0xc0] sm:$0xf]  ;;  %v10872_v59 = vor.u32 %v12835_v51, %v10871_v50 }
 0x38c   : > { %7469 = vmatpush.bf16.msra.mxu2 %v11016_v36  ;;  %v11072_v53 = vor.u32 %v12885_v47, %v11071_v46  ;;  %v12851_v54 = vld [vmem:[#allocation9 + $0xc4] sm:$0xf0]  ;;  %v10999_v55 = vld [vmem:[#allocation9 + $0x140] sm:$0xf]  ;;  %v10863_v62 = vld [vmem:[#allocation9 + $0x30] sm:$0xf] }
 0x38d   : > { %7482 = vmatpush.bf16.msra.mxu3 %v11080_v40  ;;  %v12867_v56 = vld [vmem:[#allocation9 + $0x144] sm:$0xf0]  ;;  %v11063_v57 = vld [vmem:[#allocation9 + $0x1c0] sm:$0xf]  ;;  %v10936_v60 = vor.u32 %v12851_v54, %v10935_v52  ;;  %v12833_v63 = vld [vmem:[#allocation9 + $0x34] sm:$0xf0] }
 0x38e   : > { %v12883_v58 = vld [vmem:[#allocation9 + $0x1c4] sm:$0xf0]  ;;  %7444 = vmatpush.bf16.msra.mxu0 %v10880_v44  ;;  %v11000_v61 = vor.u32 %v12867_v56, %v10999_v55  ;;  %v10927_v0 = vld [vmem:[#allocation9 + $0xb0] sm:$0xf]  ;;  %v12849_v2 = vld [vmem:[#allocation9 + $0xb4] sm:$0xf0]  ;;  %v10864_v7 = vor.u32 %v12833_v63, %v10863_v62 }
 0x38f   : > { %7457 = vmatpush.bf16.msra.mxu1 %v10944_v48  ;;  %v11064_v1 = vor.u32 %v12883_v58, %v11063_v57  ;;  %v10991_v3 = vld [vmem:[#allocation9 + $0x130] sm:$0xf]  ;;  %v12865_v4 = vld [vmem:[#allocation9 + $0x134] sm:$0xf0]  ;;  %v10928_v8 = vor.u32 %v12849_v2, %v10927_v0  ;;  %v10855_v10 = vld [vmem:[#allocation9 + $0x20] sm:$0xf] }
 0x390   : > { %7470 = vmatpush.bf16.msra.mxu2 %v11008_v49  ;;  %v11055_v5 = vld [vmem:[#allocation9 + $0x1b0] sm:$0xf]  ;;  %v12881_v6 = vld [vmem:[#allocation9 + $0x1b4] sm:$0xf0]  ;;  %v10992_v9 = vor.u32 %v12865_v4, %v10991_v3  ;;  %v12831_v11 = vld [vmem:[#allocation9 + $0x24] sm:$0xf0] }
 0x391   : > { %7483 = vmatpush.bf16.msra.mxu3 %v11072_v53  ;;  %v10919_v12 = vld [vmem:[#allocation9 + $0xa0] sm:$0xf]  ;;  %v11056_v13 = vor.u32 %v12881_v6, %v11055_v5  ;;  %v12847_v14 = vld [vmem:[#allocation9 + $0xa4] sm:$0xf0]  ;;  %v10856_v21 = vor.u32 %v12831_v11, %v10855_v10  ;;  %v10847_v24 = vld [vmem:[#allocation9 + $0x10] sm:$0xf] }
 0x392   : > { %7445 = vmatpush.bf16.msra.mxu0 %v10872_v59  ;;  %v10983_v15 = vld [vmem:[#allocation9 + $0x120] sm:$0xf]  ;;  %v12863_v18 = vld [vmem:[#allocation9 + $0x124] sm:$0xf0]  ;;  %v10920_v22 = vor.u32 %v12847_v14, %v10919_v12  ;;  %v12829_v25 = vld [vmem:[#allocation9 + $0x14] sm:$0xf0] }
 0x393   : > { %7458 = vmatpush.bf16.msra.mxu1 %v10936_v60  ;;  %v11047_v19 = vld [vmem:[#allocation9 + $0x1a0] sm:$0xf]  ;;  %v12879_v20 = vld [vmem:[#allocation9 + $0x1a4] sm:$0xf0]  ;;  %v10984_v23 = vor.u32 %v12863_v18, %v10983_v15  ;;  %v10911_v26 = vld [vmem:[#allocation9 + $0x90] sm:$0xf]  ;;  %v10848_v30 = vor.u32 %v12829_v25, %v10847_v24 }
 0x394   : > { %7471 = vmatpush.bf16.msra.mxu2 %v11000_v61  ;;  %v11048_v27 = vor.u32 %v12879_v20, %v11047_v19  ;;  %v12845_v31 = vld [vmem:[#allocation9 + $0x94] sm:$0xf0]  ;;  %v10975_v28 = vld [vmem:[#allocation9 + $0x110] sm:$0xf]  ;;  %v10839_v17 = vld [vmem:[#allocation9] sm:$0xf] }
 0x395   : > { %7484 = vmatpush.bf16.msra.mxu3 %v11064_v1  ;;  %v12861_v32 = vld [vmem:[#allocation9 + $0x114] sm:$0xf0]  ;;  %v11039_v29 = vld [vmem:[#allocation9 + $0x190] sm:$0xf]  ;;  %v12827_v33 = vld [vmem:[#allocation9 + $0x4] sm:$0xf0]  ;;  %v10912_v34 = vor.u32 %v12845_v31, %v10911_v26 }
 0x396   : > { %7446 = vmatpush.bf16.msra.mxu0 %v10864_v7  ;;  %v12877_v16 = vld [vmem:[#allocation9 + $0x194] sm:$0xf0]  ;;  %v10976_v35 = vor.u32 %v12861_v32, %v10975_v28  ;;  %v10903_v36 = vld [vmem:[#allocation9 + $0x80] sm:$0xf]  ;;  %v12843_v37 = vld [vmem:[#allocation9 + $0x84] sm:$0xf0]  ;;  %v10840_v46 = vor.u32 %v12827_v33, %v10839_v17 }
 0x397   : > { %7459 = vmatpush.bf16.msra.mxu1 %v10928_v8  ;;  %v10967_v38 = vld [vmem:[#allocation9 + $0x100] sm:$0xf]  ;;  %v11040_v39 = vor.u32 %v12877_v16, %v11039_v29  ;;  %v12859_v40 = vld [vmem:[#allocation9 + $0x104] sm:$0xf0]  ;;  %v11151_v43 = vld [vmem:[#allocation9 + $0x270] sm:$0xf]  ;;  %v10904_v50 = vor.u32 %v12843_v37, %v10903_v36 }
 0x398   : > { %7472 = vmatpush.bf16.msra.mxu2 %v10992_v9  ;;  %v11031_v41 = vld [vmem:[#allocation9 + $0x180] sm:$0xf]  ;;  %v12875_v42 = vld [vmem:[#allocation9 + $0x184] sm:$0xf0]  ;;  %v12905_v44 = vld [vmem:[#allocation9 + $0x274] sm:$0xf0]  ;;  %v10968_v51 = vor.u32 %v12859_v40, %v10967_v38 }
 0x399   : > { %7485 = vmatpush.bf16.msra.mxu3 %v11056_v13  ;;  %v11215_v45 = vld [vmem:[#allocation9 + $0x2f0] sm:$0xf]  ;;  %v12921_v47 = vld [vmem:[#allocation9 + $0x2f4] sm:$0xf0]  ;;  %v11032_v54 = vor.u32 %v12875_v42, %v11031_v41  ;;  %v11152_v55 = vor.u32 %v12905_v44, %v11151_v43  ;;  %v11143_v58 = vld [vmem:[#allocation9 + $0x260] sm:$0xf] }
 0x39a   : > { %7447 = vmatpush.bf16.msra.mxu0 %v10856_v21  ;;  %v11279_v48 = vld [vmem:[#allocation9 + $0x370] sm:$0xf]  ;;  %v12937_v49 = vld [vmem:[#allocation9 + $0x374] sm:$0xf0]  ;;  %v11216_v56 = vor.u32 %v12921_v47, %v11215_v45  ;;  %v12903_v59 = vld [vmem:[#allocation9 + $0x264] sm:$0xf0] }
 0x39b   : > { %7460 = vmatpush.bf16.msra.mxu1 %v10920_v22  ;;  %v11343_v52 = vld [vmem:[#allocation9 + $0x3f0] sm:$0xf]  ;;  %v12953_v53 = vld [vmem:[#allocation9 + $0x3f4] sm:$0xf0]  ;;  %v11280_v57 = vor.u32 %v12937_v49, %v11279_v48  ;;  %v11207_v60 = vld [vmem:[#allocation9 + $0x2e0] sm:$0xf]  ;;  %v11144_v3 = vor.u32 %v12903_v59, %v11143_v58 }
 0x39c   : > { %7473 = vmatpush.bf16.msra.mxu2 %v10984_v23  ;;  %v11344_v61 = vor.u32 %v12953_v53, %v11343_v52  ;;  %v12919_v62 = vld [vmem:[#allocation9 + $0x2e4] sm:$0xf0]  ;;  %v11271_v63 = vld [vmem:[#allocation9 + $0x360] sm:$0xf]  ;;  %v11135_v4 = vld [vmem:[#allocation9 + $0x250] sm:$0xf] }
 0x39d   : > { %7486 = vmatpush.bf16.msra.mxu3 %v11048_v27  ;;  %v12935_v0 = vld [vmem:[#allocation9 + $0x364] sm:$0xf0]  ;;  %v11335_v1 = vld [vmem:[#allocation9 + $0x3e0] sm:$0xf]  ;;  %v11208_v5 = vor.u32 %v12919_v62, %v11207_v60  ;;  %v12901_v7 = vld [vmem:[#allocation9 + $0x254] sm:$0xf0] }
 0x39e   : > { %7448 = vmatpush.bf16.msra.mxu0 %v10848_v30  ;;  %v12951_v2 = vld [vmem:[#allocation9 + $0x3e4] sm:$0xf0]  ;;  %v11272_v6 = vor.u32 %v12935_v0, %v11271_v63  ;;  %v11199_v8 = vld [vmem:[#allocation9 + $0x2d0] sm:$0xf]  ;;  %v12917_v9 = vld [vmem:[#allocation9 + $0x2d4] sm:$0xf0]  ;;  %v11136_v19 = vor.u32 %v12901_v7, %v11135_v4 }
 0x39f   : > { %7461 = vmatpush.bf16.msra.mxu1 %v10912_v34  ;;  %v11336_v10 = vor.u32 %v12951_v2, %v11335_v1  ;;  %v11263_v11 = vld [vmem:[#allocation9 + $0x350] sm:$0xf]  ;;  %v12933_v12 = vld [vmem:[#allocation9 + $0x354] sm:$0xf0]  ;;  %v11127_v15 = vld [vmem:[#allocation9 + $0x240] sm:$0xf]  ;;  %v11200_v20 = vor.u32 %v12917_v9, %v11199_v8 }
 0x3a0   : > { %7474 = vmatpush.bf16.msra.mxu2 %v10976_v35  ;;  %v11327_v13 = vld [vmem:[#allocation9 + $0x3d0] sm:$0xf]  ;;  %v12949_v14 = vld [vmem:[#allocation9 + $0x3d4] sm:$0xf0]  ;;  %v12899_v18 = vld [vmem:[#allocation9 + $0x244] sm:$0xf0]  ;;  %v11264_v24 = vor.u32 %v12933_v12, %v11263_v11 }
 0x3a1   : > { %7487 = vmatpush.bf16.msra.mxu3 %v11040_v39  ;;  %v11191_v21 = vld [vmem:[#allocation9 + $0x2c0] sm:$0xf]  ;;  %v15191_v23 = vld [vmem:[#allocation8] sm:$0xff]  ;;  %v5393_v31 = vld [vmem:[#allocation2 + $0x18] sm:$0xff]  ;;  %v11328_v32 = vor.u32 %v12949_v14, %v11327_v13  ;;  %v11128_v38 = vor.u32 %v12899_v18, %v11127_v15 }
 0x3a2   : > { %7449 = vmatpush.bf16.msra.mxu0 %v10840_v46  ;;  %v5392_v22 = vld [vmem:[#allocation2 + $0x50] sm:$0xff]  ;;  %v5418_v25 = vperm.slane %v15191_v23, 2  ;;  %v5390_v26 = vld [vmem:[#allocation2] sm:$0xff]  ;;  %v5416_v27 = vperm.slane %v15191_v23, 0  ;;  %v5419_v28 = vperm.slane %v15191_v23, 3  ;;  %v5391_v37 = vld [vmem:[#allocation2 + $0x38] sm:$0xff] }
 0x3a3   : > { %7462 = vmatpush.bf16.msra.mxu1 %v10904_v50  ;;  %v12915_v29 = vld [vmem:[#allocation9 + $0x2c4] sm:$0xf0]  ;;  %v11255_v16 = vld [vmem:[#allocation9 + $0x340] sm:$0xf]  ;;  %v5417_v39 = vperm.slane %v15191_v23, 1  ;;  %v5422_v14 = vperm.slane %v15191_v23, 6 }
 0x3a4   : > { %7475 = vmatpush.bf16.msra.mxu2 %v10968_v51  ;;  %v12931_v30 = vld [vmem:[#allocation9 + $0x344] sm:$0xf0]  ;;  %v11319_v17 = vld [vmem:[#allocation9 + $0x3c0] sm:$0xf]  ;;  %v5458_v34 = vadd.f32 %v5418_v25, %v5392_v22  ;;  %v5456_v35 = vadd.f32 %v5416_v27, %v5390_v26  ;;  %v5459_v36 = vadd.f32 %v5419_v28, %v5393_v31  ;;  %v11192_v40 = vor.u32 %v12915_v29, %v11191_v21  ;;  %v11119_v42 = vld [vmem:[#allocation9 + $0x230] sm:$0xf] }
 0x3a5   : > { %7488 = vmatpush.bf16.msra.mxu3 %v11032_v54  ;;  %v12947_v33 = vld [vmem:[#allocation9 + $0x3c4] sm:$0xf0]  ;;  %v11256_v41 = vor.u32 %v12931_v30, %v11255_v16  ;;  %v12897_v43 = vld [vmem:[#allocation9 + $0x234] sm:$0xf0]  ;;  %v11183_v44 = vld [vmem:[#allocation9 + $0x2b0] sm:$0xf]  ;;  %v5457_v49 = vadd.f32 %v5417_v39, %v5391_v37 }
 0x3a6   : > { %7494 = vmatpush.bf16.msrb.mxu0 %v11152_v55  ;;  %13275 = vtanh.f32 %v5458_v34  ;;  %v11320_v45 = vor.u32 %v12947_v33, %v11319_v17  ;;  %v12913_v46 = vld [vmem:[#allocation9 + $0x2b4] sm:$0xf0]  ;;  %v11247_v47 = vld [vmem:[#allocation9 + $0x330] sm:$0xf]  ;;  %v11120_v52 = vor.u32 %v12897_v43, %v11119_v42  ;;  %v11111_v55 = vld [vmem:[#allocation9 + $0x220] sm:$0xf] }
 0x3a7   : > { %7507 = vmatpush.bf16.msrb.mxu1 %v11216_v56  ;;  %v12929_v48 = vld [vmem:[#allocation9 + $0x334] sm:$0xf0]  ;;  %13277 = vtanh.f32 %v5456_v35  ;;  %v11311_v50 = vld [vmem:[#allocation9 + $0x3b0] sm:$0xf]  ;;  %v11184_v53 = vor.u32 %v12913_v46, %v11183_v44  ;;  %v12895_v56 = vld [vmem:[#allocation9 + $0x224] sm:$0xf0] }
 0x3a8   : > { %7520 = vmatpush.bf16.msrb.mxu2 %v11280_v57  ;;  %v12945_v51 = vld [vmem:[#allocation9 + $0x3b4] sm:$0xf0]  ;;  %13279 = vtanh.f32 %v5459_v36  ;;  %v11248_v54 = vor.u32 %v12929_v48, %v11247_v47  ;;  %v11175_v57 = vld [vmem:[#allocation9 + $0x2a0] sm:$0xf]  ;;  %v12911_v59 = vld [vmem:[#allocation9 + $0x2a4] sm:$0xf0] }
 0x3a9   : > { %7533 = vmatpush.bf16.msrb.mxu3 %v11344_v61  ;;  %13281 = vtanh.f32 %v5457_v49  ;;  %v11312_v58 = vor.u32 %v12945_v51, %v11311_v50  ;;  %v11239_v60 = vld [vmem:[#allocation9 + $0x320] sm:$0xf]  ;;  %v12927_v61 = vld [vmem:[#allocation9 + $0x324] sm:$0xf0]  ;;  %v11103_v1 = vld [vmem:[#allocation9 + $0x210] sm:$0xf]  ;;  %v11176_v9 = vor.u32 %v12911_v59, %v11175_v57 }
 0x3aa   : > { %7495 = vmatpush.bf16.msrb.mxu0 %v11144_v3  ;;  %v11303_v63 = vld [vmem:[#allocation9 + $0x3a0] sm:$0xf]  ;;  %v12943_v0 = vld [vmem:[#allocation9 + $0x3a4] sm:$0xf0]  ;;  %v11112_v3 = vor.u32 %v12895_v56, %v11111_v55  ;;  %v12909_v12 = vld [vmem:[#allocation9 + $0x294] sm:$0xf0] }
 0x3ab   : > { %7508 = vmatpush.bf16.msrb.mxu1 %v11208_v5  ;;  %v12893_v5 = vld [vmem:[#allocation9 + $0x214] sm:$0xf0]  ;;  %v5396_v7 = vld [vmem:[#allocation2 + $0x78] sm:$0xff]  ;;  %v11231_v13 = vld [vmem:[#allocation9 + $0x310] sm:$0xf]  ;;  %v11304_v18 = vor.u32 %v12943_v0, %v11303_v63  ;;  %v5420_v29 = vperm.slane %v15191_v23, 4 }
 0x3ac   : > { %7521 = vmatpush.bf16.msrb.mxu2 %v11272_v6  ;;  %v13276_v62 = vpop.eup %13275  ;;  %v11167_v6 = vld [vmem:[#allocation9 + $0x290] sm:$0xf]  ;;  %v12941_v22 = vld [vmem:[#allocation9 + $0x394] sm:$0xf0]  ;;  %v11095_v25 = vld [vmem:[#allocation9 + $0x200] sm:$0xf]  ;;  %v5462_v27 = vadd.f32 %v5422_v14, %v5396_v7  ;;  %v11104_v28 = vor.u32 %v12893_v5, %v11103_v1 }
 0x3ad   : > { %7534 = vmatpush.bf16.msrb.mxu3 %v11336_v10  ;;  %v13278_v2 = vpop.eup %13277  ;;  %v15197_v4 = vpack.c.bf16 %v13276_v62, %v13276_v62  ;;  %v11240_v10 = vor.u32 %v12927_v61, %v11239_v60  ;;  %v11295_v21 = vld [vmem:[#allocation9 + $0x390] sm:$0xf]  ;;  %v12891_v26 = vld [vmem:[#allocation9 + $0x204] sm:$0xf0]  ;;  %v5394_v31 = vld [vmem:[#allocation2 + $0x30] sm:$0xff]  ;;  %v5423_v30 = vperm.slane %v15191_v23, 7  ;;  %v11168_v33 = vor.u32 %v12909_v12, %v11167_v6 }
 0x3ae   : > { %7496 = vmatpush.bf16.msrb.mxu0 %v11136_v19  ;;  %v13280_v8 = vpop.eup %13279  ;;  %v15199_v11 = vpack.c.bf16 %v13278_v2, %v13278_v2  ;;  %v5397_v16 = vld [vmem:[#allocation2 + $0x80] sm:$0xff]  ;;  %v5395_v17 = vld [vmem:[#allocation2 + $0x68] sm:$0xff]  ;;  %v12907_v35 = vld [vmem:[#allocation9 + $0x284] sm:$0xf0]  ;;  %13283 = vtanh.f32 %v5462_v27  ;;  %v5421_v37 = vperm.slane %v15191_v23, 5  ;;  %v5460_v42 = vadd.f32 %v5420_v29, %v5394_v31 }
 0x3af   : > { %7509 = vmatpush.bf16.msrb.mxu1 %v11200_v20  ;;  %v13282_v15 = vpop.eup %13281  ;;  %7476 = vmatmul.bf16.vlgmr.msra.gmra.mxu2 %v15197_v4  ;;  %v15203_v19 = vpack.c.bf16 %v13280_v8, %v13280_v8  ;;  %v12925_v20 = vld [vmem:[#allocation9 + $0x314] sm:$0xf0]  ;;  %v11223_v36 = vld [vmem:[#allocation9 + $0x300] sm:$0xf]  ;;  %v12923_v39 = vld [vmem:[#allocation9 + $0x304] sm:$0xf0]  ;;  %v5463_v43 = vadd.f32 %v5423_v30, %v5397_v16  ;;  %v11096_v48 = vor.u32 %v12891_v26, %v11095_v25 }
 0x3b0   : > { %7522 = vmatpush.bf16.msrb.mxu2 %v11264_v24  ;;  %7450 = vmatmul.bf16.vlgmr.msra.gmra.mxu0 %v15199_v11  ;;  %v15206_v24 = vpack.c.bf16 %v13282_v15, %v13282_v15  ;;  %v11232_v34 = vor.u32 %v12925_v20, %v11231_v13  ;;  %v11407_v44 = vld [vmem:[#allocation9 + $0x470] sm:$0xf]  ;;  %v5461_v47 = vadd.f32 %v5421_v37, %v5395_v17  ;;  %v12985_v49 = vld [vmem:[#allocation9 + $0x4f4] sm:$0xf0]  ;;  %13285 = vtanh.f32 %v5460_v42  ;;  %v11399_v60 = vld [vmem:[#allocation9 + $0x460] sm:$0xf] }
 0x3b1   : > { %7535 = vmatpush.bf16.msrb.mxu3 %v11328_v32  ;;  %v11159_v32 = vld [vmem:[#allocation9 + $0x280] sm:$0xf]  ;;  %v11471_v46 = vld [vmem:[#allocation9 + $0x4f0] sm:$0xf]  ;;  %v13001_v51 = vld [vmem:[#allocation9 + $0x574] sm:$0xf0]  ;;  %13287 = vtanh.f32 %v5463_v43 }
 0x3b2   : > { %7497 = vmatpush.bf16.msrb.mxu0 %v11128_v38  ;;  %7489 = vmatmul.bf16.vlgmr.msra.gmra.mxu3 %v15203_v19  ;;  %v11296_v38 = vor.u32 %v12941_v22, %v11295_v21  ;;  %v11535_v50 = vld [vmem:[#allocation9 + $0x570] sm:$0xf]  ;;  %v11160_v23 = vor.u32 %v12907_v35, %v11159_v32  ;;  %13289 = vtanh.f32 %v5461_v47  ;;  %v12967_v61 = vld [vmem:[#allocation9 + $0x464] sm:$0xf0]  ;;  %v11463_v62 = vld [vmem:[#allocation9 + $0x4e0] sm:$0xf] }
 0x3b3   : > { %7510 = vmatpush.bf16.msrb.mxu1 %v11192_v40  ;;  %v11287_v40 = vld [vmem:[#allocation9 + $0x380] sm:$0xf]  ;;  %v11536_v59 = vor.u32 %v13001_v51, %v11535_v50  ;;  %v12983_v0 = vld [vmem:[#allocation9 + $0x4e4] sm:$0xf0]  ;;  %v11400_v7 = vor.u32 %v12967_v61, %v11399_v60  ;;  %v11391_v13 = vld [vmem:[#allocation9 + $0x450] sm:$0xf] }
 0x3b4   : > { %7523 = vmatpush.bf16.msrb.mxu2 %v11256_v41  ;;  %7463 = vmatmul.bf16.vlgmr.msra.gmra.mxu1 %v15206_v24  ;;  %v12939_v41 = vld [vmem:[#allocation9 + $0x384] sm:$0xf0]  ;;  %v13284_v57 = vpop.eup %13283  ;;  %v11527_v1 = vld [vmem:[#allocation9 + $0x560] sm:$0xf]  ;;  %v12965_v14 = vld [vmem:[#allocation9 + $0x454] sm:$0xf0] }
 0x3b5   : > { %7536 = vmatpush.bf16.msrb.mxu3 %v11320_v45  ;;  %v12969_v45 = vld [vmem:[#allocation9 + $0x474] sm:$0xf0]  ;;  %v11288_v55 = vor.u32 %v12939_v41, %v11287_v40  ;;  %v12999_v2 = vld [vmem:[#allocation9 + $0x564] sm:$0xf0]  ;;  %v15213_v8 = vpack.c.bf16 %v13284_v57, %v13284_v57  ;;  %v11455_v15 = vld [vmem:[#allocation9 + $0x4d0] sm:$0xf]  ;;  %v11392_v32 = vor.u32 %v12965_v14, %v11391_v13 }
 0x3b6   : > { %7498 = vmatpush.bf16.msrb.mxu0 %v11120_v52  ;;  %v11224_v52 = vor.u32 %v12923_v39, %v11223_v36  ;;  %v11408_v56 = vor.u32 %v12969_v45, %v11407_v44  ;;  %v13015_v5 = vld [vmem:[#allocation9 + $0x5e4] sm:$0xf0]  ;;  %v13286_v6 = vpop.eup %13285  ;;  %v11528_v12 = vor.u32 %v12999_v2, %v11527_v1  ;;  %v12981_v21 = vld [vmem:[#allocation9 + $0x4d4] sm:$0xf0]  ;;  %v11519_v22 = vld [vmem:[#allocation9 + $0x550] sm:$0xf] }
 0x3b7   : > { %7511 = vmatpush.bf16.msrb.mxu1 %v11184_v53  ;;  %v11599_v53 = vld [vmem:[#allocation9 + $0x5f0] sm:$0xf]  ;;  %v12997_v25 = vld [vmem:[#allocation9 + $0x554] sm:$0xf0]  ;;  %v15215_v26 = vpack.c.bf16 %v13286_v6, %v13286_v6  ;;  %v11456_v16 = vor.u32 %v12981_v21, %v11455_v15  ;;  %v11383_v17 = vld [vmem:[#allocation9 + $0x440] sm:$0xf] }
 0x3b8   : > { %7524 = vmatpush.bf16.msrb.mxu2 %v11248_v54  ;;  %v13017_v54 = vld [vmem:[#allocation9 + $0x5f4] sm:$0xf0]  ;;  %v11583_v27 = vld [vmem:[#allocation9 + $0x5d0] sm:$0xf]  ;;  %v11520_v30 = vor.u32 %v12997_v25, %v11519_v22  ;;  %v12979_v36 = vld [vmem:[#allocation9 + $0x4c4] sm:$0xf0] }
 0x3b9   : > { %7537 = vmatpush.bf16.msrb.mxu3 %v11312_v58  ;;  %v11472_v58 = vor.u32 %v12985_v49, %v11471_v46  ;;  %v11600_v63 = vor.u32 %v13017_v54, %v11599_v53  ;;  %v13013_v31 = vld [vmem:[#allocation9 + $0x5d4] sm:$0xf0]  ;;  %v11511_v37 = vld [vmem:[#allocation9 + $0x540] sm:$0xf]  ;;  %v13011_v40 = vld [vmem:[#allocation9 + $0x5c4] sm:$0xf0] }
 0x3ba   : > { %7499 = vmatpush.bf16.msrb.mxu0 %v11112_v3  ;;  %v11591_v3 = vld [vmem:[#allocation9 + $0x5e0] sm:$0xf]  ;;  %v11584_v35 = vor.u32 %v13013_v31, %v11583_v27  ;;  %v15224_v41 = vld [vmem:[#allocation8 + $0x8] sm:$0xff]  ;;  %v11375_v43 = vld [vmem:[#allocation9 + $0x430] sm:$0xf] }
 0x3bb   : > { %7512 = vmatpush.bf16.msrb.mxu1 %v11176_v9  ;;  %v13288_v9 = vpop.eup %13287  ;;  %v11592_v20 = vor.u32 %v13015_v5, %v11591_v3  ;;  %v11575_v39 = vld [vmem:[#allocation9 + $0x5c0] sm:$0xf]  ;;  %v12961_v46 = vld [vmem:[#allocation9 + $0x434] sm:$0xf0]  ;;  %v11439_v47 = vld [vmem:[#allocation9 + $0x4b0] sm:$0xf] }
 0x3bc   : > { %7525 = vmatpush.bf16.msrb.mxu2 %v11240_v10  ;;  %v11464_v10 = vor.u32 %v12983_v0, %v11463_v62  ;;  %v11576_v49 = vor.u32 %v13011_v40, %v11575_v39  ;;  %v11503_v50 = vld [vmem:[#allocation9 + $0x530] sm:$0xf]  ;;  %v12993_v51 = vld [vmem:[#allocation9 + $0x534] sm:$0xf0]  ;;  %v11367_v57 = vld [vmem:[#allocation9 + $0x420] sm:$0xf] }
 0x3bd   : > { %7538 = vmatpush.bf16.msrb.mxu3 %v11304_v18  ;;  %v13290_v18 = vpop.eup %13289  ;;  %v13009_v53 = vld [vmem:[#allocation9 + $0x5b4] sm:$0xf0]  ;;  %v5425_v60 = vperm.slane %v15224_v41, 1  ;;  %v11504_v62 = vor.u32 %v12993_v51, %v11503_v50  ;;  %v12975_v0 = vld [vmem:[#allocation9 + $0x4a4] sm:$0xf0]  ;;  %v5427_v2 = vperm.slane %v15224_v41, 3 }
 0x3be   : > { %7500 = vmatpush.bf16.msrb.mxu0 %v11104_v28  ;;  %v15217_v28 = vpack.c.bf16 %v13288_v9, %v13288_v9  ;;  %v15220_v29 = vpack.c.bf16 %v13290_v18, %v13290_v18  ;;  %v5398_v54 = vld [vmem:[#allocation2 + $0x8] sm:$0xff]  ;;  %v11495_v5 = vld [vmem:[#allocation9 + $0x520] sm:$0xf]  ;;  %v12991_v6 = vld [vmem:[#allocation9 + $0x524] sm:$0xf0] }
 0x3bf   : > { %7513 = vmatpush.bf16.msrb.mxu1 %v11168_v33  ;;  %v12963_v33 = vld [vmem:[#allocation9 + $0x444] sm:$0xf0]  ;;  %v5399_v1 = vld [vmem:[#allocation2 + $0x88] sm:$0xff]  ;;  %v5401_v9 = vld [vmem:[#allocation2 + $0x40] sm:$0xff] }
 0x3c0   : > { %7526 = vmatpush.bf16.msrb.mxu2 %v11232_v34  ;;  %v11447_v34 = vld [vmem:[#allocation9 + $0x4c0] sm:$0xf]  ;;  %v11384_v42 = vor.u32 %v12963_v33, %v11383_v17  ;;  %v5465_v15 = vadd.f32 %v5425_v60, %v5399_v1  ;;  %v11359_v21 = vld [vmem:[#allocation9 + $0x410] sm:$0xf]  ;;  %v12957_v22 = vld [vmem:[#allocation9 + $0x414] sm:$0xf0]  ;;  %v5467_v27 = vadd.f32 %v5427_v2, %v5401_v9 }
 0x3c1   : > { %7539 = vmatpush.bf16.msrb.mxu3 %v11296_v38  ;;  %v12995_v38 = vld [vmem:[#allocation9 + $0x544] sm:$0xf0]  ;;  %v11448_v44 = vor.u32 %v12979_v36, %v11447_v34  ;;  %v11423_v25 = vld [vmem:[#allocation9 + $0x490] sm:$0xf]  ;;  %v13005_v33 = vld [vmem:[#allocation9 + $0x594] sm:$0xf0]  ;;  %v11360_v34 = vor.u32 %v12957_v22, %v11359_v21 }
 0x3c2   : > { %7501 = vmatpush.bf16.msrb.mxu0 %v11096_v48  ;;  %v11512_v45 = vor.u32 %v12995_v38, %v11511_v37  ;;  %v12977_v48 = vld [vmem:[#allocation9 + $0x4b4] sm:$0xf0]  ;;  %v11551_v17 = vld [vmem:[#allocation9 + $0x590] sm:$0xf]  ;;  %v12955_v36 = vld [vmem:[#allocation9 + $0x404] sm:$0xf0] }
 0x3c3   : > { %7514 = vmatpush.bf16.msrb.mxu1 %v11160_v23  ;;  %v5424_v23 = vperm.slane %v15224_v41, 0  ;;  %v11440_v61 = vor.u32 %v12977_v48, %v11439_v47  ;;  %v11415_v39 = vld [vmem:[#allocation9 + $0x480] sm:$0xf]  ;;  %v12971_v40 = vld [vmem:[#allocation9 + $0x484] sm:$0xf0] }
 0x3c4   : > { %7527 = vmatpush.bf16.msrb.mxu2 %v11224_v52  ;;  %v11567_v52 = vld [vmem:[#allocation9 + $0x5b0] sm:$0xf]  ;;  %v13033_v48 = vld [vmem:[#allocation9 + $0x674] sm:$0xf0]  ;;  %v11655_v1 = vld [vmem:[#allocation9 + $0x660] sm:$0xf] }
 0x3c5   : > { %7540 = vmatpush.bf16.msrb.mxu3 %v11288_v55  ;;  %7502 = vmatmul.bf16.vlgmr.msrb.gmra.mxu0 %v15215_v26  ;;  %v5426_v55 = vperm.slane %v15224_v41, 2  ;;  %v11568_v3 = vor.u32 %v13009_v53, %v11567_v52  ;;  %v11663_v47 = vld [vmem:[#allocation9 + $0x670] sm:$0xf]  ;;  %v13065_v53 = vld [vmem:[#allocation9 + $0x774] sm:$0xf0] }
 0x3c6   : > { %7546 = vmatpush.bf16.msra.mxu0 %v11408_v56  ;;  %7515 = vmatmul.bf16.vlgmr.msrb.gmra.mxu1 %v15220_v29  ;;  %v11376_v56 = vor.u32 %v12961_v46, %v11375_v43  ;;  %v11552_v43 = vor.u32 %v13005_v33, %v11551_v17  ;;  %v13003_v46 = vld [vmem:[#allocation9 + $0x584] sm:$0xf0]  ;;  %v11791_v52 = vld [vmem:[#allocation9 + $0x770] sm:$0xf]  ;;  %v11783_v9 = vld [vmem:[#allocation9 + $0x760] sm:$0xf] }
 0x3c7   : > { %7559 = vmatpush.bf16.msra.mxu1 %v11472_v58  ;;  %7528 = vmatmul.bf16.vlgmr.msrb.gmra.mxu2 %v15213_v8  ;;  %v12959_v58 = vld [vmem:[#allocation9 + $0x424] sm:$0xf0]  ;;  %v13061_v17 = vld [vmem:[#allocation9 + $0x754] sm:$0xf0]  ;;  %v11839_v33 = vld [vmem:[#allocation9 + $0x7d0] sm:$0xf] }
 0x3c8   : > { %7572 = vmatpush.bf16.msra.mxu2 %v11536_v59  ;;  %7541 = vmatmul.bf16.vlgmr.msrb.gmra.mxu3 %v15217_v28  ;;  %v5400_v59 = vld [vmem:[#allocation2 + $0x28] sm:$0xff]  ;;  %v11368_v14 = vor.u32 %v12959_v58, %v11367_v57  ;;  %v11855_v57 = vld [vmem:[#allocation9 + $0x7f0] sm:$0xf]  ;;  %v13031_v2 = vld [vmem:[#allocation9 + $0x664] sm:$0xf0] }
 0x3c9   : > { %7585 = vmatpush.bf16.msra.mxu3 %v11600_v63  ;;  %v11431_v63 = vld [vmem:[#allocation9 + $0x4a0] sm:$0xf]  ;;  %v5466_v13 = vadd.f32 %v5426_v55, %v5400_v59  ;;  %v11416_v55 = vor.u32 %v12971_v40, %v11415_v39  ;;  %v13081_v58 = vld [vmem:[#allocation9 + $0x7f4] sm:$0xf0]  ;;  %v13027_v39 = vld [vmem:[#allocation9 + $0x644] sm:$0xf0] }
 0x3ca   : > { %7547 = vmatpush.bf16.msra.mxu0 %v11400_v7  ;;  %v5464_v7 = vadd.f32 %v5424_v23, %v5398_v54  ;;  %v11432_v18 = vor.u32 %v12975_v0, %v11431_v63  ;;  %v13049_v23 = vld [vmem:[#allocation9 + $0x6f4] sm:$0xf0]  ;;  %v11792_v0 = vor.u32 %v13065_v53, %v11791_v52  ;;  %v11703_v40 = vld [vmem:[#allocation9 + $0x6c0] sm:$0xf]  ;;  %v11695_v52 = vld [vmem:[#allocation9 + $0x6b0] sm:$0xf] }
 0x3cb   : > { %7560 = vmatpush.bf16.msra.mxu1 %v11464_v10  ;;  %v11559_v10 = vld [vmem:[#allocation9 + $0x5a0] sm:$0xf]  ;;  %v13041_v53 = vld [vmem:[#allocation9 + $0x6b4] sm:$0xf0] }
 0x3cc   : > { %7573 = vmatpush.bf16.msra.mxu2 %v11528_v12  ;;  %v13007_v12 = vld [vmem:[#allocation9 + $0x5a4] sm:$0xf0]  ;;  %13291 = vtanh.f32 %v5464_v7 }
 0x3cd   : > { %7586 = vmatpush.bf16.msra.mxu3 %v11592_v20  ;;  %v11496_v20 = vor.u32 %v12991_v6, %v11495_v5  ;;  %v11560_v31 = vor.u32 %v13007_v12, %v11559_v10  ;;  %13293 = vtanh.f32 %v5466_v13  ;;  %v11856_v5 = vor.u32 %v13081_v58, %v11855_v57  ;;  %v13047_v7 = vld [vmem:[#allocation9 + $0x6e4] sm:$0xf0]  ;;  %v11823_v58 = vld [vmem:[#allocation9 + $0x7b0] sm:$0xf] }
 0x3ce   : > { %7548 = vmatpush.bf16.msra.mxu0 %v11392_v32  ;;  %v12973_v32 = vld [vmem:[#allocation9 + $0x494] sm:$0xf0]  ;;  %13295 = vtanh.f32 %v5465_v15  ;;  %v13063_v10 = vld [vmem:[#allocation9 + $0x764] sm:$0xf0]  ;;  %v5428_v57 = vperm.slane %v15224_v41, 4 }
 0x3cf   : > { %7561 = vmatpush.bf16.msra.mxu1 %v11456_v16  ;;  %v11487_v16 = vld [vmem:[#allocation9 + $0x510] sm:$0xf]  ;;  %v11424_v37 = vor.u32 %v12973_v32, %v11423_v25  ;;  %13297 = vtanh.f32 %v5467_v27  ;;  %v13079_v15 = vld [vmem:[#allocation9 + $0x7e4] sm:$0xf0]  ;;  %v11784_v22 = vor.u32 %v13063_v10, %v11783_v9  ;;  %v13029_v27 = vld [vmem:[#allocation9 + $0x654] sm:$0xf0] }
 0x3d0   : > { %7574 = vmatpush.bf16.msra.mxu2 %v11520_v30  ;;  %v12989_v30 = vld [vmem:[#allocation9 + $0x514] sm:$0xf0]  ;;  %v11647_v25 = vld [vmem:[#allocation9 + $0x650] sm:$0xf]  ;;  %v13039_v9 = vld [vmem:[#allocation9 + $0x6a4] sm:$0xf0] }
 0x3d1   : > { %7587 = vmatpush.bf16.msra.mxu3 %v11584_v35  ;;  %v11351_v35 = vld [vmem:[#allocation9 + $0x400] sm:$0xf]  ;;  %v11488_v38 = vor.u32 %v12989_v30, %v11487_v16  ;;  %v13045_v16 = vld [vmem:[#allocation9 + $0x6d4] sm:$0xf0]  ;;  %v11775_v30 = vld [vmem:[#allocation9 + $0x750] sm:$0xf] }
 0x3d2   : > { %7549 = vmatpush.bf16.msra.mxu0 %v11384_v42  ;;  %v11479_v42 = vld [vmem:[#allocation9 + $0x500] sm:$0xf]  ;;  %v13292_v50 = vpop.eup %13291  ;;  %v11352_v51 = vor.u32 %v12955_v36, %v11351_v35  ;;  %v11648_v35 = vor.u32 %v13029_v27, %v11647_v25  ;;  %v5405_v25 = vld [vmem:[#allocation2 + $0x60] sm:$0xff] }
 0x3d3   : > { %7562 = vmatpush.bf16.msra.mxu1 %v11448_v44  ;;  %v12987_v44 = vld [vmem:[#allocation9 + $0x504] sm:$0xf0]  ;;  %v13294_v54 = vpop.eup %13293  ;;  %v15231_v6 = vpack.c.bf16 %v13292_v50, %v13292_v50  ;;  %v5403_v10 = vld [vmem:[#allocation2 + $0x10] sm:$0xff] }
 0x3d4   : > { %7575 = vmatpush.bf16.msra.mxu2 %v11512_v45  ;;  %v11543_v45 = vld [vmem:[#allocation9 + $0x580] sm:$0xf]  ;;  %v13296_v59 = vpop.eup %13295  ;;  %v15233_v12 = vpack.c.bf16 %v13294_v54, %v13294_v54 }
 0x3d5   : > { %7588 = vmatpush.bf16.msra.mxu3 %v11576_v49  ;;  %v11727_v49 = vld [vmem:[#allocation9 + $0x6f0] sm:$0xf]  ;;  %v11544_v60 = vor.u32 %v13003_v46, %v11543_v45  ;;  %v15235_v13 = vpack.c.bf16 %v13296_v59, %v13296_v59  ;;  %v13059_v45 = vld [vmem:[#allocation9 + $0x744] sm:$0xf0]  ;;  %v11831_v46 = vld [vmem:[#allocation9 + $0x7c0] sm:$0xf] }
 0x3d6   : > { %7550 = vmatpush.bf16.msra.mxu0 %v11376_v56  ;;  %v11480_v56 = vor.u32 %v12987_v44, %v11479_v42  ;;  %v11728_v63 = vor.u32 %v13049_v23, %v11727_v49  ;;  %v11767_v44 = vld [vmem:[#allocation9 + $0x740] sm:$0xf]  ;;  %v11631_v49 = vld [vmem:[#allocation9 + $0x630] sm:$0xf]  ;;  %v13025_v23 = vld [vmem:[#allocation9 + $0x634] sm:$0xf0] }
 0x3d7   : > { %7563 = vmatpush.bf16.msra.mxu1 %v11440_v61  ;;  %v11664_v61 = vor.u32 %v13033_v48, %v11663_v47  ;;  %v13075_v47 = vld [vmem:[#allocation9 + $0x7c4] sm:$0xf0]  ;;  %v13073_v59 = vld [vmem:[#allocation9 + $0x7b4] sm:$0xf0]  ;;  %v11815_v27 = vld [vmem:[#allocation9 + $0x7a0] sm:$0xf] }
 0x3d8   : > { %7576 = vmatpush.bf16.msra.mxu2 %v11504_v62  ;;  %v13298_v62 = vpop.eup %13297  ;;  %v11832_v54 = vor.u32 %v13075_v47, %v11831_v46  ;;  %v13019_v46 = vld [vmem:[#allocation9 + $0x604] sm:$0xf0] }
 0x3d9   : > { %7589 = vmatpush.bf16.msra.mxu3 %v11568_v3  ;;  %v11719_v3 = vld [vmem:[#allocation9 + $0x6e0] sm:$0xf] }
 0x3da   : > { %7551 = vmatpush.bf16.msra.mxu0 %v11368_v14  ;;  %v11847_v14 = vld [vmem:[#allocation9 + $0x7e0] sm:$0xf]  ;;  %v11720_v21 = vor.u32 %v13047_v7, %v11719_v3  ;;  %v11696_v3 = vor.u32 %v13041_v53, %v11695_v52  ;;  %v13051_v52 = vld [vmem:[#allocation9 + $0x704] sm:$0xf0] }
 0x3db   : > { %7564 = vmatpush.bf16.msra.mxu1 %v11432_v18  ;;  %v15237_v18 = vpack.c.bf16 %v13298_v62, %v13298_v62  ;;  %v11848_v32 = vor.u32 %v13079_v15, %v11847_v14  ;;  %v11632_v62 = vor.u32 %v13025_v23, %v11631_v49  ;;  %v11687_v7 = vld [vmem:[#allocation9 + $0x6a0] sm:$0xf]  ;;  %v5431_v14 = vperm.slane %v15224_v41, 7 }
 0x3dc   : > { %7577 = vmatpush.bf16.msra.mxu2 %v11496_v20  ;;  %v11656_v20 = vor.u32 %v13031_v2, %v11655_v1  ;;  %v5404_v1 = vld [vmem:[#allocation2 + $0x98] sm:$0xff]  ;;  %v5429_v2 = vperm.slane %v15224_v41, 5  ;;  %v11824_v15 = vor.u32 %v13073_v59, %v11823_v58  ;;  %v11671_v49 = vld [vmem:[#allocation9 + $0x680] sm:$0xf] }
 0x3dd   : > { %7590 = vmatpush.bf16.msra.mxu3 %v11560_v31  ;;  %v11711_v31 = vld [vmem:[#allocation9 + $0x6d0] sm:$0xf]  ;;  %v11799_v53 = vld [vmem:[#allocation9 + $0x780] sm:$0xf] }
 0x3de   : > { %7552 = vmatpush.bf16.msra.mxu0 %v11360_v34  ;;  %v13077_v34 = vld [vmem:[#allocation9 + $0x7d4] sm:$0xf0]  ;;  %v11712_v36 = vor.u32 %v13045_v16, %v11711_v31  ;;  %v13071_v31 = vld [vmem:[#allocation9 + $0x7a4] sm:$0xf0] }
 0x3df   : > { %7565 = vmatpush.bf16.msra.mxu1 %v11424_v37  ;;  %v11776_v37 = vor.u32 %v13061_v17, %v11775_v30  ;;  %v11840_v42 = vor.u32 %v13077_v34, %v11839_v33  ;;  %v5469_v30 = vadd.f32 %v5429_v2, %v5403_v10  ;;  %v11688_v17 = vor.u32 %v13039_v9, %v11687_v7  ;;  %v11615_v34 = vld [vmem:[#allocation9 + $0x610] sm:$0xf] }
 0x3e0   : > { %7578 = vmatpush.bf16.msra.mxu2 %v11488_v38  ;;  %v11639_v38 = vld [vmem:[#allocation9 + $0x640] sm:$0xf]  ;;  %v12111_v2 = vld [vmem:[#allocation9 + $0x9f0] sm:$0xf] }
 0x3e1   : > { %7591 = vmatpush.bf16.msra.mxu3 %v11552_v43  ;;  %v13043_v43 = vld [vmem:[#allocation9 + $0x6c4] sm:$0xf0]  ;;  %v11640_v48 = vor.u32 %v13027_v39, %v11639_v38  ;;  %v13037_v38 = vld [vmem:[#allocation9 + $0x694] sm:$0xf0]  ;;  %v11743_v39 = vld [vmem:[#allocation9 + $0x710] sm:$0xf] }
 0x3e2   : > { %7553 = vmatpush.bf16.msra.mxu0 %v11352_v51  ;;  %v11704_v50 = vor.u32 %v13043_v43, %v11703_v40  ;;  %v11768_v51 = vor.u32 %v13059_v45, %v11767_v44  ;;  %v13053_v40 = vld [vmem:[#allocation9 + $0x714] sm:$0xf0]  ;;  %v11607_v45 = vld [vmem:[#allocation9 + $0x600] sm:$0xf] }
 0x3e3   : > { %7566 = vmatpush.bf16.msra.mxu1 %v11416_v55  ;;  %v11759_v55 = vld [vmem:[#allocation9 + $0x730] sm:$0xf]  ;;  %v13069_v43 = vld [vmem:[#allocation9 + $0x794] sm:$0xf0]  ;;  %v11608_v59 = vor.u32 %v13019_v46, %v11607_v45 }
 0x3e4   : > { %7579 = vmatpush.bf16.msra.mxu2 %v11480_v56  ;;  %v13057_v56 = vld [vmem:[#allocation9 + $0x734] sm:$0xf0]  ;;  %v12095_v46 = vld [vmem:[#allocation9 + $0x9d0] sm:$0xf] }
 0x3e5   : > { %7592 = vmatpush.bf16.msra.mxu3 %v11544_v60  ;;  %7554 = vmatmul.bf16.vlgmr.msra.gmra.mxu0 %v15231_v6  ;;  %v5402_v60 = vld [vmem:[#allocation2 + $0x58] sm:$0xff]  ;;  %v13125_v45 = vld [vmem:[#allocation9 + $0x954] sm:$0xf0] }
 0x3e6   : > { %7598 = vmatpush.bf16.msrb.mxu0 %v11664_v61  ;;  %7567 = vmatmul.bf16.vlgmr.msra.gmra.mxu1 %v15235_v13  ;;  %v5430_v61 = vperm.slane %v15224_v41, 6  ;;  %v5471_v41 = vadd.f32 %v5431_v14, %v5405_v25 }
 0x3e7   : > { %7611 = vmatpush.bf16.msrb.mxu1 %v11728_v63  ;;  %7580 = vmatmul.bf16.vlgmr.msra.gmra.mxu2 %v15233_v12  ;;  %v11623_v63 = vld [vmem:[#allocation9 + $0x620] sm:$0xf] }
 0x3e8   : > { %7624 = vmatpush.bf16.msrb.mxu2 %v11792_v0  ;;  %7593 = vmatmul.bf16.vlgmr.msra.gmra.mxu3 %v15237_v18  ;;  %v13023_v0 = vld [vmem:[#allocation9 + $0x624] sm:$0xf0] }
 0x3e9   : > { %7637 = vmatpush.bf16.msrb.mxu3 %v11856_v5  ;;  %v11760_v5 = vor.u32 %v13057_v56, %v11759_v55  ;;  %v11624_v16 = vor.u32 %v13023_v0, %v11623_v63  ;;  %v11919_v55 = vld [vmem:[#allocation9 + $0x870] sm:$0xf]  ;;  %v13097_v56 = vld [vmem:[#allocation9 + $0x874] sm:$0xf0] }
 0x3ea   : > { %7599 = vmatpush.bf16.msrb.mxu0 %v11656_v20  ;;  %v11751_v20 = vld [vmem:[#allocation9 + $0x720] sm:$0xf]  ;;  %v11920_v9 = vor.u32 %v13097_v56, %v11919_v55  ;;  %v13123_v56 = vld [vmem:[#allocation9 + $0x944] sm:$0xf0] }
 0x3eb   : > { %7612 = vmatpush.bf16.msrb.mxu1 %v11720_v21  ;;  %v13055_v21 = vld [vmem:[#allocation9 + $0x724] sm:$0xf0]  ;;  %v12023_v55 = vld [vmem:[#allocation9 + $0x940] sm:$0xf] }
 0x3ec   : > { %7625 = vmatpush.bf16.msrb.mxu2 %v11784_v22  ;;  %v5468_v22 = vadd.f32 %v5428_v57, %v5402_v60  ;;  %v11752_v33 = vor.u32 %v13055_v21, %v11751_v20  ;;  %v11983_v57 = vld [vmem:[#allocation9 + $0x8f0] sm:$0xf]  ;;  %v13113_v60 = vld [vmem:[#allocation9 + $0x8f4] sm:$0xf0]  ;;  %v11911_v20 = vld [vmem:[#allocation9 + $0x860] sm:$0xf] }
 0x3ed   : > { %7638 = vmatpush.bf16.msrb.mxu3 %v11848_v32  ;;  %v5470_v32 = vadd.f32 %v5430_v61, %v5404_v1  ;;  %v12047_v61 = vld [vmem:[#allocation9 + $0x970] sm:$0xf]  ;;  %v11984_v14 = vor.u32 %v13113_v60, %v11983_v57  ;;  %v13095_v21 = vld [vmem:[#allocation9 + $0x864] sm:$0xf0]  ;;  %v12087_v57 = vld [vmem:[#allocation9 + $0x9c0] sm:$0xf] }
 0x3ee   : > { %7600 = vmatpush.bf16.msrb.mxu0 %v11648_v35  ;;  %v13021_v35 = vld [vmem:[#allocation9 + $0x614] sm:$0xf0]  ;;  %13299 = vtanh.f32 %v5468_v22  ;;  %v11975_v22 = vld [vmem:[#allocation9 + $0x8e0] sm:$0xf] }
 0x3ef   : > { %7613 = vmatpush.bf16.msrb.mxu1 %v11712_v36  ;;  %v11679_v36 = vld [vmem:[#allocation9 + $0x690] sm:$0xf]  ;;  %13301 = vtanh.f32 %v5470_v32  ;;  %v11616_v44 = vor.u32 %v13021_v35, %v11615_v34  ;;  %v12039_v32 = vld [vmem:[#allocation9 + $0x960] sm:$0xf]  ;;  %v13143_v34 = vld [vmem:[#allocation9 + $0x9e4] sm:$0xf0] }
 0x3f0   : > { %7626 = vmatpush.bf16.msrb.mxu2 %v11776_v37  ;;  %v11816_v37 = vor.u32 %v13071_v31, %v11815_v27  ;;  %13303 = vtanh.f32 %v5469_v30  ;;  %v11680_v47 = vor.u32 %v13037_v38, %v11679_v36  ;;  %v13111_v31 = vld [vmem:[#allocation9 + $0x8e4] sm:$0xf0]  ;;  %v11912_v36 = vor.u32 %v13095_v21, %v11911_v20  ;;  %v11903_v38 = vld [vmem:[#allocation9 + $0x850] sm:$0xf] }
 0x3f1   : > { %7639 = vmatpush.bf16.msrb.mxu3 %v11840_v42  ;;  %v11807_v42 = vld [vmem:[#allocation9 + $0x790] sm:$0xf]  ;;  %13305 = vtanh.f32 %v5471_v41  ;;  %v11976_v41 = vor.u32 %v13111_v31, %v11975_v22  ;;  %v11879_v22 = vld [vmem:[#allocation9 + $0x820] sm:$0xf] }
 0x3f2   : > { %7601 = vmatpush.bf16.msrb.mxu0 %v11640_v48  ;;  %v11744_v48 = vor.u32 %v13053_v40, %v11743_v39  ;;  %v11808_v23 = vor.u32 %v13069_v43, %v11807_v42  ;;  %v13093_v39 = vld [vmem:[#allocation9 + $0x854] sm:$0xf0]  ;;  %v11967_v40 = vld [vmem:[#allocation9 + $0x8d0] sm:$0xf]  ;;  %v5408_v31 = vld [vmem:[#allocation2 + $0x70] sm:$0xff] }
 0x3f3   : > { %7614 = vmatpush.bf16.msrb.mxu1 %v11704_v50  ;;  %v13035_v50 = vld [vmem:[#allocation9 + $0x684] sm:$0xf0]  ;;  %v13109_v43 = vld [vmem:[#allocation9 + $0x8d4] sm:$0xf0] }
 0x3f4   : > { %7627 = vmatpush.bf16.msrb.mxu2 %v11768_v51  ;;  %v11735_v51 = vld [vmem:[#allocation9 + $0x700] sm:$0xf]  ;;  %v13300_v58 = vpop.eup %13299  ;;  %v11672_v0 = vor.u32 %v13035_v50, %v11671_v49  ;;  %v11968_v49 = vor.u32 %v13109_v43, %v11967_v40  ;;  %v13119_v40 = vld [vmem:[#allocation9 + $0x924] sm:$0xf0] }
 0x3f5   : > { %7640 = vmatpush.bf16.msrb.mxu3 %v11832_v54  ;;  %v13067_v54 = vld [vmem:[#allocation9 + $0x784] sm:$0xf0]  ;;  %v13302_v63 = vpop.eup %13301  ;;  %v11736_v1 = vor.u32 %v13051_v52, %v11735_v51  ;;  %v15247_v27 = vpack.c.bf16 %v13300_v58, %v13300_v58  ;;  %v11895_v51 = vld [vmem:[#allocation9 + $0x840] sm:$0xf] }
 0x3f6   : > { %7602 = vmatpush.bf16.msrb.mxu0 %v11632_v62  ;;  %v13129_v62 = vld [vmem:[#allocation9 + $0x974] sm:$0xf0]  ;;  %v11800_v7 = vor.u32 %v13067_v54, %v11799_v53  ;;  %v15249_v30 = vpack.c.bf16 %v13302_v63, %v13302_v63  ;;  %v11959_v52 = vld [vmem:[#allocation9 + $0x8c0] sm:$0xf]  ;;  %v13107_v54 = vld [vmem:[#allocation9 + $0x8c4] sm:$0xf0]  ;;  %v12024_v63 = vor.u32 %v13123_v56, %v12023_v55 }
 0x3f7   : > { %7615 = vmatpush.bf16.msrb.mxu1 %v11696_v3  ;;  %v13145_v3 = vld [vmem:[#allocation9 + $0x9f4] sm:$0xf0]  ;;  %v13139_v58 = vld [vmem:[#allocation9 + $0x9c4] sm:$0xf0]  ;;  %v5409_v43 = vld [vmem:[#allocation2 + $0x90] sm:$0xff] }
 0x3f8   : > { %7628 = vmatpush.bf16.msrb.mxu2 %v11760_v5  ;;  %v13304_v5 = vpop.eup %13303  ;;  %v12112_v25 = vor.u32 %v13145_v3, %v12111_v2  ;;  %v13105_v2 = vld [vmem:[#allocation9 + $0x8b4] sm:$0xf0]  ;;  %v12088_v3 = vor.u32 %v13139_v58, %v12087_v57  ;;  %v11999_v56 = vld [vmem:[#allocation9 + $0x910] sm:$0xf] }
 0x3f9   : > { %7641 = vmatpush.bf16.msrb.mxu3 %v11824_v15  ;;  %v13306_v10 = vpop.eup %13305  ;;  %v12048_v15 = vor.u32 %v13129_v62, %v12047_v61  ;;  %v11887_v61 = vld [vmem:[#allocation9 + $0x830] sm:$0xf]  ;;  %v11960_v62 = vor.u32 %v13107_v54, %v11959_v52  ;;  %v13101_v55 = vld [vmem:[#allocation9 + $0x894] sm:$0xf0] }
 0x3fa   : > { %7603 = vmatpush.bf16.msrb.mxu0 %v11624_v16  ;;  %v13127_v16 = vld [vmem:[#allocation9 + $0x964] sm:$0xf0]  ;;  %v15253_v35 = vpack.c.bf16 %v13306_v10, %v13306_v10  ;;  %v12079_v10 = vld [vmem:[#allocation9 + $0x9b0] sm:$0xf]  ;;  %v13117_v57 = vld [vmem:[#allocation9 + $0x914] sm:$0xf0] }
 0x3fb   : > { %7616 = vmatpush.bf16.msrb.mxu1 %v11688_v17  ;;  %v15251_v17 = vpack.c.bf16 %v13304_v5, %v13304_v5  ;;  %v12015_v5 = vld [vmem:[#allocation9 + $0x930] sm:$0xf] }
 0x3fc   : > { %7629 = vmatpush.bf16.msrb.mxu2 %v11752_v33  ;;  %v12103_v33 = vld [vmem:[#allocation9 + $0x9e0] sm:$0xf]  ;;  %v11935_v52 = vld [vmem:[#allocation9 + $0x890] sm:$0xf] }
 0x3fd   : > { %7642 = vmatpush.bf16.msrb.mxu3 %v11816_v37  ;;  %v12040_v37 = vor.u32 %v13127_v16, %v12039_v32  ;;  %v12104_v42 = vor.u32 %v13143_v34, %v12103_v33  ;;  %v11943_v34 = vld [vmem:[#allocation9 + $0x8a0] sm:$0xf]  ;;  %v12063_v58 = vld [vmem:[#allocation9 + $0x990] sm:$0xf] }
 0x3fe   : > { %7604 = vmatpush.bf16.msrb.mxu0 %v11616_v44  ;;  %v12031_v44 = vld [vmem:[#allocation9 + $0x950] sm:$0xf] }
 0x3ff   : > { %7617 = vmatpush.bf16.msrb.mxu1 %v11680_v47  ;;  %v13141_v47 = vld [vmem:[#allocation9 + $0x9d4] sm:$0xf0]  ;;  %v12032_v50 = vor.u32 %v13125_v45, %v12031_v44  ;;  %v12071_v44 = vld [vmem:[#allocation9 + $0x9a0] sm:$0xf]  ;;  %v13135_v45 = vld [vmem:[#allocation9 + $0x9a4] sm:$0xf0] }
 0x400   : > { %7630 = vmatpush.bf16.msrb.mxu2 %v11744_v48  ;;  %v11904_v48 = vor.u32 %v13093_v39, %v11903_v38  ;;  %v12096_v53 = vor.u32 %v13141_v47, %v12095_v46  ;;  %v12007_v39 = vld [vmem:[#allocation9 + $0x920] sm:$0xf]  ;;  %v12072_v54 = vor.u32 %v13135_v45, %v12071_v44  ;;  %v12838_v44 = vld [vmem:[#allocation9 + $0x64] sm:$0xf]  ;;  %v10889_v45 = vld [vmem:[#allocation9 + $0x68] sm:$0xf0] }
 0x401   : > { %7643 = vmatpush.bf16.msrb.mxu3 %v11808_v23  ;;  %v13091_v23 = vld [vmem:[#allocation9 + $0x844] sm:$0xf0] }
 0x402   : > { %7605 = vmatpush.bf16.msrb.mxu0 %v11608_v59  ;;  %v5412_v59 = vld [vmem:[#allocation8 + $0x10] sm:$0xf]  ;;  %v11896_v60 = vor.u32 %v13091_v23, %v11895_v51  ;;  %v11871_v51 = vld [vmem:[#allocation9 + $0x810] sm:$0xf]  ;;  %v13085_v23 = vld [vmem:[#allocation9 + $0x814] sm:$0xf0] }
 0x403   : > { %7618 = vmatpush.bf16.msrb.mxu1 %v11672_v0  ;;  %v13089_v0 = vld [vmem:[#allocation9 + $0x834] sm:$0xf0]  ;;  %v5434_v20 = vperm.slane %v5412_v59, 2  ;;  %v5433_v32 = vperm.slane %v5412_v59, 1 }
 0x404   : > { %7631 = vmatpush.bf16.msrb.mxu2 %v11736_v1  ;;  %v11951_v1 = vld [vmem:[#allocation9 + $0x8b0] sm:$0xf]  ;;  %v11888_v21 = vor.u32 %v13089_v0, %v11887_v61  ;;  %v11863_v61 = vld [vmem:[#allocation9 + $0x800] sm:$0xf]  ;;  %v12000_v0 = vor.u32 %v13117_v57, %v11999_v56  ;;  %v10892_v56 = vor.u32 %v12838_v44, %v10889_v45  ;;  %v11057_v44 = vld [vmem:[#allocation9 + $0x1b8] sm:$0xf0] }
 0x405   : > { %7644 = vmatpush.bf16.msrb.mxu3 %v11800_v7  ;;  %7606 = vmatmul.bf16.vlgmr.msrb.gmra.mxu0 %v15247_v27  ;;  %v13121_v7 = vld [vmem:[#allocation9 + $0x934] sm:$0xf0]  ;;  %v11952_v16 = vor.u32 %v13105_v2, %v11951_v1  ;;  %v5474_v46 = vadd.f32 %v5434_v20, %v5408_v31  ;;  %v11927_v1 = vld [vmem:[#allocation9 + $0x880] sm:$0xf]  ;;  %v13099_v2 = vld [vmem:[#allocation9 + $0x884] sm:$0xf0] }
 0x406   : > { %7650 = vmatpush.bf16.msra.mxu0 %v11920_v9  ;;  %7619 = vmatmul.bf16.vlgmr.msrb.gmra.mxu1 %v15251_v17  ;;  %v5432_v9 = vperm.slane %v5412_v59, 0  ;;  %v12016_v33 = vor.u32 %v13121_v7, %v12015_v5  ;;  %v13115_v7 = vld [vmem:[#allocation9 + $0x904] sm:$0xf0]  ;;  %v12856_v20 = vld [vmem:[#allocation9 + $0xf4] sm:$0xf] }
 0x407   : > { %7663 = vmatpush.bf16.msra.mxu1 %v11984_v14  ;;  %7632 = vmatmul.bf16.vlgmr.msrb.gmra.mxu2 %v15249_v30  ;;  %v13137_v14 = vld [vmem:[#allocation9 + $0x9b4] sm:$0xf0]  ;;  %v12872_v31 = vld [vmem:[#allocation9 + $0x174] sm:$0xf] }
 0x408   : > { %7676 = vmatpush.bf16.msra.mxu2 %v12048_v15  ;;  %7645 = vmatmul.bf16.vlgmr.msrb.gmra.mxu3 %v15253_v35  ;;  %v5406_v15 = vld [vmem:[#allocation2 + $0x20] sm:$0xff]  ;;  %v12080_v38 = vor.u32 %v13137_v14, %v12079_v10  ;;  %v13131_v10 = vld [vmem:[#allocation9 + $0x984] sm:$0xf0]  ;;  %v12840_v14 = vld [vmem:[#allocation9 + $0x74] sm:$0xf] }
 0x409   : > { %7689 = vmatpush.bf16.msra.mxu3 %v12112_v25  ;;  %v13087_v25 = vld [vmem:[#allocation9 + $0x824] sm:$0xf0] }
 0x40a   : > { %7651 = vmatpush.bf16.msra.mxu0 %v11912_v36  ;;  %v13103_v36 = vld [vmem:[#allocation9 + $0x8a4] sm:$0xf0]  ;;  %v11880_v47 = vor.u32 %v13087_v25, %v11879_v22  ;;  %v10961_v25 = vld [vmem:[#allocation9 + $0xf8] sm:$0xf0] }
 0x40b   : > { %7664 = vmatpush.bf16.msra.mxu1 %v11976_v41  ;;  %v5407_v41 = vld [vmem:[#allocation2 + $0x48] sm:$0xff] }
 0x40c   : > { %7677 = vmatpush.bf16.msra.mxu2 %v12040_v37  ;;  %v5435_v37 = vperm.slane %v5412_v59, 3  ;;  %v13133_v59 = vld [vmem:[#allocation9 + $0x994] sm:$0xf0] }
 0x40d   : > { %7690 = vmatpush.bf16.msra.mxu3 %v12104_v42  ;;  %v5472_v42 = vadd.f32 %v5432_v9, %v5406_v15  ;;  %v12064_v5 = vor.u32 %v13133_v59, %v12063_v58  ;;  %v12055_v9 = vld [vmem:[#allocation9 + $0x980] sm:$0xf]  ;;  %v10897_v15 = vld [vmem:[#allocation9 + $0x78] sm:$0xf0]  ;;  %v12836_v59 = vld [vmem:[#allocation9 + $0x54] sm:$0xf] }
 0x40e   : > { %7652 = vmatpush.bf16.msra.mxu0 %v11904_v48  ;;  %v5473_v48 = vadd.f32 %v5433_v32, %v5407_v41  ;;  %v11025_v32 = vld [vmem:[#allocation9 + $0x178] sm:$0xf0] }
 0x40f   : > { %7665 = vmatpush.bf16.msra.mxu1 %v11968_v49  ;;  %v11944_v49 = vor.u32 %v13103_v36, %v11943_v34  ;;  %13307 = vtanh.f32 %v5472_v42  ;;  %v12888_v36 = vld [vmem:[#allocation9 + $0x1f4] sm:$0xf]  ;;  %v11089_v41 = vld [vmem:[#allocation9 + $0x1f8] sm:$0xf0]  ;;  %v10964_v42 = vor.u32 %v12856_v20, %v10961_v25  ;;  %v11001_v25 = vld [vmem:[#allocation9 + $0x148] sm:$0xf0] }
 0x410   : > { %7678 = vmatpush.bf16.msra.mxu2 %v12032_v50  ;;  %v12008_v50 = vor.u32 %v13119_v40, %v12007_v39  ;;  %13309 = vtanh.f32 %v5474_v46  ;;  %v10900_v39 = vor.u32 %v12840_v14, %v10897_v15  ;;  %v12854_v46 = vld [vmem:[#allocation9 + $0xe4] sm:$0xf]  ;;  %v10873_v14 = vld [vmem:[#allocation9 + $0x48] sm:$0xf0] }
 0x411   : > { %7691 = vmatpush.bf16.msra.mxu3 %v12096_v53  ;;  %v5475_v53 = vadd.f32 %v5435_v37, %v5409_v43  ;;  %13311 = vtanh.f32 %v5473_v48  ;;  %v11028_v43 = vor.u32 %v12872_v31, %v11025_v32  ;;  %v12850_v15 = vld [vmem:[#allocation9 + $0xc4] sm:$0xf]  ;;  %v11065_v32 = vld [vmem:[#allocation9 + $0x1c8] sm:$0xf0] }
 0x412   : > { %7653 = vmatpush.bf16.msra.mxu0 %v11896_v60  ;;  %v11872_v60 = vor.u32 %v13085_v23, %v11871_v51  ;;  %v11017_v51 = vld [vmem:[#allocation9 + $0x168] sm:$0xf0]  ;;  %v12882_v31 = vld [vmem:[#allocation9 + $0x1c4] sm:$0xf] }
 0x413   : > { %7666 = vmatpush.bf16.msra.mxu1 %v11960_v62  ;;  %v13083_v62 = vld [vmem:[#allocation9 + $0x804] sm:$0xf0]  ;;  %13313 = vtanh.f32 %v5475_v53  ;;  %v12886_v53 = vld [vmem:[#allocation9 + $0x1e4] sm:$0xf] }
 0x414   : > { %7679 = vmatpush.bf16.msra.mxu2 %v12024_v63  ;;  %v11936_v63 = vor.u32 %v13101_v55, %v11935_v52  ;;  %v11864_v22 = vor.u32 %v13083_v62, %v11863_v61  ;;  %v12852_v61 = vld [vmem:[#allocation9 + $0xd4] sm:$0xf] }
 0x415   : > { %7692 = vmatpush.bf16.msra.mxu3 %v12088_v3  ;;  %v11991_v3 = vld [vmem:[#allocation9 + $0x900] sm:$0xf] }
 0x416   : > { %7654 = vmatpush.bf16.msra.mxu0 %v11888_v21  ;;  %v13308_v21 = vpop.eup %13307  ;;  %v11992_v34 = vor.u32 %v13115_v7, %v11991_v3  ;;  %v11073_v3 = vld [vmem:[#allocation9 + $0x1d8] sm:$0xf0] }
 0x417   : > { %7667 = vmatpush.bf16.msra.mxu1 %v11952_v16  ;;  %v13310_v16 = vpop.eup %13309  ;;  %v15259_v48 = vpack.c.bf16 %v13308_v21, %v13308_v21  ;;  %v10937_v21 = vld [vmem:[#allocation9 + $0xc8] sm:$0xf0] }
 0x418   : > { %7680 = vmatpush.bf16.msra.mxu2 %v12016_v33  ;;  %v11928_v33 = vor.u32 %v13099_v2, %v11927_v1  ;;  %v13312_v37 = vpop.eup %13311  ;;  %v15261_v23 = vpack.c.bf16 %v13310_v16, %v13310_v16  ;;  %v11009_v1 = vld [vmem:[#allocation9 + $0x158] sm:$0xf0]  ;;  %v12884_v2 = vld [vmem:[#allocation9 + $0x1d4] sm:$0xf] }
 0x419   : > { %7693 = vmatpush.bf16.msra.mxu3 %v12080_v38  ;;  %v12056_v38 = vor.u32 %v13131_v10, %v12055_v9  ;;  %v13314_v40 = vpop.eup %13313  ;;  %v15263_v52 = vpack.c.bf16 %v13312_v37, %v13312_v37  ;;  %v12834_v10 = vld [vmem:[#allocation9 + $0x44] sm:$0xf]  ;;  %v11076_v20 = vor.u32 %v12884_v2, %v11073_v3  ;;  %v12848_v37 = vld [vmem:[#allocation9 + $0xb4] sm:$0xf]  ;;  %v10913_v2 = vld [vmem:[#allocation9 + $0x98] sm:$0xf0] }
 0x41a   : > { %7655 = vmatpush.bf16.msra.mxu0 %v11880_v47  ;;  %v11092_v47 = vor.u32 %v12888_v36, %v11089_v41  ;;  %v15265_v55 = vpack.c.bf16 %v13314_v40, %v13314_v40  ;;  %v10876_v16 = vor.u32 %v12834_v10, %v10873_v14  ;;  %v12832_v36 = vld [vmem:[#allocation9 + $0x34] sm:$0xf]  ;;  %v10865_v41 = vld [vmem:[#allocation9 + $0x38] sm:$0xf0] }
 0x41b   : > { %7668 = vmatpush.bf16.msra.mxu1 %v11944_v49  ;;  %v10953_v49 = vld [vmem:[#allocation9 + $0xe8] sm:$0xf0]  ;;  %v12864_v40 = vld [vmem:[#allocation9 + $0x134] sm:$0xf]  ;;  %v10868_v45 = vor.u32 %v12832_v36, %v10865_v41  ;;  %v11041_v14 = vld [vmem:[#allocation9 + $0x198] sm:$0xf0] }
 0x41c   : > { %7681 = vmatpush.bf16.msra.mxu2 %v12008_v50  ;;  %v12870_v50 = vld [vmem:[#allocation9 + $0x164] sm:$0xf]  ;;  %v10956_v57 = vor.u32 %v12854_v46, %v10953_v49  ;;  %v12876_v10 = vld [vmem:[#allocation9 + $0x194] sm:$0xf]  ;;  %v10969_v36 = vld [vmem:[#allocation9 + $0x108] sm:$0xf0] }
 0x41d   : > { %7694 = vmatpush.bf16.msra.mxu3 %v12072_v54  ;;  %v11081_v54 = vld [vmem:[#allocation9 + $0x1e8] sm:$0xf0]  ;;  %v11020_v58 = vor.u32 %v12870_v50, %v11017_v51  ;;  %v12830_v49 = vld [vmem:[#allocation9 + $0x24] sm:$0xf] }
 0x41e   : > { %7656 = vmatpush.bf16.msra.mxu0 %v11872_v60  ;;  %v10881_v60 = vld [vmem:[#allocation9 + $0x58] sm:$0xf0]  ;;  %v11084_v62 = vor.u32 %v12886_v53, %v11081_v54  ;;  %v10857_v50 = vld [vmem:[#allocation9 + $0x28] sm:$0xf0]  ;;  %v12846_v51 = vld [vmem:[#allocation9 + $0xa4] sm:$0xf] }
 0x41f   : > { %7669 = vmatpush.bf16.msra.mxu1 %v11936_v63  ;;  %v10945_v63 = vld [vmem:[#allocation9 + $0xd8] sm:$0xf0]  ;;  %v10921_v54 = vld [vmem:[#allocation9 + $0xa8] sm:$0xf0]  ;;  %v12874_v41 = vld [vmem:[#allocation9 + $0x184] sm:$0xf] }
 0x420   : > { %7682 = vmatpush.bf16.msra.mxu2 %v12000_v0  ;;  %v12868_v0 = vld [vmem:[#allocation9 + $0x154] sm:$0xf]  ;;  %v10948_v7 = vor.u32 %v12852_v61, %v10945_v63 }
 0x421   : > { %7695 = vmatpush.bf16.msra.mxu3 %v12064_v5  ;;  %v10884_v5 = vor.u32 %v12836_v59, %v10881_v60  ;;  %v11012_v9 = vor.u32 %v12868_v0, %v11009_v1  ;;  %v11049_v59 = vld [vmem:[#allocation9 + $0x1a8] sm:$0xf0]  ;;  %v10860_v60 = vor.u32 %v12830_v49, %v10857_v50  ;;  %v12828_v61 = vld [vmem:[#allocation9 + $0x14] sm:$0xf]  ;;  %v10849_v0 = vld [vmem:[#allocation9 + $0x18] sm:$0xf0] }
 0x422   : > { %7657 = vmatpush.bf16.msra.mxu0 %v11864_v22  ;;  %v12866_v22 = vld [vmem:[#allocation9 + $0x144] sm:$0xf]  ;;  %v12844_v1 = vld [vmem:[#allocation9 + $0x94] sm:$0xf] }
 0x423   : > { %7670 = vmatpush.bf16.msra.mxu1 %v11928_v33  ;;  %v10940_v33 = vor.u32 %v12850_v15, %v10937_v21  ;;  %v10852_v15 = vor.u32 %v12828_v61, %v10849_v0  ;;  %v10841_v21 = vld [vmem:[#allocation9 + $0x8] sm:$0xf0]  ;;  %v12952_v50 = vld [vmem:[#allocation9 + $0x3f4] sm:$0xf]  ;;  %v12918_v61 = vld [vmem:[#allocation9 + $0x2e4] sm:$0xf] }
 0x424   : > { %7683 = vmatpush.bf16.msra.mxu2 %v11992_v34  ;;  %v11004_v34 = vor.u32 %v12866_v22, %v11001_v25  ;;  %v12842_v22 = vld [vmem:[#allocation9 + $0x84] sm:$0xf]  ;;  %v10916_v25 = vor.u32 %v12844_v1, %v10913_v2  ;;  %v11209_v0 = vld [vmem:[#allocation9 + $0x2e8] sm:$0xf0] }
 0x425   : > { %7696 = vmatpush.bf16.msra.mxu3 %v12056_v38  ;;  %7658 = vmatmul.bf16.vlgmr.msra.gmra.mxu0 %v15259_v48  ;;  %v11068_v38 = vor.u32 %v12882_v31, %v11065_v32  ;;  %v10905_v32 = vld [vmem:[#allocation9 + $0x88] sm:$0xf0]  ;;  %v12934_v1 = vld [vmem:[#allocation9 + $0x364] sm:$0xf] }
 0x426   : > { %7702 = vmatpush.bf16.msrb.mxu0 %v10900_v39  ;;  %7671 = vmatmul.bf16.vlgmr.msra.gmra.mxu1 %v15263_v52  ;;  %v10929_v39 = vld [vmem:[#allocation9 + $0xb8] sm:$0xf0]  ;;  %v11273_v2 = vld [vmem:[#allocation9 + $0x368] sm:$0xf0] }
 0x427   : > { %7715 = vmatpush.bf16.msrb.mxu1 %v10964_v42  ;;  %7684 = vmatmul.bf16.vlgmr.msra.gmra.mxu2 %v15261_v23  ;;  %v10993_v42 = vld [vmem:[#allocation9 + $0x138] sm:$0xf0]  ;;  %v10932_v46 = vor.u32 %v12848_v37, %v10929_v39  ;;  %v11033_v37 = vld [vmem:[#allocation9 + $0x188] sm:$0xf0] }
 0x428   : > { %7728 = vmatpush.bf16.msrb.mxu2 %v11028_v43  ;;  %7697 = vmatmul.bf16.vlgmr.msra.gmra.mxu3 %v15265_v55  ;;  %v12880_v43 = vld [vmem:[#allocation9 + $0x1b4] sm:$0xf]  ;;  %v11153_v39 = vld [vmem:[#allocation9 + $0x278] sm:$0xf0] }
 0x429   : > { %7741 = vmatpush.bf16.msrb.mxu3 %v11092_v47  ;;  %v10996_v47 = vor.u32 %v12864_v40, %v10993_v42  ;;  %v11060_v53 = vor.u32 %v12880_v43, %v11057_v44  ;;  %v12920_v40 = vld [vmem:[#allocation9 + $0x2f4] sm:$0xf]  ;;  %v11217_v43 = vld [vmem:[#allocation9 + $0x2f8] sm:$0xf0] }
 0x42a   : > { %7703 = vmatpush.bf16.msrb.mxu0 %v10892_v56  ;;  %v12862_v56 = vld [vmem:[#allocation9 + $0x124] sm:$0xf]  ;;  %v12936_v44 = vld [vmem:[#allocation9 + $0x374] sm:$0xf] }
 0x42b   : > { %7716 = vmatpush.bf16.msrb.mxu1 %v10956_v57  ;;  %v10985_v57 = vld [vmem:[#allocation9 + $0x128] sm:$0xf0] }
 0x42c   : > { %7729 = vmatpush.bf16.msrb.mxu2 %v11020_v58  ;;  %v12878_v58 = vld [vmem:[#allocation9 + $0x1a4] sm:$0xf]  ;;  %v10988_v63 = vor.u32 %v12862_v56, %v10985_v57  ;;  %v11220_v57 = vor.u32 %v12920_v40, %v11217_v43 }
 0x42d   : > { %7742 = vmatpush.bf16.msrb.mxu3 %v11084_v62  ;;  %v10924_v62 = vor.u32 %v12846_v51, %v10921_v54  ;;  %v11052_v3 = vor.u32 %v12878_v58, %v11049_v59  ;;  %v11345_v51 = vld [vmem:[#allocation9 + $0x3f8] sm:$0xf0]  ;;  %v11036_v54 = vor.u32 %v12874_v41, %v11033_v37  ;;  %v12902_v59 = vld [vmem:[#allocation9 + $0x264] sm:$0xf]  ;;  %v12948_v37 = vld [vmem:[#allocation9 + $0x3d4] sm:$0xf] }
 0x42e   : > { %7704 = vmatpush.bf16.msrb.mxu0 %v10884_v5  ;;  %v12860_v5 = vld [vmem:[#allocation9 + $0x114] sm:$0xf]  ;;  %v12898_v43 = vld [vmem:[#allocation9 + $0x244] sm:$0xf] }
 0x42f   : > { %7717 = vmatpush.bf16.msrb.mxu1 %v10948_v7  ;;  %v10977_v7 = vld [vmem:[#allocation9 + $0x118] sm:$0xf0] }
 0x430   : > { %7730 = vmatpush.bf16.msrb.mxu2 %v11012_v9  ;;  %v5836_v9 = vld [vmem:[#allocation11] sm:$0x3]  ;;  %v10980_v31 = vor.u32 %v12860_v5, %v10977_v7  ;;  %v12950_v5 = vld [vmem:[#allocation9 + $0x3e4] sm:$0xf]  ;;  %v11337_v7 = vld [vmem:[#allocation9 + $0x3e8] sm:$0xf0] }
 0x431   : > { %7743 = vmatpush.bf16.msrb.mxu3 %v11076_v20  ;;  %v12826_v20 = vld [vmem:[#allocation9 + $0x4] sm:$0xf] }
 0x432   : > { %7705 = vmatpush.bf16.msrb.mxu0 %v10876_v16  ;;  %v12858_v16 = vld [vmem:[#allocation9 + $0x104] sm:$0xf]  ;;  %v10844_v42 = vor.u32 %v12826_v20, %v10841_v21  ;;  %v11276_v20 = vor.u32 %v12934_v1, %v11273_v2  ;;  %v12900_v21 = vld [vmem:[#allocation9 + $0x254] sm:$0xf]  ;;  %v11313_v1 = vld [vmem:[#allocation9 + $0x3b8] sm:$0xf0] }
 0x433   : > { %7718 = vmatpush.bf16.msrb.mxu1 %v10940_v33  ;;  %v5838_v33 = vperm.slane %v5836_v9, 0  ;;  %v10972_v49 = vor.u32 %v12858_v16, %v10969_v36  ;;  %v7477_v9 = vpop.f32.mrf.mxu2  ;;  %v11201_v16 = vld [vmem:[#allocation9 + $0x2d8] sm:$0xf0] }
 0x434   : > { %7731 = vmatpush.bf16.msrb.mxu2 %v11004_v34  ;;  %v11044_v34 = vor.u32 %v12876_v10, %v11041_v14 }
 0x435   : > { %7744 = vmatpush.bf16.msrb.mxu3 %v11068_v38  ;;  %v12904_v38 = vld [vmem:[#allocation9 + $0x274] sm:$0xf] }
 0x436   : > { %7706 = vmatpush.bf16.msrb.mxu0 %v10868_v45  ;;  %v11281_v45 = vld [vmem:[#allocation9 + $0x378] sm:$0xf0]  ;;  %v11156_v56 = vor.u32 %v12904_v38, %v11153_v39 }
 0x437   : > { %7719 = vmatpush.bf16.msrb.mxu1 %v10932_v46  ;;  %v7451_v46 = vpop.f32.mrf.mxu0  ;;  %v11284_v58 = vor.u32 %v12936_v44, %v11281_v45  ;;  %v11329_v38 = vld [vmem:[#allocation9 + $0x3d8] sm:$0xf0]  ;;  %v11129_v44 = vld [vmem:[#allocation9 + $0x248] sm:$0xf0]  ;;  %v12914_v45 = vld [vmem:[#allocation9 + $0x2c4] sm:$0xf] }
 0x438   : > { %7732 = vmatpush.bf16.msrb.mxu2 %v10996_v47  ;;  %v10908_v47 = vor.u32 %v12842_v22, %v10905_v32  ;;  %v11137_v22 = vld [vmem:[#allocation9 + $0x258] sm:$0xf0]  ;;  %v11340_v32 = vor.u32 %v12950_v5, %v11337_v7 }
 0x439   : > { %7745 = vmatpush.bf16.msrb.mxu3 %v11060_v53  ;;  %v7452_v53 = vadd.f32 %v7451_v46, %v5838_v33  ;;  %v12932_v33 = vld [vmem:[#allocation9 + $0x354] sm:$0xf]  ;;  %v11140_v39 = vor.u32 %v12900_v21, %v11137_v22  ;;  %v11177_v22 = vld [vmem:[#allocation9 + $0x2a8] sm:$0xf0] }
 0x43a   : > { %7707 = vmatpush.bf16.msrb.mxu0 %v10860_v60  ;;  %v11145_v60 = vld [vmem:[#allocation9 + $0x268] sm:$0xf0] }
 0x43b   : > { %7720 = vmatpush.bf16.msrb.mxu1 %v10924_v62  ;;  %v7464_v62 = vpop.f32.mrf.mxu1  ;;  %v11148_v10 = vor.u32 %v12902_v59, %v11145_v60 }
 0x43c   : > { %7733 = vmatpush.bf16.msrb.mxu2 %v10988_v63  ;;  %v11348_v63 = vor.u32 %v12952_v50, %v11345_v51  ;;  %v11257_v50 = vld [vmem:[#allocation9 + $0x348] sm:$0xf0] }
 0x43d   : > { %7746 = vmatpush.bf16.msrb.mxu3 %v11052_v3  ;;  %v7465_v3 = vadd.f32 %v7464_v62, %v7452_v53  ;;  %v11321_v51 = vld [vmem:[#allocation9 + $0x3c8] sm:$0xf0]  ;;  %v11132_v53 = vor.u32 %v12898_v43, %v11129_v44  ;;  %v12928_v62 = vld [vmem:[#allocation9 + $0x334] sm:$0xf]  ;;  %v11169_v44 = vld [vmem:[#allocation9 + $0x298] sm:$0xf0] }
 0x43e   : > { %7708 = vmatpush.bf16.msrb.mxu0 %v10852_v15  ;;  %v11212_v15 = vor.u32 %v12918_v61, %v11209_v0  ;;  %v11185_v61 = vld [vmem:[#allocation9 + $0x2b8] sm:$0xf0]  ;;  %v12944_v0 = vld [vmem:[#allocation9 + $0x3b4] sm:$0xf] }
 0x43f   : > { %7721 = vmatpush.bf16.msrb.mxu1 %v10916_v25  ;;  %v7478_v14 = vadd.f32 %v7477_v9, %v7465_v3  ;;  %v12916_v25 = vld [vmem:[#allocation9 + $0x2d4] sm:$0xf]  ;;  %v7453_v41 = vpop.f32.mrf.mxu0  ;;  %v11316_v21 = vor.u32 %v12944_v0, %v11313_v1  ;;  %v11409_v1 = vld [vmem:[#allocation9 + $0x478] sm:$0xf0] }
 0x440   : > { %7734 = vmatpush.bf16.msrb.mxu2 %v10980_v31  ;;  %v7490_v31 = vpop.f32.mrf.mxu3  ;;  %v11204_v40 = vor.u32 %v12916_v25, %v11201_v16  ;;  %v12926_v25 = vld [vmem:[#allocation9 + $0x324] sm:$0xf]  ;;  %v12968_v0 = vld [vmem:[#allocation9 + $0x474] sm:$0xf] }
 0x441   : > { %7747 = vmatpush.bf16.msrb.mxu3 %v11044_v34  ;;  %v11265_v34 = vld [vmem:[#allocation9 + $0x358] sm:$0xf0]  ;;  %v7491_v36 = vadd.f32 %v7490_v31, %v7478_v14  ;;  %v11113_v14 = vld [vmem:[#allocation9 + $0x228] sm:$0xf0]  ;;  %v12942_v16 = vld [vmem:[#allocation9 + $0x3a4] sm:$0xf] }
 0x442   : > { %7709 = vmatpush.bf16.msrb.mxu0 %v10844_v42  ;;  %v11268_v42 = vor.u32 %v12932_v33, %v11265_v34  ;;  %v11241_v31 = vld [vmem:[#allocation9 + $0x328] sm:$0xf0] }
 0x443   : > { %7722 = vmatpush.bf16.msrb.mxu1 %v10908_v47  ;;  %v7466_v46 = vpop.f32.mrf.mxu1  ;;  %v11193_v47 = vld [vmem:[#allocation9 + $0x2c8] sm:$0xf0] }
 0x444   : > { %7735 = vmatpush.bf16.msrb.mxu2 %v10972_v49  ;;  %v12930_v49 = vld [vmem:[#allocation9 + $0x344] sm:$0xf]  ;;  %v11305_v33 = vld [vmem:[#allocation9 + $0x3a8] sm:$0xf0]  ;;  %v11233_v46 = vld [vmem:[#allocation9 + $0x318] sm:$0xf0] }
 0x445   : > { %7748 = vmatpush.bf16.msrb.mxu3 %v11036_v54  ;;  %7710 = vmatmul.bf16.vlgmr.msrb.gmra.mxu0 %v15199_v11  ;;  %v12946_v11 = vld [vmem:[#allocation9 + $0x3c4] sm:$0xf]  ;;  %v11260_v54 = vor.u32 %v12930_v49, %v11257_v50  ;;  %v11308_v43 = vor.u32 %v12942_v16, %v11305_v33  ;;  %v11297_v49 = vld [vmem:[#allocation9 + $0x398] sm:$0xf0] }
 0x446   : > { %7754 = vmatpush.bf16.msra.mxu0 %v11156_v56  ;;  %7723 = vmatmul.bf16.vlgmr.msrb.gmra.mxu1 %v15206_v24  ;;  %v11196_v24 = vor.u32 %v12914_v45, %v11193_v47  ;;  %v12896_v56 = vld [vmem:[#allocation9 + $0x234] sm:$0xf]  ;;  %v11324_v60 = vor.u32 %v12946_v11, %v11321_v51  ;;  %v12966_v33 = vld [vmem:[#allocation9 + $0x464] sm:$0xf] }
 0x447   : > { %7767 = vmatpush.bf16.msra.mxu1 %v11220_v57  ;;  %7736 = vmatmul.bf16.vlgmr.msrb.gmra.mxu2 %v15197_v4  ;;  %v11332_v4 = vor.u32 %v12948_v37, %v11329_v38  ;;  %v11121_v57 = vld [vmem:[#allocation9 + $0x238] sm:$0xf0]  ;;  %v7503_v2 = vpop.f32.mrf.mxu0  ;;  %v11244_v38 = vor.u32 %v12926_v25, %v11241_v31  ;;  %v12924_v45 = vld [vmem:[#allocation9 + $0x314] sm:$0xf]  ;;  %v11412_v25 = vor.u32 %v12968_v0, %v11409_v1  ;;  %v11577_v1 = vld [vmem:[#allocation9 + $0x5c8] sm:$0xf0] }
 0x448   : > { %7780 = vmatpush.bf16.msra.mxu2 %v11284_v58  ;;  %7749 = vmatmul.bf16.vlgmr.msrb.gmra.mxu3 %v15203_v19  ;;  %v7479_v19 = vpop.f32.mrf.mxu2  ;;  %v12912_v58 = vld [vmem:[#allocation9 + $0x2b4] sm:$0xf]  ;;  %v7492_v59 = vpop.f32.mrf.mxu3  ;;  %v11124_v3 = vor.u32 %v12896_v56, %v11121_v57  ;;  %v7504_v5 = vadd.f32 %v7503_v2, %v7491_v36  ;;  %v12906_v56 = vld [vmem:[#allocation9 + $0x284] sm:$0xf]  ;;  %v11161_v57 = vld [vmem:[#allocation9 + $0x288] sm:$0xf0] }
 0x449   : > { %7793 = vmatpush.bf16.msra.mxu3 %v11348_v63  ;;  %v11249_v63 = vld [vmem:[#allocation9 + $0x338] sm:$0xf0]  ;;  %v11188_v7 = vor.u32 %v12912_v58, %v11185_v61  ;;  %v12940_v47 = vld [vmem:[#allocation9 + $0x394] sm:$0xf]  ;;  %v12890_v19 = vld [vmem:[#allocation9 + $0x204] sm:$0xf] }
 0x44a   : > { %7755 = vmatpush.bf16.msra.mxu0 %v11148_v10  ;;  %v11252_v9 = vor.u32 %v12928_v62, %v11249_v63  ;;  %v12894_v10 = vld [vmem:[#allocation9 + $0x224] sm:$0xf]  ;;  %v11225_v61 = vld [vmem:[#allocation9 + $0x308] sm:$0xf0]  ;;  %v12984_v2 = vld [vmem:[#allocation9 + $0x4f4] sm:$0xf] }
 0x44b   : > { %7768 = vmatpush.bf16.msra.mxu1 %v11212_v15  ;;  %v12910_v15 = vld [vmem:[#allocation9 + $0x2a4] sm:$0xf]  ;;  %v11116_v41 = vor.u32 %v12894_v10, %v11113_v14  ;;  %v11289_v63 = vld [vmem:[#allocation9 + $0x388] sm:$0xf0]  ;;  %v11537_v10 = vld [vmem:[#allocation9 + $0x578] sm:$0xf0]  ;;  %v11164_v14 = vor.u32 %v12906_v56, %v11161_v57 }
 0x44c   : > { %7781 = vmatpush.bf16.msra.mxu2 %v11276_v20  ;;  %v7516_v20 = vpop.f32.mrf.mxu1  ;;  %v11180_v37 = vor.u32 %v12910_v15, %v11177_v22  ;;  %v12922_v58 = vld [vmem:[#allocation9 + $0x304] sm:$0xf] }
 0x44d   : > { %7794 = vmatpush.bf16.msra.mxu3 %v11340_v32  ;;  %v7517_v32 = vadd.f32 %v7516_v20, %v7504_v5  ;;  %v12938_v62 = vld [vmem:[#allocation9 + $0x384] sm:$0xf]  ;;  %v11228_v15 = vor.u32 %v12922_v58, %v11225_v61  ;;  %v13016_v20 = vld [vmem:[#allocation9 + $0x5f4] sm:$0xf]  ;;  %v11449_v61 = vld [vmem:[#allocation9 + $0x4c8] sm:$0xf0] }
 0x44e   : > { %7756 = vmatpush.bf16.msra.mxu0 %v11140_v39  ;;  %v12892_v39 = vld [vmem:[#allocation9 + $0x214] sm:$0xf]  ;;  %v11292_v22 = vor.u32 %v12938_v62, %v11289_v63  ;;  %v12962_v58 = vld [vmem:[#allocation9 + $0x444] sm:$0xf]  ;;  %v11513_v63 = vld [vmem:[#allocation9 + $0x548] sm:$0xf0] }
 0x44f   : > { %7769 = vmatpush.bf16.msra.mxu1 %v11204_v40  ;;  %v11105_v40 = vld [vmem:[#allocation9 + $0x218] sm:$0xf0]  ;;  %v7505_v11 = vpop.f32.mrf.mxu0  ;;  %v12994_v62 = vld [vmem:[#allocation9 + $0x544] sm:$0xf] }
 0x450   : > { %7782 = vmatpush.bf16.msra.mxu2 %v11268_v42  ;;  %v7529_v34 = vpop.f32.mrf.mxu2  ;;  %v12908_v42 = vld [vmem:[#allocation9 + $0x294] sm:$0xf]  ;;  %v11108_v51 = vor.u32 %v12892_v39, %v11105_v40  ;;  %v11529_v39 = vld [vmem:[#allocation9 + $0x568] sm:$0xf0]  ;;  %v13014_v40 = vld [vmem:[#allocation9 + $0x5e4] sm:$0xf] }
 0x451   : > { %7795 = vmatpush.bf16.msra.mxu3 %v11332_v4  ;;  %v7530_v36 = vadd.f32 %v7529_v34, %v7517_v32  ;;  %v7542_v4 = vpop.f32.mrf.mxu3  ;;  %v11401_v34 = vld [vmem:[#allocation9 + $0x468] sm:$0xf0]  ;;  %v11457_v11 = vld [vmem:[#allocation9 + $0x4d8] sm:$0xf0] }
 0x452   : > { %7757 = vmatpush.bf16.msra.mxu0 %v11132_v53  ;;  %v11097_v53 = vld [vmem:[#allocation9 + $0x208] sm:$0xf0] }
 0x453   : > { %7770 = vmatpush.bf16.msra.mxu1 %v11196_v24  ;;  %v15275_v50 = vadd.f32 %v7542_v4, %v7530_v36  ;;  %v11172_v24 = vor.u32 %v12908_v42, %v11169_v44  ;;  %v11100_v5 = vor.u32 %v12890_v19, %v11097_v53  ;;  %v11593_v42 = vld [vmem:[#allocation9 + $0x5e8] sm:$0xf0]  ;;  %v11393_v4 = vld [vmem:[#allocation9 + $0x458] sm:$0xf0]  ;;  %v13012_v53 = vld [vmem:[#allocation9 + $0x5d4] sm:$0xf] }
 0x454   : > { %7783 = vmatpush.bf16.msra.mxu2 %v11260_v54  ;;  %v11236_v54 = vor.u32 %v12924_v45, %v11233_v46  ;;  %v7518_v59 = vpop.f32.mrf.mxu1  ;;  %v12964_v46 = vld [vmem:[#allocation9 + $0x454] sm:$0xf]  ;;  %v11521_v19 = vld [vmem:[#allocation9 + $0x558] sm:$0xf0] }
 0x455   : > { %7796 = vmatpush.bf16.msra.mxu3 %v11324_v60  ;;  %v11300_v60 = vor.u32 %v12940_v47, %v11297_v49  ;;  %v12980_v47 = vld [vmem:[#allocation9 + $0x4d4] sm:$0xf]  ;;  %v11596_v49 = vor.u32 %v13014_v40, %v11593_v42  ;;  %v11385_v59 = vld [vmem:[#allocation9 + $0x448] sm:$0xf0] }
 0x456   : > { %7758 = vmatpush.bf16.msra.mxu0 %v11124_v3  ;;  %v11460_v56 = vor.u32 %v12980_v47, %v11457_v11  ;;  %v11497_v40 = vld [vmem:[#allocation9 + $0x528] sm:$0xf0] }
 0x457   : > { %7771 = vmatpush.bf16.msra.mxu1 %v11188_v7  ;;  %v11473_v7 = vld [vmem:[#allocation9 + $0x4f8] sm:$0xf0] }
 0x458   : > { %7784 = vmatpush.bf16.msra.mxu2 %v11252_v9  ;;  %v7531_v3 = vpop.f32.mrf.mxu2  ;;  %v13000_v9 = vld [vmem:[#allocation9 + $0x574] sm:$0xf]  ;;  %v11476_v32 = vor.u32 %v12984_v2, %v11473_v7  ;;  %v11388_v2 = vor.u32 %v12962_v58, %v11385_v59  ;;  %v11489_v58 = vld [vmem:[#allocation9 + $0x518] sm:$0xf0] }
 0x459   : > { %7797 = vmatpush.bf16.msra.mxu3 %v11316_v21  ;;  %v11601_v21 = vld [vmem:[#allocation9 + $0x5f8] sm:$0xf0]  ;;  %v7544_v31 = vpop.f32.mrf.mxu3  ;;  %v11540_v16 = vor.u32 %v13000_v9, %v11537_v10  ;;  %v12960_v7 = vld [vmem:[#allocation9 + $0x434] sm:$0xf] }
 0x45a   : > { %7759 = vmatpush.bf16.msra.mxu0 %v11116_v41  ;;  %v12982_v41 = vld [vmem:[#allocation9 + $0x4e4] sm:$0xf]  ;;  %v11604_v36 = vor.u32 %v13016_v20, %v11601_v21  ;;  %v11377_v9 = vld [vmem:[#allocation9 + $0x438] sm:$0xf0]  ;;  %v12976_v10 = vld [vmem:[#allocation9 + $0x4b4] sm:$0xf] }
 0x45b   : > { %7772 = vmatpush.bf16.msra.mxu1 %v11180_v37  ;;  %v11465_v37 = vld [vmem:[#allocation9 + $0x4e8] sm:$0xf0]  ;;  %v11441_v20 = vld [vmem:[#allocation9 + $0x4b8] sm:$0xf0]  ;;  %v12992_v21 = vld [vmem:[#allocation9 + $0x534] sm:$0xf] }
 0x45c   : > { %7785 = vmatpush.bf16.msra.mxu2 %v11244_v38  ;;  %v12998_v38 = vld [vmem:[#allocation9 + $0x564] sm:$0xf]  ;;  %v11468_v44 = vor.u32 %v12982_v41, %v11465_v37  ;;  %v11569_v31 = vld [vmem:[#allocation9 + $0x5b8] sm:$0xf0]  ;;  %v13004_v59 = vld [vmem:[#allocation9 + $0x594] sm:$0xf] }
 0x45d   : > { %7798 = vmatpush.bf16.msra.mxu3 %v11308_v43  ;;  %v11404_v43 = vor.u32 %v12966_v33, %v11401_v34  ;;  %v11532_v45 = vor.u32 %v12998_v38, %v11529_v39  ;;  %v12958_v33 = vld [vmem:[#allocation9 + $0x424] sm:$0xf]  ;;  %v11369_v34 = vld [vmem:[#allocation9 + $0x428] sm:$0xf0] }
 0x45e   : > { %7760 = vmatpush.bf16.msra.mxu0 %v11108_v51  ;;  %v12996_v51 = vld [vmem:[#allocation9 + $0x554] sm:$0xf]  ;;  %v12974_v41 = vld [vmem:[#allocation9 + $0x4a4] sm:$0xf]  ;;  %v11433_v38 = vld [vmem:[#allocation9 + $0x4a8] sm:$0xf0] }
 0x45f   : > { %7773 = vmatpush.bf16.msra.mxu1 %v11172_v24  ;;  %v11585_v24 = vld [vmem:[#allocation9 + $0x5d8] sm:$0xf0]  ;;  %v11524_v57 = vor.u32 %v12996_v51, %v11521_v19  ;;  %v12990_v39 = vld [vmem:[#allocation9 + $0x524] sm:$0xf]  ;;  %v11436_v11 = vor.u32 %v12974_v41, %v11433_v38  ;;  %v12956_v19 = vld [vmem:[#allocation9 + $0x414] sm:$0xf] }
 0x460   : > { %7786 = vmatpush.bf16.msra.mxu2 %v11236_v54  ;;  %v11396_v54 = vor.u32 %v12964_v46, %v11393_v4  ;;  %v11372_v4 = vor.u32 %v12958_v33, %v11369_v34  ;;  %v11500_v51 = vor.u32 %v12990_v39, %v11497_v40  ;;  %v11657_v38 = vld [vmem:[#allocation9 + $0x668] sm:$0xf0]  ;;  %v13046_v39 = vld [vmem:[#allocation9 + $0x6e4] sm:$0xf] }
 0x461   : > { %7799 = vmatpush.bf16.msra.mxu3 %v11300_v60  ;;  %v11588_v60 = vor.u32 %v13012_v53, %v11585_v24  ;;  %v11361_v53 = vld [vmem:[#allocation9 + $0x418] sm:$0xf0]  ;;  %v12972_v24 = vld [vmem:[#allocation9 + $0x494] sm:$0xf] }
 0x462   : > { %7761 = vmatpush.bf16.msra.mxu0 %v11100_v5  ;;  %v7555_v0 = vpop.f32.mrf.mxu0  ;;  %v11516_v5 = vor.u32 %v12994_v62, %v11513_v63  ;;  %v11353_v62 = vld [vmem:[#allocation9 + $0x408] sm:$0xf0] }
 0x463   : > { %7774 = vmatpush.bf16.msra.mxu1 %v11164_v14 }
 0x464   : > { %7787 = vmatpush.bf16.msra.mxu2 %v11228_v15 }
 0x465   : > { %7800 = vmatpush.bf16.msra.mxu3 %v11292_v22  ;;  %7762 = vmatmul.bf16.vlgmr.msra.gmra.mxu0 %v15215_v26  ;;  %v13010_v26 = vld [vmem:[#allocation9 + $0x5c4] sm:$0xf]  ;;  %v11505_v22 = vld [vmem:[#allocation9 + $0x538] sm:$0xf0] }
 0x466   : > { %7806 = vmatpush.bf16.msrb.mxu0 %v11412_v25  ;;  %7775 = vmatmul.bf16.vlgmr.msra.gmra.mxu1 %v15220_v29  ;;  %v7568_v29 = vpop.f32.mrf.mxu1  ;;  %v11580_v14 = vor.u32 %v13010_v26, %v11577_v1  ;;  %v13008_v25 = vld [vmem:[#allocation9 + $0x5b4] sm:$0xf]  ;;  %v12970_v26 = vld [vmem:[#allocation9 + $0x484] sm:$0xf]  ;;  %v11417_v1 = vld [vmem:[#allocation9 + $0x488] sm:$0xf0] }
 0x467   : > { %7819 = vmatpush.bf16.msrb.mxu1 %v11476_v32  ;;  %7788 = vmatmul.bf16.vlgmr.msra.gmra.mxu2 %v15213_v8  ;;  %v12978_v8 = vld [vmem:[#allocation9 + $0x4c4] sm:$0xf]  ;;  %v11380_v32 = vor.u32 %v12960_v7, %v11377_v9  ;;  %v13032_v9 = vld [vmem:[#allocation9 + $0x674] sm:$0xf] }
 0x468   : > { %7832 = vmatpush.bf16.msrb.mxu2 %v11540_v16  ;;  %7801 = vmatmul.bf16.vlgmr.msra.gmra.mxu3 %v15217_v28  ;;  %v7556_v28 = vadd.f32 %v7555_v0, %v15275_v50  ;;  %v11452_v3 = vor.u32 %v12978_v8, %v11449_v61  ;;  %v11444_v50 = vor.u32 %v12976_v10, %v11441_v20  ;;  %v11553_v8 = vld [vmem:[#allocation9 + $0x598] sm:$0xf0]  ;;  %v12954_v61 = vld [vmem:[#allocation9 + $0x404] sm:$0xf] }
 0x469   : > { %7845 = vmatpush.bf16.msrb.mxu3 %v11604_v36  ;;  %v11508_v16 = vor.u32 %v12992_v21, %v11505_v22  ;;  %v11572_v36 = vor.u32 %v13008_v25, %v11569_v31  ;;  %v11665_v10 = vld [vmem:[#allocation9 + $0x678] sm:$0xf0]  ;;  %v11356_v20 = vor.u32 %v12954_v61, %v11353_v62  ;;  %v13064_v22 = vld [vmem:[#allocation9 + $0x774] sm:$0xf]  ;;  %v11420_v31 = vor.u32 %v12970_v26, %v11417_v1  ;;  %v13026_v62 = vld [vmem:[#allocation9 + $0x644] sm:$0xf] }
 0x46a   : > { %7807 = vmatpush.bf16.msrb.mxu0 %v11404_v43  ;;  %v7569_v15 = vadd.f32 %v7568_v29, %v7556_v28  ;;  %v7581_v37 = vpop.f32.mrf.mxu2  ;;  %v7557_v46 = vpop.f32.mrf.mxu0  ;;  %v12986_v28 = vld [vmem:[#allocation9 + $0x504] sm:$0xf]  ;;  %v11481_v29 = vld [vmem:[#allocation9 + $0x508] sm:$0xf0]  ;;  %v11729_v21 = vld [vmem:[#allocation9 + $0x6f8] sm:$0xf0]  ;;  %v11668_v34 = vor.u32 %v13032_v9, %v11665_v10 }
 0x46b   : > { %7820 = vmatpush.bf16.msrb.mxu1 %v11468_v44  ;;  %v7594_v43 = vpop.f32.mrf.mxu3  ;;  %v13006_v44 = vld [vmem:[#allocation9 + $0x5a4] sm:$0xf]  ;;  %v11793_v25 = vld [vmem:[#allocation9 + $0x778] sm:$0xf0]  ;;  %v11849_v46 = vld [vmem:[#allocation9 + $0x7e8] sm:$0xf0] }
 0x46c   : > { %7833 = vmatpush.bf16.msrb.mxu2 %v11532_v45  ;;  %v7582_v42 = vadd.f32 %v7581_v37, %v7569_v15  ;;  %v11561_v45 = vld [vmem:[#allocation9 + $0x5a8] sm:$0xf0]  ;;  %v13030_v37 = vld [vmem:[#allocation9 + $0x664] sm:$0xf]  ;;  %v11633_v9 = vld [vmem:[#allocation9 + $0x638] sm:$0xf0] }
 0x46d   : > { %7846 = vmatpush.bf16.msrb.mxu3 %v11596_v49  ;;  %v11705_v26 = vld [vmem:[#allocation9 + $0x6c8] sm:$0xf0]  ;;  %v13058_v1 = vld [vmem:[#allocation9 + $0x744] sm:$0xf]  ;;  %v13040_v10 = vld [vmem:[#allocation9 + $0x6b4] sm:$0xf] }
 0x46e   : > { %7808 = vmatpush.bf16.msrb.mxu0 %v11396_v54  ;;  %v7570_v47 = vpop.f32.mrf.mxu1  ;;  %v15282_v49 = vadd.f32 %v7594_v43, %v7582_v42  ;;  %v11564_v54 = vor.u32 %v13006_v44, %v11561_v45  ;;  %v11721_v42 = vld [vmem:[#allocation9 + $0x6e8] sm:$0xf0]  ;;  %v13062_v43 = vld [vmem:[#allocation9 + $0x764] sm:$0xf] }
 0x46f   : > { %7821 = vmatpush.bf16.msrb.mxu1 %v11460_v56  ;;  %v11425_v56 = vld [vmem:[#allocation9 + $0x498] sm:$0xf0]  ;;  %v11785_v44 = vld [vmem:[#allocation9 + $0x768] sm:$0xf0]  ;;  %v13078_v45 = vld [vmem:[#allocation9 + $0x7e4] sm:$0xf]  ;;  %v11724_v47 = vor.u32 %v13046_v39, %v11721_v42 }
 0x470   : > { %7834 = vmatpush.bf16.msrb.mxu2 %v11524_v57  ;;  %v12988_v57 = vld [vmem:[#allocation9 + $0x514] sm:$0xf]  ;;  %v11428_v63 = vor.u32 %v12972_v24, %v11425_v56  ;;  %v11852_v24 = vor.u32 %v13078_v45, %v11849_v46  ;;  %v11753_v39 = vld [vmem:[#allocation9 + $0x728] sm:$0xf0]  ;;  %v13070_v42 = vld [vmem:[#allocation9 + $0x7a4] sm:$0xf] }
 0x471   : > { %7847 = vmatpush.bf16.msrb.mxu3 %v11588_v60  ;;  %v11364_v60 = vor.u32 %v12956_v19, %v11361_v53  ;;  %v11492_v0 = vor.u32 %v12988_v57, %v11489_v58  ;;  %v11649_v19 = vld [vmem:[#allocation9 + $0x658] sm:$0xf0]  ;;  %v13044_v53 = vld [vmem:[#allocation9 + $0x6d4] sm:$0xf] }
 0x472   : > { %7809 = vmatpush.bf16.msrb.mxu0 %v11388_v2  ;;  %v11556_v2 = vor.u32 %v13004_v59, %v11553_v8  ;;  %v7583_v7 = vpop.f32.mrf.mxu2  ;;  %v13060_v56 = vld [vmem:[#allocation9 + $0x754] sm:$0xf]  ;;  %v11777_v57 = vld [vmem:[#allocation9 + $0x758] sm:$0xf0] }
 0x473   : > { %7822 = vmatpush.bf16.msrb.mxu1 %v11452_v3  ;;  %v13002_v3 = vld [vmem:[#allocation9 + $0x584] sm:$0xf]  ;;  %v7596_v15 = vpop.f32.mrf.mxu3  ;;  %v13076_v58 = vld [vmem:[#allocation9 + $0x7d4] sm:$0xf]  ;;  %v11841_v59 = vld [vmem:[#allocation9 + $0x7d8] sm:$0xf0]  ;;  %v11780_v61 = vor.u32 %v13060_v56, %v11777_v57 }
 0x474   : > { %7835 = vmatpush.bf16.msrb.mxu2 %v11516_v5  ;;  %v11545_v5 = vld [vmem:[#allocation9 + $0x588] sm:$0xf0]  ;;  %v13024_v7 = vld [vmem:[#allocation9 + $0x634] sm:$0xf]  ;;  %v11697_v15 = vld [vmem:[#allocation9 + $0x6b8] sm:$0xf0] }
 0x475   : > { %7848 = vmatpush.bf16.msrb.mxu3 %v11580_v14  ;;  %v13048_v14 = vld [vmem:[#allocation9 + $0x6f4] sm:$0xf]  ;;  %v11548_v33 = vor.u32 %v13002_v3, %v11545_v5  ;;  %v11745_v56 = vld [vmem:[#allocation9 + $0x718] sm:$0xf0] }
 0x476   : > { %7810 = vmatpush.bf16.msrb.mxu0 %v11380_v32  ;;  %v11484_v32 = vor.u32 %v12986_v28, %v11481_v29  ;;  %v11732_v41 = vor.u32 %v13048_v14, %v11729_v21  ;;  %v11761_v21 = vld [vmem:[#allocation9 + $0x738] sm:$0xf0]  ;;  %v13068_v57 = vld [vmem:[#allocation9 + $0x794] sm:$0xf] }
 0x477   : > { %7823 = vmatpush.bf16.msrb.mxu1 %v11444_v50  ;;  %v13080_v50 = vld [vmem:[#allocation9 + $0x7f4] sm:$0xf] }
 0x478   : > { %7836 = vmatpush.bf16.msrb.mxu2 %v11508_v16  ;;  %v11857_v16 = vld [vmem:[#allocation9 + $0x7f8] sm:$0xf0] }
 0x479   : > { %7849 = vmatpush.bf16.msrb.mxu3 %v11572_v36  ;;  %v11796_v36 = vor.u32 %v13064_v22, %v11793_v25  ;;  %v11860_v40 = vor.u32 %v13080_v50, %v11857_v16  ;;  %v13072_v22 = vld [vmem:[#allocation9 + $0x7b4] sm:$0xf]  ;;  %v11825_v25 = vld [vmem:[#allocation9 + $0x7b8] sm:$0xf0]  ;;  %v13022_v16 = vld [vmem:[#allocation9 + $0x624] sm:$0xf] }
 0x47a   : > { %7811 = vmatpush.bf16.msrb.mxu0 %v11372_v4  ;;  %v11660_v4 = vor.u32 %v13030_v37, %v11657_v38  ;;  %v11689_v37 = vld [vmem:[#allocation9 + $0x6a8] sm:$0xf0]  ;;  %v13054_v38 = vld [vmem:[#allocation9 + $0x724] sm:$0xf] }
 0x47b   : > { %7824 = vmatpush.bf16.msrb.mxu1 %v11436_v11  ;;  %v11788_v11 = vor.u32 %v13062_v43, %v11785_v44  ;;  %v11817_v43 = vld [vmem:[#allocation9 + $0x7a8] sm:$0xf0] }
 0x47c   : > { %7837 = vmatpush.bf16.msrb.mxu2 %v11500_v51  ;;  %v13028_v51 = vld [vmem:[#allocation9 + $0x654] sm:$0xf] }
 0x47d   : > { %7850 = vmatpush.bf16.msrb.mxu3 %v11564_v54  ;;  %v11713_v54 = vld [vmem:[#allocation9 + $0x6d8] sm:$0xf0]  ;;  %v11652_v8 = vor.u32 %v13028_v51, %v11649_v19  ;;  %v13036_v19 = vld [vmem:[#allocation9 + $0x694] sm:$0xf] }
 0x47e   : > { %7812 = vmatpush.bf16.msrb.mxu0 %v11364_v60  ;;  %v11716_v60 = vor.u32 %v13044_v53, %v11713_v54  ;;  %v11617_v51 = vld [vmem:[#allocation9 + $0x618] sm:$0xf0]  ;;  %v11820_v53 = vor.u32 %v13070_v42, %v11817_v43  ;;  %v13052_v54 = vld [vmem:[#allocation9 + $0x714] sm:$0xf]  ;;  %v12041_v42 = vld [vmem:[#allocation9 + $0x968] sm:$0xf0] }
 0x47f   : > { %7825 = vmatpush.bf16.msrb.mxu1 %v11428_v63  ;;  %v13042_v63 = vld [vmem:[#allocation9 + $0x6c4] sm:$0xf] }
 0x480   : > { %7838 = vmatpush.bf16.msrb.mxu2 %v11492_v0  ;;  %v11844_v0 = vor.u32 %v13076_v58, %v11841_v59  ;;  %v11708_v3 = vor.u32 %v13042_v63, %v11705_v26  ;;  %v11809_v58 = vld [vmem:[#allocation9 + $0x798] sm:$0xf0]  ;;  %v11673_v63 = vld [vmem:[#allocation9 + $0x688] sm:$0xf0]  ;;  %v13142_v43 = vld [vmem:[#allocation9 + $0x9e4] sm:$0xf] }
 0x481   : > { %7851 = vmatpush.bf16.msrb.mxu3 %v11556_v2  ;;  %v11833_v2 = vld [vmem:[#allocation9 + $0x7c8] sm:$0xf0]  ;;  %v11812_v26 = vor.u32 %v13068_v57, %v11809_v58  ;;  %v12097_v57 = vld [vmem:[#allocation9 + $0x9d8] sm:$0xf0] }
 0x482   : > { %7813 = vmatpush.bf16.msrb.mxu0 %v11356_v20  ;;  %v15288_v28 = vpop.f32.mrf.mxu0  ;;  %v13056_v20 = vld [vmem:[#allocation9 + $0x734] sm:$0xf] }
 0x483   : > { %7826 = vmatpush.bf16.msrb.mxu1 %v11420_v31  ;;  %v15290_v29 = vpop.f32.mrf.mxu1  ;;  %v11636_v31 = vor.u32 %v13024_v7, %v11633_v9  ;;  %v11764_v50 = vor.u32 %v13056_v20, %v11761_v21 }
 0x484   : > { %7839 = vmatpush.bf16.msrb.mxu2 %v11484_v32  ;;  %v11700_v32 = vor.u32 %v13040_v10, %v11697_v15  ;;  %v11985_v10 = vld [vmem:[#allocation9 + $0x8f8] sm:$0xf0] }
 0x485   : > { %7852 = vmatpush.bf16.msrb.mxu3 %v11548_v33  ;;  %7814 = vmatmul.bf16.vlgmr.msrb.gmra.mxu0 %v15231_v6  ;;  %v11641_v6 = vld [vmem:[#allocation9 + $0x648] sm:$0xf0]  ;;  %v12049_v15 = vld [vmem:[#allocation9 + $0x978] sm:$0xf0] }
 0x486   : > { %7858 = vmatpush.bf16.msra.mxu0 %v11668_v34  ;;  %7827 = vmatmul.bf16.vlgmr.msrb.gmra.mxu1 %v15235_v13  ;;  %v13074_v13 = vld [vmem:[#allocation9 + $0x7c4] sm:$0xf]  ;;  %v11625_v33 = vld [vmem:[#allocation9 + $0x628] sm:$0xf0] }
 0x487   : > { %7871 = vmatpush.bf16.msra.mxu1 %v11732_v41  ;;  %7840 = vmatmul.bf16.vlgmr.msrb.gmra.mxu2 %v15233_v12  ;;  %v11769_v12 = vld [vmem:[#allocation9 + $0x748] sm:$0xf0]  ;;  %v11836_v14 = vor.u32 %v13074_v13, %v11833_v2  ;;  %v13038_v34 = vld [vmem:[#allocation9 + $0x6a4] sm:$0xf]  ;;  %v11828_v41 = vor.u32 %v13072_v22, %v11825_v25  ;;  %v11628_v45 = vor.u32 %v13022_v16, %v11625_v33  ;;  %v13144_v22 = vld [vmem:[#allocation9 + $0x9f4] sm:$0xf] }
 0x488   : > { %7884 = vmatpush.bf16.msra.mxu2 %v11796_v36  ;;  %7853 = vmatmul.bf16.vlgmr.msrb.gmra.mxu3 %v15237_v18  ;;  %v11644_v18 = vor.u32 %v13026_v62, %v11641_v6  ;;  %v11772_v5 = vor.u32 %v13058_v1, %v11769_v12  ;;  %v11748_v62 = vor.u32 %v13052_v54, %v11745_v56  ;;  %v13034_v6 = vld [vmem:[#allocation9 + $0x684] sm:$0xf]  ;;  %v11737_v1 = vld [vmem:[#allocation9 + $0x708] sm:$0xf0]  ;;  %v12113_v25 = vld [vmem:[#allocation9 + $0x9f8] sm:$0xf0] }
 0x489   : > { %7897 = vmatpush.bf16.msra.mxu3 %v11860_v40  ;;  %v13066_v12 = vld [vmem:[#allocation9 + $0x784] sm:$0xf]  ;;  %v11801_v13 = vld [vmem:[#allocation9 + $0x788] sm:$0xf0]  ;;  %v11676_v20 = vor.u32 %v13034_v6, %v11673_v63  ;;  %v12033_v54 = vld [vmem:[#allocation9 + $0x958] sm:$0xf0] }
 0x48a   : > { %7859 = vmatpush.bf16.msra.mxu0 %v11660_v4  ;;  %v15292_v36 = vpop.f32.mrf.mxu2  ;;  %v7609_v44 = vpop.f32.mrf.mxu0  ;;  %v11692_v4 = vor.u32 %v13038_v34, %v11689_v37  ;;  %v13094_v33 = vld [vmem:[#allocation9 + $0x864] sm:$0xf]  ;;  %v11913_v34 = vld [vmem:[#allocation9 + $0x868] sm:$0xf0]  ;;  %v12116_v37 = vor.u32 %v13144_v22, %v12113_v25  ;;  %v13140_v56 = vld [vmem:[#allocation9 + $0x9d4] sm:$0xf] }
 0x48b   : > { %7872 = vmatpush.bf16.msra.mxu1 %v11724_v47  ;;  %v15294_v40 = vpop.f32.mrf.mxu3  ;;  %v7622_v46 = vpop.f32.mrf.mxu1  ;;  %v11756_v47 = vor.u32 %v13054_v38, %v11753_v39  ;;  %v11977_v38 = vld [vmem:[#allocation9 + $0x8e8] sm:$0xf0]  ;;  %v13126_v39 = vld [vmem:[#allocation9 + $0x964] sm:$0xf] }
 0x48c   : > { %7885 = vmatpush.bf16.msra.mxu2 %v11788_v11  ;;  %v13020_v11 = vld [vmem:[#allocation9 + $0x614] sm:$0xf]  ;;  %v12105_v44 = vld [vmem:[#allocation9 + $0x9e8] sm:$0xf0]  ;;  %v13122_v63 = vld [vmem:[#allocation9 + $0x944] sm:$0xf] }
 0x48d   : > { %7898 = vmatpush.bf16.msra.mxu3 %v11852_v24  ;;  %v11681_v24 = vld [vmem:[#allocation9 + $0x698] sm:$0xf0]  ;;  %v11620_v59 = vor.u32 %v13020_v11, %v11617_v51  ;;  %v13108_v51 = vld [vmem:[#allocation9 + $0x8d4] sm:$0xf]  ;;  %v11961_v6 = vld [vmem:[#allocation9 + $0x8c8] sm:$0xf0] }
 0x48e   : > { %7860 = vmatpush.bf16.msra.mxu0 %v11652_v8  ;;  %v13018_v8 = vld [vmem:[#allocation9 + $0x604] sm:$0xf]  ;;  %v11905_v11 = vld [vmem:[#allocation9 + $0x858] sm:$0xf0] }
 0x48f   : > { %7873 = vmatpush.bf16.msra.mxu1 %v11716_v60  ;;  %v11609_v60 = vld [vmem:[#allocation9 + $0x608] sm:$0xf0]  ;;  %v13086_v25 = vld [vmem:[#allocation9 + $0x824] sm:$0xf] }
 0x490   : > { %7886 = vmatpush.bf16.msra.mxu2 %v11780_v61  ;;  %v11684_v61 = vor.u32 %v13036_v19, %v11681_v24  ;;  %v11612_v9 = vor.u32 %v13018_v8, %v11609_v60  ;;  %v12108_v19 = vor.u32 %v13142_v43, %v12105_v44  ;;  %v13124_v24 = vld [vmem:[#allocation9 + $0x954] sm:$0xf]  ;;  %v13090_v60 = vld [vmem:[#allocation9 + $0x844] sm:$0xf] }
 0x491   : > { %7899 = vmatpush.bf16.msra.mxu3 %v11844_v0  ;;  %v13050_v0 = vld [vmem:[#allocation9 + $0x704] sm:$0xf]  ;;  %v12036_v8 = vor.u32 %v13124_v24, %v12033_v54  ;;  %v12001_v24 = vld [vmem:[#allocation9 + $0x918] sm:$0xf0]  ;;  %v13132_v54 = vld [vmem:[#allocation9 + $0x994] sm:$0xf] }
 0x492   : > { %7861 = vmatpush.bf16.msra.mxu0 %v11644_v18  ;;  %v7635_v2 = vpop.f32.mrf.mxu2  ;;  %v13096_v18 = vld [vmem:[#allocation9 + $0x874] sm:$0xf]  ;;  %v11740_v21 = vor.u32 %v13050_v0, %v11737_v1 }
 0x493   : > { %7874 = vmatpush.bf16.msra.mxu1 %v11708_v3  ;;  %v11921_v3 = vld [vmem:[#allocation9 + $0x878] sm:$0xf0]  ;;  %v7648_v7 = vpop.f32.mrf.mxu3  ;;  %v13088_v2 = vld [vmem:[#allocation9 + $0x834] sm:$0xf] }
 0x494   : > { %7887 = vmatpush.bf16.msra.mxu2 %v11772_v5  ;;  %v13112_v5 = vld [vmem:[#allocation9 + $0x8f4] sm:$0xf]  ;;  %v11953_v7 = vld [vmem:[#allocation9 + $0x8b8] sm:$0xf0] }
 0x495   : > { %7900 = vmatpush.bf16.msra.mxu3 %v11836_v14  ;;  %v13128_v14 = vld [vmem:[#allocation9 + $0x974] sm:$0xf] }
 0x496   : > { %7862 = vmatpush.bf16.msra.mxu0 %v11636_v31  ;;  %v11804_v31 = vor.u32 %v13066_v12, %v11801_v13  ;;  %v12052_v16 = vor.u32 %v13128_v14, %v12049_v15  ;;  %v13136_v14 = vld [vmem:[#allocation9 + $0x9b4] sm:$0xf]  ;;  %v12081_v15 = vld [vmem:[#allocation9 + $0x9b8] sm:$0xf0] }
 0x497   : > { %7875 = vmatpush.bf16.msra.mxu1 %v11700_v32  ;;  %v11924_v32 = vor.u32 %v13096_v18, %v11921_v3  ;;  %v11889_v18 = vld [vmem:[#allocation9 + $0x838] sm:$0xf0]  ;;  %v13104_v3 = vld [vmem:[#allocation9 + $0x8b4] sm:$0xf] }
 0x498   : > { %7888 = vmatpush.bf16.msra.mxu2 %v11764_v50  ;;  %v11988_v50 = vor.u32 %v13112_v5, %v11985_v10  ;;  %v12017_v10 = vld [vmem:[#allocation9 + $0x938] sm:$0xf0] }
 0x499   : > { %7901 = vmatpush.bf16.msra.mxu3 %v11828_v41  ;;  %v13110_v41 = vld [vmem:[#allocation9 + $0x8e4] sm:$0xf] }
 0x49a   : > { %7863 = vmatpush.bf16.msra.mxu0 %v11628_v45  ;;  %v11916_v45 = vor.u32 %v13094_v33, %v11913_v34  ;;  %v11980_v46 = vor.u32 %v13110_v41, %v11977_v38  ;;  %v11945_v33 = vld [vmem:[#allocation9 + $0x8a8] sm:$0xf0]  ;;  %v13118_v34 = vld [vmem:[#allocation9 + $0x924] sm:$0xf] }
 0x49b   : > { %7876 = vmatpush.bf16.msra.mxu1 %v11692_v4  ;;  %v12044_v4 = vor.u32 %v13126_v39, %v12041_v42  ;;  %v12009_v41 = vld [vmem:[#allocation9 + $0x928] sm:$0xf0]  ;;  %v13134_v38 = vld [vmem:[#allocation9 + $0x9a4] sm:$0xf] }
 0x49c   : > { %7889 = vmatpush.bf16.msra.mxu2 %v11756_v47  ;;  %v13092_v47 = vld [vmem:[#allocation9 + $0x854] sm:$0xf]  ;;  %v12073_v39 = vld [vmem:[#allocation9 + $0x9a8] sm:$0xf0] }
 0x49d   : > { %7902 = vmatpush.bf16.msra.mxu3 %v11820_v53  ;;  %v11969_v53 = vld [vmem:[#allocation9 + $0x8d8] sm:$0xf0]  ;;  %v11908_v58 = vor.u32 %v13092_v47, %v11905_v11  ;;  %v13100_v11 = vld [vmem:[#allocation9 + $0x894] sm:$0xf] }
 0x49e   : > { %7864 = vmatpush.bf16.msra.mxu0 %v11620_v59  ;;  %v11972_v59 = vor.u32 %v13108_v51, %v11969_v53  ;;  %v11873_v47 = vld [vmem:[#allocation9 + $0x818] sm:$0xf0]  ;;  %v12076_v51 = vor.u32 %v13134_v38, %v12073_v39  ;;  %v13116_v53 = vld [vmem:[#allocation9 + $0x914] sm:$0xf]  ;;  %v13146_v39 = vld [vmem:[#allocation12] sm:$0xff] }
 0x49f   : > { %7877 = vmatpush.bf16.msra.mxu1 %v11684_v61  ;;  %v13106_v61 = vld [vmem:[#allocation9 + $0x8c4] sm:$0xf] }
 0x4a0   : > { %7890 = vmatpush.bf16.msra.mxu2 %v11748_v62  ;;  %v12100_v62 = vor.u32 %v13140_v56, %v12097_v57  ;;  %v11964_v12 = vor.u32 %v13106_v61, %v11961_v6  ;;  %v12065_v56 = vld [vmem:[#allocation9 + $0x998] sm:$0xf0]  ;;  %v13114_v6 = vld [vmem:[#allocation9 + $0x904] sm:$0xf] }
 0x4a1   : > { %7903 = vmatpush.bf16.msra.mxu3 %v11812_v26  ;;  %v12089_v26 = vld [vmem:[#allocation9 + $0x9c8] sm:$0xf0]  ;;  %v12068_v61 = vor.u32 %v13132_v54, %v12065_v56 }
 0x4a2   : > { %7865 = vmatpush.bf16.msra.mxu0 %v11612_v9  ;;  %v15300_v0 = vpop.f32.mrf.mxu0  ;;  %v13120_v9 = vld [vmem:[#allocation9 + $0x934] sm:$0xf] }
 0x4a3   : > { %7878 = vmatpush.bf16.msra.mxu1 %v11676_v20  ;;  %v15302_v1 = vpop.f32.mrf.mxu1  ;;  %v11892_v20 = vor.u32 %v13088_v2, %v11889_v18  ;;  %v12020_v22 = vor.u32 %v13120_v9, %v12017_v10  ;;  %v13152_v10 = vld [vmem:[#allocation12 + $0x30] sm:$0xff] }
 0x4a4   : > { %7891 = vmatpush.bf16.msra.mxu2 %v11740_v21  ;;  %v11956_v21 = vor.u32 %v13104_v3, %v11953_v7 }
 0x4a5   : > { %7904 = vmatpush.bf16.msra.mxu3 %v11804_v31  ;;  %7866 = vmatmul.bf16.vlgmr.msra.gmra.mxu0 %v15247_v27  ;;  %v11897_v27 = vld [vmem:[#allocation9 + $0x848] sm:$0xf0] }
 0x4a6   : > { %7910 = vmatpush.bf16.msrb.mxu0 %v11924_v32  ;;  %7879 = vmatmul.bf16.vlgmr.msra.gmra.mxu1 %v15251_v17  ;;  %v13138_v17 = vld [vmem:[#allocation9 + $0x9c4] sm:$0xf]  ;;  %v11881_v31 = vld [vmem:[#allocation9 + $0x828] sm:$0xf0] }
 0x4a7   : > { %7923 = vmatpush.bf16.msrb.mxu1 %v11988_v50  ;;  %7892 = vmatmul.bf16.vlgmr.msra.gmra.mxu2 %v15249_v30  ;;  %v12025_v30 = vld [vmem:[#allocation9 + $0x948] sm:$0xf0]  ;;  %v12092_v5 = vor.u32 %v13138_v17, %v12089_v26  ;;  %v13102_v32 = vld [vmem:[#allocation9 + $0x8a4] sm:$0xf]  ;;  %v12084_v50 = vor.u32 %v13136_v14, %v12081_v15  ;;  %v11884_v43 = vor.u32 %v13086_v25, %v11881_v31 }
 0x4a8   : > { %7936 = vmatpush.bf16.msrb.mxu2 %v12052_v16  ;;  %7905 = vmatmul.bf16.vlgmr.msra.gmra.mxu3 %v15253_v35  ;;  %v11900_v35 = vor.u32 %v13090_v60, %v11897_v27  ;;  %v12028_v13 = vor.u32 %v13122_v63, %v12025_v30  ;;  %v11865_v60 = vld [vmem:[#allocation9 + $0x808] sm:$0xf0]  ;;  %v13098_v27 = vld [vmem:[#allocation9 + $0x884] sm:$0xf] }
 0x4a9   : > { %7949 = vmatpush.bf16.msrb.mxu3 %v12116_v37  ;;  %v11993_v63 = vld [vmem:[#allocation9 + $0x908] sm:$0xf0]  ;;  %v13130_v17 = vld [vmem:[#allocation9 + $0x984] sm:$0xf] }
 0x4aa   : > { %7911 = vmatpush.bf16.msrb.mxu0 %v11916_v45  ;;  %v15304_v16 = vpop.f32.mrf.mxu2  ;;  %v7661_v42 = vpop.f32.mrf.mxu0  ;;  %v11948_v45 = vor.u32 %v13102_v32, %v11945_v33  ;;  %v12057_v26 = vld [vmem:[#allocation9 + $0x988] sm:$0xf0]  ;;  %v11996_v18 = vor.u32 %v13114_v6, %v11993_v63  ;;  %v13158_v63 = vld [vmem:[#allocation12 + $0x60] sm:$0xff] }
 0x4ab   : > { %7924 = vmatpush.bf16.msrb.mxu1 %v11980_v46  ;;  %v15306_v37 = vpop.f32.mrf.mxu3  ;;  %v7674_v44 = vpop.f32.mrf.mxu1  ;;  %v12012_v46 = vor.u32 %v13118_v34, %v12009_v41  ;;  %v12060_v3 = vor.u32 %v13130_v17, %v12057_v26  ;;  %v13147_v41 = vld [vmem:[#allocation12 + $0x8] sm:$0xff]  ;;  %v13157_v17 = vld [vmem:[#allocation12 + $0x58] sm:$0xff] }
 0x4ac   : > { %7937 = vmatpush.bf16.msrb.mxu2 %v12044_v4  ;;  %v13084_v4 = vld [vmem:[#allocation9 + $0x814] sm:$0xf]  ;;  %v13159_v6 = vld [vmem:[#allocation12 + $0x68] sm:$0xff] }
 0x4ad   : > { %7950 = vmatpush.bf16.msrb.mxu3 %v12108_v19  ;;  %v11937_v19 = vld [vmem:[#allocation9 + $0x898] sm:$0xf0]  ;;  %v11876_v57 = vor.u32 %v13084_v4, %v11873_v47 }
 0x4ae   : > { %7912 = vmatpush.bf16.msrb.mxu0 %v11908_v58  ;;  %v11940_v58 = vor.u32 %v13100_v11, %v11937_v19 }
 0x4af   : > { %7925 = vmatpush.bf16.msrb.mxu1 %v11972_v59  ;;  %v12004_v59 = vor.u32 %v13116_v53, %v12001_v24 }
 0x4b0   : > { %7938 = vmatpush.bf16.msrb.mxu2 %v12036_v8  ;;  %v13082_v8 = vld [vmem:[#allocation9 + $0x804] sm:$0xf] }
 0x4b1   : > { %7951 = vmatpush.bf16.msrb.mxu3 %v12100_v62  ;;  %v11929_v62 = vld [vmem:[#allocation9 + $0x888] sm:$0xf0] }
 0x4b2   : > { %7913 = vmatpush.bf16.msrb.mxu0 %v11900_v35  ;;  %v7687_v30 = vpop.f32.mrf.mxu2  ;;  %v11932_v2 = vor.u32 %v13098_v27, %v11929_v62  ;;  %v13160_v27 = vld [vmem:[#allocation12 + $0x70] sm:$0xff] }
 0x4b3   : > { %7926 = vmatpush.bf16.msrb.mxu1 %v11964_v12  ;;  %v7700_v35 = vpop.f32.mrf.mxu3  ;;  %v7608_v12 = vadd.f32 %v15288_v28, %v15282_v49  ;;  %v13151_v28 = vld [vmem:[#allocation12 + $0x28] sm:$0xff] }
 0x4b4   : > { %7939 = vmatpush.bf16.msrb.mxu2 %v12028_v13  ;;  %v11868_v13 = vor.u32 %v13082_v8, %v11865_v60  ;;  %v13161_v8 = vld [vmem:[#allocation12 + $0x78] sm:$0xff]  ;;  %v13156_v35 = vld [vmem:[#allocation12 + $0x50] sm:$0xff] }
 0x4b5   : > { %7952 = vmatpush.bf16.msrb.mxu3 %v12092_v5  ;;  %v13153_v5 = vld [vmem:[#allocation12 + $0x38] sm:$0xff]  ;;  %v7621_v7 = vadd.f32 %v15290_v29, %v7608_v12 }
 0x4b6   : > { %7914 = vmatpush.bf16.msrb.mxu0 %v11892_v20  ;;  %v13319_v29 = vld [vmem:[#allocation11] sm:$0x3] }
 0x4b7   : > { %7927 = vmatpush.bf16.msrb.mxu1 %v11956_v21  ;;  %v7634_v9 = vadd.f32 %v15292_v36, %v7621_v7  ;;  %v5839_v14 = vperm.slane %v13319_v29, 1  ;;  %v13150_v36 = vld [vmem:[#allocation12 + $0x20] sm:$0xff] }
 0x4b8   : > { %7940 = vmatpush.bf16.msrb.mxu2 %v12020_v22 }
 0x4b9   : > { %7953 = vmatpush.bf16.msrb.mxu3 %v12084_v50  ;;  %v7647_v49 = vadd.f32 %v15294_v40, %v7634_v9  ;;  %v13148_v50 = vld [vmem:[#allocation12 + $0x10] sm:$0xff] }
 0x4ba   : > { %7915 = vmatpush.bf16.msrb.mxu0 %v11884_v43 }
 0x4bb   : > { %7928 = vmatpush.bf16.msrb.mxu1 %v11948_v45  ;;  %v7660_v15 = vadd.f32 %v15300_v0, %v7647_v49 }
 0x4bc   : > { %7941 = vmatpush.bf16.msrb.mxu2 %v12012_v46 }
 0x4bd   : > { %7954 = vmatpush.bf16.msrb.mxu3 %v12076_v51 }
 0x4be   : > { %7916 = vmatpush.bf16.msrb.mxu0 %v11876_v57 }
 0x4bf   : > { %7929 = vmatpush.bf16.msrb.mxu1 %v11940_v58 }
 0x4c0   : > { %7942 = vmatpush.bf16.msrb.mxu2 %v12004_v59 }
 0x4c1   : > { %7955 = vmatpush.bf16.msrb.mxu3 %v12068_v61 }
 0x4c2   : > { %7917 = vmatpush.bf16.msrb.mxu0 %v11868_v13  ;;  %v7711_v20 = vpop.f32.mrf.mxu0 }
 0x4c3   : > { %7930 = vmatpush.bf16.msrb.mxu1 %v11932_v2  ;;  %v7712_v21 = vadd.f32 %v7711_v20, %v5839_v14  ;;  %v7724_v22 = vpop.f32.mrf.mxu1 }
 0x4c4   : > { %7943 = vmatpush.bf16.msrb.mxu2 %v11996_v18 }
 0x4c5   : > { %7956 = vmatpush.bf16.msrb.mxu3 %v12060_v3  ;;  %7918 = vmatmul.bf16.vlgmr.msrb.gmra.mxu0 %v15259_v48  ;;  %v7673_v48 = vadd.f32 %v15302_v1, %v7660_v15 }
 0x4c6   : > { %8098 = vmatpush.bf16.msra.mxu0 %v13153_v5  ;;  %7931 = vmatmul.bf16.vlgmr.msrb.gmra.mxu1 %v15263_v52  ;;  %v7725_v52 = vadd.f32 %v7724_v22, %v7712_v21  ;;  %v13155_v5 = vld [vmem:[#allocation12 + $0x48] sm:$0xff] }
 0x4c7   : > { %7944 = vmatmul.bf16.vlgmr.msrb.gmra.mxu2 %v15261_v23  ;;  %v7686_v23 = vadd.f32 %v15304_v16, %v7673_v48  ;;  %8111 = vmatpush.bf16.msra.mxu1 %v13161_v8 }
 0x4c8   : > { %7957 = vmatmul.bf16.vlgmr.msrb.gmra.mxu3 %v15265_v55  ;;  %v13149_v55 = vld [vmem:[#allocation12 + $0x18] sm:$0xff] }
 0x4c9   : > { %v7699_v32 = vadd.f32 %v15306_v37, %v7686_v23 }
 0x4ca   : > { %8099 = vmatpush.bf16.msra.mxu0 %v13152_v10  ;;  %v7737_v25 = vpop.f32.mrf.mxu2  ;;  %v7713_v33 = vpop.f32.mrf.mxu0  ;;  %v13154_v10 = vld [vmem:[#allocation12 + $0x40] sm:$0xff] }
 0x4cb   : > { %v7738_v40 = vadd.f32 %v7737_v25, %v7725_v52  ;;  %v7750_v31 = vpop.f32.mrf.mxu3  ;;  %v7726_v34 = vpop.f32.mrf.mxu1  ;;  %13315 = vtanh.f32 %v7699_v32  ;;  %8112 = vmatpush.bf16.msra.mxu1 %v13160_v27 }
 0x4cd   : > { %v7751_v0 = vadd.f32 %v7750_v31, %v7738_v40 }
 0x4ce   : > { %8100 = vmatpush.bf16.msra.mxu0 %v13151_v28 }
 0x4cf   : > { %8113 = vmatpush.bf16.msra.mxu1 %v13159_v6 }
 0x4d1   : > { %v13316_v16 = vpop.eup %13315 }
 0x4d2   : > { %8101 = vmatpush.bf16.msra.mxu0 %v13150_v36  ;;  %v7739_v38 = vpop.f32.mrf.mxu2  ;;  %v7964_v42 = vpack.c.bf16 %v13316_v16, %v13316_v16 }
 0x4d3   : > { %v7752_v1 = vpop.f32.mrf.mxu3  ;;  %8114 = vmatpush.bf16.msra.mxu1 %v13158_v63 }
 0x4d4   : > { %v13274_v1 = vld [vmem:[#allocation14] ss:$0 sm:$0xff] }
 0x4d6   : > { %8102 = vmatpush.bf16.msra.mxu0 %v13149_v55 }
 0x4d7   : > { %8115 = vmatpush.bf16.msra.mxu1 %v13157_v17 }
 0x4da   : > { %8103 = vmatpush.bf16.msra.mxu0 %v13148_v50 }
 0x4db   : > { %8116 = vmatpush.bf16.msra.mxu1 %v13156_v35 }
 0x4de   : > { %8104 = vmatpush.bf16.msra.mxu0 %v13147_v41 }
 0x4df   : > { %8117 = vmatpush.bf16.msra.mxu1 %v13155_v5 }
 0x4e2   : > { %8105 = vmatpush.bf16.msra.mxu0 %v13146_v39  ;;  %v7763_v43 = vpop.f32.mrf.mxu0 }
 0x4e3   : > { %v7764_v44 = vadd.f32 %v7763_v43, %v7751_v0  ;;  %v7776_v45 = vpop.f32.mrf.mxu1  ;;  %8118 = vmatpush.bf16.msra.mxu1 %v13154_v10 }
 0x4e5   : > { %8106 = vmatmul.bf16.vlgmr.msra.gmra.mxu0 %v7964_v42  ;;  %v7777_v37 = vadd.f32 %v7776_v45, %v7764_v44 }
 0x4ea   : > { %v7789_v46 = vpop.f32.mrf.mxu2  ;;  %v7765_v51 = vpop.f32.mrf.mxu0 }
 0x4eb   : > { %v7790_v4 = vadd.f32 %v7789_v46, %v7777_v37  ;;  %v7802_v47 = vpop.f32.mrf.mxu3  ;;  %v7778_v19 = vpop.f32.mrf.mxu1 }
 0x4ed   : > { %v7803_v11 = vadd.f32 %v7802_v47, %v7790_v4 }
 0x4f2   : > { %v7791_v53 = vpop.f32.mrf.mxu2 }
 0x4f3   : > { %v7804_v24 = vpop.f32.mrf.mxu3 }
 0x502   : > { %v7815_v54 = vpop.f32.mrf.mxu0 }
 0x503   : > { %v7828_v56 = vpop.f32.mrf.mxu1  ;;  %v7816_v12 = vadd.f32 %v7815_v54, %v7803_v11 }
 0x505   : > { %v7829_v7 = vadd.f32 %v7828_v56, %v7816_v12 }
 0x50a   : > { %v7841_v57 = vpop.f32.mrf.mxu2  ;;  %v7817_v59 = vpop.f32.mrf.mxu0 }
 0x50b   : > { %v7854_v58 = vpop.f32.mrf.mxu3  ;;  %v7830_v60 = vpop.f32.mrf.mxu1  ;;  %v7842_v9 = vadd.f32 %v7841_v57, %v7829_v7 }
 0x50d   : > { %v7855_v29 = vadd.f32 %v7854_v58, %v7842_v9 }
 0x512   : > { %v7843_v61 = vpop.f32.mrf.mxu2 }
 0x513   : > { %v7856_v62 = vpop.f32.mrf.mxu3 }
 0x522   : > { %v7867_v30 = vpop.f32.mrf.mxu0 }
 0x523   : > { %v7880_v26 = vpop.f32.mrf.mxu1  ;;  %v7868_v14 = vadd.f32 %v7867_v30, %v7855_v29 }
 0x525   : > { %v7881_v15 = vadd.f32 %v7880_v26, %v7868_v14 }
 0x52a   : > { %v7893_v13 = vpop.f32.mrf.mxu2  ;;  %v7869_v18 = vpop.f32.mrf.mxu0 }
 0x52b   : > { %v7906_v2 = vpop.f32.mrf.mxu3  ;;  %v7882_v3 = vpop.f32.mrf.mxu1  ;;  %v7894_v36 = vadd.f32 %v7893_v13, %v7881_v15 }
 0x52d   : > { %v7907_v20 = vadd.f32 %v7906_v2, %v7894_v36 }
 0x532   : > { %v7895_v49 = vpop.f32.mrf.mxu2 }
 0x533   : > { %v7908_v28 = vpop.f32.mrf.mxu3 }
 0x542   : > { %v7919_v21 = vpop.f32.mrf.mxu0 }
 0x543   : > { %v7932_v22 = vpop.f32.mrf.mxu1  ;;  %v7920_v48 = vadd.f32 %v7919_v21, %v7907_v20 }
 0x545   : > { %v7933_v52 = vadd.f32 %v7932_v22, %v7920_v48 }
 0x54a   : > { %v7945_v23 = vpop.f32.mrf.mxu2  ;;  %v7921_v40 = vpop.f32.mrf.mxu0 }
 0x54b   : > { %v7946_v55 = vadd.f32 %v7945_v23, %v7933_v52  ;;  %v7958_v25 = vpop.f32.mrf.mxu3  ;;  %v7934_v31 = vpop.f32.mrf.mxu1 }
 0x54d   : > { %v7959_v32 = vadd.f32 %v7958_v25, %v7946_v55 }
 0x54f   : > { %13317 = vtanh.f32 %v7959_v32 }
 0x552   : > { %v7947_v50 = vpop.f32.mrf.mxu2 }
 0x553   : > { %v7960_v0 = vpop.f32.mrf.mxu3 }
 0x555   : > { %v13318_v33 = vpop.eup %13317 }
 0x556   : > { %v7965_v34 = vpack.c.bf16 %v13318_v33, %v13318_v33 }
 0x558   : > { %8119 = vmatmul.bf16.vlgmr.msra.gmra.mxu1 %v7965_v34 }
 0x562   : > { %v8107_v41 = vpop.f32.mrf.mxu0 }
 0x563   : > { %v8108_v39 = vadd.f32 %v13274_v1, %v8107_v41 }
 0x56a   : > { %v8109_v38 = vpop.f32.mrf.mxu0 }
 0x5d5   : > { %v8120_v16 = vpop.f32.mrf.mxu1 }
 0x5d6   : > { %v8121_v42 = vadd.f32 %v8120_v16, %v8108_v39 }
 0x5d8   : > { %8124 = vst [vmem:[#allocation15] sm:$0xff] %v8121_v42 }
 0x5dd   : > { %v8122_v43 = vpop.f32.mrf.mxu1 }
 0x5de PF: > { %p13227_p3 = scmp.eq.s32.totalorder %s13691_s8, 1  ;;  %s13626_s9 = smov [#allocation15]  }
 0x5df   : > { %s8131_s29 = sshll.u32 %s13626_s9, 4  ;;  %s8133_s23 = sshll.u32 %s15345_s7, 4  ;;  %s8132_s29 = int_to_ptr.vmem [resolvable:$true] %s8131_s29  ;;  %s8134_s23 = int_to_ptr.hbm [resolvable:$true] %s8133_s23 }
 0x5e0   : > { %13190 = dma.vmem_to_hbm [thread:$0]  (%p13227_p3), %s8132_s29, 128, %s8134_s23, [#allocation5]  }
 0x5e1   : > { %13595 = dma.done.wait (%p13227_p3), [#allocation5], 128  }
 0x5e2   : > { %13597 = vsyncadd (%p13227_p3), [#allocation5], 4294967168 }
 0x5e3 PF: > { %p23_p4 = scmp.ge.s32.totalorder %s13732_s21, 4   ;;  %s15356_s24 = smov %s13604_s25 }
 0x5e4   : > { %s15357_s25 = smov %s13608_s26  ;;  %s15358_s26 = smov %s13743_s28 }
 0x5e5   : > { %s15359_s27 = smov %s13732_s21  ;;  %25 = sbr.rel (!%p23_p4) target bundleno = 12 (0xc), region = 126 }
 0x5ea   :  { %8147 = vsyncpa [#allocation4], 1 }
 0x5eb   :  { %8149 = vsyncpa [#allocation4 + $0x1], 1 }
 0x5ec   :  { %8150 = vsyncpa [#allocation7], 1 }
 0x5ed   :  { %8152 = vsyncpa [#allocation7 + $0x1], 1 }
 0x5ee   :  { %8153 = vsyncpa [#allocation10], 1 }
 0x5ef   :  { %8154 = vsyncpa [#allocation13], 1 }
 0x5f0   :  { %8155 = vsyncpa [#allocation5], 1 }
 0x5f1   :  { %8157 = vsyncpa [#allocation5 + $0x1], 1 }

</bundles_post_ra>
